<compile_context>
chip_gen: v5e
topology: v5e:2x2
jax: 0.10.0
libtpu: 0.0.40
codegen_flags: <defaults>
</compile_context>

<pallas_src>
import numpy as np
import jax
import jax.numpy as jnp
from jax import lax
from jax.experimental import pallas as pl
from jax.experimental.pallas import tpu as pltpu

K = 5      # Conv3d kernel_size
PAD = 2    # Conv3d padding


def _elu(y):
    # PyTorch nn.ELU(alpha=1.0); exp(min(y,0)) avoids inf on the positive branch.
    return jnp.where(y > 0, y, jnp.exp(jnp.minimum(y, 0.0)) - 1.0)


# ---------------------------------------------------------------------------
# Fused kernel: conv1 + BN1 + ELU -> (VMEM) -> conv2 + BN2 + residual + ELU
# ---------------------------------------------------------------------------
def res_lu_conv_kernel(x_ref, tw1_ref, s1_ref, b1_ref, tw2_ref, s2_ref, b2_ref,
                       out_ref, xs_ref):
    NB, D, H, WC = x_ref.shape           # (batch-tile, D, H, W*C); WC = 128 lanes
    Dp = D + 2 * PAD
    KWC = K * WC                          # kh folded into the contraction: 640
    M = NB * D * H                        # matmul rows: 128

    # --- zero ONLY the never-written cells of the staging buffer, once per step
    halo = jnp.zeros((NB, PAD, H, KWC), xs_ref.dtype)
    xs_ref[:, 0:PAD] = halo                       # kd halo planes (top)
    xs_ref[:, PAD + D:Dp] = halo                  # kd halo planes (bottom)
    for kh in range(K):                           # h-edge strips per kh block
        s = kh - PAD
        if s < 0:
            xs_ref[:, PAD:PAD + D, 0:-s, kh * WC:(kh + 1) * WC] = \
                jnp.zeros((NB, D, -s, WC), xs_ref.dtype)
        elif s > 0:
            xs_ref[:, PAD:PAD + D, H - s:H, kh * WC:(kh + 1) * WC] = \
                jnp.zeros((NB, D, s, WC), xs_ref.dtype)

    def stage(v):
        """Write v (NB,D,H,WC) into the staging buffer, kh-expanded along lanes:
        xs[n, PAD+d, h, kh*WC + l] = v[n, d, h+kh-PAD, l] (edges stay zero).
        5 shifted copies per conv instead of 25 misaligned per-tap slices."""
        for kh in range(K):
            s = kh - PAD
            lo, hi = max(0, -s), min(H, H - s)
            xs_ref[:, PAD:PAD + D, lo:hi, kh * WC:(kh + 1) * WC] = \
                v[:, :, lo + s:hi + s, :]

    def conv(tw_ref):
        """5 MXU matmuls (M, K*WC) @ (K*WC, WC): kh, kw and Cin all live in the
        contraction; the kd tap is a whole-tile slice along the (non-sublane)
        D axis.  Statically unrolled; bf16 operands, f32 accumulation."""
        acc = jnp.zeros((M, WC), jnp.float32)
        for kd in range(K):
            lhs = xs_ref[:, kd:kd + D].reshape(M, KWC).astype(jnp.bfloat16)
            acc = acc + jnp.dot(lhs, tw_ref[kd],
                                preferred_element_type=jnp.float32)
        return acc

    x = x_ref[...]                                       # (NB, D, H, WC) f32

    # ---- conv1 + folded BN1 + ELU (scale/shift are lane-dense (1, WC)) ----
    stage(x)
    out1 = _elu(conv(tw1_ref) * s1_ref[...] + b1_ref[...])

    # ---- conv2 + folded BN2 + residual(x, full f32) + ELU ----
    stage(out1.reshape(NB, D, H, WC))                    # out1 never leaves VMEM
    y2 = conv(tw2_ref) * s2_ref[...] + b2_ref[...] + x.reshape(M, WC)
    out_ref[...] = _elu(y2).reshape(NB, D, H, WC)        # lane-dense store


# ---------------------------------------------------------------------------
# Wrapper: layout plumbing (W*C lane packing, kh-folded block-Toeplitz weights,
# BN folding) + pallas_call.
# ---------------------------------------------------------------------------
def toeplitz_weight(w, Wd):
    """(K,K,K,Cin,Cout) -> (K, K*Wd*Cin, Wd*Cout): the kh tap, the kw shift and
    the input channel all become the MXU contraction dimension."""
    KD, KH, KW, Cin, Cout = w.shape
    t = jnp.zeros((KD, KH, Wd, Cin, Wd, Cout), w.dtype)
    for wo in range(Wd):
        for kw in range(KW):
            wi = wo + kw - PAD
            if 0 <= wi < Wd:
                t = t.at[:, :, wi, :, wo, :].set(w[:, :, kw, :, :])
    return t.reshape(KD, KH * Wd * Cin, Wd * Cout)


def res_lu_conv_block(x_ndhwc, tw1, s1, b1, tw2, s2, b2, nb=None):
    N, D, H, Wd, C = x_ndhwc.shape
    WC = Wd * C                                  # lane axis; 128 at W=8, C=16
    if nb is None:
        nb = max(1, min(N, pl.cdiv(128, D * H)))  # batch-tile so M = nb*D*H >= 128
        while N % nb:
            nb -= 1
    xr = x_ndhwc.reshape(N, D, H, WC)            # unpadded: halo built in-kernel

    def lane(v):                                 # per-channel -> per-lane (w*C + c)
        return jnp.tile(v.astype(jnp.float32), Wd).reshape(1, WC)

    # TODO(synk): add pipeline_mode=pl.Buffered(1) on the two (grid-constant)
    #             weight specs when C>=32 makes their double-buffer footprint matter.
    out = pl.pallas_call(
        res_lu_conv_kernel,
        out_shape=jax.ShapeDtypeStruct((N, D, H, WC), jnp.float32),
        grid=(N // nb,),
        in_specs=[
            pl.BlockSpec((nb, D, H, WC), lambda i: (i, 0, 0, 0)),      # x (unpadded)
            pl.BlockSpec((K, K * WC, WC), lambda i: (0, 0, 0)),        # Toeplitz w1 (bf16)
            pl.BlockSpec((1, WC), lambda i: (0, 0)),                   # scale1 (lane)
            pl.BlockSpec((1, WC), lambda i: (0, 0)),                   # shift1 (lane)
            pl.BlockSpec((K, K * WC, WC), lambda i: (0, 0, 0)),        # Toeplitz w2 (bf16)
            pl.BlockSpec((1, WC), lambda i: (0, 0)),                   # scale2
            pl.BlockSpec((1, WC), lambda i: (0, 0)),                   # shift2
        ],
        out_specs=pl.BlockSpec((nb, D, H, WC), lambda i: (i, 0, 0, 0)),
        scratch_shapes=[pltpu.VMEM((nb, D + 2 * PAD, H, K * WC), jnp.float32)],
        compiler_params=pltpu.CompilerParams(
            dimension_semantics=("parallel",)),
    )(xr, tw1, lane(s1), lane(b1), tw2, lane(s2), lane(b2))
    return out.reshape(N, D, H, Wd, C)


def res_lu_conv_params(key, nchan):
    """Deterministic synthetic parameters matching nn.Conv3d / nn.BatchNorm3d shapes.
    Conv weights are (KD,KH,KW,Cin,Cout); PyTorch's (Cout,Cin,KD,KH,KW) maps via
    transpose(2,3,4,1,0)."""
    ks = jax.random.split(key, 10)
    fan_in = nchan * K ** 3
    bound = 1.0 / np.sqrt(fan_in)
    p = {}
    p["w1"] = jax.random.uniform(ks[0], (K, K, K, nchan, nchan), jnp.float32, -bound, bound)
    p["b1"] = jax.random.uniform(ks[1], (nchan,), jnp.float32, -bound, bound)
    p["w2"] = jax.random.uniform(ks[2], (K, K, K, nchan, nchan), jnp.float32, -bound, bound)
    p["b2"] = jax.random.uniform(ks[3], (nchan,), jnp.float32, -bound, bound)
    for i, kk in zip((1, 2), (ks[4:7], ks[7:10])):
        p[f"gamma{i}"] = jax.random.uniform(kk[0], (nchan,), jnp.float32, 0.5, 1.5)
        p[f"beta{i}"] = jax.random.uniform(kk[1], (nchan,), jnp.float32, -0.5, 0.5)
        p[f"mean{i}"] = 0.1 * jax.random.normal(kk[2], (nchan,), jnp.float32)
        p[f"var{i}"] = jnp.ones((nchan,), jnp.float32) * 0.9
    return p


def res_lu_conv_forward(params, x_ndhwc):
    """ResLUConv.forward (eval-mode BN + conv bias folded into scale/shift)."""
    eps = 1e-5
    Wd = x_ndhwc.shape[3]
    s1 = params["gamma1"] * lax.rsqrt(params["var1"] + eps)
    t1 = params["b1"] * s1 + params["beta1"] - params["mean1"] * s1
    s2 = params["gamma2"] * lax.rsqrt(params["var2"] + eps)
    t2 = params["b2"] * s2 + params["beta2"] - params["mean2"] * s2
    tw1 = toeplitz_weight(params["w1"], Wd).astype(jnp.bfloat16)   # bf16 MXU operands
    tw2 = toeplitz_weight(params["w2"], Wd).astype(jnp.bfloat16)
    return res_lu_conv_block(x_ndhwc, tw1, s1, t1, tw2, s2, t2)


# ---------------------------------------------------------------------------
# Pure-JAX f32 reference (lax.conv_general_dilated) for validation.
# ---------------------------------------------------------------------------
def ref_forward(params, x_ndhwc):
    eps = 1e-5

    def conv(x, w, b):
        y = lax.conv_general_dilated(
            x, w, (1, 1, 1), [(PAD, PAD)] * 3,
            dimension_numbers=("NDHWC", "DHWIO", "NDHWC"),
            precision=lax.Precision.HIGHEST)
        return y + b

    def bn(y, i):
        return ((y - params[f"mean{i}"]) * lax.rsqrt(params[f"var{i}"] + eps)
                * params[f"gamma{i}"] + params[f"beta{i}"])

    y1 = _elu(bn(conv(x_ndhwc, params["w1"], params["b1"]), 1))
    y2 = _elu(bn(conv(y1, params["w2"], params["b2"]), 2) + x_ndhwc)
    return y2


if __name__ == "__main__":
    # ResLUConv(nchan=16) (VNet's 16-ch level) on a 4 x 16 x 8^3 volume.
    # W*C = 128 -> lane axis one full vreg; 2 batches per grid step -> M = 128,
    # and 2 parallel grid steps keep both v7x TensorCores busy.
    N, C, D, H, W = 4, 16, 8, 8, 8
    key = jax.random.PRNGKey(0)
    pkey, xkey = jax.random.split(key)
    params = res_lu_conv_params(pkey, C)

    # PyTorch-style NCDHW input, transposed to the kernel's channels-last layout.
    x_ncdhw = jax.random.normal(xkey, (N, C, D, H, W), jnp.float32)
    x = jnp.transpose(x_ncdhw, (0, 2, 3, 4, 1))

    out = jax.block_until_ready(res_lu_conv_forward(params, x))

    ref = ref_forward(params, x)
    # Tolerance reflects bf16 MXU operands (f32 accumulation) vs. the f32 reference.
    np.testing.assert_allclose(np.asarray(out), np.asarray(ref), atol=3e-2, rtol=3e-2)
    print("KERNEL_OK")
</pallas_src>

<mosaic_0001>
module attributes {stable_mosaic.version = 11 : i64} {
  func.func @res_lu_conv_kernel(%arg0: i32, %arg1: memref<2x8x8x128xf32, #tpu.memory_space<vmem>>, %arg2: memref<5x640x128xbf16, #tpu.memory_space<vmem>>, %arg3: memref<1x128xf32, #tpu.memory_space<vmem>>, %arg4: memref<1x128xf32, #tpu.memory_space<vmem>>, %arg5: memref<5x640x128xbf16, #tpu.memory_space<vmem>>, %arg6: memref<1x128xf32, #tpu.memory_space<vmem>>, %arg7: memref<1x128xf32, #tpu.memory_space<vmem>>, %arg8: memref<2x8x8x128xf32, #tpu.memory_space<vmem>>, %arg9: memref<2x12x8x640xf32, #tpu.memory_space<vmem>>) attributes {dimension_semantics = [#tpu.dimension_semantics<parallel>], iteration_bounds = array<i64: 2>, scalar_prefetch = 0 : i64, scratch_operands = 1 : i64, tpu.core_type = #tpu.core_type<tc>, window_params = [{transform_indices = @transform_0, window_bounds = array<i64: 2, 8, 8, 128>}, {pipeline_mode = #tpu.pipeline_mode<synchronous>, transform_indices = @transform_1, window_bounds = array<i64: 5, 640, 128>}, {pipeline_mode = #tpu.pipeline_mode<synchronous>, transform_indices = @transform_2, window_bounds = array<i64: 1, 128>}, {pipeline_mode = #tpu.pipeline_mode<synchronous>, transform_indices = @transform_3, window_bounds = array<i64: 1, 128>}, {pipeline_mode = #tpu.pipeline_mode<synchronous>, transform_indices = @transform_4, window_bounds = array<i64: 5, 640, 128>}, {pipeline_mode = #tpu.pipeline_mode<synchronous>, transform_indices = @transform_5, window_bounds = array<i64: 1, 128>}, {pipeline_mode = #tpu.pipeline_mode<synchronous>, transform_indices = @transform_6, window_bounds = array<i64: 1, 128>}, {transform_indices = @transform_7, window_bounds = array<i64: 2, 8, 8, 128>}]} {
    %cst = arith.constant 0.000000e+00 : f32
    %0 = vector.broadcast %cst : f32 to vector<2x2x8x640xf32>
    %c0 = arith.constant 0 : index
    %c0_0 = arith.constant 0 : index
    %c0_1 = arith.constant 0 : index
    %c0_2 = arith.constant 0 : index
    %1 = vector.load %arg9[%c0, %c0_0, %c0_1, %c0_2] : memref<2x12x8x640xf32, #tpu.memory_space<vmem>>, vector<2x2x8x640xf32>
    tpu.vector_store %arg9[%c0, %c0_0, %c0_1, %c0_2], %0 {strides = array<i32>} : memref<2x12x8x640xf32, #tpu.memory_space<vmem>>, vector<2x2x8x640xf32>,
    %c0_3 = arith.constant 0 : index
    %c10 = arith.constant 10 : index
    %c0_4 = arith.constant 0 : index
    %c0_5 = arith.constant 0 : index
    %2 = vector.load %arg9[%c0_3, %c10, %c0_4, %c0_5] : memref<2x12x8x640xf32, #tpu.memory_space<vmem>>, vector<2x2x8x640xf32>
    tpu.vector_store %arg9[%c0_3, %c10, %c0_4, %c0_5], %0 {strides = array<i32>} : memref<2x12x8x640xf32, #tpu.memory_space<vmem>>, vector<2x2x8x640xf32>,
    %cst_6 = arith.constant 0.000000e+00 : f32
    %3 = vector.broadcast %cst_6 : f32 to vector<2x8x2x128xf32>
    %c0_7 = arith.constant 0 : index
    %c2 = arith.constant 2 : index
    %c0_8 = arith.constant 0 : index
    %c0_9 = arith.constant 0 : index
    %4 = vector.load %arg9[%c0_7, %c2, %c0_8, %c0_9] : memref<2x12x8x640xf32, #tpu.memory_space<vmem>>, vector<2x8x2x128xf32>
    tpu.vector_store %arg9[%c0_7, %c2, %c0_8, %c0_9], %3 {strides = array<i32>} : memref<2x12x8x640xf32, #tpu.memory_space<vmem>>, vector<2x8x2x128xf32>,
    %cst_10 = arith.constant 0.000000e+00 : f32
    %5 = vector.broadcast %cst_10 : f32 to vector<2x8x1x128xf32>
    %c0_11 = arith.constant 0 : index
    %c2_12 = arith.constant 2 : index
    %c0_13 = arith.constant 0 : index
    %c128 = arith.constant 128 : index
    %6 = vector.load %arg9[%c0_11, %c2_12, %c0_13, %c128] : memref<2x12x8x640xf32, #tpu.memory_space<vmem>>, vector<2x8x1x128xf32>
    tpu.vector_store %arg9[%c0_11, %c2_12, %c0_13, %c128], %5 {strides = array<i32>} : memref<2x12x8x640xf32, #tpu.memory_space<vmem>>, vector<2x8x1x128xf32>,
    %cst_14 = arith.constant 0.000000e+00 : f32
    %7 = vector.broadcast %cst_14 : f32 to vector<2x8x1x128xf32>
    %c0_15 = arith.constant 0 : index
    %c2_16 = arith.constant 2 : index
    %c7 = arith.constant 7 : index
    %c384 = arith.constant 384 : index
    %8 = vector.load %arg9[%c0_15, %c2_16, %c7, %c384] : memref<2x12x8x640xf32, #tpu.memory_space<vmem>>, vector<2x8x1x128xf32>
    tpu.vector_store %arg9[%c0_15, %c2_16, %c7, %c384], %7 {strides = array<i32>} : memref<2x12x8x640xf32, #tpu.memory_space<vmem>>, vector<2x8x1x128xf32>,
    %cst_17 = arith.constant 0.000000e+00 : f32
    %9 = vector.broadcast %cst_17 : f32 to vector<2x8x2x128xf32>
    %c0_18 = arith.constant 0 : index
    %c2_19 = arith.constant 2 : index
    %c6 = arith.constant 6 : index
    %c512 = arith.constant 512 : index
    %10 = vector.load %arg9[%c0_18, %c2_19, %c6, %c512] : memref<2x12x8x640xf32, #tpu.memory_space<vmem>>, vector<2x8x2x128xf32>
    tpu.vector_store %arg9[%c0_18, %c2_19, %c6, %c512], %9 {strides = array<i32>} : memref<2x12x8x640xf32, #tpu.memory_space<vmem>>, vector<2x8x2x128xf32>,
    %c0_20 = arith.constant 0 : index
    %c0_21 = arith.constant 0 : index
    %c0_22 = arith.constant 0 : index
    %c0_23 = arith.constant 0 : index
    %11 = vector.load %arg1[%c0_20, %c0_21, %c0_22, %c0_23] : memref<2x8x8x128xf32, #tpu.memory_space<vmem>>, vector<2x8x8x128xf32>
    %12 = vector.extract_strided_slice %11 {offsets = [0, 0, 0, 0], sizes = [2, 8, 6, 128], strides = [1, 1, 1, 1]} : vector<2x8x8x128xf32> to vector<2x8x6x128xf32>
    %c0_24 = arith.constant 0 : index
    %c2_25 = arith.constant 2 : index
    %c2_26 = arith.constant 2 : index
    %c0_27 = arith.constant 0 : index
    %13 = vector.load %arg9[%c0_24, %c2_25, %c2_26, %c0_27] : memref<2x12x8x640xf32, #tpu.memory_space<vmem>>, vector<2x8x6x128xf32>
    tpu.vector_store %arg9[%c0_24, %c2_25, %c2_26, %c0_27], %12 {strides = array<i32>} : memref<2x12x8x640xf32, #tpu.memory_space<vmem>>, vector<2x8x6x128xf32>,
    %14 = vector.extract_strided_slice %11 {offsets = [0, 0, 0, 0], sizes = [2, 8, 7, 128], strides = [1, 1, 1, 1]} : vector<2x8x8x128xf32> to vector<2x8x7x128xf32>
    %c0_28 = arith.constant 0 : index
    %c2_29 = arith.constant 2 : index
    %c1 = arith.constant 1 : index
    %c128_30 = arith.constant 128 : index
    %15 = vector.load %arg9[%c0_28, %c2_29, %c1, %c128_30] : memref<2x12x8x640xf32, #tpu.memory_space<vmem>>, vector<2x8x7x128xf32>
    tpu.vector_store %arg9[%c0_28, %c2_29, %c1, %c128_30], %14 {strides = array<i32>} : memref<2x12x8x640xf32, #tpu.memory_space<vmem>>, vector<2x8x7x128xf32>,
    %c0_31 = arith.constant 0 : index
    %c2_32 = arith.constant 2 : index
    %c0_33 = arith.constant 0 : index
    %c256 = arith.constant 256 : index
    %16 = vector.load %arg9[%c0_31, %c2_32, %c0_33, %c256] : memref<2x12x8x640xf32, #tpu.memory_space<vmem>>, vector<2x8x8x128xf32>
    tpu.vector_store %arg9[%c0_31, %c2_32, %c0_33, %c256], %11 {strides = array<i32>} : memref<2x12x8x640xf32, #tpu.memory_space<vmem>>, vector<2x8x8x128xf32>,
    %17 = vector.extract_strided_slice %11 {offsets = [0, 0, 1, 0], sizes = [2, 8, 7, 128], strides = [1, 1, 1, 1]} : vector<2x8x8x128xf32> to vector<2x8x7x128xf32>
    %c0_34 = arith.constant 0 : index
    %c2_35 = arith.constant 2 : index
    %c0_36 = arith.constant 0 : index
    %c384_37 = arith.constant 384 : index
    %18 = vector.load %arg9[%c0_34, %c2_35, %c0_36, %c384_37] : memref<2x12x8x640xf32, #tpu.memory_space<vmem>>, vector<2x8x7x128xf32>
    tpu.vector_store %arg9[%c0_34, %c2_35, %c0_36, %c384_37], %17 {strides = array<i32>} : memref<2x12x8x640xf32, #tpu.memory_space<vmem>>, vector<2x8x7x128xf32>,
    %19 = vector.extract_strided_slice %11 {offsets = [0, 0, 2, 0], sizes = [2, 8, 6, 128], strides = [1, 1, 1, 1]} : vector<2x8x8x128xf32> to vector<2x8x6x128xf32>
    %c0_38 = arith.constant 0 : index
    %c2_39 = arith.constant 2 : index
    %c0_40 = arith.constant 0 : index
    %c512_41 = arith.constant 512 : index
    %20 = vector.load %arg9[%c0_38, %c2_39, %c0_40, %c512_41] : memref<2x12x8x640xf32, #tpu.memory_space<vmem>>, vector<2x8x6x128xf32>
    tpu.vector_store %arg9[%c0_38, %c2_39, %c0_40, %c512_41], %19 {strides = array<i32>} : memref<2x12x8x640xf32, #tpu.memory_space<vmem>>, vector<2x8x6x128xf32>,
    %cst_42 = arith.constant 0.000000e+00 : f32
    %21 = vector.broadcast %cst_42 : f32 to vector<128x128xf32>
    %c0_43 = arith.constant 0 : index
    %c0_44 = arith.constant 0 : index
    %c0_45 = arith.constant 0 : index
    %c0_46 = arith.constant 0 : index
    %22 = vector.load %arg9[%c0_43, %c0_44, %c0_45, %c0_46] : memref<2x12x8x640xf32, #tpu.memory_space<vmem>>, vector<2x8x8x640xf32>
    %23 = vector.shape_cast %22 : vector<2x8x8x640xf32> to vector<128x640xf32>
    %24 = arith.truncf %23 : vector<128x640xf32> to vector<128x640xbf16>
    %c0_47 = arith.constant 0 : index
    %c0_48 = arith.constant 0 : index
    %c0_49 = arith.constant 0 : index
    %25 = vector.load %arg2[%c0_47, %c0_48, %c0_49] : memref<5x640x128xbf16, #tpu.memory_space<vmem>>, vector<1x640x128xbf16>
    %26 = vector.shape_cast %25 : vector<1x640x128xbf16> to vector<640x128xbf16>
    %cst_50 = arith.constant dense<0.000000e+00> : vector<128x128xf32>
    %27 = tpu.matmul %24, %26, %cst_50 {dimension_numbers = #tpu.dot_dimension_numbers<[1], [0], [0], [1], [0, 0, 1, 1], [], []>} : vector<128x640xbf16>, vector<640x128xbf16>, vector<128x128xf32> -> vector<128x128xf32>
    %28 = arith.addf %21, %27 : vector<128x128xf32>
    %c0_51 = arith.constant 0 : index
    %c1_52 = arith.constant 1 : index
    %c0_53 = arith.constant 0 : index
    %c0_54 = arith.constant 0 : index
    %29 = vector.load %arg9[%c0_51, %c1_52, %c0_53, %c0_54] : memref<2x12x8x640xf32, #tpu.memory_space<vmem>>, vector<2x8x8x640xf32>
    %30 = vector.shape_cast %29 : vector<2x8x8x640xf32> to vector<128x640xf32>
    %31 = arith.truncf %30 : vector<128x640xf32> to vector<128x640xbf16>
    %c1_55 = arith.constant 1 : index
    %c0_56 = arith.constant 0 : index
    %c0_57 = arith.constant 0 : index
    %32 = vector.load %arg2[%c1_55, %c0_56, %c0_57] : memref<5x640x128xbf16, #tpu.memory_space<vmem>>, vector<1x640x128xbf16>
    %33 = vector.shape_cast %32 : vector<1x640x128xbf16> to vector<640x128xbf16>
    %cst_58 = arith.constant dense<0.000000e+00> : vector<128x128xf32>
    %34 = tpu.matmul %31, %33, %cst_58 {dimension_numbers = #tpu.dot_dimension_numbers<[1], [0], [0], [1], [0, 0, 1, 1], [], []>} : vector<128x640xbf16>, vector<640x128xbf16>, vector<128x128xf32> -> vector<128x128xf32>
    %35 = arith.addf %28, %34 : vector<128x128xf32>
    %c0_59 = arith.constant 0 : index
    %c2_60 = arith.constant 2 : index
    %c0_61 = arith.constant 0 : index
    %c0_62 = arith.constant 0 : index
    %36 = vector.load %arg9[%c0_59, %c2_60, %c0_61, %c0_62] : memref<2x12x8x640xf32, #tpu.memory_space<vmem>>, vector<2x8x8x640xf32>
    %37 = vector.shape_cast %36 : vector<2x8x8x640xf32> to vector<128x640xf32>
    %38 = arith.truncf %37 : vector<128x640xf32> to vector<128x640xbf16>
    %c2_63 = arith.constant 2 : index
    %c0_64 = arith.constant 0 : index
    %c0_65 = arith.constant 0 : index
    %39 = vector.load %arg2[%c2_63, %c0_64, %c0_65] : memref<5x640x128xbf16, #tpu.memory_space<vmem>>, vector<1x640x128xbf16>
    %40 = vector.shape_cast %39 : vector<1x640x128xbf16> to vector<640x128xbf16>
    %cst_66 = arith.constant dense<0.000000e+00> : vector<128x128xf32>
    %41 = tpu.matmul %38, %40, %cst_66 {dimension_numbers = #tpu.dot_dimension_numbers<[1], [0], [0], [1], [0, 0, 1, 1], [], []>} : vector<128x640xbf16>, vector<640x128xbf16>, vector<128x128xf32> -> vector<128x128xf32>
    %42 = arith.addf %35, %41 : vector<128x128xf32>
    %c0_67 = arith.constant 0 : index
    %c3 = arith.constant 3 : index
    %c0_68 = arith.constant 0 : index
    %c0_69 = arith.constant 0 : index
    %43 = vector.load %arg9[%c0_67, %c3, %c0_68, %c0_69] : memref<2x12x8x640xf32, #tpu.memory_space<vmem>>, vector<2x8x8x640xf32>
    %44 = vector.shape_cast %43 : vector<2x8x8x640xf32> to vector<128x640xf32>
    %45 = arith.truncf %44 : vector<128x640xf32> to vector<128x640xbf16>
    %c3_70 = arith.constant 3 : index
    %c0_71 = arith.constant 0 : index
    %c0_72 = arith.constant 0 : index
    %46 = vector.load %arg2[%c3_70, %c0_71, %c0_72] : memref<5x640x128xbf16, #tpu.memory_space<vmem>>, vector<1x640x128xbf16>
    %47 = vector.shape_cast %46 : vector<1x640x128xbf16> to vector<640x128xbf16>
    %cst_73 = arith.constant dense<0.000000e+00> : vector<128x128xf32>
    %48 = tpu.matmul %45, %47, %cst_73 {dimension_numbers = #tpu.dot_dimension_numbers<[1], [0], [0], [1], [0, 0, 1, 1], [], []>} : vector<128x640xbf16>, vector<640x128xbf16>, vector<128x128xf32> -> vector<128x128xf32>
    %49 = arith.addf %42, %48 : vector<128x128xf32>
    %c0_74 = arith.constant 0 : index
    %c4 = arith.constant 4 : index
    %c0_75 = arith.constant 0 : index
    %c0_76 = arith.constant 0 : index
    %50 = vector.load %arg9[%c0_74, %c4, %c0_75, %c0_76] : memref<2x12x8x640xf32, #tpu.memory_space<vmem>>, vector<2x8x8x640xf32>
    %51 = vector.shape_cast %50 : vector<2x8x8x640xf32> to vector<128x640xf32>
    %52 = arith.truncf %51 : vector<128x640xf32> to vector<128x640xbf16>
    %c4_77 = arith.constant 4 : index
    %c0_78 = arith.constant 0 : index
    %c0_79 = arith.constant 0 : index
    %53 = vector.load %arg2[%c4_77, %c0_78, %c0_79] : memref<5x640x128xbf16, #tpu.memory_space<vmem>>, vector<1x640x128xbf16>
    %54 = vector.shape_cast %53 : vector<1x640x128xbf16> to vector<640x128xbf16>
    %cst_80 = arith.constant dense<0.000000e+00> : vector<128x128xf32>
    %55 = tpu.matmul %52, %54, %cst_80 {dimension_numbers = #tpu.dot_dimension_numbers<[1], [0], [0], [1], [0, 0, 1, 1], [], []>} : vector<128x640xbf16>, vector<640x128xbf16>, vector<128x128xf32> -> vector<128x128xf32>
    %56 = arith.addf %49, %55 : vector<128x128xf32>
    %c0_81 = arith.constant 0 : index
    %c0_82 = arith.constant 0 : index
    %57 = vector.load %arg3[%c0_81, %c0_82] : memref<1x128xf32, #tpu.memory_space<vmem>>, vector<1x128xf32>
    %58 = vector.broadcast %57 : vector<1x128xf32> to vector<128x128xf32>
    %59 = arith.mulf %56, %58 : vector<128x128xf32>
    %c0_83 = arith.constant 0 : index
    %c0_84 = arith.constant 0 : index
    %60 = vector.load %arg4[%c0_83, %c0_84] : memref<1x128xf32, #tpu.memory_space<vmem>>, vector<1x128xf32>
    %61 = vector.broadcast %60 : vector<1x128xf32> to vector<128x128xf32>
    %62 = arith.addf %59, %61 : vector<128x128xf32>
    %cst_85 = arith.constant 0.000000e+00 : f32
    %63 = vector.broadcast %cst_85 : f32 to vector<128x128xf32>
    %64 = arith.cmpf ogt, %62, %63 : vector<128x128xf32>
    %cst_86 = arith.constant 0.000000e+00 : f32
    %65 = vector.broadcast %cst_86 : f32 to vector<128x128xf32>
    %66 = arith.minimumf %62, %65 : vector<128x128xf32>
    %67 = math.exp %66 : vector<128x128xf32>
    %cst_87 = arith.constant 1.000000e+00 : f32
    %68 = vector.broadcast %cst_87 : f32 to vector<128x128xf32>
    %69 = arith.subf %67, %68 : vector<128x128xf32>
    %70 = arith.select %64, %62, %69 : vector<128x128xi1>, vector<128x128xf32>
    %71 = vector.shape_cast %70 : vector<128x128xf32> to vector<2x8x8x128xf32>
    %72 = vector.extract_strided_slice %71 {offsets = [0, 0, 0, 0], sizes = [2, 8, 6, 128], strides = [1, 1, 1, 1]} : vector<2x8x8x128xf32> to vector<2x8x6x128xf32>
    %c0_88 = arith.constant 0 : index
    %c2_89 = arith.constant 2 : index
    %c2_90 = arith.constant 2 : index
    %c0_91 = arith.constant 0 : index
    %73 = vector.load %arg9[%c0_88, %c2_89, %c2_90, %c0_91] : memref<2x12x8x640xf32, #tpu.memory_space<vmem>>, vector<2x8x6x128xf32>
    tpu.vector_store %arg9[%c0_88, %c2_89, %c2_90, %c0_91], %72 {strides = array<i32>} : memref<2x12x8x640xf32, #tpu.memory_space<vmem>>, vector<2x8x6x128xf32>,
    %74 = vector.extract_strided_slice %71 {offsets = [0, 0, 0, 0], sizes = [2, 8, 7, 128], strides = [1, 1, 1, 1]} : vector<2x8x8x128xf32> to vector<2x8x7x128xf32>
    %c0_92 = arith.constant 0 : index
    %c2_93 = arith.constant 2 : index
    %c1_94 = arith.constant 1 : index
    %c128_95 = arith.constant 128 : index
    %75 = vector.load %arg9[%c0_92, %c2_93, %c1_94, %c128_95] : memref<2x12x8x640xf32, #tpu.memory_space<vmem>>, vector<2x8x7x128xf32>
    tpu.vector_store %arg9[%c0_92, %c2_93, %c1_94, %c128_95], %74 {strides = array<i32>} : memref<2x12x8x640xf32, #tpu.memory_space<vmem>>, vector<2x8x7x128xf32>,
    %c0_96 = arith.constant 0 : index
    %c2_97 = arith.constant 2 : index
    %c0_98 = arith.constant 0 : index
    %c256_99 = arith.constant 256 : index
    %76 = vector.load %arg9[%c0_96, %c2_97, %c0_98, %c256_99] : memref<2x12x8x640xf32, #tpu.memory_space<vmem>>, vector<2x8x8x128xf32>
    tpu.vector_store %arg9[%c0_96, %c2_97, %c0_98, %c256_99], %71 {strides = array<i32>} : memref<2x12x8x640xf32, #tpu.memory_space<vmem>>, vector<2x8x8x128xf32>,
    %77 = vector.extract_strided_slice %71 {offsets = [0, 0, 1, 0], sizes = [2, 8, 7, 128], strides = [1, 1, 1, 1]} : vector<2x8x8x128xf32> to vector<2x8x7x128xf32>
    %c0_100 = arith.constant 0 : index
    %c2_101 = arith.constant 2 : index
    %c0_102 = arith.constant 0 : index
    %c384_103 = arith.constant 384 : index
    %78 = vector.load %arg9[%c0_100, %c2_101, %c0_102, %c384_103] : memref<2x12x8x640xf32, #tpu.memory_space<vmem>>, vector<2x8x7x128xf32>
    tpu.vector_store %arg9[%c0_100, %c2_101, %c0_102, %c384_103], %77 {strides = array<i32>} : memref<2x12x8x640xf32, #tpu.memory_space<vmem>>, vector<2x8x7x128xf32>,
    %79 = vector.extract_strided_slice %71 {offsets = [0, 0, 2, 0], sizes = [2, 8, 6, 128], strides = [1, 1, 1, 1]} : vector<2x8x8x128xf32> to vector<2x8x6x128xf32>
    %c0_104 = arith.constant 0 : index
    %c2_105 = arith.constant 2 : index
    %c0_106 = arith.constant 0 : index
    %c512_107 = arith.constant 512 : index
    %80 = vector.load %arg9[%c0_104, %c2_105, %c0_106, %c512_107] : memref<2x12x8x640xf32, #tpu.memory_space<vmem>>, vector<2x8x6x128xf32>
    tpu.vector_store %arg9[%c0_104, %c2_105, %c0_106, %c512_107], %79 {strides = array<i32>} : memref<2x12x8x640xf32, #tpu.memory_space<vmem>>, vector<2x8x6x128xf32>,
    %cst_108 = arith.constant 0.000000e+00 : f32
    %81 = vector.broadcast %cst_108 : f32 to vector<128x128xf32>
    %c0_109 = arith.constant 0 : index
    %c0_110 = arith.constant 0 : index
    %c0_111 = arith.constant 0 : index
    %c0_112 = arith.constant 0 : index
    %82 = vector.load %arg9[%c0_109, %c0_110, %c0_111, %c0_112] : memref<2x12x8x640xf32, #tpu.memory_space<vmem>>, vector<2x8x8x640xf32>
    %83 = vector.shape_cast %82 : vector<2x8x8x640xf32> to vector<128x640xf32>
    %84 = arith.truncf %83 : vector<128x640xf32> to vector<128x640xbf16>
    %c0_113 = arith.constant 0 : index
    %c0_114 = arith.constant 0 : index
    %c0_115 = arith.constant 0 : index
    %85 = vector.load %arg5[%c0_113, %c0_114, %c0_115] : memref<5x640x128xbf16, #tpu.memory_space<vmem>>, vector<1x640x128xbf16>
    %86 = vector.shape_cast %85 : vector<1x640x128xbf16> to vector<640x128xbf16>
    %cst_116 = arith.constant dense<0.000000e+00> : vector<128x128xf32>
    %87 = tpu.matmul %84, %86, %cst_116 {dimension_numbers = #tpu.dot_dimension_numbers<[1], [0], [0], [1], [0, 0, 1, 1], [], []>} : vector<128x640xbf16>, vector<640x128xbf16>, vector<128x128xf32> -> vector<128x128xf32>
    %88 = arith.addf %81, %87 : vector<128x128xf32>
    %c0_117 = arith.constant 0 : index
    %c1_118 = arith.constant 1 : index
    %c0_119 = arith.constant 0 : index
    %c0_120 = arith.constant 0 : index
    %89 = vector.load %arg9[%c0_117, %c1_118, %c0_119, %c0_120] : memref<2x12x8x640xf32, #tpu.memory_space<vmem>>, vector<2x8x8x640xf32>
    %90 = vector.shape_cast %89 : vector<2x8x8x640xf32> to vector<128x640xf32>
    %91 = arith.truncf %90 : vector<128x640xf32> to vector<128x640xbf16>
    %c1_121 = arith.constant 1 : index
    %c0_122 = arith.constant 0 : index
    %c0_123 = arith.constant 0 : index
    %92 = vector.load %arg5[%c1_121, %c0_122, %c0_123] : memref<5x640x128xbf16, #tpu.memory_space<vmem>>, vector<1x640x128xbf16>
    %93 = vector.shape_cast %92 : vector<1x640x128xbf16> to vector<640x128xbf16>
    %cst_124 = arith.constant dense<0.000000e+00> : vector<128x128xf32>
    %94 = tpu.matmul %91, %93, %cst_124 {dimension_numbers = #tpu.dot_dimension_numbers<[1], [0], [0], [1], [0, 0, 1, 1], [], []>} : vector<128x640xbf16>, vector<640x128xbf16>, vector<128x128xf32> -> vector<128x128xf32>
    %95 = arith.addf %88, %94 : vector<128x128xf32>
    %c0_125 = arith.constant 0 : index
    %c2_126 = arith.constant 2 : index
    %c0_127 = arith.constant 0 : index
    %c0_128 = arith.constant 0 : index
    %96 = vector.load %arg9[%c0_125, %c2_126, %c0_127, %c0_128] : memref<2x12x8x640xf32, #tpu.memory_space<vmem>>, vector<2x8x8x640xf32>
    %97 = vector.shape_cast %96 : vector<2x8x8x640xf32> to vector<128x640xf32>
    %98 = arith.truncf %97 : vector<128x640xf32> to vector<128x640xbf16>
    %c2_129 = arith.constant 2 : index
    %c0_130 = arith.constant 0 : index
    %c0_131 = arith.constant 0 : index
    %99 = vector.load %arg5[%c2_129, %c0_130, %c0_131] : memref<5x640x128xbf16, #tpu.memory_space<vmem>>, vector<1x640x128xbf16>
    %100 = vector.shape_cast %99 : vector<1x640x128xbf16> to vector<640x128xbf16>
    %cst_132 = arith.constant dense<0.000000e+00> : vector<128x128xf32>
    %101 = tpu.matmul %98, %100, %cst_132 {dimension_numbers = #tpu.dot_dimension_numbers<[1], [0], [0], [1], [0, 0, 1, 1], [], []>} : vector<128x640xbf16>, vector<640x128xbf16>, vector<128x128xf32> -> vector<128x128xf32>
    %102 = arith.addf %95, %101 : vector<128x128xf32>
    %c0_133 = arith.constant 0 : index
    %c3_134 = arith.constant 3 : index
    %c0_135 = arith.constant 0 : index
    %c0_136 = arith.constant 0 : index
    %103 = vector.load %arg9[%c0_133, %c3_134, %c0_135, %c0_136] : memref<2x12x8x640xf32, #tpu.memory_space<vmem>>, vector<2x8x8x640xf32>
    %104 = vector.shape_cast %103 : vector<2x8x8x640xf32> to vector<128x640xf32>
    %105 = arith.truncf %104 : vector<128x640xf32> to vector<128x640xbf16>
    %c3_137 = arith.constant 3 : index
    %c0_138 = arith.constant 0 : index
    %c0_139 = arith.constant 0 : index
    %106 = vector.load %arg5[%c3_137, %c0_138, %c0_139] : memref<5x640x128xbf16, #tpu.memory_space<vmem>>, vector<1x640x128xbf16>
    %107 = vector.shape_cast %106 : vector<1x640x128xbf16> to vector<640x128xbf16>
    %cst_140 = arith.constant dense<0.000000e+00> : vector<128x128xf32>
    %108 = tpu.matmul %105, %107, %cst_140 {dimension_numbers = #tpu.dot_dimension_numbers<[1], [0], [0], [1], [0, 0, 1, 1], [], []>} : vector<128x640xbf16>, vector<640x128xbf16>, vector<128x128xf32> -> vector<128x128xf32>
    %109 = arith.addf %102, %108 : vector<128x128xf32>
    %c0_141 = arith.constant 0 : index
    %c4_142 = arith.constant 4 : index
    %c0_143 = arith.constant 0 : index
    %c0_144 = arith.constant 0 : index
    %110 = vector.load %arg9[%c0_141, %c4_142, %c0_143, %c0_144] : memref<2x12x8x640xf32, #tpu.memory_space<vmem>>, vector<2x8x8x640xf32>
    %111 = vector.shape_cast %110 : vector<2x8x8x640xf32> to vector<128x640xf32>
    %112 = arith.truncf %111 : vector<128x640xf32> to vector<128x640xbf16>
    %c4_145 = arith.constant 4 : index
    %c0_146 = arith.constant 0 : index
    %c0_147 = arith.constant 0 : index
    %113 = vector.load %arg5[%c4_145, %c0_146, %c0_147] : memref<5x640x128xbf16, #tpu.memory_space<vmem>>, vector<1x640x128xbf16>
    %114 = vector.shape_cast %113 : vector<1x640x128xbf16> to vector<640x128xbf16>
    %cst_148 = arith.constant dense<0.000000e+00> : vector<128x128xf32>
    %115 = tpu.matmul %112, %114, %cst_148 {dimension_numbers = #tpu.dot_dimension_numbers<[1], [0], [0], [1], [0, 0, 1, 1], [], []>} : vector<128x640xbf16>, vector<640x128xbf16>, vector<128x128xf32> -> vector<128x128xf32>
    %116 = arith.addf %109, %115 : vector<128x128xf32>
    %c0_149 = arith.constant 0 : index
    %c0_150 = arith.constant 0 : index
    %117 = vector.load %arg6[%c0_149, %c0_150] : memref<1x128xf32, #tpu.memory_space<vmem>>, vector<1x128xf32>
    %118 = vector.broadcast %117 : vector<1x128xf32> to vector<128x128xf32>
    %119 = arith.mulf %116, %118 : vector<128x128xf32>
    %c0_151 = arith.constant 0 : index
    %c0_152 = arith.constant 0 : index
    %120 = vector.load %arg7[%c0_151, %c0_152] : memref<1x128xf32, #tpu.memory_space<vmem>>, vector<1x128xf32>
    %121 = vector.broadcast %120 : vector<1x128xf32> to vector<128x128xf32>
    %122 = arith.addf %119, %121 : vector<128x128xf32>
    %123 = vector.shape_cast %11 : vector<2x8x8x128xf32> to vector<128x128xf32>
    %124 = arith.addf %122, %123 : vector<128x128xf32>
    %cst_153 = arith.constant 0.000000e+00 : f32
    %125 = vector.broadcast %cst_153 : f32 to vector<128x128xf32>
    %126 = arith.cmpf ogt, %124, %125 : vector<128x128xf32>
    %cst_154 = arith.constant 0.000000e+00 : f32
    %127 = vector.broadcast %cst_154 : f32 to vector<128x128xf32>
    %128 = arith.minimumf %124, %127 : vector<128x128xf32>
    %129 = math.exp %128 : vector<128x128xf32>
    %cst_155 = arith.constant 1.000000e+00 : f32
    %130 = vector.broadcast %cst_155 : f32 to vector<128x128xf32>
    %131 = arith.subf %129, %130 : vector<128x128xf32>
    %132 = arith.select %126, %124, %131 : vector<128x128xi1>, vector<128x128xf32>
    %133 = vector.shape_cast %132 : vector<128x128xf32> to vector<2x8x8x128xf32>
    %c0_156 = arith.constant 0 : index
    %c0_157 = arith.constant 0 : index
    %c0_158 = arith.constant 0 : index
    %c0_159 = arith.constant 0 : index
    %134 = vector.load %arg8[%c0_156, %c0_157, %c0_158, %c0_159] : memref<2x8x8x128xf32, #tpu.memory_space<vmem>>, vector<2x8x8x128xf32>
    tpu.vector_store %arg8[%c0_156, %c0_157, %c0_158, %c0_159], %133 {strides = array<i32>} : memref<2x8x8x128xf32, #tpu.memory_space<vmem>>, vector<2x8x8x128xf32>,
    return
  }
  func.func @transform_0(%arg0: i32) -> (i32, i32, i32, i32) {
    %c0_i32 = arith.constant 0 : i32
    %c0_i32_0 = arith.constant 0 : i32
    %c0_i32_1 = arith.constant 0 : i32
    %c0_i32_2 = arith.constant 0 : i32
    return %arg0, %c0_i32, %c0_i32_0, %c0_i32_1 : i32, i32, i32, i32
  }
  func.func @transform_1(%arg0: i32) -> (i32, i32, i32) {
    %c0_i32 = arith.constant 0 : i32
    %c0_i32_0 = arith.constant 0 : i32
    %c0_i32_1 = arith.constant 0 : i32
    %c0_i32_2 = arith.constant 0 : i32
    return %c0_i32, %c0_i32_0, %c0_i32_1 : i32, i32, i32
  }
  func.func @transform_2(%arg0: i32) -> (i32, i32) {
    %c0_i32 = arith.constant 0 : i32
    %c0_i32_0 = arith.constant 0 : i32
    %c0_i32_1 = arith.constant 0 : i32
    return %c0_i32, %c0_i32_0 : i32, i32
  }
  func.func @transform_3(%arg0: i32) -> (i32, i32) {
    %c0_i32 = arith.constant 0 : i32
    %c0_i32_0 = arith.constant 0 : i32
    %c0_i32_1 = arith.constant 0 : i32
    return %c0_i32, %c0_i32_0 : i32, i32
  }
  func.func @transform_4(%arg0: i32) -> (i32, i32, i32) {
    %c0_i32 = arith.constant 0 : i32
    %c0_i32_0 = arith.constant 0 : i32
    %c0_i32_1 = arith.constant 0 : i32
    %c0_i32_2 = arith.constant 0 : i32
    return %c0_i32, %c0_i32_0, %c0_i32_1 : i32, i32, i32
  }
  func.func @transform_5(%arg0: i32) -> (i32, i32) {
    %c0_i32 = arith.constant 0 : i32
    %c0_i32_0 = arith.constant 0 : i32
    %c0_i32_1 = arith.constant 0 : i32
    return %c0_i32, %c0_i32_0 : i32, i32
  }
  func.func @transform_6(%arg0: i32) -> (i32, i32) {
    %c0_i32 = arith.constant 0 : i32
    %c0_i32_0 = arith.constant 0 : i32
    %c0_i32_1 = arith.constant 0 : i32
    return %c0_i32, %c0_i32_0 : i32, i32
  }
  func.func @transform_7(%arg0: i32) -> (i32, i32, i32, i32) {
    %c0_i32 = arith.constant 0 : i32
    %c0_i32_0 = arith.constant 0 : i32
    %c0_i32_1 = arith.constant 0 : i32
    %c0_i32_2 = arith.constant 0 : i32
    return %arg0, %c0_i32, %c0_i32_0, %c0_i32_1 : i32, i32, i32, i32
  }
}

</mosaic_0001>

<bundles_post_ra>
// kernel: tpu_custom_call.1
= control target key start
LH: loop header
LB: loop body
LE: loop exit
PB: predicated region body
PF: predicated region fallthrough
CT: control target
= control target key end

     0   :  { %s13141_s0 = inlined_call_operand.hbm [shape: f32[4,8,8,128], index: 0, kind: input, shape index: {}]   ;;  %s13142_s1 = inlined_call_operand.hbm [shape: bf16[5,640,128], index: 1, kind: input, shape index: {}]   ;;  %s13143_s2 = inlined_call_operand.vmem [shape: f32[1,128], index: 2, kind: input, shape index: {}]   ;;  %s13144_s3 = inlined_call_operand.vmem [shape: f32[1,128], index: 3, kind: input, shape index: {}]   ;;  %s13145_s4 = inlined_call_operand.hbm [shape: bf16[5,640,128], index: 4, kind: input, shape index: {}]   ;;  %s13146_s5 = inlined_call_operand.vmem [shape: f32[1,128], index: 5, kind: input, shape index: {}]   ;;  %s13147_s6 = inlined_call_operand.vmem [shape: f32[1,128], index: 6, kind: input, shape index: {}]   ;;  %s13148_s7 = inlined_call_operand.hbm [shape: f32[4,8,8,128], index: 7, kind: output, shape index: {}]  }
   0x1   :  { %13220 = sst [smem:[#allocation78_spill]] %s13142_s1 }
   0x2   :  { %12 = vsyncpa [#allocation4], 0 }
   0x3   :  { %14 = vsyncpa [#allocation4 + $0x1], 0 }
   0x4   :  { %15 = vsyncpa [#allocation7], 0 }
   0x5   :  { %16 = vsyncpa [#allocation5], 0 }
   0x6   :  { %18 = vsyncpa [#allocation5 + $0x1], 0  ;;  %s10766_s24 = smov 0   ;;  %s10768_s25 = smov 0  }
   0x7   :  { %s10770_s26 = smov 0   ;;  %s10772_s27 = smov 0  }
   0x8 LB: > { %s10787_s28 = sadd.s32 4294967295, %s10714_s27   ;;  %s8275_s29 = sadd.s32 4294967294, %s10714_s27   ;;  %s10714_s27 = sphi %s10772_s27, %s13424_s27   ;;  %s10710_s26 = sphi %s10770_s26, %s13423_s26   ;;  %s10706_s25 = sphi %s10768_s25, %s13422_s25   ;;  %s10702_s24 = sphi %s10766_s24, %s13421_s24  }
   0x9   : > { %p44_p0 = scmp.ne.s32.totalorder %s10706_s25, %s10702_s24  ;;  %p45_p1 = scmp.eq.s32.totalorder %s10787_s28, 0 }
   0xa   : > { %p194_p2 = scmp.eq.s32.totalorder %s10787_s28, 1  ;;  %p200_p3 = scmp.eq.s32.totalorder %s8275_s29, 1 }
   0xb   : > { %p10796_p4 = por %p45_p1, %p44_p0  ;;  %p8276_p5 = scmp.ge.s32.totalorder %s10714_s27, 1 }
   0xc   : > { %p10801_p6 = por %p200_p3, %p44_p0  ;;  %p207_p7 = scmp.lt.s32.totalorder %s10714_s27, 3 }
   0xd   : > { %s13223_s1 = sld [smem:[#allocation78_spill]]  ;;  %s10716_s13 = smov [#allocation6]  }
   0xe   : > { %p10809_p8 = pnand %p8276_p5, %p207_p7  ;;  %s220_s14 = sshll.u32 %s10716_s13, 4  ;;  %s221_s14 = int_to_ptr.vmem [resolvable:$true] %s220_s14 }
   0xf   : > { %s238_s17 = sshll.u32 %s13145_s4, 4  ;;  %s10717_s18 = smov 64   ;;  %s239_s17 = int_to_ptr.hbm [resolvable:$true] %s238_s17 }
  0x10   : > { %p10359_p9 = pneg %p10809_p8  ;;  %s10718_s19 = smov 4  }
  0x11   : > { %s10719_s20 = smov [#allocation8]   ;;  %s10822_s22 = sadd.s32 1, %s10714_s27  }
  0x12   : > { %p10360_p10 = pnand %p10359_p9, %p45_p1  ;;  %s240_s21 = sshll.u32 %s10719_s20, 4  ;;  %s241_s21 = int_to_ptr.vmem [resolvable:$true] %s240_s21 }
  0x13   : > { %s218_s11 = sshll.u32 %s13223_s1, 4  ;;  %s31_s23 = sadd.s32 1, %s10710_s26  ;;  %s219_s11 = int_to_ptr.hbm [resolvable:$true] %s218_s11 }
  0x14   : > { %10362 = dma.hbm_to_vmem [thread:$0]  (!%p10360_p10), %s219_s11, 25600, %s221_s14, [#allocation7], %s10717_s18, %s10717_s18, %s10718_s19  }
  0x15   : > { %10365 = dma.hbm_to_vmem [thread:$0]  (!%p10360_p10), %s239_s17, 25600, %s241_s21, [#allocation7], %s10717_s18, %s10717_s18, %s10718_s19  }
  0x16   : > { %s28_s29 = ssub.s32 %s10714_s27, %s10822_s22  ;;  %p38_p12 = scmp.ne.s32.totalorder %s10710_s26, %s10706_s25 }
  0x17   : > { %p29_p13 = scmp.eq.s32.totalorder %s28_s29, 0  ;;  %p39_p0 = scmp.eq.s32.totalorder %s10714_s27, 0 }
  0x18   : > { %p10832_p3 = por %p194_p2, %p38_p12  ;;  %p10376_p5 = scmp.lt.s32.totalorder %s10714_s27, 2 }
  0x19   : > { %s10838_s10 = scalar_select %p29_p13, %s10710_s26, %s31_s23  }
  0x1a   : > { %p40_p7 = por %p39_p0, %p38_p12  ;;  %s260_s11 = sand.u32 1, %s10710_s26  }
  0x1b   : > { %s8280_s13 = sshll.u32 %s260_s11, 7  ;;  %s9928_s14 = sshll.u32 %s10714_s27, 7 }
  0x1c   : > { %s270_s17 = scalar_lea.hbm %s13141_s0, %s9928_s14  ;;  %s264_s18 = scalar_lea.vmem [#allocation3], %s8280_s13 }
  0x1d   : > { %s273_s19 = sshll.u32 %s264_s18, 4  ;;  %s271_s20 = sshll.u32 %s270_s17, 4  ;;  %s274_s19 = int_to_ptr.vmem [resolvable:$true] %s273_s19  ;;  %s272_s20 = int_to_ptr.hbm [resolvable:$true] %s271_s20 }
  0x1e   : > { %p10845_p2 = pnand %p10376_p5, %p40_p7  ;;  %s261_s23 = scalar_lea.sflag [#allocation4], %s260_s11 }
  0x1f   : > { %s10614_s29 = sshra.s32 %s272_s20, 4  ;;  %s10621_s15 = scalar_lea.hbm %s13141_s0, 256  ;;  %s10615_s29 = int_to_ptr.hbm [resolvable:$true] %s10614_s29 }
  0x20   : > { %s10616_s1 = scalar_lea.hbm %s10615_s29, 128  ;;  %p10618_p10 = pneg %p10845_p2 }
  0x21   : > { %p10617_p9 = scmp.ne.s32.totalorder %s10615_s29, %s10616_s1  ;;  %p10622_p0 = scmp.lt.s32.totalorder %s10615_s29, %s13141_s0 }
  0x22   : > { %p10623_p5 = scmp.lt.s32.totalorder %s10621_s15, %s10616_s1 }
  0x23   : > { %p10619_p12 = pnand %p10618_p10, %p10617_p9 }
  0x24   : > { %p10624_p7 = por %p10623_p5, %p10622_p0 }
  0x25   : > { %p10620_p13 = pneg %p10619_p12 }
  0x27   : > { %p10625_p11 = pnand %p10624_p7, %p10620_p13 }
  0x29   : > { %10628 = shalt.err (!%p10625_p11)
}
  0x2a   : > { %s10720_s11 = smov 128   ;;  %s10721_s18 = smov 8  }
  0x2b   : > { %10369 = dma.hbm_to_vmem [thread:$0]  (!%p10845_p2), %s272_s20, 2048, %s274_s19, %s261_s23, %s10720_s11, %s10720_s11, %s10721_s18  }
  0x2c   : > { %285 = sbr.rel (%p10809_p8) target bundleno = 2059 (0x80b), region = 48 }
  0x31   : > { %s10862_s14 = sand.u32 1, %s10706_s25  }
  0x32   : > { %s8285_s29 = sshll.u32 %s10862_s14, 7  ;;  %s288_s1 = scalar_lea.sflag [#allocation4], %s10862_s14 }
  0x33   : > { %s10868_s13 = scalar_lea.vmem [#allocation3], %s8285_s29 }
  0x34   : > { %10689 = dma.done.wait (%p10796_p4), %s288_s1, 2048  }
  0x35   : > { %10691 = vsyncadd (%p10796_p4), %s288_s1, 4294965248 }
  0x36   : > { %10693 = dma.done.wait (%p45_p1), [#allocation7], 51200  }
  0x37   : > { %10695 = vsyncadd (%p45_p1), [#allocation7], 4294916096  ;;  %v10722_v0 = vmov 0.0   ;;  %v9976_v1 = vld [vmem:[#allocation6 + $0x178] sm:$0xff]  ;;  %v9975_v3 = vld [vmem:[#allocation6 + $0x170] sm:$0xff]  ;;  %s10664_s11 = scalar_lea.hbm %s13148_s7, 256 }
  0x38   : > { %350 = vst [vmem:[#allocation2 + $0x208] sm:$0xff] %v10722_v0  ;;  %v9984_v2 = vld [vmem:[#allocation6 + $0x1b8] sm:$0xff]  ;;  %10331 = vmatpush.bf16.msra.mxu2 %v9976_v1  ;;  %v9983_v4 = vld [vmem:[#allocation6 + $0x1b0] sm:$0xff]  ;;  %1323 = vmatpush.bf16.msra.mxu0 %v9976_v1  ;;  %v9974_v5 = vld [vmem:[#allocation6 + $0x168] sm:$0xff] }
  0x39   : > { %385 = vst [vmem:[#allocation2 + $0x230] sm:$0x3] %v10722_v0  ;;  %10339 = vmatpush.bf16.msra.mxu3 %v9984_v2  ;;  %1372 = vmatpush.bf16.msra.mxu1 %v9984_v2  ;;  %v9982_v6 = vld [vmem:[#allocation6 + $0x1a8] sm:$0xff]  ;;  %v10881_v7 = vld [vmem:[%s10868_s13 + $0x40] sm:$0xff]  ;;  %v9972_v11 = vld [vmem:[#allocation6 + $0x158] sm:$0xff] }
  0x3a   : > { %13227 = vst [vmem:[#allocation13_spill] sm:$0xff] %v10881_v7  ;;  %v481_v8 = vrot.slane %v10881_v7, 6  ;;  %v9973_v9 = vld [vmem:[#allocation6 + $0x160] sm:$0xff]  ;;  %v9980_v12 = vld [vmem:[#allocation6 + $0x198] sm:$0xff]  ;;  %v9971_v13 = vld [vmem:[#allocation6 + $0x150] sm:$0xff]  ;;  %v529_v28 = vrot.slane %v10881_v7, 7 }
  0x3b   : > { %v9981_v10 = vld [vmem:[#allocation6 + $0x1a0] sm:$0xff]  ;;  %v9979_v14 = vld [vmem:[#allocation6 + $0x190] sm:$0xff]  ;;  %v9970_v15 = vld [vmem:[#allocation6 + $0x148] sm:$0xff]  ;;  %377 = vst [vmem:[#allocation2 + $0x50] sm:$0x3] %v10722_v0 }
  0x3c   : > { %10332 = vmatpush.bf16.msra.mxu2 %v9975_v3  ;;  %1324 = vmatpush.bf16.msra.mxu0 %v9975_v3  ;;  %513 = vst [vmem:[#allocation2 + $0x230] sm:$0xfc] %v481_v8  ;;  %v9978_v16 = vld [vmem:[#allocation6 + $0x188] sm:$0xff]  ;;  %v9969_v17 = vld [vmem:[#allocation6 + $0x140] sm:$0xff]  ;;  %v9992_v21 = vld [vmem:[#allocation6 + $0x1f8] sm:$0xff] }
  0x3d   : > { %10340 = vmatpush.bf16.msra.mxu3 %v9983_v4  ;;  %1373 = vmatpush.bf16.msra.mxu1 %v9983_v4  ;;  %v9977_v18 = vld [vmem:[#allocation6 + $0x180] sm:$0xff]  ;;  %378 = vst [vmem:[#allocation2 + $0x78] sm:$0x3] %v10722_v0  ;;  %v10000_v22 = vld [vmem:[#allocation6 + $0x238] sm:$0xff]  ;;  %v9991_v23 = vld [vmem:[#allocation6 + $0x1f0] sm:$0xff] }
  0x3e   : > { %379 = vst [vmem:[#allocation2 + $0xa0] sm:$0x3] %v10722_v0  ;;  %v10008_v24 = vld [vmem:[#allocation6 + $0x278] sm:$0xff]  ;;  %v9999_v25 = vld [vmem:[#allocation6 + $0x230] sm:$0xff]  ;;  %v10945_v26 = vld [vmem:[%s10868_s13] sm:$0xff] }
  0x3f   : > { %380 = vst [vmem:[#allocation2 + $0xc8] sm:$0x3] %v10722_v0  ;;  %v9990_v27 = vld [vmem:[#allocation6 + $0x1e8] sm:$0xff]  ;;  %v473_v30 = vrot.slane %v10945_v26, 6  ;;  %v10007_v32 = vld [vmem:[#allocation6 + $0x270] sm:$0xff]  ;;  %v9989_v33 = vld [vmem:[#allocation6 + $0x1e0] sm:$0xff] }
  0x40   : > { %10333 = vmatpush.bf16.msra.mxu2 %v9974_v5  ;;  %1325 = vmatpush.bf16.msra.mxu0 %v9974_v5  ;;  %381 = vst [vmem:[#allocation2 + $0xf0] sm:$0x3] %v10722_v0  ;;  %v10951_v29 = vld [vmem:[%s10868_s13 + $0x48] sm:$0xff]  ;;  %v10957_v34 = vld [vmem:[%s10868_s13 + $0x50] sm:$0xff]  ;;  %v521_v35 = vrot.slane %v10945_v26, 7  ;;  %v9997_v36 = vld [vmem:[#allocation6 + $0x220] sm:$0xff] }
  0x41   : > { %10341 = vmatpush.bf16.msra.mxu3 %v9982_v6  ;;  %1374 = vmatpush.bf16.msra.mxu1 %v9982_v6  ;;  %382 = vst [vmem:[#allocation2 + $0x118] sm:$0x3] %v10722_v0  ;;  %v9998_v31 = vld [vmem:[#allocation6 + $0x228] sm:$0xff]  ;;  %v482_v38 = vrot.slane %v10951_v29, 6  ;;  %v483_v39 = vrot.slane %v10957_v34, 6  ;;  %v530_v41 = vrot.slane %v10951_v29, 7 }
  0x42   : > { %383 = vst [vmem:[#allocation2 + $0x140] sm:$0x3] %v10722_v0  ;;  %v10006_v37 = vld [vmem:[#allocation6 + $0x268] sm:$0xff]  ;;  %v10969_v42 = vld [vmem:[%s10868_s13 + $0x10] sm:$0xff]  ;;  %v531_v43 = vrot.slane %v10957_v34, 7  ;;  %v10982_v50 = vld [vmem:[%s10868_s13 + $0x58] sm:$0xff] }
  0x43   : > { %v927_v19 = vld [vmem:[#allocation2 + $0x230] sm:$0xff]  ;;  %384 = vst [vmem:[#allocation2 + $0x168] sm:$0x3] %v10722_v0  ;;  %v10965_v40 = vld [vmem:[%s10868_s13 + $0x8] sm:$0xff]  ;;  %v475_v46 = vrot.slane %v10969_v42, 6  ;;  %v10986_v53 = vld [vmem:[%s10868_s13 + $0x60] sm:$0xff] }
  0x44   : > { %10334 = vmatpush.bf16.msra.mxu2 %v9973_v9  ;;  %1326 = vmatpush.bf16.msra.mxu0 %v9973_v9  ;;  %v982_v20 = vpack.c.bf16 %v927_v19, %v10722_v0  ;;  %386 = vst [vmem:[#allocation2 + $0x258] sm:$0x3] %v10722_v0  ;;  %v474_v44 = vrot.slane %v10965_v40, 6  ;;  %v522_v52 = vrot.slane %v10965_v40, 7  ;;  %v9988_v54 = vld [vmem:[#allocation6 + $0x1d8] sm:$0xff]  ;;  %v523_v57 = vrot.slane %v10969_v42, 7 }
  0x45   : > { %10342 = vmatpush.bf16.msra.mxu3 %v9981_v10  ;;  %1375 = vmatpush.bf16.msra.mxu1 %v9981_v10  ;;  %387 = vst [vmem:[#allocation2 + $0x280] sm:$0x3] %v10722_v0  ;;  %v484_v59 = vrot.slane %v10982_v50, 6  ;;  %v9936_v60 = vld [vmem:[#allocation6 + $0x38] sm:$0xff]  ;;  %v485_v62 = vrot.slane %v10986_v53, 6  ;;  %v10005_v1 = vld [vmem:[#allocation6 + $0x260] sm:$0xff] }
  0x46   : > { %388 = vst [vmem:[#allocation2 + $0x2a8] sm:$0x3] %v10722_v0  ;;  %v9996_v63 = vld [vmem:[#allocation6 + $0x218] sm:$0xff]  ;;  %v9935_v2 = vld [vmem:[#allocation6 + $0x30] sm:$0xff]  ;;  %v532_v6 = vrot.slane %v10982_v50, 7  ;;  %v11005_v8 = vld [vmem:[%s10868_s13 + $0x20] sm:$0xff] }
  0x47   : > { %389 = vst [vmem:[#allocation2 + $0x2d0] sm:$0x3] %v10722_v0  ;;  %v9987_v3 = vld [vmem:[#allocation6 + $0x1d0] sm:$0xff]  ;;  %v11001_v4 = vld [vmem:[%s10868_s13 + $0x18] sm:$0xff]  ;;  %v533_v10 = vrot.slane %v10986_v53, 7  ;;  %v11017_v19 = vld [vmem:[%s10868_s13 + $0x68] sm:$0xff] }
  0x48   : > { %10335 = vmatpush.bf16.msra.mxu2 %v9972_v11  ;;  %1327 = vmatpush.bf16.msra.mxu0 %v9972_v11  ;;  %390 = vst [vmem:[#allocation2 + $0x2f8] sm:$0x3] %v10722_v0  ;;  %v9995_v5 = vld [vmem:[#allocation6 + $0x210] sm:$0xff]  ;;  %v10004_v9 = vld [vmem:[#allocation6 + $0x258] sm:$0xff]  ;;  %v476_v11 = vrot.slane %v11001_v4, 6 }
  0x49   : > { %10343 = vmatpush.bf16.msra.mxu3 %v9980_v12  ;;  %1376 = vmatpush.bf16.msra.mxu1 %v9980_v12  ;;  %391 = vst [vmem:[#allocation2 + $0x320] sm:$0x3] %v10722_v0  ;;  %v9934_v12 = vld [vmem:[#allocation6 + $0x28] sm:$0xff] }
  0x4a   : > { %392 = vst [vmem:[#allocation2 + $0x348] sm:$0x3] %v10722_v0 }
  0x4b   : > { %393 = vst [vmem:[#allocation2 + $0x58] sm:$0x1] %v10722_v0 }
  0x4c   : > { %10336 = vmatpush.bf16.msra.mxu2 %v9971_v13  ;;  %1328 = vmatpush.bf16.msra.mxu0 %v9971_v13  ;;  %394 = vst [vmem:[#allocation2 + $0x80] sm:$0x1] %v10722_v0 }
  0x4d   : > { %10344 = vmatpush.bf16.msra.mxu3 %v9979_v14  ;;  %1377 = vmatpush.bf16.msra.mxu1 %v9979_v14  ;;  %395 = vst [vmem:[#allocation2 + $0xa8] sm:$0x1] %v10722_v0 }
  0x4e   : > { %396 = vst [vmem:[#allocation2 + $0xd0] sm:$0x1] %v10722_v0 }
  0x4f   : > { %397 = vst [vmem:[#allocation2 + $0xf8] sm:$0x1] %v10722_v0 }
  0x50   : > { %10337 = vmatpush.bf16.msra.mxu2 %v9970_v15  ;;  %1329 = vmatpush.bf16.msra.mxu0 %v9970_v15  ;;  %398 = vst [vmem:[#allocation2 + $0x120] sm:$0x1] %v10722_v0  ;;  %v477_v15 = vrot.slane %v11005_v8, 6 }
  0x51   : > { %10345 = vmatpush.bf16.msra.mxu3 %v9978_v16  ;;  %1378 = vmatpush.bf16.msra.mxu1 %v9978_v16  ;;  %399 = vst [vmem:[#allocation2 + $0x148] sm:$0x1] %v10722_v0 }
  0x52   : > { %400 = vst [vmem:[#allocation2 + $0x170] sm:$0x1] %v10722_v0 }
  0x53   : > { %401 = vst [vmem:[#allocation2 + $0x238] sm:$0x1] %v10722_v0 }
  0x54   : > { %10338 = vmatpush.bf16.msra.mxu2 %v9969_v17  ;;  %1330 = vmatpush.bf16.msra.mxu0 %v9969_v17  ;;  %402 = vst [vmem:[#allocation2 + $0x260] sm:$0x1] %v10722_v0 }
  0x55   : > { %10346 = vmatpush.bf16.msra.mxu3 %v9977_v18  ;;  %1379 = vmatpush.bf16.msra.mxu1 %v9977_v18  ;;  %403 = vst [vmem:[#allocation2 + $0x288] sm:$0x1] %v10722_v0  ;;  %v9933_v18 = vld [vmem:[#allocation6 + $0x20] sm:$0xff] }
  0x56   : > { %404 = vst [vmem:[#allocation2 + $0x2b0] sm:$0x1] %v10722_v0 }
  0x57   : > { %1351 = vmatmul.bf16.vlgmr.msra.gmra.mxu2 %v982_v20  ;;  %405 = vst [vmem:[#allocation2 + $0x2d8] sm:$0x1] %v10722_v0 }
  0x58   : > { %406 = vst [vmem:[#allocation2 + $0x300] sm:$0x1] %v10722_v0  ;;  %1421 = vmatpush.bf16.msrb.mxu2 %v9992_v21  ;;  %1519 = vmatpush.bf16.msrb.mxu0 %v10008_v24  ;;  %v11021_v24 = vld [vmem:[%s10868_s13 + $0x70] sm:$0xff] }
  0x59   : > { %407 = vst [vmem:[#allocation2 + $0x328] sm:$0x1] %v10722_v0  ;;  %1470 = vmatpush.bf16.msrb.mxu3 %v10000_v22  ;;  %1808 = vmatpush.bf16.msrb.mxu1 %v9936_v60 }
  0x5a   : > { %408 = vst [vmem:[#allocation2 + $0x350] sm:$0x1] %v10722_v0 }
  0x5b   : > { %409 = vst [vmem:[#allocation2 + $0x6f] sm:$0x1] %v10722_v0 }
  0x5c   : > { %410 = vst [vmem:[#allocation2 + $0x97] sm:$0x1] %v10722_v0  ;;  %1422 = vmatpush.bf16.msrb.mxu2 %v9991_v23  ;;  %1520 = vmatpush.bf16.msrb.mxu0 %v10007_v32  ;;  %v524_v23 = vrot.slane %v11001_v4, 7 }
  0x5d   : > { %411 = vst [vmem:[#allocation2 + $0xbf] sm:$0x1] %v10722_v0  ;;  %1471 = vmatpush.bf16.msrb.mxu3 %v9999_v25  ;;  %1809 = vmatpush.bf16.msrb.mxu1 %v9935_v2  ;;  %v585_v2 = vrot.slane %v10945_v26, 1 }
  0x5e   : > { %412 = vst [vmem:[#allocation2 + $0xe7] sm:$0x1] %v10722_v0 }
  0x5f   : > { %413 = vst [vmem:[#allocation2 + $0x10f] sm:$0x1] %v10722_v0 }
  0x60   : > { %414 = vst [vmem:[#allocation2 + $0x137] sm:$0x1] %v10722_v0  ;;  %1423 = vmatpush.bf16.msrb.mxu2 %v9990_v27  ;;  %1521 = vmatpush.bf16.msrb.mxu0 %v10006_v37  ;;  %v525_v27 = vrot.slane %v11005_v8, 7  ;;  %v11037_v37 = vld [vmem:[%s10868_s13 + $0x28] sm:$0xff] }
  0x61   : > { %415 = vst [vmem:[#allocation2 + $0x15f] sm:$0x1] %v10722_v0  ;;  %1472 = vmatpush.bf16.msrb.mxu3 %v9998_v31  ;;  %1810 = vmatpush.bf16.msrb.mxu1 %v9934_v12  ;;  %v486_v31 = vrot.slane %v11017_v19, 6 }
  0x62   : > { %416 = vst [vmem:[#allocation2 + $0x187] sm:$0x1] %v10722_v0 }
  0x63   : > { %417 = vst [vmem:[#allocation2 + $0x24f] sm:$0x1] %v10722_v0 }
  0x64   : > { %418 = vst [vmem:[#allocation2 + $0x277] sm:$0x1] %v10722_v0  ;;  %1424 = vmatpush.bf16.msrb.mxu2 %v9989_v33  ;;  %1522 = vmatpush.bf16.msrb.mxu0 %v10005_v1  ;;  %v487_v33 = vrot.slane %v11021_v24, 6  ;;  %v10001_v1 = vld [vmem:[#allocation6 + $0x240] sm:$0xff] }
  0x65   : > { %419 = vst [vmem:[#allocation2 + $0x29f] sm:$0x1] %v10722_v0  ;;  %1473 = vmatpush.bf16.msrb.mxu3 %v9997_v36  ;;  %1811 = vmatpush.bf16.msrb.mxu1 %v9933_v18 }
  0x66   : > { %420 = vst [vmem:[#allocation2 + $0x2c7] sm:$0x1] %v10722_v0 }
  0x67   : > { %421 = vst [vmem:[#allocation2 + $0x2ef] sm:$0x1] %v10722_v0 }
  0x68   : > { %422 = vst [vmem:[#allocation2 + $0x317] sm:$0x1] %v10722_v0  ;;  %1425 = vmatpush.bf16.msrb.mxu2 %v9988_v54  ;;  %1523 = vmatpush.bf16.msrb.mxu0 %v10004_v9  ;;  %v10002_v54 = vld [vmem:[#allocation6 + $0x248] sm:$0xff] }
  0x69   : > { %423 = vst [vmem:[#allocation2 + $0x33f] sm:$0x1] %v10722_v0  ;;  %1474 = vmatpush.bf16.msrb.mxu3 %v9996_v63 }
  0x6a   : > { %424 = vst [vmem:[#allocation2 + $0x367] sm:$0x1] %v10722_v0 }
  0x6b   : > { %425 = vst [vmem:[#allocation2 + $0x70] sm:$0xc0] %v10722_v0 }
  0x6c   : > { %426 = vst [vmem:[#allocation2 + $0x98] sm:$0xc0] %v10722_v0  ;;  %1426 = vmatpush.bf16.msrb.mxu2 %v9987_v3  ;;  %v633_v3 = vrot.slane %v10945_v26, 2 }
  0x6d   : > { %427 = vst [vmem:[#allocation2 + $0xc0] sm:$0xc0] %v10722_v0  ;;  %1475 = vmatpush.bf16.msrb.mxu3 %v9995_v5 }
  0x6e   : > { %428 = vst [vmem:[#allocation2 + $0xe8] sm:$0xc0] %v10722_v0 }
  0x6f   : > { %429 = vst [vmem:[#allocation2 + $0x110] sm:$0xc0] %v10722_v0 }
  0x70   : > { %430 = vst [vmem:[#allocation2 + $0x138] sm:$0xc0] %v10722_v0 }
  0x71   : > { %431 = vst [vmem:[#allocation2 + $0x160] sm:$0xc0] %v10722_v0 }
  0x72   : > { %432 = vst [vmem:[#allocation2 + $0x188] sm:$0xc0] %v10722_v0 }
  0x73   : > { %433 = vst [vmem:[#allocation2 + $0x250] sm:$0xc0] %v10722_v0 }
  0x74   : > { %434 = vst [vmem:[#allocation2 + $0x278] sm:$0xc0] %v10722_v0 }
  0x75   : > { %435 = vst [vmem:[#allocation2 + $0x2a0] sm:$0xc0] %v10722_v0 }
  0x76   : > { %436 = vst [vmem:[#allocation2 + $0x2c8] sm:$0xc0] %v10722_v0 }
  0x77   : > { %13228 = vst [vmem:[#allocation14_spill] sm:$0xff] %v10945_v26 }
  0x78   : > { %437 = vst [vmem:[#allocation2 + $0x2f0] sm:$0xc0] %v10722_v0 }
  0x79   : > { %438 = vst [vmem:[#allocation2 + $0x318] sm:$0xc0] %v10722_v0 }
  0x7a   : > { %13229 = vst [vmem:[#allocation15_spill] sm:$0xff] %v10951_v29 }
  0x7b   : > { %439 = vst [vmem:[#allocation2 + $0x340] sm:$0xc0] %v10722_v0 }
  0x7c   : > { %440 = vst [vmem:[#allocation2 + $0x368] sm:$0xc0] %v10722_v0 }
  0x7d   : > { %13230 = vst [vmem:[#allocation16_spill] sm:$0xff] %v10957_v34 }
  0x7e   : > { %577 = vst [vmem:[#allocation2 + $0x240] sm:$0xff] %v10881_v7 }
  0x7f   : > { %561 = vst [vmem:[#allocation2 + $0x238] sm:$0xfe] %v529_v28 }
  0x80   : > { %505 = vst [vmem:[#allocation2 + $0x50] sm:$0xfc] %v473_v30 }
  0x81   : > { %569 = vst [vmem:[#allocation2 + $0x60] sm:$0xff] %v10945_v26 }
  0x82   : > { %553 = vst [vmem:[#allocation2 + $0x58] sm:$0xfe] %v521_v35  ;;  %v9986_v35 = vld [vmem:[#allocation6 + $0x1c8] sm:$0xff] }
  0x83   : > { %13231 = vst [vmem:[#allocation17_spill] sm:$0xff] %v10965_v40  ;;  %1427 = vmatpush.bf16.msrb.mxu2 %v9986_v35 }
  0x84   : > { %514 = vst [vmem:[#allocation2 + $0x258] sm:$0xfc] %v482_v38  ;;  %v534_v38 = vrot.slane %v11017_v19, 7 }
  0x85   : > { %13232 = vst [vmem:[#allocation18_spill] sm:$0xff] %v10969_v42 }
  0x86   : > { %515 = vst [vmem:[#allocation2 + $0x280] sm:$0xfc] %v483_v39  ;;  %v928_v45 = vld [vmem:[#allocation2 + $0x238] sm:$0xff]  ;;  %v11041_v39 = vld [vmem:[%s10868_s13 + $0x30] sm:$0xff] }
  0x87   : > { %578 = vst [vmem:[#allocation2 + $0x268] sm:$0xff] %v10951_v29  ;;  %v983_v47 = vpack.c.bf16 %v928_v45, %v10722_v0  ;;  %v10977_v48 = vld [vmem:[#allocation2 + $0x50] sm:$0xff] }
  0x88   : > { %579 = vst [vmem:[#allocation2 + $0x290] sm:$0xff] %v10957_v34  ;;  %v962_v49 = vpack.c.bf16 %v10977_v48, %v10722_v0  ;;  %v10003_v45 = vld [vmem:[#allocation6 + $0x250] sm:$0xff] }
  0x89   : > { %562 = vst [vmem:[#allocation2 + $0x260] sm:$0xfe] %v530_v41  ;;  %1400 = vmatmul.bf16.vlgmr.msra.gmra.mxu3 %v983_v47  ;;  %v888_v51 = vld [vmem:[#allocation2 + $0x58] sm:$0xff]  ;;  %v9931_v47 = vld [vmem:[#allocation6 + $0x10] sm:$0xff]  ;;  %1524 = vmatpush.bf16.msrb.mxu0 %v10003_v45 }
  0x8a   : > { %563 = vst [vmem:[#allocation2 + $0x288] sm:$0xfe] %v531_v43  ;;  %1331 = vmatmul.bf16.vlgmr.msra.gmra.mxu0 %v962_v49  ;;  %v963_v55 = vpack.c.bf16 %v888_v51, %v10722_v0  ;;  %v9932_v41 = vld [vmem:[#allocation6 + $0x18] sm:$0xff]  ;;  %v535_v43 = vrot.slane %v11021_v24, 7  ;;  %v9985_v49 = vld [vmem:[#allocation6 + $0x1c0] sm:$0xff]  ;;  %v479_v51 = vrot.slane %v11041_v39, 6 }
  0x8b   : > { %13233 = vst [vmem:[#allocation19_spill] sm:$0xff] %v10982_v50  ;;  %v10989_v56 = vld [vmem:[#allocation2 + $0x258] sm:$0xff]  ;;  %1812 = vmatpush.bf16.msrb.mxu1 %v9932_v41  ;;  %1428 = vmatpush.bf16.msrb.mxu2 %v9985_v49  ;;  %v9943_v45 = vld [vmem:[#allocation6 + $0x70] sm:$0xff] }
  0x8c   : > { %506 = vst [vmem:[#allocation2 + $0x78] sm:$0xfc] %v474_v44  ;;  %1380 = vmatmul.bf16.vlgmr.msra.gmra.mxu1 %v963_v55  ;;  %v9994_v44 = vld [vmem:[#allocation6 + $0x208] sm:$0xff]  ;;  %v526_v55 = vrot.slane %v11037_v37, 7  ;;  %v9959_v49 = vld [vmem:[#allocation6 + $0xf0] sm:$0xff] }
  0x8d   : > { %13234 = vst [vmem:[#allocation20_spill] sm:$0xff] %v10986_v53  ;;  %v10992_v58 = vld [vmem:[#allocation2 + $0x280] sm:$0xff]  ;;  %1476 = vmatpush.bf16.msrb.mxu3 %v9994_v44  ;;  %1525 = vmatpush.bf16.msrb.mxu0 %v10002_v54  ;;  %v636_v54 = vrot.slane %v11001_v4, 2 }
  0x8e   : > { %507 = vst [vmem:[#allocation2 + $0xa0] sm:$0xfc] %v475_v46  ;;  %v987_v61 = vpack.c.bf16 %v10992_v58, %v10989_v56  ;;  %v478_v46 = vrot.slane %v11037_v37, 6 }
  0x8f   : > { %570 = vst [vmem:[#allocation2 + $0x88] sm:$0xff] %v10965_v40  ;;  %1813 = vmatpush.bf16.msrb.mxu1 %v9931_v47  ;;  %v9951_v47 = vld [vmem:[#allocation6 + $0xb0] sm:$0xff] }
  0x90   : > { %571 = vst [vmem:[#allocation2 + $0xb0] sm:$0xff] %v10969_v42  ;;  %1356 = vmatmul.bf16.gmra.mxu2 %v987_v61  ;;  %v933_v13 = vld [vmem:[#allocation2 + $0x260] sm:$0xff]  ;;  %v527_v61 = vrot.slane %v11041_v39, 7 }
  0x91   : > { %554 = vst [vmem:[#allocation2 + $0x80] sm:$0xfe] %v522_v52  ;;  %v938_v14 = vld [vmem:[#allocation2 + $0x288] sm:$0xff]  ;;  %v9993_v52 = vld [vmem:[#allocation6 + $0x200] sm:$0xff]  ;;  %1526 = vmatpush.bf16.msrb.mxu0 %v10001_v1 }
  0x92   : > { %555 = vst [vmem:[#allocation2 + $0xa8] sm:$0xfe] %v523_v57  ;;  %v988_v20 = vpack.c.bf16 %v938_v14, %v933_v13  ;;  %v9930_v57 = vld [vmem:[#allocation6 + $0x8] sm:$0xff]  ;;  %1477 = vmatpush.bf16.msrb.mxu3 %v9993_v52  ;;  %v589_v52 = vrot.slane %v11005_v8, 1 }
  0x93   : > { %13235 = vst [vmem:[#allocation21_spill] sm:$0xff] %v11001_v4  ;;  %v11012_v16 = vld [vmem:[#allocation2 + $0x78] sm:$0xff]  ;;  %1814 = vmatpush.bf16.msrb.mxu1 %v9930_v57  ;;  %v9942_v1 = vld [vmem:[#allocation6 + $0x68] sm:$0xff] }
  0x94   : > { %516 = vst [vmem:[#allocation2 + $0x2a8] sm:$0xfc] %v484_v59 }
  0x95   : > { %13236 = vst [vmem:[#allocation22_spill] sm:$0xff] %v11005_v8  ;;  %v11014_v17 = vld [vmem:[#allocation2 + $0xa0] sm:$0xff] }
  0x96   : > { %517 = vst [vmem:[#allocation2 + $0x2d0] sm:$0xfc] %v485_v62  ;;  %v967_v25 = vpack.c.bf16 %v11014_v17, %v11012_v16 }
  0x97   : > { %580 = vst [vmem:[#allocation2 + $0x2b8] sm:$0xff] %v10982_v50 }
  0x98   : > { %581 = vst [vmem:[#allocation2 + $0x2e0] sm:$0xff] %v10986_v53  ;;  %v893_v21 = vld [vmem:[#allocation2 + $0x80] sm:$0xff] }
  0x99   : > { %564 = vst [vmem:[#allocation2 + $0x2b0] sm:$0xfe] %v532_v6  ;;  %v898_v22 = vld [vmem:[#allocation2 + $0xa8] sm:$0xff]  ;;  %1405 = vmatmul.bf16.gmra.mxu3 %v988_v20  ;;  %v9952_v20 = vld [vmem:[#allocation6 + $0xb8] sm:$0xff] }
  0x9a   : > { %565 = vst [vmem:[#allocation2 + $0x2d8] sm:$0xfe] %v533_v10  ;;  %v968_v32 = vpack.c.bf16 %v898_v22, %v893_v21  ;;  %1336 = vmatmul.bf16.gmra.mxu0 %v967_v25  ;;  %v9929_v10 = vld [vmem:[#allocation6] sm:$0xff]  ;;  %v9960_v21 = vld [vmem:[#allocation6 + $0xf8] sm:$0xff]  ;;  %1906 = vmatpush.bf16.msra.mxu3 %v9952_v20  ;;  %v586_v22 = vrot.slane %v10965_v40, 1  ;;  %v634_v25 = vrot.slane %v10965_v40, 2 }
  0x9b   : > { %13237 = vst [vmem:[#allocation23_spill] sm:$0xff] %v11017_v19  ;;  %v11026_v28 = vld [vmem:[#allocation2 + $0x2a8] sm:$0xff]  ;;  %1815 = vmatpush.bf16.msrb.mxu1 %v9929_v10  ;;  %1955 = vmatpush.bf16.msra.mxu0 %v9960_v21  ;;  %v591_v10 = vrot.slane %v11041_v39, 1 }
  0x9c   : > { %508 = vst [vmem:[#allocation2 + $0xc8] sm:$0xfc] %v476_v11  ;;  %1385 = vmatmul.bf16.gmra.mxu1 %v968_v32 }
  0x9d   : > { %13238 = vst [vmem:[#allocation24_spill] sm:$0xff] %v11021_v24  ;;  %v11028_v30 = vld [vmem:[#allocation2 + $0x2d0] sm:$0xff] }
  0x9e   : > { %509 = vst [vmem:[#allocation2 + $0xf0] sm:$0xfc] %v477_v15  ;;  %v992_v36 = vpack.c.bf16 %v11028_v30, %v11026_v28  ;;  %v9944_v15 = vld [vmem:[#allocation6 + $0x78] sm:$0xff]  ;;  %1907 = vmatpush.bf16.msra.mxu3 %v9951_v47 }
  0x9f   : > { %572 = vst [vmem:[#allocation2 + $0xd8] sm:$0xff] %v11001_v4  ;;  %1857 = vmatpush.bf16.msra.mxu2 %v9944_v15  ;;  %1956 = vmatpush.bf16.msra.mxu0 %v9959_v49  ;;  %v9940_v47 = vld [vmem:[#allocation6 + $0x58] sm:$0xff] }
  0xa0   : > { %573 = vst [vmem:[#allocation2 + $0x100] sm:$0xff] %v11005_v8  ;;  %1361 = vmatmul.bf16.gmra.mxu2 %v992_v36  ;;  %v943_v59 = vld [vmem:[#allocation2 + $0x2b0] sm:$0xff]  ;;  %v9948_v49 = vld [vmem:[#allocation6 + $0x98] sm:$0xff] }
  0xa1   : > { %556 = vst [vmem:[#allocation2 + $0xd0] sm:$0xfe] %v524_v23  ;;  %v948_v60 = vld [vmem:[#allocation2 + $0x2d8] sm:$0xff]  ;;  %v587_v23 = vrot.slane %v10969_v42, 1 }
  0xa2   : > { %557 = vst [vmem:[#allocation2 + $0xf8] sm:$0xfe] %v525_v27  ;;  %v993_v5 = vpack.c.bf16 %v948_v60, %v943_v59  ;;  %v635_v27 = vrot.slane %v10969_v42, 2 }
  0xa3   : > { %13239 = vst [vmem:[#allocation25_spill] sm:$0xff] %v11037_v37  ;;  %v11050_v62 = vld [vmem:[#allocation2 + $0xc8] sm:$0xff]  ;;  %1858 = vmatpush.bf16.msra.mxu2 %v9943_v45 }
  0xa4   : > { %518 = vst [vmem:[#allocation2 + $0x2f8] sm:$0xfc] %v486_v31  ;;  %v771_v45 = vpack.c.bf16 %v11050_v62, %v11014_v17  ;;  %v643_v17 = vrot.slane %v10957_v34, 2 }
  0xa5   : > { %13240 = vst [vmem:[#allocation26_spill] sm:$0xff] %v11041_v39  ;;  %v11052_v63 = vld [vmem:[#allocation2 + $0xf0] sm:$0xff] }
  0xa6   : > { %519 = vst [vmem:[#allocation2 + $0x320] sm:$0xfc] %v487_v33  ;;  %v972_v11 = vpack.c.bf16 %v11052_v63, %v11050_v62 }
  0xa7   : > { %582 = vst [vmem:[#allocation2 + $0x308] sm:$0xff] %v11017_v19  ;;  %1859 = vmatpush.bf16.msra.mxu2 %v9942_v1 }
  0xa8   : > { %583 = vst [vmem:[#allocation2 + $0x330] sm:$0xff] %v11021_v24  ;;  %v903_v6 = vld [vmem:[#allocation2 + $0xd0] sm:$0xff] }
  0xa9   : > { %566 = vst [vmem:[#allocation2 + $0x300] sm:$0xfe] %v534_v38  ;;  %v908_v9 = vld [vmem:[#allocation2 + $0xf8] sm:$0xff]  ;;  %1410 = vmatmul.bf16.gmra.mxu3 %v993_v5  ;;  %v9950_v5 = vld [vmem:[#allocation6 + $0xa8] sm:$0xff] }
  0xaa   : > { %567 = vst [vmem:[#allocation2 + $0x328] sm:$0xfe] %v535_v43  ;;  %v973_v14 = vpack.c.bf16 %v908_v9, %v903_v6  ;;  %1341 = vmatmul.bf16.gmra.mxu0 %v972_v11  ;;  %v9958_v6 = vld [vmem:[#allocation6 + $0xe8] sm:$0xff]  ;;  %1908 = vmatpush.bf16.msra.mxu3 %v9950_v5  ;;  %v590_v9 = vrot.slane %v11037_v37, 1  ;;  %v638_v11 = vrot.slane %v11037_v37, 2 }
  0xab   : > { %510 = vst [vmem:[#allocation2 + $0x118] sm:$0xfc] %v478_v46  ;;  %v11060_v12 = vld [vmem:[#allocation2 + $0x2f8] sm:$0xff]  ;;  %v964_v46 = vpack.c.bf16 %v10945_v26, %v10722_v0  ;;  %1957 = vmatpush.bf16.msra.mxu0 %v9958_v6 }
  0xac   : > { %511 = vst [vmem:[#allocation2 + $0x140] sm:$0xfc] %v479_v51  ;;  %1390 = vmatmul.bf16.gmra.mxu1 %v973_v14  ;;  %v588_v51 = vrot.slane %v11001_v4, 1 }
  0xad   : > { %574 = vst [vmem:[#allocation2 + $0x128] sm:$0xff] %v11037_v37  ;;  %v957_v13 = vld [vmem:[#allocation2 + $0x320] sm:$0xff] }
  0xae   : > { %575 = vst [vmem:[#allocation2 + $0x150] sm:$0xff] %v11041_v39  ;;  %v997_v18 = vpack.c.bf16 %v957_v13, %v11060_v12  ;;  %v639_v13 = vrot.slane %v11041_v39, 2 }
  0xaf   : > { %558 = vst [vmem:[#allocation2 + $0x120] sm:$0xfe] %v526_v55  ;;  %v637_v55 = vrot.slane %v11005_v8, 2 }
  0xb0   : > { %559 = vst [vmem:[#allocation2 + $0x148] sm:$0xfe] %v527_v61  ;;  %1366 = vmatmul.bf16.gmra.mxu2 %v997_v18  ;;  %v953_v31 = vld [vmem:[#allocation2 + $0x300] sm:$0xff] }
  0xb1   : > { %617 = vst [vmem:[#allocation2 + $0x68] sm:$0x7f] %v585_v2  ;;  %v958_v32 = vld [vmem:[#allocation2 + $0x328] sm:$0xff]  ;;  %v969_v2 = vpack.c.bf16 %v10969_v42, %v10965_v40 }
  0xb2   : > { %665 = vst [vmem:[#allocation2 + $0x70] sm:$0x3f] %v633_v3  ;;  %v11067_v33 = vld [vmem:[#allocation2 + $0x118] sm:$0xff]  ;;  %v998_v36 = vpack.c.bf16 %v958_v32, %v953_v31  ;;  %v13149_v3 = vmov 0.0|0.0   ;;  %v9949_v31 = vld [vmem:[#allocation6 + $0xa0] sm:$0xff] }
  0xb3   : > { %618 = vst [vmem:[#allocation2 + $0x90] sm:$0x7f] %v586_v22  ;;  %v917_v35 = vld [vmem:[#allocation2 + $0x140] sm:$0xff]  ;;  %1909 = vmatpush.bf16.msra.mxu3 %v9949_v31  ;;  %v776_v6 = vpack.c.bf16 %v11067_v33, %v11052_v63  ;;  %v645_v63 = vrot.slane %v10986_v53, 2 }
  0xb4   : > { %619 = vst [vmem:[#allocation2 + $0xb8] sm:$0x7f] %v587_v23  ;;  %v977_v43 = vpack.c.bf16 %v917_v35, %v11067_v33  ;;  %v766_v23 = vpack.c.bf16 %v11012_v16, %v10977_v48  ;;  %v9957_v32 = vld [vmem:[#allocation6 + $0xe0] sm:$0xff]  ;;  %v593_v35 = vrot.slane %v10881_v7, 1 }
  0xb5   : > { %666 = vst [vmem:[#allocation2 + $0x98] sm:$0x3f] %v634_v25  ;;  %v9941_v25 = vld [vmem:[#allocation6 + $0x60] sm:$0xff]  ;;  %1958 = vmatpush.bf16.msra.mxu0 %v9957_v32 }
  0xb6   : > { %667 = vst [vmem:[#allocation2 + $0xc0] sm:$0x3f] %v635_v27  ;;  %v913_v38 = vld [vmem:[#allocation2 + $0x120] sm:$0xff]  ;;  %v974_v27 = vpack.c.bf16 %v11005_v8, %v11001_v4  ;;  %1860 = vmatpush.bf16.msra.mxu2 %v9941_v25  ;;  %v9955_v25 = vld [vmem:[#allocation6 + $0xd0] sm:$0xff] }
  0xb7   : > { %v918_v41 = vld [vmem:[#allocation2 + $0x148] sm:$0xff]  ;;  %620 = vst [vmem:[#allocation2 + $0xe0] sm:$0x7f] %v588_v51  ;;  %1910 = vmatpush.bf16.msra.mxu3 %v9948_v49  ;;  %v594_v51 = vrot.slane %v10951_v29, 1  ;;  %v10077_v4 = vld [vmem:[#allocation6 + $0x4a0] sm:$0xff] }
  0xb8   : > { %v978_v44 = vpack.c.bf16 %v918_v41, %v913_v38  ;;  %621 = vst [vmem:[#allocation2 + $0x108] sm:$0x7f] %v589_v52  ;;  %v11076_v57 = vld [vmem:[#allocation2 + $0x68] sm:$0xff]  ;;  %v595_v52 = vrot.slane %v10957_v34, 1 }
  0xb9   : > { %1415 = vmatmul.bf16.gmra.mxu3 %v998_v36  ;;  %668 = vst [vmem:[#allocation2 + $0xe8] sm:$0x3f] %v636_v54  ;;  %v11078_v59 = vld [vmem:[#allocation2 + $0x70] sm:$0xff]  ;;  %v965_v60 = vpack.c.bf16 %v11076_v57, %v10722_v0  ;;  %v641_v36 = vrot.slane %v10881_v7, 2  ;;  %v642_v54 = vrot.slane %v10951_v29, 2 }
  0xba   : > { %1346 = vmatmul.bf16.gmra.mxu0 %v977_v43  ;;  %669 = vst [vmem:[#allocation2 + $0x110] sm:$0x3f] %v637_v55  ;;  %v966_v61 = vpack.c.bf16 %v11078_v59, %v10722_v0  ;;  %v11091_v14 = vld [vmem:[#allocation2 + $0x90] sm:$0xff]  ;;  %1861 = vmatpush.bf16.msra.mxu2 %v9940_v47  ;;  %v9968_v47 = vld [vmem:[#allocation6 + $0x138] sm:$0xff] }
  0xbb   : > { %622 = vst [vmem:[#allocation2 + $0x130] sm:$0x7f] %v590_v9  ;;  %v11093_v15 = vld [vmem:[#allocation2 + $0xb8] sm:$0xff]  ;;  %v984_v9 = vpack.c.bf16 %v10881_v7, %v10722_v0  ;;  %2004 = vmatpush.bf16.msra.mxu1 %v9968_v47  ;;  %v10030_v7 = vld [vmem:[#allocation6 + $0x328] sm:$0xff] }
  0xbc   : > { %1395 = vmatmul.bf16.gmra.mxu1 %v978_v44  ;;  %623 = vst [vmem:[#allocation2 + $0x158] sm:$0x7f] %v591_v10  ;;  %v11095_v18 = vld [vmem:[#allocation2 + $0x98] sm:$0xff]  ;;  %v970_v21 = vpack.c.bf16 %v11093_v15, %v11091_v14  ;;  %v9939_v10 = vld [vmem:[#allocation6 + $0x50] sm:$0xff] }
  0xbd   : > { %670 = vst [vmem:[#allocation2 + $0x138] sm:$0x3f] %v638_v11  ;;  %v11097_v20 = vld [vmem:[#allocation2 + $0xc0] sm:$0xff]  ;;  %v9947_v11 = vld [vmem:[#allocation6 + $0x90] sm:$0xff] }
  0xbe   : > { %671 = vst [vmem:[#allocation2 + $0x160] sm:$0x3f] %v639_v13  ;;  %v971_v22 = vpack.c.bf16 %v11097_v20, %v11095_v18  ;;  %v11109_v38 = vld [vmem:[#allocation2 + $0xe0] sm:$0xff]  ;;  %1862 = vmatpush.bf16.msra.mxu2 %v9939_v10  ;;  %1911 = vmatpush.bf16.msra.mxu3 %v9947_v11  ;;  %v9954_v11 = vld [vmem:[#allocation6 + $0xc8] sm:$0xff] }
  0xbf   : > { %625 = vst [vmem:[#allocation2 + $0x248] sm:$0x7f] %v593_v35  ;;  %v11111_v48 = vld [vmem:[#allocation2 + $0x108] sm:$0xff] }
  0xc0   : > { %1429 = vmatmul.bf16.vlgmr.msrb.gmra.mxu2 %v964_v46  ;;  %673 = vst [vmem:[#allocation2 + $0x250] sm:$0x3f] %v641_v36  ;;  %v11113_v16 = vld [vmem:[#allocation2 + $0xe8] sm:$0xff]  ;;  %v975_v43 = vpack.c.bf16 %v11111_v48, %v11109_v38  ;;  %v979_v46 = vpack.c.bf16 %v11041_v39, %v11037_v37  ;;  %v693_v37 = vld [vmem:[#allocation2 + $0x60] sm:$0xff] }
  0xc1   : > { %v11115_v41 = vld [vmem:[#allocation2 + $0x110] sm:$0xff]  ;;  %626 = vst [vmem:[#allocation2 + $0x270] sm:$0x7f] %v594_v51  ;;  %v9946_v51 = vld [vmem:[#allocation6 + $0x88] sm:$0xff] }
  0xc2   : > { %v976_v44 = vpack.c.bf16 %v11115_v41, %v11113_v16  ;;  %627 = vst [vmem:[#allocation2 + $0x298] sm:$0x7f] %v595_v52  ;;  %v11129_v62 = vld [vmem:[#allocation2 + $0x130] sm:$0xff]  ;;  %1912 = vmatpush.bf16.msra.mxu3 %v9946_v51  ;;  %v9937_v51 = vld [vmem:[#allocation6 + $0x40] sm:$0xff] }
  0xc3   : > { %v920_v55 = vld [vmem:[#allocation2 + $0x158] sm:$0xff]  ;;  %674 = vst [vmem:[#allocation2 + $0x278] sm:$0x3f] %v642_v54  ;;  %v599_v54 = vrot.slane %v11021_v24, 1 }
  0xc4   : > { %675 = vst [vmem:[#allocation2 + $0x2a0] sm:$0x3f] %v643_v17 }
  0xc5   : > { %v921_v1 = vld [vmem:[#allocation2 + $0x160] sm:$0xff]  ;;  %677 = vst [vmem:[#allocation2 + $0x2f0] sm:$0x3f] %v645_v63 }
  0xc6   : > { %v11143_v33 = vld [vmem:[#allocation2 + $0x248] sm:$0xff]  ;;  %631 = vst [vmem:[#allocation2 + $0x338] sm:$0x7f] %v599_v54 }
  0xc7   : > { %v985_v31 = vpack.c.bf16 %v11143_v33, %v10722_v0 }
  0xc9   : > { %1478 = vmatmul.bf16.vlgmr.msrb.gmra.mxu3 %v965_v60  ;;  %v9956_v60 = vld [vmem:[#allocation6 + $0xd8] sm:$0xff] }
  0xca   : > { %1527 = vmatmul.bf16.vlgmr.msrb.gmra.mxu0 %v966_v61  ;;  %v11131_v61 = vld [vmem:[#allocation2 + $0x138] sm:$0xff] }
  0xcb   : > { %1959 = vmatpush.bf16.msra.mxu0 %v9956_v60  ;;  %v981_v5 = vpack.c.bf16 %v921_v1, %v11131_v61  ;;  %v646_v60 = vrot.slane %v11017_v19, 2  ;;  %v647_v1 = vrot.slane %v11021_v24, 2  ;;  %v11166_v10 = vld [vmem:[#allocation2 + $0x298] sm:$0xff] }
  0xcc   : > { %1816 = vmatmul.bf16.vlgmr.msrb.gmra.mxu1 %v13149_v3 }
  0xcd   : > { %678 = vst [vmem:[#allocation2 + $0x318] sm:$0x3f] %v646_v60  ;;  %v9963_v60 = vld [vmem:[#allocation6 + $0x110] sm:$0xff] }
  0xce   : > { %679 = vst [vmem:[#allocation2 + $0x340] sm:$0x3f] %v647_v1 }
  0xcf   : > { %1960 = vmatpush.bf16.msra.mxu0 %v9955_v25 }
  0xd0   : > { %1434 = vmatmul.bf16.gmra.mxu2 %v969_v2  ;;  %v980_v2 = vpack.c.bf16 %v920_v55, %v11129_v62  ;;  %v9967_v55 = vld [vmem:[#allocation6 + $0x130] sm:$0xff] }
  0xd1   : > { %2005 = vmatpush.bf16.msra.mxu1 %v9967_v55 }
  0xd3   : > { %1961 = vmatpush.bf16.msra.mxu0 %v9954_v11 }
  0xd9   : > { %1483 = vmatmul.bf16.gmra.mxu3 %v970_v21  ;;  %v596_v21 = vrot.slane %v10982_v50, 1 }
  0xda   : > { %1532 = vmatmul.bf16.gmra.mxu0 %v971_v22  ;;  %v1352_v13 = vpop.f32.mrf.mxu2  ;;  %v597_v22 = vrot.slane %v10986_v53, 1 }
  0xdb   : > { %628 = vst [vmem:[#allocation2 + $0x2c0] sm:$0x7f] %v596_v21  ;;  %v11170_v21 = vld [vmem:[#allocation2 + $0x2a0] sm:$0xff] }
  0xdc   : > { %1821 = vmatmul.bf16.gmra.mxu1 %v766_v23  ;;  %v644_v23 = vrot.slane %v10982_v50, 2  ;;  %629 = vst [vmem:[#allocation2 + $0x2e8] sm:$0x7f] %v597_v22  ;;  %v9966_v22 = vld [vmem:[#allocation6 + $0x128] sm:$0xff] }
  0xdd   : > { %2006 = vmatpush.bf16.msra.mxu1 %v9966_v22 }
  0xde   : > { %676 = vst [vmem:[#allocation2 + $0x2c8] sm:$0x3f] %v644_v23 }
  0xe0   : > { %1439 = vmatmul.bf16.gmra.mxu2 %v974_v27  ;;  %v11145_v27 = vld [vmem:[#allocation2 + $0x250] sm:$0xff] }
  0xe1   : > { %v986_v32 = vpack.c.bf16 %v11145_v27, %v10722_v0  ;;  %v598_v0 = vrot.slane %v11017_v19, 1 }
  0xe2   : > { %v1354_v36 = vpop.f32.mrf.mxu2  ;;  %v11187_v22 = vld [vmem:[#allocation2 + $0x2c0] sm:$0xff] }
  0xe3   : > { %630 = vst [vmem:[#allocation2 + $0x310] sm:$0x7f] %v598_v0  ;;  %v9964_v0 = vld [vmem:[#allocation6 + $0x118] sm:$0xff] }
  0xe9   : > { %1488 = vmatmul.bf16.gmra.mxu3 %v975_v43 }
  0xea   : > { %1537 = vmatmul.bf16.gmra.mxu0 %v976_v44 }
  0xec   : > { %1826 = vmatmul.bf16.gmra.mxu1 %v771_v45  ;;  %v989_v45 = vpack.c.bf16 %v10957_v34, %v10951_v29 }
  0xf0   : > { %1444 = vmatmul.bf16.gmra.mxu2 %v979_v46  ;;  %v9938_v46 = vld [vmem:[#allocation6 + $0x48] sm:$0xff] }
  0xf1   : > { %1863 = vmatpush.bf16.msra.mxu2 %v9938_v46 }
  0xf5   : > { %1864 = vmatpush.bf16.msra.mxu2 %v9937_v51  ;;  %v9961_v51 = vld [vmem:[#allocation6 + $0x100] sm:$0xff] }
  0xf9   : > { %1493 = vmatmul.bf16.gmra.mxu3 %v980_v2 }
  0xfa   : > { %1542 = vmatmul.bf16.gmra.mxu0 %v981_v5 }
  0xfc   : > { %1831 = vmatmul.bf16.gmra.mxu1 %v776_v6 }
 0x100   : > { %1449 = vmatmul.bf16.gmra.mxu2 %v984_v9  ;;  %v11164_v9 = vld [vmem:[#allocation2 + $0x270] sm:$0xff] }
 0x101   : > { %v990_v25 = vpack.c.bf16 %v11166_v10, %v11164_v9 }
 0x107   : > { %v1332_v35 = vpop.f32.mrf.mxu0 }
 0x109   : > { %v1381_v43 = vpop.f32.mrf.mxu1  ;;  %1498 = vmatmul.bf16.gmra.mxu3 %v985_v31  ;;  %v731_v31 = vld [vmem:[#allocation2 + $0x230] sm:$0xff] }
 0x10a   : > { %v11151_v44 = vadd.f32 %v1381_v43, %v1332_v35  ;;  %1547 = vmatmul.bf16.gmra.mxu0 %v986_v32  ;;  %v9965_v43 = vld [vmem:[#allocation6 + $0x120] sm:$0xff] }
 0x10b   : > { %2007 = vmatpush.bf16.msra.mxu1 %v9965_v43 }
 0x10c   : > { %1836 = vmatmul.bf16.gmra.mxu1 %v13149_v3  ;;  %v1401_v49 = vpop.f32.mrf.mxu3  ;;  %v961_v3 = vld [vmem:[#allocation2 + $0x340] sm:$0xff] }
 0x10d   : > { %v11156_v52 = vadd.f32 %v1401_v49, %v1352_v13  ;;  %v11168_v13 = vld [vmem:[#allocation2 + $0x278] sm:$0xff] }
 0x10e   : > { %v991_v32 = vpack.c.bf16 %v11170_v21, %v11168_v13 }
 0x10f   : > { %v1334_v17 = vpop.f32.mrf.mxu0  ;;  %2008 = vmatpush.bf16.msra.mxu1 %v9964_v0  ;;  %v791_v0 = vpack.c.bf16 %v11026_v28, %v10992_v58 }
 0x110   : > { %1454 = vmatmul.bf16.gmra.mxu2 %v989_v45  ;;  %v786_v45 = vpack.c.bf16 %v10989_v56, %v731_v31  ;;  %v11191_v31 = vld [vmem:[#allocation2 + $0x2c8] sm:$0xff] }
 0x111   : > { %v1383_v2 = vpop.f32.mrf.mxu1 }
 0x112   : > { %v11162_v6 = vadd.f32 %v1383_v2, %v1334_v17  ;;  %v9945_v17 = vld [vmem:[#allocation6 + $0x80] sm:$0xff] }
 0x113   : > { %v1357_v5 = vpop.f32.mrf.mxu2  ;;  %1913 = vmatpush.bf16.msra.mxu3 %v9945_v17  ;;  %2009 = vmatpush.bf16.msra.mxu1 %v9963_v60 }
 0x114   : > { %v1403_v23 = vpop.f32.mrf.mxu3 }
 0x115   : > { %v11172_v63 = vadd.f32 %v1403_v23, %v1354_v36  ;;  %v994_v36 = vpack.c.bf16 %v10986_v53, %v10982_v50  ;;  %v11189_v23 = vld [vmem:[#allocation2 + $0x2e8] sm:$0xff] }
 0x117   : > { %v1337_v35 = vpop.f32.mrf.mxu0 }
 0x119   : > { %v1386_v46 = vpop.f32.mrf.mxu1  ;;  %1503 = vmatmul.bf16.gmra.mxu3 %v990_v25  ;;  %v9953_v25 = vld [vmem:[#allocation6 + $0xc0] sm:$0xff] }
 0x11a   : > { %v11179_v49 = vadd.f32 %v1386_v46, %v1337_v35  ;;  %1552 = vmatmul.bf16.gmra.mxu0 %v991_v32  ;;  %v11193_v32 = vld [vmem:[#allocation2 + $0x2f0] sm:$0xff] }
 0x11b   : > { %v1359_v47 = vpop.f32.mrf.mxu2  ;;  %1962 = vmatpush.bf16.msra.mxu0 %v9953_v25  ;;  %v996_v46 = vpack.c.bf16 %v11193_v32, %v11191_v31  ;;  %v10024_v25 = vld [vmem:[#allocation6 + $0x2f8] sm:$0xff] }
 0x11c   : > { %1841 = vmatmul.bf16.gmra.mxu1 %v786_v45  ;;  %v1406_v54 = vpop.f32.mrf.mxu3  ;;  %v995_v45 = vpack.c.bf16 %v11189_v23, %v11187_v22  ;;  %2543 = vmatpush.bf16.msrb.mxu3 %v10024_v25  ;;  %v796_v25 = vpack.c.bf16 %v11060_v12, %v11028_v30  ;;  %v10031_v30 = vld [vmem:[#allocation6 + $0x330] sm:$0xff] }
 0x11d   : > { %v11183_v55 = vadd.f32 %v1406_v54, %v1357_v5  ;;  %v9962_v5 = vld [vmem:[#allocation6 + $0x108] sm:$0xff] }
 0x11e   : > { %2010 = vmatpush.bf16.msra.mxu1 %v9962_v5 }
 0x11f   : > { %v1339_v56 = vpop.f32.mrf.mxu0 }
 0x120   : > { %1459 = vmatmul.bf16.gmra.mxu2 %v994_v36 }
 0x121   : > { %v1388_v1 = vpop.f32.mrf.mxu1 }
 0x122   : > { %v11185_v11 = vadd.f32 %v1388_v1, %v1339_v56  ;;  %2011 = vmatpush.bf16.msra.mxu1 %v9961_v51  ;;  %v10016_v56 = vld [vmem:[#allocation6 + $0x2b8] sm:$0xff] }
 0x123   : > { %v1362_v2 = vpop.f32.mrf.mxu2  ;;  %2494 = vmatpush.bf16.msrb.mxu2 %v10016_v56 }
 0x124   : > { %v1408_v35 = vpop.f32.mrf.mxu3 }
 0x125   : > { %v11195_v43 = vadd.f32 %v1408_v35, %v1359_v47  ;;  %v999_v47 = vpack.c.bf16 %v11021_v24, %v11017_v19  ;;  %v10015_v24 = vld [vmem:[#allocation6 + $0x2b0] sm:$0xff] }
 0x127   : > { %v1342_v36 = vpop.f32.mrf.mxu0  ;;  %2495 = vmatpush.bf16.msrb.mxu2 %v10015_v24 }
 0x129   : > { %v1391_v54 = vpop.f32.mrf.mxu1  ;;  %1508 = vmatmul.bf16.gmra.mxu3 %v995_v45  ;;  %v10032_v45 = vld [vmem:[#allocation6 + $0x338] sm:$0xff] }
 0x12a   : > { %v11203_v60 = vadd.f32 %v1391_v54, %v1342_v36  ;;  %1557 = vmatmul.bf16.gmra.mxu0 %v996_v46  ;;  %v11211_v36 = vld [vmem:[#allocation2 + $0x310] sm:$0xff]  ;;  %v960_v46 = vld [vmem:[#allocation2 + $0x338] sm:$0xff] }
 0x12b   : > { %v1364_v17 = vpop.f32.mrf.mxu2  ;;  %v11213_v54 = vld [vmem:[#allocation2 + $0x318] sm:$0xff]  ;;  %2592 = vmatpush.bf16.msrb.mxu0 %v10032_v45 }
 0x12c   : > { %1846 = vmatmul.bf16.gmra.mxu1 %v791_v0  ;;  %v1411_v1 = vpop.f32.mrf.mxu3 }
 0x12d   : > { %v11207_v5 = vadd.f32 %v1411_v1, %v1362_v2  ;;  %v1000_v2 = vpack.c.bf16 %v960_v46, %v11211_v36  ;;  %v13241_v46 = vmov 0.0|0.0  }
 0x12f   : > { %v1344_v58 = vpop.f32.mrf.mxu0  ;;  %2593 = vmatpush.bf16.msrb.mxu0 %v10031_v30 }
 0x130   : > { %1464 = vmatmul.bf16.gmra.mxu2 %v999_v47  ;;  %v1001_v47 = vpack.c.bf16 %v961_v3, %v11213_v54 }
 0x131   : > { %v1393_v28 = vpop.f32.mrf.mxu1 }
 0x132   : > { %v11209_v51 = vadd.f32 %v1393_v28, %v1344_v58 }
 0x133   : > { %v1367_v35 = vpop.f32.mrf.mxu2  ;;  %2594 = vmatpush.bf16.msrb.mxu0 %v10030_v7 }
 0x134   : > { %v1413_v0 = vpop.f32.mrf.mxu3 }
 0x135   : > { %v11215_v56 = vadd.f32 %v1413_v0, %v1364_v17  ;;  %v10023_v17 = vld [vmem:[#allocation6 + $0x2f0] sm:$0xff] }
 0x136   : > { %2544 = vmatpush.bf16.msrb.mxu3 %v10023_v17  ;;  %v10014_v17 = vld [vmem:[#allocation6 + $0x2a8] sm:$0xff] }
 0x137   : > { %v1347_v1 = vpop.f32.mrf.mxu0  ;;  %2496 = vmatpush.bf16.msrb.mxu2 %v10014_v17 }
 0x139   : > { %v1396_v58 = vpop.f32.mrf.mxu1  ;;  %1513 = vmatmul.bf16.gmra.mxu3 %v1000_v2 }
 0x13a   : > { %v11221_v19 = vadd.f32 %v1396_v58, %v1347_v1  ;;  %1562 = vmatmul.bf16.gmra.mxu0 %v1001_v47  ;;  %v697_v58 = vld [vmem:[#allocation2 + $0x80] sm:$0xff] }
 0x13b   : > { %v1369_v28 = vpop.f32.mrf.mxu2 }
 0x13c   : > { %1851 = vmatmul.bf16.gmra.mxu1 %v796_v25  ;;  %v1416_v45 = vpop.f32.mrf.mxu3  ;;  %v692_v25 = vld [vmem:[#allocation2 + $0x58] sm:$0xff] }
 0x13d   : > { %v11223_v0 = vadd.f32 %v1416_v45, %v1367_v35 }
 0x13f   : > { %v1349_v3 = vpop.f32.mrf.mxu0 }
 0x140   : > { %1865 = vmatmul.bf16.vlgmr.msra.gmra.mxu2 %v13241_v46 }
 0x141   : > { %v1398_v53 = vpop.f32.mrf.mxu1 }
 0x142   : > { %v11226_v12 = vadd.f32 %v1398_v53, %v1349_v3  ;;  %v11234_v53 = vpack.c.bf16 %v697_v58, %v692_v25 }
 0x143   : > { %v1430_v50 = vpop.f32.mrf.mxu2 }
 0x144   : > { %v1431_v2 = vadd.f32 %v1430_v50, %v11151_v44  ;;  %v1418_v1 = vpop.f32.mrf.mxu3  ;;  %v10022_v44 = vld [vmem:[#allocation6 + $0x2e8] sm:$0xff] }
 0x145   : > { %v11229_v47 = vadd.f32 %v1418_v1, %v1369_v28  ;;  %2545 = vmatpush.bf16.msrb.mxu3 %v10022_v44  ;;  %v702_v44 = vld [vmem:[#allocation2 + $0xa8] sm:$0xff] }
 0x147   : > { %v1528_v24 = vpop.f32.mrf.mxu0 }
 0x149   : > { %v1817_v35 = vpop.f32.mrf.mxu1  ;;  %1914 = vmatmul.bf16.vlgmr.msra.gmra.mxu3 %v13241_v46 }
 0x14a   : > { %1963 = vmatmul.bf16.vlgmr.msra.gmra.mxu0 %v13241_v46 }
 0x14b   : > { %v1432_v45 = vpop.f32.mrf.mxu2 }
 0x14c   : > { %v1433_v34 = vadd.f32 %v1432_v45, %v11162_v6  ;;  %2012 = vmatmul.bf16.vlgmr.msra.gmra.mxu1 %v13241_v46  ;;  %v1479_v50 = vpop.f32.mrf.mxu3  ;;  %v698_v6 = vld [vmem:[#allocation2 + $0x88] sm:$0xff] }
 0x14d   : > { %v1480_v28 = vadd.f32 %v1479_v50, %v1431_v2  ;;  %v11241_v17 = vpack.c.bf16 %v698_v6, %v693_v37  ;;  %v769_v2 = vpack.c.bf16 %v11091_v14, %v11076_v57  ;;  %v10021_v14 = vld [vmem:[#allocation6 + $0x2e0] sm:$0xff] }
 0x14e   : > { %2546 = vmatpush.bf16.msrb.mxu3 %v10021_v14 }
 0x14f   : > { %v1529_v3 = vadd.f32 %v1528_v24, %v1480_v28  ;;  %v1530_v30 = vpop.f32.mrf.mxu0  ;;  %v707_v28 = vld [vmem:[#allocation2 + $0xd0] sm:$0xff] }
 0x150   : > { %1870 = vmatmul.bf16.gmra.mxu2 %v11234_v53  ;;  %v11251_v37 = vpack.c.bf16 %v707_v28, %v702_v44 }
 0x151   : > { %v1819_v1 = vpop.f32.mrf.mxu1  ;;  %v11238_v39 = vadd.f32 %v1817_v35, %v1529_v3  ;;  %v770_v35 = vpack.c.bf16 %v11095_v18, %v11078_v59 }
 0x153   : > { %v1435_v29 = vpop.f32.mrf.mxu2 }
 0x154   : > { %v1436_v25 = vadd.f32 %v1435_v29, %v11179_v49  ;;  %v1481_v58 = vpop.f32.mrf.mxu3  ;;  %v10013_v29 = vld [vmem:[#allocation6 + $0x2a0] sm:$0xff] }
 0x155   : > { %v1482_v45 = vadd.f32 %v1481_v58, %v1433_v34  ;;  %2497 = vmatpush.bf16.msrb.mxu2 %v10013_v29  ;;  %v10029_v58 = vld [vmem:[#allocation6 + $0x320] sm:$0xff] }
 0x156   : > { %2595 = vmatpush.bf16.msrb.mxu0 %v10029_v58  ;;  %v717_v29 = vld [vmem:[#allocation2 + $0x120] sm:$0xff] }
 0x157   : > { %v1531_v50 = vadd.f32 %v1530_v30, %v1482_v45  ;;  %v1533_v24 = vpop.f32.mrf.mxu0  ;;  %v703_v45 = vld [vmem:[#allocation2 + $0xb0] sm:$0xff] }
 0x159   : > { %v1822_v3 = vpop.f32.mrf.mxu1  ;;  %1919 = vmatmul.bf16.gmra.mxu3 %v11241_v17  ;;  %v11248_v7 = vadd.f32 %v1819_v1, %v1531_v50 }
 0x15a   : > { %1968 = vmatmul.bf16.gmra.mxu0 %v769_v2  ;;  %v708_v2 = vld [vmem:[#allocation2 + $0xd8] sm:$0xff] }
 0x15b   : > { %v1437_v8 = vpop.f32.mrf.mxu2  ;;  %v11257_v44 = vpack.c.bf16 %v708_v2, %v703_v45  ;;  %v10028_v45 = vld [vmem:[#allocation6 + $0x318] sm:$0xff]  ;;  %v713_v2 = vld [vmem:[#allocation2 + $0x100] sm:$0xff] }
 0x15c   : > { %v1438_v34 = vadd.f32 %v1437_v8, %v11185_v11  ;;  %2017 = vmatmul.bf16.gmra.mxu1 %v770_v35  ;;  %v1484_v57 = vpop.f32.mrf.mxu3  ;;  %v712_v35 = vld [vmem:[#allocation2 + $0xf8] sm:$0xff]  ;;  %2596 = vmatpush.bf16.msrb.mxu0 %v10028_v45 }
 0x15d   : > { %v1485_v49 = vadd.f32 %v1484_v57, %v1436_v25  ;;  %v774_v25 = vpack.c.bf16 %v11109_v38, %v11093_v15  ;;  %v10020_v38 = vld [vmem:[#allocation6 + $0x2d8] sm:$0xff] }
 0x15e   : > { %2547 = vmatpush.bf16.msrb.mxu3 %v10020_v38 }
 0x15f   : > { %v1534_v59 = vadd.f32 %v1533_v24, %v1485_v49  ;;  %v1535_v18 = vpop.f32.mrf.mxu0 }
 0x160   : > { %1875 = vmatmul.bf16.gmra.mxu2 %v11251_v37 }
 0x161   : > { %v1824_v30 = vpop.f32.mrf.mxu1  ;;  %v11254_v1 = vadd.f32 %v1822_v3, %v1534_v59  ;;  %v775_v3 = vpack.c.bf16 %v11113_v16, %v11097_v20  ;;  %v11267_v59 = vpack.c.bf16 %v717_v29, %v712_v35  ;;  %v780_v29 = vpack.c.bf16 %v11131_v61, %v11115_v41 }
 0x163   : > { %v1440_v6 = vpop.f32.mrf.mxu2 }
 0x164   : > { %v1441_v8 = vadd.f32 %v1440_v6, %v11203_v60  ;;  %v1486_v11 = vpop.f32.mrf.mxu3  ;;  %v10012_v60 = vld [vmem:[#allocation6 + $0x298] sm:$0xff] }
 0x165   : > { %v1487_v50 = vadd.f32 %v1486_v11, %v1438_v34  ;;  %2498 = vmatpush.bf16.msrb.mxu2 %v10012_v60  ;;  %v718_v11 = vld [vmem:[#allocation2 + $0x128] sm:$0xff] }
 0x167   : > { %v1536_v28 = vadd.f32 %v1535_v18, %v1487_v50  ;;  %v1538_v24 = vpop.f32.mrf.mxu0 }
 0x169   : > { %v1827_v57 = vpop.f32.mrf.mxu1  ;;  %1924 = vmatmul.bf16.gmra.mxu3 %v11257_v44  ;;  %v11264_v49 = vadd.f32 %v1824_v30, %v1536_v28  ;;  %v11273_v28 = vpack.c.bf16 %v718_v11, %v713_v2 }
 0x16a   : > { %1973 = vmatmul.bf16.gmra.mxu0 %v774_v25 }
 0x16b   : > { %v1442_v14 = vpop.f32.mrf.mxu2 }
 0x16c   : > { %v1443_v34 = vadd.f32 %v1442_v14, %v11209_v51  ;;  %2022 = vmatmul.bf16.gmra.mxu1 %v775_v3  ;;  %v1489_v15 = vpop.f32.mrf.mxu3  ;;  %v10011_v14 = vld [vmem:[#allocation6 + $0x290] sm:$0xff] }
 0x16d   : > { %v1490_v18 = vadd.f32 %v1489_v15, %v1441_v8  ;;  %v779_v8 = vpack.c.bf16 %v11129_v62, %v11111_v48  ;;  %2499 = vmatpush.bf16.msrb.mxu2 %v10011_v14  ;;  %v10019_v15 = vld [vmem:[#allocation6 + $0x2d0] sm:$0xff] }
 0x16e   : > { %2548 = vmatpush.bf16.msrb.mxu3 %v10019_v15  ;;  %v10039_v15 = vld [vmem:[#allocation6 + $0x370] sm:$0xff] }
 0x16f   : > { %v1539_v20 = vadd.f32 %v1538_v24, %v1490_v18  ;;  %v1540_v16 = vpop.f32.mrf.mxu0  ;;  %v10027_v18 = vld [vmem:[#allocation6 + $0x310] sm:$0xff] }
 0x170   : > { %1880 = vmatmul.bf16.gmra.mxu2 %v11267_v59  ;;  %2597 = vmatpush.bf16.msrb.mxu0 %v10027_v18 }
 0x171   : > { %v1829_v6 = vpop.f32.mrf.mxu1  ;;  %v11270_v30 = vadd.f32 %v1827_v57, %v1539_v20 }
 0x173   : > { %v1445_v58 = vpop.f32.mrf.mxu2 }
 0x174   : > { %v1446_v51 = vadd.f32 %v1445_v58, %v11221_v19  ;;  %v1491_v50 = vpop.f32.mrf.mxu3  ;;  %v10489_v58 = vld [vmem:[#allocation2 + $0x208] sm:$0xff] }
 0x175   : > { %v1492_v25 = vadd.f32 %v1491_v50, %v1443_v34  ;;  %v783_v45 = vpack.c.bf16 %v10489_v58, %v10489_v58  ;;  %v737_v50 = vld [vmem:[#allocation2 + $0x260] sm:$0xff] }
 0x177   : > { %v1541_v35 = vadd.f32 %v1540_v16, %v1492_v25  ;;  %v1543_v24 = vpop.f32.mrf.mxu0 }
 0x179   : > { %v1832_v3 = vpop.f32.mrf.mxu1  ;;  %1929 = vmatmul.bf16.gmra.mxu3 %v11273_v28  ;;  %v11280_v60 = vadd.f32 %v1829_v6, %v1541_v35 }
 0x17a   : > { %1978 = vmatmul.bf16.gmra.mxu0 %v779_v8  ;;  %v10010_v8 = vld [vmem:[#allocation6 + $0x288] sm:$0xff] }
 0x17b   : > { %v1447_v57 = vpop.f32.mrf.mxu2  ;;  %2500 = vmatpush.bf16.msrb.mxu2 %v10010_v8 }
 0x17c   : > { %v1448_v19 = vadd.f32 %v1447_v57, %v11226_v12  ;;  %2027 = vmatmul.bf16.gmra.mxu1 %v780_v29  ;;  %v1494_v34 = vpop.f32.mrf.mxu3  ;;  %v10018_v57 = vld [vmem:[#allocation6 + $0x2c8] sm:$0xff] }
 0x17d   : > { %v1495_v48 = vadd.f32 %v1494_v34, %v1446_v51  ;;  %v732_v51 = vld [vmem:[#allocation2 + $0x238] sm:$0xff]  ;;  %2549 = vmatpush.bf16.msrb.mxu3 %v10018_v57 }
 0x17e   : > { %v11290_v29 = vpack.c.bf16 %v737_v50, %v732_v51  ;;  %v742_v51 = vld [vmem:[#allocation2 + $0x288] sm:$0xff]  ;;  %v747_v50 = vld [vmem:[#allocation2 + $0x2b0] sm:$0xff] }
 0x17f   : > { %v1544_v62 = vadd.f32 %v1543_v24, %v1495_v48  ;;  %v1545_v41 = vpop.f32.mrf.mxu0 }
 0x180   : > { %1885 = vmatmul.bf16.gmra.mxu2 %v13241_v46 }
 0x181   : > { %v1834_v61 = vpop.f32.mrf.mxu1  ;;  %v11284_v20 = vadd.f32 %v1832_v3, %v1544_v62 }
 0x183   : > { %v1450_v38 = vpop.f32.mrf.mxu2 }
 0x184   : > { %v1451_v16 = vadd.f32 %v1450_v38, %v11156_v52  ;;  %v1496_v6 = vpop.f32.mrf.mxu3  ;;  %v10040_v52 = vld [vmem:[#allocation6 + $0x378] sm:$0xff]  ;;  %v738_v38 = vld [vmem:[#allocation2 + $0x268] sm:$0xff] }
 0x185   : > { %v1497_v12 = vadd.f32 %v1496_v6, %v1448_v19  ;;  %2641 = vmatpush.bf16.msrb.mxu1 %v10040_v52  ;;  %v10038_v6 = vld [vmem:[#allocation6 + $0x368] sm:$0xff] }
 0x187   : > { %v1546_v2 = vadd.f32 %v1545_v41, %v1497_v12  ;;  %v1548_v11 = vpop.f32.mrf.mxu0  ;;  %v10026_v41 = vld [vmem:[#allocation6 + $0x308] sm:$0xff] }
 0x188   : > { %2598 = vmatpush.bf16.msrb.mxu0 %v10026_v41  ;;  %v743_v41 = vld [vmem:[#allocation2 + $0x290] sm:$0xff] }
 0x189   : > { %v1837_v46 = vpop.f32.mrf.mxu1  ;;  %1934 = vmatmul.bf16.gmra.mxu3 %v783_v45  ;;  %v11287_v35 = vadd.f32 %v1834_v61, %v1546_v2  ;;  %2642 = vmatpush.bf16.msrb.mxu1 %v10039_v15  ;;  %v733_v61 = vld [vmem:[#allocation2 + $0x240] sm:$0xff] }
 0x18a   : > { %1983 = vmatmul.bf16.gmra.mxu0 %v783_v45  ;;  %v11296_v58 = vpack.c.bf16 %v738_v38, %v733_v61  ;;  %v748_v61 = vld [vmem:[#allocation2 + $0x2b8] sm:$0xff] }
 0x18b   : > { %v1452_v25 = vpop.f32.mrf.mxu2 }
 0x18c   : > { %v1453_v24 = vadd.f32 %v1452_v25, %v11172_v63  ;;  %2032 = vmatmul.bf16.gmra.mxu1 %v783_v45  ;;  %v1499_v3 = vpop.f32.mrf.mxu3  ;;  %v789_v45 = vpack.c.bf16 %v11164_v9, %v11143_v33  ;;  %v790_v25 = vpack.c.bf16 %v11168_v13, %v11145_v27  ;;  %v11306_v33 = vpack.c.bf16 %v747_v50, %v742_v51  ;;  %v10036_v9 = vld [vmem:[#allocation6 + $0x358] sm:$0xff]  ;;  %v757_v50 = vld [vmem:[#allocation2 + $0x300] sm:$0xff] }
 0x18d   : > { %v1500_v14 = vadd.f32 %v1499_v3, %v1451_v16  ;;  %2643 = vmatpush.bf16.msrb.mxu1 %v10038_v6  ;;  %v10034_v6 = vld [vmem:[#allocation6 + $0x348] sm:$0xff]  ;;  %v752_v51 = vld [vmem:[#allocation2 + $0x2d8] sm:$0xff] }
 0x18f   : > { %v1549_v19 = vadd.f32 %v1548_v11, %v1500_v14  ;;  %v1550_v34 = vpop.f32.mrf.mxu0  ;;  %v10017_v14 = vld [vmem:[#allocation6 + $0x2c0] sm:$0xff] }
 0x190   : > { %1890 = vmatmul.bf16.gmra.mxu2 %v11290_v29  ;;  %2550 = vmatpush.bf16.msrb.mxu3 %v10017_v14 }
 0x191   : > { %v1839_v48 = vpop.f32.mrf.mxu1  ;;  %v11293_v63 = vadd.f32 %v1837_v46, %v1549_v19  ;;  %v10037_v46 = vld [vmem:[#allocation6 + $0x360] sm:$0xff] }
 0x192   : > { %2644 = vmatpush.bf16.msrb.mxu1 %v10037_v46  ;;  %v10033_v46 = vld [vmem:[#allocation6 + $0x340] sm:$0xff] }
 0x193   : > { %v1455_v62 = vpop.f32.mrf.mxu2 }
 0x194   : > { %v1456_v18 = vadd.f32 %v1455_v62, %v11183_v55  ;;  %v1501_v16 = vpop.f32.mrf.mxu3  ;;  %v10025_v62 = vld [vmem:[#allocation6 + $0x300] sm:$0xff] }
 0x195   : > { %v1502_v12 = vadd.f32 %v1501_v16, %v1453_v24  ;;  %v10009_v24 = vld [vmem:[#allocation6 + $0x280] sm:$0xff]  ;;  %2599 = vmatpush.bf16.msrb.mxu0 %v10025_v62 }
 0x196   : > { %2501 = vmatpush.bf16.msrb.mxu2 %v10009_v24  ;;  %2645 = vmatpush.bf16.msrb.mxu1 %v10036_v9  ;;  %v10056_v9 = vld [vmem:[#allocation6 + $0x3f8] sm:$0xff] }
 0x197   : > { %v1551_v2 = vadd.f32 %v1550_v34, %v1502_v12  ;;  %v1553_v11 = vpop.f32.mrf.mxu0  ;;  %v10035_v34 = vld [vmem:[#allocation6 + $0x350] sm:$0xff]  ;;  %v11312_v12 = vpack.c.bf16 %v748_v61, %v743_v41  ;;  %3197 = vmatpush.bf16.msra.mxu3 %v10056_v9  ;;  %v799_v61 = vpack.c.bf16 %v11211_v36, %v11189_v23 }
 0x199   : > { %v1842_v8 = vpop.f32.mrf.mxu1  ;;  %1939 = vmatmul.bf16.gmra.mxu3 %v11296_v58  ;;  %v11303_v52 = vadd.f32 %v1839_v48, %v1551_v2 }
 0x19a   : > { %1988 = vmatmul.bf16.gmra.mxu0 %v789_v45  ;;  %2646 = vmatpush.bf16.msrb.mxu1 %v10035_v34  ;;  %v794_v45 = vpack.c.bf16 %v11187_v22, %v11166_v10  ;;  %v11322_v10 = vpack.c.bf16 %v757_v50, %v752_v51  ;;  %v753_v34 = vld [vmem:[#allocation2 + $0x2e0] sm:$0xff] }
 0x19b   : > { %v1457_v55 = vpop.f32.mrf.mxu2 }
 0x19c   : > { %v1458_v3 = vadd.f32 %v1457_v55, %v11195_v43  ;;  %2037 = vmatmul.bf16.gmra.mxu1 %v790_v25  ;;  %v1504_v57 = vpop.f32.mrf.mxu3  ;;  %v795_v25 = vpack.c.bf16 %v11191_v31, %v11170_v21  ;;  %v10048_v55 = vld [vmem:[#allocation6 + $0x3b8] sm:$0xff] }
 0x19d   : > { %v1505_v19 = vadd.f32 %v1504_v57, %v1456_v18  ;;  %2690 = vmatpush.bf16.msra.mxu2 %v10048_v55  ;;  %v10063_v55 = vld [vmem:[#allocation6 + $0x430] sm:$0xff] }
 0x19e   : > { %2647 = vmatpush.bf16.msrb.mxu1 %v10034_v6 }
 0x19f   : > { %v1554_v27 = vadd.f32 %v1553_v11, %v1505_v19  ;;  %v1555_v13 = vpop.f32.mrf.mxu0 }
 0x1a0   : > { %1895 = vmatmul.bf16.gmra.mxu2 %v11306_v33 }
 0x1a1   : > { %v1844_v15 = vpop.f32.mrf.mxu1  ;;  %v11309_v43 = vadd.f32 %v1842_v8, %v1554_v27  ;;  %v10064_v27 = vld [vmem:[#allocation6 + $0x438] sm:$0xff] }
 0x1a2   : > { %2648 = vmatpush.bf16.msrb.mxu1 %v10033_v46  ;;  %3246 = vmatpush.bf16.msra.mxu0 %v10064_v27  ;;  %v10055_v46 = vld [vmem:[#allocation6 + $0x3f0] sm:$0xff]  ;;  %v11346_v27 = vld [vmem:[#allocation2 + $0xc8] sm:$0xff] }
 0x1a3   : > { %v1460_v48 = vpop.f32.mrf.mxu2  ;;  %3198 = vmatpush.bf16.msra.mxu3 %v10055_v46 }
 0x1a4   : > { %v1461_v38 = vadd.f32 %v1460_v48, %v11207_v5  ;;  %v1506_v18 = vpop.f32.mrf.mxu3 }
 0x1a5   : > { %v1507_v16 = vadd.f32 %v1506_v18, %v1458_v3  ;;  %v2053_v18 = vld [vmem:[#allocation2 + $0x50] sm:$0xff] }
 0x1a6   : > { %3247 = vmatpush.bf16.msra.mxu0 %v10063_v55 }
 0x1a7   : > { %v1556_v2 = vadd.f32 %v1555_v13, %v1507_v16  ;;  %v1558_v11 = vpop.f32.mrf.mxu0  ;;  %v11332_v16 = vld [vmem:[#allocation2 + $0x78] sm:$0xff] }
 0x1a8   : > { %v2133_v23 = vpack.c.bf16 %v11332_v16, %v2053_v18 }
 0x1a9   : > { %v1847_v8 = vpop.f32.mrf.mxu1  ;;  %1944 = vmatmul.bf16.gmra.mxu3 %v11312_v12  ;;  %v11319_v24 = vadd.f32 %v1844_v15, %v1556_v2  ;;  %v758_v15 = vld [vmem:[#allocation2 + $0x308] sm:$0xff] }
 0x1aa   : > { %1993 = vmatmul.bf16.gmra.mxu0 %v794_v45  ;;  %v11328_v41 = vpack.c.bf16 %v758_v15, %v753_v34  ;;  %v800_v45 = vpack.c.bf16 %v11213_v54, %v11193_v32 }
 0x1ab   : > { %v1462_v5 = vpop.f32.mrf.mxu2 }
 0x1ac   : > { %v1463_v3 = vadd.f32 %v1462_v5, %v11215_v56  ;;  %2042 = vmatmul.bf16.gmra.mxu1 %v795_v25  ;;  %v1509_v22 = vpop.f32.mrf.mxu3 }
 0x1ad   : > { %v1510_v57 = vadd.f32 %v1509_v22, %v1461_v38 }
 0x1af   : > { %v1559_v21 = vadd.f32 %v1558_v11, %v1510_v57  ;;  %v1560_v31 = vpop.f32.mrf.mxu0  ;;  %v10047_v11 = vld [vmem:[#allocation6 + $0x3b0] sm:$0xff]  ;;  %v2056_v57 = vld [vmem:[#allocation2 + $0x68] sm:$0xff] }
 0x1b0   : > { %1900 = vmatmul.bf16.gmra.mxu2 %v11322_v10 }
 0x1b1   : > { %v1849_v14 = vpop.f32.mrf.mxu1  ;;  %v11325_v13 = vadd.f32 %v1847_v8, %v1559_v21  ;;  %2691 = vmatpush.bf16.msra.mxu2 %v10047_v11  ;;  %v2061_v21 = vld [vmem:[#allocation2 + $0x90] sm:$0xff] }
 0x1b2   : > { %v2136_v34 = vpack.c.bf16 %v2061_v21, %v2056_v57 }
 0x1b3   : > { %v1465_v19 = vpop.f32.mrf.mxu2 }
 0x1b4   : > { %v1466_v56 = vadd.f32 %v1465_v19, %v11223_v0  ;;  %v1511_v48 = vpop.f32.mrf.mxu3  ;;  %v11344_v19 = vld [vmem:[#allocation2 + $0xa0] sm:$0xff] }
 0x1b5   : > { %v1512_v62 = vadd.f32 %v1511_v48, %v1463_v3  ;;  %v10046_v48 = vld [vmem:[#allocation6 + $0x3a8] sm:$0xff] }
 0x1b6   : > { %2692 = vmatpush.bf16.msra.mxu2 %v10046_v48 }
 0x1b7   : > { %v1561_v38 = vadd.f32 %v1560_v31, %v1512_v62  ;;  %v1563_v6 = vpop.f32.mrf.mxu0 }
 0x1b9   : > { %v1852_v2 = vpop.f32.mrf.mxu1  ;;  %1949 = vmatmul.bf16.gmra.mxu3 %v11328_v41  ;;  %v11337_v51 = vadd.f32 %v1849_v14, %v1561_v38 }
 0x1ba   : > { %1998 = vmatmul.bf16.gmra.mxu0 %v799_v61  ;;  %v2138_v61 = vpack.c.bf16 %v11346_v27, %v11344_v19 }
 0x1bb   : > { %v1467_v0 = vpop.f32.mrf.mxu2 }
 0x1bc   : > { %v1468_v50 = vadd.f32 %v1467_v0, %v11229_v47  ;;  %2047 = vmatmul.bf16.gmra.mxu1 %v800_v45  ;;  %v1514_v36 = vpop.f32.mrf.mxu3  ;;  %v11356_v45 = vld [vmem:[%s10868_s13 + $0x38] sm:$0xff] }
 0x1bd   : > { %v1515_v25 = vadd.f32 %v1514_v36, %v1466_v56  ;;  %13242 = vst [vmem:[#allocation27_spill] sm:$0xff] %v11356_v45  ;;  %v592_v0 = vrot.slane %v11356_v45, 1 }
 0x1be   : > { %576 = vst [vmem:[#allocation2 + $0x178] sm:$0xff] %v11356_v45 }
 0x1bf   : > { %v1564_v32 = vadd.f32 %v1563_v6, %v1515_v25  ;;  %v1565_v54 = vpop.f32.mrf.mxu0  ;;  %v10054_v6 = vld [vmem:[#allocation6 + $0x3e8] sm:$0xff]  ;;  %624 = vst [vmem:[#allocation2 + $0x180] sm:$0x7f] %v592_v0 }
 0x1c0   : > { %2502 = vmatmul.bf16.vlgmr.msrb.gmra.mxu2 %v2133_v23  ;;  %3199 = vmatpush.bf16.msra.mxu3 %v10054_v6  ;;  %v10062_v23 = vld [vmem:[#allocation6 + $0x428] sm:$0xff]  ;;  %v10061_v6 = vld [vmem:[#allocation6 + $0x420] sm:$0xff] }
 0x1c1   : > { %v1854_v8 = vpop.f32.mrf.mxu1  ;;  %v11341_v3 = vadd.f32 %v1852_v2, %v1564_v32  ;;  %3248 = vmatpush.bf16.msra.mxu0 %v10062_v23 }
 0x1c3   : > { %v1866_v5 = vpop.f32.mrf.mxu2 }
 0x1c4   : > { %v1867_v22 = vadd.f32 %v1866_v5, %v11238_v39  ;;  %v1516_v47 = vpop.f32.mrf.mxu3 }
 0x1c5   : > { %v1517_v9 = vadd.f32 %v1516_v47, %v1468_v50  ;;  %v11367_v47 = vld [vmem:[#allocation2 + $0x118] sm:$0xff]  ;;  %3249 = vmatpush.bf16.msra.mxu0 %v10061_v6 }
 0x1c7   : > { %v1566_v31 = vadd.f32 %v1565_v54, %v1517_v9  ;;  %v1964_v14 = vpop.f32.mrf.mxu0  ;;  %v2066_v54 = vld [vmem:[#allocation2 + $0xb8] sm:$0xff] }
 0x1c9   : > { %v2013_v15 = vpop.f32.mrf.mxu1  ;;  %2551 = vmatmul.bf16.vlgmr.msrb.gmra.mxu3 %v11234_v53  ;;  %v11349_v62 = vadd.f32 %v1854_v8, %v1566_v31  ;;  %v480_v53 = vrot.slane %v11356_v45, 6  ;;  %v2071_v8 = vld [vmem:[#allocation2 + $0xe0] sm:$0xff] }
 0x1ca   : > { %2600 = vmatmul.bf16.vlgmr.msrb.gmra.mxu0 %v11241_v17  ;;  %v528_v17 = vrot.slane %v11356_v45, 7  ;;  %v2141_v9 = vpack.c.bf16 %v2071_v8, %v2066_v54  ;;  %v10045_v31 = vld [vmem:[#allocation6 + $0x3a0] sm:$0xff] }
 0x1cb   : > { %v1868_v56 = vpop.f32.mrf.mxu2  ;;  %512 = vst [vmem:[#allocation2 + $0x168] sm:$0xfc] %v480_v53  ;;  %2693 = vmatpush.bf16.msra.mxu2 %v10045_v31 }
 0x1cc   : > { %v1869_v39 = vadd.f32 %v1868_v56, %v11248_v7  ;;  %2649 = vmatmul.bf16.vlgmr.msrb.gmra.mxu1 %v2136_v34  ;;  %v1915_v38 = vpop.f32.mrf.mxu3  ;;  %560 = vst [vmem:[#allocation2 + $0x170] sm:$0xfe] %v528_v17  ;;  %v10053_v56 = vld [vmem:[#allocation6 + $0x3e0] sm:$0xff]  ;;  %v2076_v17 = vld [vmem:[#allocation2 + $0x108] sm:$0xff] }
 0x1cd   : > { %v1916_v18 = vadd.f32 %v1915_v38, %v1867_v22  ;;  %v11365_v22 = vld [vmem:[#allocation2 + $0xf0] sm:$0xff]  ;;  %3200 = vmatpush.bf16.msra.mxu3 %v10053_v56 }
 0x1ce   : > { %v2143_v34 = vpack.c.bf16 %v11367_v47, %v11365_v22  ;;  %v11397_v56 = vld [vmem:[#allocation2 + $0x150] sm:$0xff] }
 0x1cf   : > { %v1965_v2 = vadd.f32 %v1964_v14, %v1916_v18  ;;  %v1966_v7 = vpop.f32.mrf.mxu0  ;;  %v2150_v6 = vpack.c.bf16 %v11356_v45, %v11397_v56 }
 0x1d0   : > { %2507 = vmatmul.bf16.gmra.mxu2 %v2138_v61 }
 0x1d1   : > { %v2015_v11 = vpop.f32.mrf.mxu1  ;;  %v11362_v36 = vadd.f32 %v2013_v15, %v1965_v2  ;;  %v2081_v2 = vld [vmem:[#allocation2 + $0x130] sm:$0xff] }
 0x1d2   : > { %v2146_v23 = vpack.c.bf16 %v2081_v2, %v2076_v17  ;;  %v11403_v17 = vld [vmem:[#allocation2 + $0x258] sm:$0xff] }
 0x1d3   : > { %v1871_v50 = vpop.f32.mrf.mxu2 }
 0x1d4   : > { %v1872_v46 = vadd.f32 %v1871_v50, %v11254_v1  ;;  %v1917_v25 = vpop.f32.mrf.mxu3  ;;  %v11381_v50 = vld [vmem:[#allocation2 + $0x168] sm:$0xff] }
 0x1d5   : > { %v1918_v32 = vadd.f32 %v1917_v25, %v1869_v39 }
 0x1d7   : > { %v1967_v5 = vadd.f32 %v1966_v7, %v1918_v32  ;;  %v1969_v55 = vpop.f32.mrf.mxu0  ;;  %v10044_v32 = vld [vmem:[#allocation6 + $0x398] sm:$0xff] }
 0x1d8   : > { %2694 = vmatpush.bf16.msra.mxu2 %v10044_v32 }
 0x1d9   : > { %v2018_v57 = vpop.f32.mrf.mxu1  ;;  %2556 = vmatmul.bf16.gmra.mxu3 %v11251_v37  ;;  %v11370_v14 = vadd.f32 %v2015_v11, %v1967_v5  ;;  %v11379_v11 = vld [vmem:[#allocation2 + $0x140] sm:$0xff] }
 0x1da   : > { %2605 = vmatmul.bf16.gmra.mxu0 %v11257_v44  ;;  %v2148_v8 = vpack.c.bf16 %v11381_v50, %v11379_v11 }
 0x1db   : > { %v1873_v21 = vpop.f32.mrf.mxu2 }
 0x1dc   : > { %v1874_v1 = vadd.f32 %v1873_v21, %v11264_v49  ;;  %2654 = vmatmul.bf16.gmra.mxu1 %v2141_v9  ;;  %v1920_v15 = vpop.f32.mrf.mxu3 }
 0x1dd   : > { %v1921_v48 = vadd.f32 %v1920_v15, %v1872_v46 }
 0x1df   : > { %v1970_v39 = vadd.f32 %v1969_v55, %v1921_v48  ;;  %v1971_v37 = vpop.f32.mrf.mxu0  ;;  %v10052_v55 = vld [vmem:[#allocation6 + $0x3d8] sm:$0xff] }
 0x1e0   : > { %2512 = vmatmul.bf16.gmra.mxu2 %v2143_v34  ;;  %3201 = vmatpush.bf16.msra.mxu3 %v10052_v55 }
 0x1e1   : > { %v2020_v61 = vpop.f32.mrf.mxu1  ;;  %v11376_v18 = vadd.f32 %v2018_v57, %v1970_v39 }
 0x1e3   : > { %v1876_v38 = vpop.f32.mrf.mxu2 }
 0x1e4   : > { %v1877_v44 = vadd.f32 %v1876_v38, %v11270_v30  ;;  %v1922_v49 = vpop.f32.mrf.mxu3  ;;  %v2091_v38 = vld [vmem:[#allocation2 + $0x180] sm:$0xff] }
 0x1e5   : > { %v1923_v53 = vadd.f32 %v1922_v49, %v1874_v1  ;;  %v10060_v1 = vld [vmem:[#allocation6 + $0x418] sm:$0xff] }
 0x1e6   : > { %3250 = vmatpush.bf16.msra.mxu0 %v10060_v1 }
 0x1e7   : > { %v1972_v7 = vadd.f32 %v1971_v37, %v1923_v53  ;;  %v1974_v0 = vpop.f32.mrf.mxu0  ;;  %v2093_v53 = vld [vmem:[#allocation2 + $0x230] sm:$0xff] }
 0x1e9   : > { %v2023_v46 = vpop.f32.mrf.mxu1  ;;  %2561 = vmatmul.bf16.gmra.mxu3 %v11267_v59  ;;  %v11384_v54 = vadd.f32 %v2020_v61, %v1972_v7  ;;  %v2086_v61 = vld [vmem:[#allocation2 + $0x158] sm:$0xff] }
 0x1ea   : > { %2610 = vmatmul.bf16.gmra.mxu0 %v11273_v28  ;;  %v11392_v28 = vld [vmem:[#allocation2 + $0x148] sm:$0xff]  ;;  %v2151_v2 = vpack.c.bf16 %v2091_v38, %v2086_v61  ;;  %v11412_v38 = vld [vmem:[#allocation2 + $0x280] sm:$0xff] }
 0x1eb   : > { %v1878_v25 = vpop.f32.mrf.mxu2 }
 0x1ec   : > { %v1879_v30 = vadd.f32 %v1878_v25, %v11280_v60  ;;  %2659 = vmatmul.bf16.gmra.mxu1 %v2146_v23  ;;  %v1925_v5 = vpop.f32.mrf.mxu3  ;;  %v11394_v60 = vld [vmem:[#allocation2 + $0x170] sm:$0xff]  ;;  %v2153_v25 = vpack.c.bf16 %v11403_v17, %v2093_v53  ;;  %v10042_v53 = vld [vmem:[#allocation6 + $0x388] sm:$0xff] }
 0x1ed   : > { %v1926_v9 = vadd.f32 %v1925_v5, %v1877_v44  ;;  %v2149_v37 = vpack.c.bf16 %v11394_v60, %v11392_v28 }
 0x1ef   : > { %v1975_v57 = vadd.f32 %v1974_v0, %v1926_v9  ;;  %v1976_v59 = vpop.f32.mrf.mxu0  ;;  %v10043_v0 = vld [vmem:[#allocation6 + $0x390] sm:$0xff] }
 0x1f0   : > { %2517 = vmatmul.bf16.gmra.mxu2 %v2148_v8 }
 0x1f1   : > { %v2025_v21 = vpop.f32.mrf.mxu1  ;;  %v11390_v34 = vadd.f32 %v2023_v46, %v1975_v57  ;;  %2695 = vmatpush.bf16.msra.mxu2 %v10043_v0 }
 0x1f3   : > { %v1881_v31 = vpop.f32.mrf.mxu2 }
 0x1f4   : > { %v1882_v15 = vadd.f32 %v1881_v31, %v11284_v20  ;;  %v1927_v48 = vpop.f32.mrf.mxu3 }
 0x1f5   : > { %v1928_v39 = vadd.f32 %v1927_v48, %v1879_v30  ;;  %v10051_v30 = vld [vmem:[#allocation6 + $0x3d0] sm:$0xff]  ;;  %v2096_v48 = vld [vmem:[#allocation2 + $0x248] sm:$0xff]  ;;  %2696 = vmatpush.bf16.msra.mxu2 %v10042_v53  ;;  %v11435_v53 = vld [vmem:[#allocation2 + $0x2f8] sm:$0xff] }
 0x1f6   : > { %3202 = vmatpush.bf16.msra.mxu3 %v10051_v30 }
 0x1f7   : > { %v1977_v44 = vadd.f32 %v1976_v59, %v1928_v39  ;;  %v1979_v49 = vpop.f32.mrf.mxu0  ;;  %v10059_v59 = vld [vmem:[#allocation6 + $0x410] sm:$0xff] }
 0x1f8   : > { %3251 = vmatpush.bf16.msra.mxu0 %v10059_v59  ;;  %v2101_v39 = vld [vmem:[#allocation2 + $0x270] sm:$0xff] }
 0x1f9   : > { %v2028_v20 = vpop.f32.mrf.mxu1  ;;  %2566 = vmatmul.bf16.gmra.mxu3 %v2149_v37  ;;  %v11405_v23 = vadd.f32 %v2025_v21, %v1977_v44 }
 0x1fa   : > { %2615 = vmatmul.bf16.gmra.mxu0 %v2150_v6  ;;  %v2156_v6 = vpack.c.bf16 %v2101_v39, %v2096_v48  ;;  %v2106_v39 = vld [vmem:[#allocation2 + $0x298] sm:$0xff] }
 0x1fb   : > { %v1883_v7 = vpop.f32.mrf.mxu2 }
 0x1fc   : > { %v1884_v46 = vadd.f32 %v1883_v7, %v11287_v35  ;;  %2664 = vmatmul.bf16.gmra.mxu1 %v2151_v2  ;;  %v1930_v32 = vpop.f32.mrf.mxu3  ;;  %v10072_v7 = vld [vmem:[#allocation6 + $0x478] sm:$0xff] }
 0x1fd   : > { %v1931_v8 = vadd.f32 %v1930_v32, %v1882_v15  ;;  %v11414_v15 = vld [vmem:[#allocation2 + $0x2a8] sm:$0xff]  ;;  %3295 = vmatpush.bf16.msra.mxu1 %v10072_v7  ;;  %v11424_v32 = vld [vmem:[%s10868_s13 + $0x78] sm:$0xff]  ;;  %s13025_s13 = scalar_lea.vmem [#allocation9], %s8285_s29  ;;  %s10330_s29 = sshll.u32 %s10787_s28, 7 }
 0x1fe   : > { %13243 = vst [vmem:[#allocation28_spill] sm:$0xff] %v11424_v32  ;;  %s8179_s19 = scalar_lea.hbm %s13148_s7, %s10330_s29  ;;  %s8180_s20 = sshll.u32 %s13025_s13, 4  ;;  %s8181_s20 = int_to_ptr.vmem [resolvable:$true] %s8180_s20 }
 0x1ff   : > { %v1980_v5 = vadd.f32 %v1979_v49, %v1931_v8  ;;  %v1981_v55 = vpop.f32.mrf.mxu0  ;;  %584 = vst [vmem:[#allocation2 + $0x358] sm:$0xff] %v11424_v32  ;;  %v10071_v8 = vld [vmem:[#allocation6 + $0x470] sm:$0xff]  ;;  %s8182_s21 = sshll.u32 %s8179_s19, 4  ;;  %s8167_s28 = scalar_lea.sflag [#allocation5], %s10862_s14  ;;  %s8183_s21 = int_to_ptr.hbm [resolvable:$true] %s8182_s21 }
 0x200   : > { %2522 = vmatmul.bf16.gmra.mxu2 %v2153_v25  ;;  %s10658_s23 = sshra.s32 %s8183_s21, 4  ;;  %s10659_s23 = int_to_ptr.hbm [resolvable:$true] %s10658_s23 }
 0x201   : > { %v2030_v9 = vpop.f32.mrf.mxu1  ;;  %v11409_v31 = vadd.f32 %v2028_v20, %v1980_v5  ;;  %v2158_v20 = vpack.c.bf16 %v11414_v15, %v11412_v38  ;;  %v600_v5 = vrot.slane %v11424_v32, 1  ;;  %3296 = vmatpush.bf16.msra.mxu1 %v10071_v8  ;;  %s10660_s15 = scalar_lea.hbm %s10659_s23, 128  ;;  %p10665_p11 = scmp.lt.s32.totalorder %s10659_s23, %s13148_s7 }
 0x202   : > { %p10661_p1 = scmp.ne.s32.totalorder %s10659_s23, %s10660_s15  ;;  %p10666_p2 = scmp.lt.s32.totalorder %s10664_s11, %s10660_s15 }
 0x203   : > { %v1886_v57 = vpop.f32.mrf.mxu2  ;;  %632 = vst [vmem:[#allocation2 + $0x360] sm:$0x7f] %v600_v5  ;;  %v10067_v5 = vld [vmem:[#allocation6 + $0x450] sm:$0xff] }
 0x204   : > { %v1887_v21 = vadd.f32 %v1886_v57, %v11293_v63  ;;  %v1932_v35 = vpop.f32.mrf.mxu3  ;;  %v10058_v57 = vld [vmem:[#allocation6 + $0x408] sm:$0xff]  ;;  %p10662_p4 = pnand %p10661_p1, %p10832_p3  ;;  %p10667_p9 = por %p10666_p2, %p10665_p11 }
 0x205   : > { %v1933_v1 = vadd.f32 %v1932_v35, %v1884_v46  ;;  %v10050_v46 = vld [vmem:[#allocation6 + $0x3c8] sm:$0xff]  ;;  %3252 = vmatpush.bf16.msra.mxu0 %v10058_v57 }
 0x206   : > { %3203 = vmatpush.bf16.msra.mxu3 %v10050_v46  ;;  %v10070_v35 = vld [vmem:[#allocation6 + $0x468] sm:$0xff]  ;;  %p10663_p8 = pneg %p10662_p4 }
 0x207   : > { %v1982_v37 = vadd.f32 %v1981_v55, %v1933_v1  ;;  %v1984_v61 = vpop.f32.mrf.mxu0  ;;  %3297 = vmatpush.bf16.msra.mxu1 %v10070_v35  ;;  %v10066_v35 = vld [vmem:[#allocation6 + $0x448] sm:$0xff] }
 0x208   : > { %p10668_p10 = pnand %p10667_p9, %p10663_p8 }
 0x209   : > { %v2033_v44 = vpop.f32.mrf.mxu1  ;;  %2571 = vmatmul.bf16.gmra.mxu3 %v11290_v29  ;;  %v11417_v2 = vadd.f32 %v2030_v9, %v1982_v37  ;;  %v488_v29 = vrot.slane %v11424_v32, 6  ;;  %v2111_v37 = vld [vmem:[#allocation2 + $0x2c0] sm:$0xff] }
 0x20a   : > { %2620 = vmatmul.bf16.gmra.mxu0 %v11296_v58  ;;  %v536_v58 = vrot.slane %v11424_v32, 7  ;;  %v2161_v7 = vpack.c.bf16 %v2111_v37, %v2106_v39  ;;  %v2116_v39 = vld [vmem:[#allocation2 + $0x2e8] sm:$0xff] }
 0x20b   : > { %v1888_v49 = vpop.f32.mrf.mxu2  ;;  %520 = vst [vmem:[#allocation2 + $0x348] sm:$0xfc] %v488_v29  ;;  %v10068_v29 = vld [vmem:[#allocation6 + $0x458] sm:$0xff] }
 0x20c   : > { %v1889_v63 = vadd.f32 %v1888_v49, %v11303_v52  ;;  %2669 = vmatmul.bf16.gmra.mxu1 %v2156_v6  ;;  %v1935_v0 = vpop.f32.mrf.mxu3  ;;  %568 = vst [vmem:[#allocation2 + $0x350] sm:$0xfe] %v536_v58  ;;  %v11433_v49 = vld [vmem:[#allocation2 + $0x2d0] sm:$0xff] }
 0x20d   : > { %v1936_v25 = vadd.f32 %v1935_v0, %v1887_v21  ;;  %v10041_v0 = vld [vmem:[#allocation6 + $0x380] sm:$0xff] }
 0x20e   : > { %2697 = vmatpush.bf16.msra.mxu2 %v10041_v0 }
 0x20f   : > { %v1985_v52 = vadd.f32 %v1984_v61, %v1936_v25  ;;  %v1986_v30 = vpop.f32.mrf.mxu0  ;;  %v2163_v25 = vpack.c.bf16 %v11435_v53, %v11433_v49 }
 0x210   : > { %2527 = vmatmul.bf16.gmra.mxu2 %v2158_v20  ;;  %v10069_v20 = vld [vmem:[#allocation6 + $0x460] sm:$0xff] }
 0x211   : > { %v2035_v55 = vpop.f32.mrf.mxu1  ;;  %v11430_v59 = vadd.f32 %v2033_v44, %v1985_v52  ;;  %3298 = vmatpush.bf16.msra.mxu1 %v10069_v20  ;;  %v10049_v52 = vld [vmem:[#allocation6 + $0x3c0] sm:$0xff] }
 0x212   : > { %3204 = vmatpush.bf16.msra.mxu3 %v10049_v52  ;;  %v11449_v20 = vld [vmem:[#allocation2 + $0x348] sm:$0xff]  ;;  %v10088_v52 = vld [vmem:[#allocation6 + $0x4f8] sm:$0xff] }
 0x213   : > { %v1891_v9 = vpop.f32.mrf.mxu2 }
 0x214   : > { %v1892_v21 = vadd.f32 %v1891_v9, %v11309_v43  ;;  %v1937_v1 = vpop.f32.mrf.mxu3 }
 0x215   : > { %v1938_v48 = vadd.f32 %v1937_v1, %v1889_v63  ;;  %3299 = vmatpush.bf16.msra.mxu1 %v10068_v29 }
 0x216   : > { %3393 = vmatpush.bf16.msrb.mxu3 %v10088_v52 }
 0x217   : > { %v1987_v61 = vadd.f32 %v1986_v30, %v1938_v48  ;;  %v1989_v6 = vpop.f32.mrf.mxu0 }
 0x219   : > { %v2038_v44 = vpop.f32.mrf.mxu1  ;;  %2576 = vmatmul.bf16.gmra.mxu3 %v11306_v33  ;;  %v11438_v46 = vadd.f32 %v2035_v55, %v1987_v61  ;;  %3300 = vmatpush.bf16.msra.mxu1 %v10067_v5 }
 0x21a   : > { %2625 = vmatmul.bf16.gmra.mxu0 %v11312_v12  ;;  %v10057_v12 = vld [vmem:[#allocation6 + $0x400] sm:$0xff] }
 0x21b   : > { %v1893_v43 = vpop.f32.mrf.mxu2  ;;  %3253 = vmatpush.bf16.msra.mxu0 %v10057_v12 }
 0x21c   : > { %v1894_v63 = vadd.f32 %v1893_v43, %v11319_v24  ;;  %2674 = vmatmul.bf16.gmra.mxu1 %v2161_v7  ;;  %v1940_v58 = vpop.f32.mrf.mxu3  ;;  %v10065_v7 = vld [vmem:[#allocation6 + $0x440] sm:$0xff] }
 0x21d   : > { %v1941_v30 = vadd.f32 %v1940_v58, %v1892_v21  ;;  %v2121_v21 = vld [vmem:[#allocation2 + $0x310] sm:$0xff]  ;;  %3301 = vmatpush.bf16.msra.mxu1 %v10066_v35 }
 0x21e   : > { %v2166_v43 = vpack.c.bf16 %v2121_v21, %v2116_v39  ;;  %v11465_v35 = vld [vmem:[#allocation2 + $0x330] sm:$0xff]  ;;  %v2126_v39 = vld [vmem:[#allocation2 + $0x338] sm:$0xff]  ;;  %v2131_v21 = vld [vmem:[#allocation2 + $0x360] sm:$0xff] }
 0x21f   : > { %v1990_v33 = vadd.f32 %v1989_v6, %v1941_v30  ;;  %v1991_v8 = vpop.f32.mrf.mxu0  ;;  %v11447_v6 = vld [vmem:[#allocation2 + $0x320] sm:$0xff] }
 0x220   : > { %2532 = vmatmul.bf16.gmra.mxu2 %v2163_v25  ;;  %v2168_v29 = vpack.c.bf16 %v11449_v20, %v11447_v6 }
 0x221   : > { %v2040_v55 = vpop.f32.mrf.mxu1  ;;  %v11444_v24 = vadd.f32 %v2038_v44, %v1990_v33  ;;  %3302 = vmatpush.bf16.msra.mxu1 %v10065_v7 }
 0x223   : > { %v1896_v9 = vpop.f32.mrf.mxu2  ;;  %13244 = vst [vmem:[#allocation29_spill] sm:$0xff] %v11444_v24 }
 0x224   : > { %v1897_v57 = vadd.f32 %v1896_v9, %v11325_v13  ;;  %v1942_v1 = vpop.f32.mrf.mxu3  ;;  %v10080_v13 = vld [vmem:[#allocation6 + $0x4b8] sm:$0xff] }
 0x225   : > { %v1943_v48 = vadd.f32 %v1942_v1, %v1894_v63  ;;  %3344 = vmatpush.bf16.msrb.mxu2 %v10080_v13 }
 0x227   : > { %v1992_v37 = vadd.f32 %v1991_v8, %v1943_v48  ;;  %v1994_v61 = vpop.f32.mrf.mxu0 }
 0x229   : > { %v2043_v0 = vpop.f32.mrf.mxu1  ;;  %2581 = vmatmul.bf16.gmra.mxu3 %v11322_v10  ;;  %v11452_v25 = vadd.f32 %v2040_v55, %v1992_v37  ;;  %v10096_v55 = vld [vmem:[#allocation6 + $0x538] sm:$0xff]  ;;  %v2170_v37 = vpack.c.bf16 %v11424_v32, %v11465_v35 }
 0x22a   : > { %2630 = vmatmul.bf16.gmra.mxu0 %v11328_v41  ;;  %v11460_v41 = vld [vmem:[#allocation2 + $0x328] sm:$0xff] }
 0x22b   : > { %v1898_v44 = vpop.f32.mrf.mxu2  ;;  %13245 = vst [vmem:[#allocation30_spill] sm:$0xff] %v11452_v25  ;;  %3900 = vmatpush.bf16.msrb.mxu0 %v10096_v55  ;;  %v10101_v25 = vld [vmem:[#allocation6 + $0x560] sm:$0xff] }
 0x22c   : > { %v1899_v63 = vadd.f32 %v1898_v44, %v11337_v51  ;;  %2679 = vmatmul.bf16.gmra.mxu1 %v2166_v43  ;;  %v1945_v58 = vpop.f32.mrf.mxu3  ;;  %v11462_v51 = vld [vmem:[#allocation2 + $0x350] sm:$0xff]  ;;  %v2171_v44 = vpack.c.bf16 %v2131_v21, %v2126_v39  ;;  %v11479_v21 = vld [vmem:[#allocation2 + $0xa8] sm:$0xff] }
 0x22d   : > { %v1946_v30 = vadd.f32 %v1945_v58, %v1897_v57  ;;  %v2169_v48 = vpack.c.bf16 %v11462_v51, %v11460_v41  ;;  %v2057_v43 = vld [vmem:[#allocation2 + $0x70] sm:$0xff] }
 0x22f   : > { %v1995_v10 = vadd.f32 %v1994_v61, %v1946_v30  ;;  %v1996_v33 = vpop.f32.mrf.mxu0 }
 0x230   : > { %2537 = vmatmul.bf16.gmra.mxu2 %v2168_v29  ;;  %v10079_v29 = vld [vmem:[#allocation6 + $0x4b0] sm:$0xff] }
 0x231   : > { %v2045_v8 = vpop.f32.mrf.mxu1  ;;  %v11458_v9 = vadd.f32 %v2043_v0, %v1995_v10  ;;  %v11471_v0 = vld [vmem:[#allocation2 + $0x98] sm:$0xff]  ;;  %3345 = vmatpush.bf16.msrb.mxu2 %v10079_v29  ;;  %v10087_v10 = vld [vmem:[#allocation6 + $0x4f0] sm:$0xff]  ;;  %v11484_v29 = vld [vmem:[#allocation2 + $0xc0] sm:$0xff] }
 0x232   : > { %v2137_v52 = vpack.c.bf16 %v11471_v0, %v2057_v43  ;;  %3394 = vmatpush.bf16.msrb.mxu3 %v10087_v10  ;;  %v2758_v43 = vld [vmem:[#allocation2 + $0x88] sm:$0xff] }
 0x233   : > { %v1901_v5 = vpop.f32.mrf.mxu2  ;;  %13246 = vst [vmem:[#allocation31_spill] sm:$0xff] %v11458_v9 }
 0x234   : > { %v1902_v12 = vadd.f32 %v1901_v5, %v11341_v3  ;;  %v1947_v1 = vpop.f32.mrf.mxu3 }
 0x235   : > { %v1948_v57 = vadd.f32 %v1947_v1, %v1899_v63 }
 0x237   : > { %v1997_v61 = vadd.f32 %v1996_v33, %v1948_v57  ;;  %v1999_v7 = vpop.f32.mrf.mxu0 }
 0x239   : > { %v2048_v3 = vpop.f32.mrf.mxu1  ;;  %2586 = vmatmul.bf16.gmra.mxu3 %v2169_v48  ;;  %v11473_v58 = vadd.f32 %v2045_v8, %v1997_v61  ;;  %v10095_v48 = vld [vmem:[#allocation6 + $0x530] sm:$0xff]  ;;  %v2757_v8 = vld [vmem:[#allocation2 + $0x80] sm:$0xff]  ;;  %v2836_v61 = vpack.c.bf16 %v11344_v19, %v11332_v16 }
 0x23a   : > { %2635 = vmatmul.bf16.gmra.mxu0 %v2170_v37 }
 0x23b   : > { %v1903_v13 = vpop.f32.mrf.mxu2  ;;  %13247 = vst [vmem:[#allocation32_spill] sm:$0xff] %v11473_v58  ;;  %3901 = vmatpush.bf16.msrb.mxu0 %v10095_v48  ;;  %v640_v48 = vrot.slane %v11356_v45, 2  ;;  %v2797_v58 = vld [vmem:[#allocation2 + $0x260] sm:$0xff] }
 0x23c   : > { %v1904_v63 = vadd.f32 %v1903_v13, %v11349_v62  ;;  %2684 = vmatmul.bf16.gmra.mxu1 %v2171_v44  ;;  %v1950_v30 = vpop.f32.mrf.mxu3  ;;  %v2837_v44 = vpack.c.bf16 %v11479_v21, %v2757_v8 }
 0x23d   : > { %v1951_v33 = vadd.f32 %v1950_v30, %v1902_v12  ;;  %v2763_v12 = vld [vmem:[#allocation2 + $0xb0] sm:$0xff]  ;;  %672 = vst [vmem:[#allocation2 + $0x188] sm:$0x3f] %v640_v48 }
 0x23f   : > { %v2000_v5 = vadd.f32 %v1999_v7, %v1951_v33  ;;  %v2001_v55 = vpop.f32.mrf.mxu0  ;;  %v10078_v33 = vld [vmem:[#allocation6 + $0x4a8] sm:$0xff] }
 0x240   : > { %2698 = vmatmul.bf16.vlgmr.msra.gmra.mxu2 %v2137_v52  ;;  %v11486_v52 = vld [vmem:[#allocation2 + $0xe8] sm:$0xff] }
 0x241   : > { %v2050_v1 = vpop.f32.mrf.mxu1  ;;  %v11477_v39 = vadd.f32 %v2048_v3, %v2000_v5  ;;  %v2838_v3 = vpack.c.bf16 %v2763_v12, %v2758_v43  ;;  %v2142_v16 = vpack.c.bf16 %v11486_v52, %v11484_v29  ;;  %3346 = vmatpush.bf16.msrb.mxu2 %v10078_v33  ;;  %v11495_v12 = vld [vmem:[#allocation2 + $0xd0] sm:$0xff]  ;;  %v2768_v33 = vld [vmem:[#allocation2 + $0xd8] sm:$0xff] }
 0x243   : > { %v2503_v57 = vpop.f32.mrf.mxu2  ;;  %13248 = vst [vmem:[#allocation33_spill] sm:$0xff] %v11477_v39  ;;  %v10091_v39 = vld [vmem:[#allocation6 + $0x510] sm:$0xff] }
 0x244   : > { %v1952_v62 = vpop.f32.mrf.mxu3 }
 0x245   : > { %v1953_v37 = vadd.f32 %v1952_v62, %v1904_v63  ;;  %v10086_v63 = vld [vmem:[#allocation6 + $0x4e8] sm:$0xff]  ;;  %3347 = vmatpush.bf16.msrb.mxu2 %v10077_v4  ;;  %v2846_v4 = vpack.c.bf16 %v11379_v11, %v11367_v47  ;;  %v10084_v11 = vld [vmem:[#allocation6 + $0x4d8] sm:$0xff] }
 0x246   : > { %3395 = vmatpush.bf16.msrb.mxu3 %v10086_v63 }
 0x247   : > { %v2002_v7 = vadd.f32 %v2001_v55, %v1953_v37  ;;  %v2601_v13 = vpop.f32.mrf.mxu0 }
 0x249   : > { %v2650_v30 = vpop.f32.mrf.mxu1  ;;  %3205 = vmatmul.bf16.vlgmr.msra.gmra.mxu3 %v2836_v61  ;;  %v11488_v5 = vadd.f32 %v2050_v1, %v2002_v7  ;;  %v10094_v1 = vld [vmem:[#allocation6 + $0x528] sm:$0xff] }
 0x24a   : > { %3254 = vmatmul.bf16.vlgmr.msra.gmra.mxu0 %v2837_v44  ;;  %v11497_v44 = vld [vmem:[#allocation2 + $0xf8] sm:$0xff] }
 0x24b   : > { %v2505_v10 = vpop.f32.mrf.mxu2  ;;  %13249 = vst [vmem:[#allocation34_spill] sm:$0xff] %v11488_v5  ;;  %3902 = vmatpush.bf16.msrb.mxu0 %v10094_v1 }
 0x24c   : > { %3303 = vmatmul.bf16.vlgmr.msra.gmra.mxu1 %v2838_v3  ;;  %v2552_v19 = vpop.f32.mrf.mxu3 }
 0x24d   : > { %v2553_v55 = vadd.f32 %v2552_v19, %v2503_v57  ;;  %v2841_v57 = vpack.c.bf16 %v11365_v22, %v11346_v27 }
 0x24f   : > { %v2602_v8 = vadd.f32 %v2601_v13, %v2553_v55  ;;  %v2603_v62 = vpop.f32.mrf.mxu0  ;;  %v2842_v13 = vpack.c.bf16 %v11497_v44, %v11495_v12  ;;  %v11503_v55 = vld [vmem:[#allocation2 + $0x110] sm:$0xff] }
 0x250   : > { %2703 = vmatmul.bf16.gmra.mxu2 %v2142_v16  ;;  %v2773_v16 = vld [vmem:[#allocation2 + $0x100] sm:$0xff] }
 0x251   : > { %v2652_v37 = vpop.f32.mrf.mxu1  ;;  %v11493_v43 = vadd.f32 %v2650_v30, %v2602_v8  ;;  %v11505_v30 = vld [vmem:[#allocation2 + $0x138] sm:$0xff]  ;;  %v2843_v48 = vpack.c.bf16 %v2773_v16, %v2768_v33 }
 0x252   : > { %v2147_v27 = vpack.c.bf16 %v11505_v30, %v11503_v55 }
 0x253   : > { %v2508_v61 = vpop.f32.mrf.mxu2 }
 0x254   : > { %v2554_v7 = vpop.f32.mrf.mxu3 }
 0x255   : > { %v2555_v3 = vadd.f32 %v2554_v7, %v2505_v10 }
 0x257   : > { %v2604_v19 = vadd.f32 %v2603_v62, %v2555_v3  ;;  %v2606_v63 = vpop.f32.mrf.mxu0  ;;  %v10085_v62 = vld [vmem:[#allocation6 + $0x4e0] sm:$0xff] }
 0x258   : > { %3396 = vmatpush.bf16.msrb.mxu3 %v10085_v62  ;;  %v11521_v62 = vld [vmem:[#allocation2 + $0x188] sm:$0xff] }
 0x259   : > { %v2655_v8 = vpop.f32.mrf.mxu1  ;;  %3210 = vmatmul.bf16.gmra.mxu3 %v2841_v57  ;;  %v11507_v10 = vadd.f32 %v2652_v37, %v2604_v19  ;;  %v10093_v57 = vld [vmem:[#allocation6 + $0x520] sm:$0xff] }
 0x25a   : > { %3259 = vmatmul.bf16.gmra.mxu0 %v2842_v13  ;;  %v11513_v37 = vld [vmem:[#allocation2 + $0x120] sm:$0xff] }
 0x25b   : > { %v2510_v1 = vpop.f32.mrf.mxu2  ;;  %3903 = vmatpush.bf16.msrb.mxu0 %v10093_v57  ;;  %v10076_v57 = vld [vmem:[#allocation6 + $0x498] sm:$0xff] }
 0x25c   : > { %3308 = vmatmul.bf16.gmra.mxu1 %v2843_v48  ;;  %v2557_v22 = vpop.f32.mrf.mxu3  ;;  %v2778_v48 = vld [vmem:[#allocation2 + $0x128] sm:$0xff]  ;;  %3348 = vmatpush.bf16.msrb.mxu2 %v10076_v57 }
 0x25d   : > { %v2558_v7 = vadd.f32 %v2557_v22, %v2508_v61  ;;  %v2847_v61 = vpack.c.bf16 %v11392_v28, %v11513_v37  ;;  %v11519_v22 = vld [vmem:[#allocation2 + $0x160] sm:$0xff]  ;;  %3397 = vmatpush.bf16.msrb.mxu3 %v10084_v11 }
 0x25e   : > { %v2152_v47 = vpack.c.bf16 %v11521_v62, %v11519_v22 }
 0x25f   : > { %v2607_v3 = vadd.f32 %v2606_v63, %v2558_v7  ;;  %v2608_v42 = vpop.f32.mrf.mxu0 }
 0x260   : > { %2708 = vmatmul.bf16.gmra.mxu2 %v2147_v27 }
 0x261   : > { %v2657_v33 = vpop.f32.mrf.mxu1  ;;  %v11511_v40 = vadd.f32 %v2655_v8, %v2607_v3  ;;  %v2848_v8 = vpack.c.bf16 %v11397_v56, %v2778_v48 }
 0x263   : > { %v2513_v16 = vpop.f32.mrf.mxu2 }
 0x264   : > { %v2559_v13 = vpop.f32.mrf.mxu3 }
 0x265   : > { %v2560_v19 = vadd.f32 %v2559_v13, %v2510_v1 }
 0x267   : > { %v2609_v27 = vadd.f32 %v2608_v42, %v2560_v19  ;;  %v2611_v63 = vpop.f32.mrf.mxu0 }
 0x269   : > { %v2660_v7 = vpop.f32.mrf.mxu1  ;;  %3215 = vmatmul.bf16.gmra.mxu3 %v2846_v4  ;;  %v11524_v1 = vadd.f32 %v2657_v33, %v2609_v27  ;;  %v10092_v4 = vld [vmem:[#allocation6 + $0x518] sm:$0xff]  ;;  %v11530_v27 = vld [vmem:[#allocation2 + $0x208] sm:$0xff] }
 0x26a   : > { %3264 = vmatmul.bf16.gmra.mxu0 %v2847_v61 }
 0x26b   : > { %v2515_v3 = vpop.f32.mrf.mxu2  ;;  %3904 = vmatpush.bf16.msrb.mxu0 %v10092_v4 }
 0x26c   : > { %3313 = vmatmul.bf16.gmra.mxu1 %v2848_v8  ;;  %v2562_v42 = vpop.f32.mrf.mxu3  ;;  %v2851_v8 = vpack.c.bf16 %v11530_v27, %v11381_v50 }
 0x26d   : > { %v2563_v28 = vadd.f32 %v2562_v42, %v2513_v16  ;;  %v2852_v16 = vpack.c.bf16 %v11530_v27, %v11394_v60  ;;  %v11536_v42 = vld [vmem:[#allocation2 + $0x278] sm:$0xff] }
 0x26f   : > { %v2612_v13 = vadd.f32 %v2611_v63, %v2563_v28  ;;  %v2613_v19 = vpop.f32.mrf.mxu0  ;;  %v2097_v63 = vld [vmem:[#allocation2 + $0x250] sm:$0xff]  ;;  %3905 = vmatpush.bf16.msrb.mxu0 %v10091_v39  ;;  %v10074_v39 = vld [vmem:[#allocation6 + $0x488] sm:$0xff] }
 0x270   : > { %2713 = vmatmul.bf16.gmra.mxu2 %v2152_v47  ;;  %v2157_v50 = vpack.c.bf16 %v11536_v42, %v2097_v63  ;;  %v2856_v63 = vpack.c.bf16 %v11412_v38, %v11403_v17  ;;  %v10104_v38 = vld [vmem:[#allocation6 + $0x578] sm:$0xff] }
 0x271   : > { %v2662_v56 = vpop.f32.mrf.mxu1  ;;  %v11528_v26 = vadd.f32 %v2660_v7, %v2612_v13  ;;  %v2853_v7 = vpack.c.bf16 %v11530_v27, %v11356_v45  ;;  %3949 = vmatpush.bf16.msrb.mxu1 %v10104_v38 }
 0x273   : > { %v2518_v48 = vpop.f32.mrf.mxu2 }
 0x274   : > { %v2564_v33 = vpop.f32.mrf.mxu3 }
 0x275   : > { %v2565_v61 = vadd.f32 %v2564_v33, %v2515_v3  ;;  %v10075_v3 = vld [vmem:[#allocation6 + $0x490] sm:$0xff] }
 0x276   : > { %3349 = vmatpush.bf16.msrb.mxu2 %v10075_v3 }
 0x277   : > { %v2614_v57 = vadd.f32 %v2613_v19, %v2565_v61  ;;  %v2616_v47 = vpop.f32.mrf.mxu0  ;;  %v10083_v19 = vld [vmem:[#allocation6 + $0x4d0] sm:$0xff] }
 0x278   : > { %3398 = vmatpush.bf16.msrb.mxu3 %v10083_v19  ;;  %v11552_v19 = vld [vmem:[#allocation2 + $0x2c8] sm:$0xff] }
 0x279   : > { %v2665_v11 = vpop.f32.mrf.mxu1  ;;  %3220 = vmatmul.bf16.gmra.mxu3 %v2851_v8  ;;  %v11540_v13 = vadd.f32 %v2662_v56, %v2614_v57  ;;  %v11545_v56 = vld [vmem:[#allocation2 + $0x288] sm:$0xff]  ;;  %13250 = vst [vmem:[#allocation35_spill] sm:$0xff] %v11552_v19 }
 0x27a   : > { %3269 = vmatmul.bf16.gmra.mxu0 %v2852_v16  ;;  %v2857_v3 = vpack.c.bf16 %v11545_v56, %v2797_v58  ;;  %3350 = vmatpush.bf16.msrb.mxu2 %v10074_v39  ;;  %v11561_v39 = vld [vmem:[#allocation2 + $0x2b0] sm:$0xff] }
 0x27b   : > { %v2520_v28 = vpop.f32.mrf.mxu2 }
 0x27c   : > { %3318 = vmatmul.bf16.gmra.mxu1 %v2853_v7  ;;  %v2567_v60 = vpop.f32.mrf.mxu3  ;;  %v2798_v7 = vld [vmem:[#allocation2 + $0x268] sm:$0xff] }
 0x27d   : > { %v2568_v4 = vadd.f32 %v2567_v60, %v2518_v48  ;;  %v2803_v48 = vld [vmem:[#allocation2 + $0x290] sm:$0xff]  ;;  %v11550_v60 = vld [vmem:[#allocation2 + $0x2a0] sm:$0xff] }
 0x27e   : > { %v2162_v17 = vpack.c.bf16 %v11552_v19, %v11550_v60 }
 0x27f   : > { %v2617_v33 = vadd.f32 %v2616_v47, %v2568_v4  ;;  %v2618_v61 = vpop.f32.mrf.mxu0 }
 0x280   : > { %2718 = vmatmul.bf16.gmra.mxu2 %v2157_v50 }
 0x281   : > { %v2667_v5 = vpop.f32.mrf.mxu1  ;;  %v11543_v8 = vadd.f32 %v2665_v11, %v2617_v33  ;;  %v2858_v11 = vpack.c.bf16 %v2803_v48, %v2798_v7  ;;  %v10103_v7 = vld [vmem:[#allocation6 + $0x570] sm:$0xff] }
 0x282   : > { %3950 = vmatpush.bf16.msrb.mxu1 %v10103_v7  ;;  %v11571_v7 = vld [vmem:[#allocation2 + $0x318] sm:$0xff] }
 0x283   : > { %v2523_v45 = vpop.f32.mrf.mxu2  ;;  %13252 = vst [vmem:[#allocation37_spill] sm:$0xff] %v11571_v7 }
 0x284   : > { %v2569_v16 = vpop.f32.mrf.mxu3 }
 0x285   : > { %v2570_v57 = vadd.f32 %v2569_v16, %v2520_v28  ;;  %v10082_v28 = vld [vmem:[#allocation6 + $0x4c8] sm:$0xff]  ;;  %v648_v16 = vrot.slane %v11424_v32, 2 }
 0x286   : > { %3399 = vmatpush.bf16.msrb.mxu3 %v10082_v28  ;;  %v2813_v28 = vld [vmem:[#allocation2 + $0x2e0] sm:$0xff] }
 0x287   : > { %v2619_v47 = vadd.f32 %v2618_v61, %v2570_v57  ;;  %v2621_v50 = vpop.f32.mrf.mxu0  ;;  %680 = vst [vmem:[#allocation2 + $0x368] sm:$0x3f] %v648_v16 }
 0x289   : > { %v2670_v4 = vpop.f32.mrf.mxu1  ;;  %3225 = vmatmul.bf16.gmra.mxu3 %v2856_v63  ;;  %v11554_v9 = vadd.f32 %v2667_v5, %v2619_v47 }
 0x28a   : > { %3274 = vmatmul.bf16.gmra.mxu0 %v2857_v3  ;;  %v10090_v3 = vld [vmem:[#allocation6 + $0x508] sm:$0xff] }
 0x28b   : > { %v2525_v33 = vpop.f32.mrf.mxu2  ;;  %3906 = vmatpush.bf16.msrb.mxu0 %v10090_v3 }
 0x28c   : > { %3323 = vmatmul.bf16.gmra.mxu1 %v2858_v11  ;;  %v2572_v58 = vpop.f32.mrf.mxu3  ;;  %v11563_v11 = vld [vmem:[#allocation2 + $0x2d8] sm:$0xff] }
 0x28d   : > { %v2573_v61 = vadd.f32 %v2572_v58, %v2523_v45  ;;  %13251 = vst [vmem:[#allocation36_spill] sm:$0xff] %v11563_v11  ;;  %v10102_v45 = vld [vmem:[#allocation6 + $0x568] sm:$0xff]  ;;  %v2808_v58 = vld [vmem:[#allocation2 + $0x2b8] sm:$0xff] }
 0x28e   : > { %3951 = vmatpush.bf16.msrb.mxu1 %v10102_v45  ;;  %v2863_v3 = vpack.c.bf16 %v2813_v28, %v2808_v58  ;;  %v10099_v28 = vld [vmem:[#allocation6 + $0x550] sm:$0xff] }
 0x28f   : > { %v2622_v57 = vadd.f32 %v2621_v50, %v2573_v61  ;;  %v2623_v63 = vpop.f32.mrf.mxu0  ;;  %v2861_v50 = vpack.c.bf16 %v11433_v49, %v11414_v15  ;;  %v2862_v61 = vpack.c.bf16 %v11563_v11, %v11561_v39 }
 0x290   : > { %2723 = vmatmul.bf16.gmra.mxu2 %v2162_v17 }
 0x291   : > { %v2672_v5 = vpop.f32.mrf.mxu1  ;;  %v11559_v47 = vadd.f32 %v2670_v4, %v2622_v57  ;;  %v11569_v57 = vld [vmem:[#allocation2 + $0x2f0] sm:$0xff] }
 0x292   : > { %3952 = vmatpush.bf16.msrb.mxu1 %v10101_v25  ;;  %v2167_v49 = vpack.c.bf16 %v11571_v7, %v11569_v57 }
 0x293   : > { %v2528_v48 = vpop.f32.mrf.mxu2 }
 0x294   : > { %v2574_v17 = vpop.f32.mrf.mxu3 }
 0x295   : > { %v2575_v38 = vadd.f32 %v2574_v17, %v2525_v33  ;;  %v10073_v17 = vld [vmem:[#allocation6 + $0x480] sm:$0xff] }
 0x296   : > { %3351 = vmatpush.bf16.msrb.mxu2 %v10073_v17  ;;  %v10098_v17 = vld [vmem:[#allocation6 + $0x548] sm:$0xff] }
 0x297   : > { %v2624_v16 = vadd.f32 %v2623_v63, %v2575_v38  ;;  %v2626_v4 = vpop.f32.mrf.mxu0  ;;  %v10100_v63 = vld [vmem:[#allocation6 + $0x558] sm:$0xff]  ;;  %v10081_v38 = vld [vmem:[#allocation6 + $0x4c0] sm:$0xff] }
 0x298   : > { %3953 = vmatpush.bf16.msrb.mxu1 %v10100_v63  ;;  %3400 = vmatpush.bf16.msrb.mxu3 %v10081_v38  ;;  %v10097_v38 = vld [vmem:[#allocation6 + $0x540] sm:$0xff] }
 0x299   : > { %v2675_v19 = vpop.f32.mrf.mxu1  ;;  %3230 = vmatmul.bf16.gmra.mxu3 %v2861_v50  ;;  %v11573_v15 = vadd.f32 %v2672_v5, %v2624_v16  ;;  %v10089_v5 = vld [vmem:[#allocation6 + $0x500] sm:$0xff] }
 0x29a   : > { %3279 = vmatmul.bf16.gmra.mxu0 %v2862_v61  ;;  %v11579_v16 = vld [vmem:[#allocation2 + $0x300] sm:$0xff] }
 0x29b   : > { %v2530_v33 = vpop.f32.mrf.mxu2  ;;  %3907 = vmatpush.bf16.msrb.mxu0 %v10089_v5  ;;  %v10112_v5 = vld [vmem:[#allocation6 + $0x5b8] sm:$0xff] }
 0x29c   : > { %3328 = vmatmul.bf16.gmra.mxu1 %v2863_v3  ;;  %v2577_v45 = vpop.f32.mrf.mxu3  ;;  %3998 = vmatpush.bf16.msra.mxu2 %v10112_v5 }
 0x29d   : > { %v2578_v11 = vadd.f32 %v2577_v45, %v2528_v48  ;;  %3954 = vmatpush.bf16.msrb.mxu1 %v10099_v28  ;;  %v2866_v48 = vpack.c.bf16 %v11447_v6, %v11435_v53  ;;  %v11585_v45 = vld [vmem:[#allocation2 + $0x340] sm:$0xff] }
 0x29f   : > { %v2627_v58 = vadd.f32 %v2626_v4, %v2578_v11  ;;  %v2628_v50 = vpop.f32.mrf.mxu0  ;;  %v2867_v11 = vpack.c.bf16 %v11460_v41, %v11579_v16 }
 0x2a0   : > { %2728 = vmatmul.bf16.gmra.mxu2 %v2167_v49  ;;  %v2818_v49 = vld [vmem:[#allocation2 + $0x308] sm:$0xff] }
 0x2a1   : > { %v2677_v25 = vpop.f32.mrf.mxu1  ;;  %v11577_v61 = vadd.f32 %v2675_v19, %v2627_v58  ;;  %3955 = vmatpush.bf16.msrb.mxu1 %v10098_v17  ;;  %v11587_v19 = vld [vmem:[#allocation2 + $0x368] sm:$0xff]  ;;  %v2868_v58 = vpack.c.bf16 %v11465_v35, %v2818_v49  ;;  %v10128_v49 = vld [vmem:[#allocation6 + $0x638] sm:$0xff] }
 0x2a2   : > { %13253 = vst [vmem:[#allocation38_spill] sm:$0xff] %v11587_v19  ;;  %v2172_v6 = vpack.c.bf16 %v11587_v19, %v11585_v45  ;;  %4096 = vmatpush.bf16.msra.mxu0 %v10128_v49  ;;  %v10127_v19 = vld [vmem:[#allocation6 + $0x630] sm:$0xff] }
 0x2a3   : > { %v2533_v24 = vpop.f32.mrf.mxu2 }
 0x2a4   : > { %v2579_v3 = vpop.f32.mrf.mxu3 }
 0x2a5   : > { %v2580_v7 = vadd.f32 %v2579_v3, %v2530_v33  ;;  %3956 = vmatpush.bf16.msrb.mxu1 %v10097_v38 }
 0x2a6   : > { %4097 = vmatpush.bf16.msra.mxu0 %v10127_v19 }
 0x2a7   : > { %v2629_v4 = vadd.f32 %v2628_v50, %v2580_v7  ;;  %v2631_v63 = vpop.f32.mrf.mxu0  ;;  %v10120_v7 = vld [vmem:[#allocation6 + $0x5f8] sm:$0xff] }
 0x2a8   : > { %4047 = vmatpush.bf16.msra.mxu3 %v10120_v7 }
 0x2a9   : > { %v2680_v28 = vpop.f32.mrf.mxu1  ;;  %3235 = vmatmul.bf16.gmra.mxu3 %v2866_v48  ;;  %v11590_v53 = vadd.f32 %v2677_v25, %v2629_v4  ;;  %v2871_v4 = vpack.c.bf16 %v11530_v27, %v11449_v20 }
 0x2aa   : > { %3284 = vmatmul.bf16.gmra.mxu0 %v2867_v11 }
 0x2ab   : > { %v2535_v33 = vpop.f32.mrf.mxu2 }
 0x2ac   : > { %3333 = vmatmul.bf16.gmra.mxu1 %v2868_v58  ;;  %v2582_v41 = vpop.f32.mrf.mxu3  ;;  %v2872_v58 = vpack.c.bf16 %v11530_v27, %v11462_v51 }
 0x2ad   : > { %v2583_v50 = vadd.f32 %v2582_v41, %v2533_v24  ;;  %v11600_v41 = vld [vmem:[#allocation2 + $0xb8] sm:$0xff] }
 0x2af   : > { %v2632_v17 = vadd.f32 %v2631_v63, %v2583_v50  ;;  %v2633_v35 = vpop.f32.mrf.mxu0  ;;  %v2873_v63 = vpack.c.bf16 %v11530_v27, %v11424_v32  ;;  %v10111_v50 = vld [vmem:[#allocation6 + $0x5b0] sm:$0xff] }
 0x2b0   : > { %2733 = vmatmul.bf16.gmra.mxu2 %v2172_v6  ;;  %v2759_v6 = vld [vmem:[#allocation2 + $0x90] sm:$0xff] }
 0x2b1   : > { %v2682_v3 = vpop.f32.mrf.mxu1  ;;  %v11594_v38 = vadd.f32 %v2680_v28, %v2632_v17  ;;  %v2839_v20 = vpack.c.bf16 %v11600_v41, %v2759_v6  ;;  %3999 = vmatpush.bf16.msra.mxu2 %v10111_v50 }
 0x2b3   : > { %v2538_v48 = vpop.f32.mrf.mxu2 }
 0x2b4   : > { %v2584_v25 = vpop.f32.mrf.mxu3 }
 0x2b5   : > { %v2585_v11 = vadd.f32 %v2584_v25, %v2535_v33  ;;  %v10119_v33 = vld [vmem:[#allocation6 + $0x5f0] sm:$0xff] }
 0x2b6   : > { %4048 = vmatpush.bf16.msra.mxu3 %v10119_v33  ;;  %v11615_v33 = vld [vmem:[#allocation2 + $0xe0] sm:$0xff] }
 0x2b7   : > { %v2634_v5 = vadd.f32 %v2633_v35, %v2585_v11  ;;  %v2636_v24 = vpop.f32.mrf.mxu0 }
 0x2b9   : > { %v2685_v7 = vpop.f32.mrf.mxu1  ;;  %3240 = vmatmul.bf16.gmra.mxu3 %v2871_v4  ;;  %v11604_v17 = vadd.f32 %v2682_v3, %v2634_v5  ;;  %v3459_v5 = vld [vmem:[#allocation2 + $0xa0] sm:$0xff] }
 0x2ba   : > { %3289 = vmatmul.bf16.gmra.mxu0 %v2872_v58  ;;  %v3464_v58 = vld [vmem:[#allocation2 + $0xc8] sm:$0xff] }
 0x2bb   : > { %v2540_v28 = vpop.f32.mrf.mxu2 }
 0x2bc   : > { %3338 = vmatmul.bf16.gmra.mxu1 %v2873_v63  ;;  %v2587_v51 = vpop.f32.mrf.mxu3 }
 0x2bd   : > { %v2588_v35 = vadd.f32 %v2587_v51, %v2538_v48  ;;  %v2840_v48 = vpack.c.bf16 %v11484_v29, %v11471_v0 }
 0x2bf   : > { %v2637_v49 = vadd.f32 %v2636_v24, %v2588_v35  ;;  %v2638_v25 = vpop.f32.mrf.mxu0  ;;  %v3539_v24 = vpack.c.bf16 %v3464_v58, %v3459_v5  ;;  %v10110_v35 = vld [vmem:[#allocation6 + $0x5a8] sm:$0xff] }
 0x2c0   : > { %3352 = vmatmul.bf16.vlgmr.msrb.gmra.mxu2 %v2839_v20  ;;  %v10126_v58 = vld [vmem:[#allocation6 + $0x628] sm:$0xff] }
 0x2c1   : > { %v2687_v11 = vpop.f32.mrf.mxu1  ;;  %v11607_v4 = vadd.f32 %v2685_v7, %v2637_v49  ;;  %v11617_v7 = vld [vmem:[#allocation2 + $0x108] sm:$0xff]  ;;  %4000 = vmatpush.bf16.msra.mxu2 %v10110_v35  ;;  %4098 = vmatpush.bf16.msra.mxu0 %v10126_v58  ;;  %v10125_v58 = vld [vmem:[#allocation6 + $0x620] sm:$0xff] }
 0x2c2   : > { %v2844_v0 = vpack.c.bf16 %v11617_v7, %v11615_v33 }
 0x2c3   : > { %v2699_v32 = vpop.f32.mrf.mxu2 }
 0x2c4   : > { %v2700_v3 = vadd.f32 %v2699_v32, %v11493_v43  ;;  %v2589_v6 = vpop.f32.mrf.mxu3  ;;  %v3540_v32 = vpack.c.bf16 %v11495_v12, %v11479_v21 }
 0x2c5   : > { %v2590_v50 = vadd.f32 %v2589_v6, %v2540_v28  ;;  %v3469_v6 = vld [vmem:[#allocation2 + $0xf0] sm:$0xff]  ;;  %4099 = vmatpush.bf16.msra.mxu0 %v10125_v58 }
 0x2c6   : > { %v11611_v63 = vadd.f32 %v2700_v3, %v11362_v36 }
 0x2c7   : > { %v2639_v20 = vadd.f32 %v2638_v25, %v2590_v50  ;;  %v3255_v51 = vpop.f32.mrf.mxu0  ;;  %v10118_v25 = vld [vmem:[#allocation6 + $0x5e8] sm:$0xff]  ;;  %v3474_v50 = vld [vmem:[#allocation2 + $0x118] sm:$0xff] }
 0x2c8   : > { %4049 = vmatpush.bf16.msra.mxu3 %v10118_v25 }
 0x2c9   : > { %v3304_v43 = vpop.f32.mrf.mxu1  ;;  %3401 = vmatmul.bf16.vlgmr.msrb.gmra.mxu3 %v2840_v48  ;;  %v11621_v36 = vadd.f32 %v2687_v11, %v2639_v20  ;;  %v2845_v20 = vpack.c.bf16 %v11503_v55, %v11486_v52 }
 0x2ca   : > { %3908 = vmatmul.bf16.vlgmr.msrb.gmra.mxu0 %v3539_v24 }
 0x2cb   : > { %v2701_v19 = vpop.f32.mrf.mxu2 }
 0x2cc   : > { %v2702_v28 = vadd.f32 %v2701_v19, %v11507_v10  ;;  %3957 = vmatmul.bf16.vlgmr.msrb.gmra.mxu1 %v3540_v32  ;;  %v3206_v29 = vpop.f32.mrf.mxu3  ;;  %v11639_v19 = vld [vmem:[#allocation2 + $0x158] sm:$0xff] }
 0x2cd   : > { %v3256_v21 = vadd.f32 %v3255_v51, %v3206_v29  ;;  %v3544_v51 = vpack.c.bf16 %v3474_v50, %v3469_v6  ;;  %v3484_v6 = vld [vmem:[#allocation2 + $0x168] sm:$0xff] }
 0x2ce   : > { %v11627_v49 = vadd.f32 %v2702_v28, %v11370_v14 }
 0x2cf   : > { %v3257_v12 = vpop.f32.mrf.mxu0  ;;  %v11629_v3 = vadd.f32 %v3304_v43, %v3256_v21  ;;  %v11637_v43 = vld [vmem:[#allocation2 + $0x130] sm:$0xff]  ;;  %v10117_v21 = vld [vmem:[#allocation6 + $0x5e0] sm:$0xff] }
 0x2d0   : > { %3357 = vmatmul.bf16.gmra.mxu2 %v2844_v0  ;;  %v2849_v52 = vpack.c.bf16 %v11639_v19, %v11637_v43  ;;  %4050 = vmatpush.bf16.msra.mxu3 %v10117_v21  ;;  %v10116_v21 = vld [vmem:[#allocation6 + $0x5d8] sm:$0xff] }
 0x2d1   : > { %v3306_v11 = vpop.f32.mrf.mxu1 }
 0x2d3   : > { %v2704_v5 = vpop.f32.mrf.mxu2 }
 0x2d4   : > { %v2705_v10 = vadd.f32 %v2704_v5, %v11511_v40  ;;  %v3208_v48 = vpop.f32.mrf.mxu3  ;;  %v3545_v40 = vpack.c.bf16 %v11513_v37, %v11497_v44  ;;  %4051 = vmatpush.bf16.msra.mxu3 %v10116_v21 }
 0x2d5   : > { %v3258_v14 = vadd.f32 %v3257_v12, %v3208_v48 }
 0x2d6   : > { %v11633_v24 = vadd.f32 %v2705_v10, %v11376_v18  ;;  %v10109_v18 = vld [vmem:[#allocation6 + $0x5a0] sm:$0xff] }
 0x2d7   : > { %v3260_v32 = vpop.f32.mrf.mxu0  ;;  %v11641_v35 = vadd.f32 %v3306_v11, %v3258_v14  ;;  %4001 = vmatpush.bf16.msra.mxu2 %v10109_v18  ;;  %v3479_v10 = vld [vmem:[#allocation2 + $0x140] sm:$0xff]  ;;  %v2850_v14 = vpack.c.bf16 %v11519_v22, %v11505_v30 }
 0x2d9   : > { %v3309_v28 = vpop.f32.mrf.mxu1  ;;  %3406 = vmatmul.bf16.gmra.mxu3 %v2845_v20  ;;  %v3480_v20 = vld [vmem:[#allocation2 + $0x148] sm:$0xff] }
 0x2da   : > { %3913 = vmatmul.bf16.gmra.mxu0 %v3544_v51  ;;  %v3485_v51 = vld [vmem:[#allocation2 + $0x170] sm:$0xff] }
 0x2db   : > { %v2706_v0 = vpop.f32.mrf.mxu2 }
 0x2dc   : > { %v2707_v29 = vadd.f32 %v2706_v0, %v11524_v1  ;;  %3962 = vmatmul.bf16.gmra.mxu1 %v3545_v40  ;;  %v3211_v55 = vpop.f32.mrf.mxu3 }
 0x2dd   : > { %v3261_v12 = vadd.f32 %v3260_v32, %v3211_v55  ;;  %v3549_v32 = vpack.c.bf16 %v3484_v6, %v3479_v10 }
 0x2de   : > { %v11649_v25 = vadd.f32 %v2707_v29, %v11384_v54 }
 0x2df   : > { %v3262_v44 = vpop.f32.mrf.mxu0  ;;  %v11651_v37 = vadd.f32 %v3309_v28, %v3261_v12  ;;  %v11659_v28 = vld [vmem:[#allocation2 + $0x180] sm:$0xff] }
 0x2e0   : > { %3362 = vmatmul.bf16.gmra.mxu2 %v2849_v52  ;;  %v10108_v52 = vld [vmem:[#allocation6 + $0x598] sm:$0xff]  ;;  %v2854_v55 = vpack.c.bf16 %v11530_v27, %v11659_v28 }
 0x2e1   : > { %v3311_v11 = vpop.f32.mrf.mxu1  ;;  %4002 = vmatpush.bf16.msra.mxu2 %v10108_v52  ;;  %v10115_v52 = vld [vmem:[#allocation6 + $0x5d0] sm:$0xff] }
 0x2e2   : > { %4052 = vmatpush.bf16.msra.mxu3 %v10115_v52 }
 0x2e3   : > { %v2709_v5 = vpop.f32.mrf.mxu2 }
 0x2e4   : > { %v2710_v1 = vadd.f32 %v2709_v5, %v11528_v26  ;;  %v3213_v50 = vpop.f32.mrf.mxu3  ;;  %v3550_v26 = vpack.c.bf16 %v3485_v51, %v3480_v20  ;;  %v2799_v20 = vld [vmem:[#allocation2 + $0x270] sm:$0xff]  ;;  %v11681_v51 = vld [vmem:[#allocation2 + $0x298] sm:$0xff] }
 0x2e5   : > { %v3263_v54 = vadd.f32 %v3262_v44, %v3213_v50 }
 0x2e6   : > { %v11655_v48 = vadd.f32 %v2710_v1, %v11390_v34  ;;  %v10124_v1 = vld [vmem:[#allocation6 + $0x618] sm:$0xff] }
 0x2e7   : > { %v3265_v40 = vpop.f32.mrf.mxu0  ;;  %v11661_v0 = vadd.f32 %v3311_v11, %v3263_v54  ;;  %4100 = vmatpush.bf16.msra.mxu0 %v10124_v1  ;;  %v11679_v54 = vpack.c.bf16 %v11530_v27, %v11530_v27 }
 0x2e9   : > { %v3314_v18 = vpop.f32.mrf.mxu1  ;;  %3411 = vmatmul.bf16.gmra.mxu3 %v2850_v14 }
 0x2ea   : > { %3918 = vmatmul.bf16.gmra.mxu0 %v3549_v32 }
 0x2eb   : > { %v2711_v29 = vpop.f32.mrf.mxu2 }
 0x2ec   : > { %v2712_v34 = vadd.f32 %v2711_v29, %v11540_v13  ;;  %3967 = vmatmul.bf16.gmra.mxu1 %v3550_v26  ;;  %v3216_v30 = vpop.f32.mrf.mxu3  ;;  %v10107_v26 = vld [vmem:[#allocation6 + $0x590] sm:$0xff] }
 0x2ed   : > { %v3266_v12 = vadd.f32 %v3265_v40, %v3216_v30  ;;  %4003 = vmatpush.bf16.msra.mxu2 %v10107_v26 }
 0x2ee   : > { %v11667_v22 = vadd.f32 %v2712_v34, %v11405_v23  ;;  %v2855_v23 = vpack.c.bf16 %v11530_v27, %v11521_v62  ;;  %v2859_v62 = vpack.c.bf16 %v11681_v51, %v2799_v20  ;;  %v11702_v20 = vld [vmem:[#allocation2 + $0x2e8] sm:$0xff] }
 0x2ef   : > { %v3267_v44 = vpop.f32.mrf.mxu0  ;;  %v11669_v11 = vadd.f32 %v3314_v18, %v3266_v12 }
 0x2f0   : > { %3367 = vmatmul.bf16.gmra.mxu2 %v2854_v55 }
 0x2f1   : > { %v3316_v5 = vpop.f32.mrf.mxu1 }
 0x2f3   : > { %v2714_v58 = vpop.f32.mrf.mxu2 }
 0x2f4   : > { %v2715_v13 = vadd.f32 %v2714_v58, %v11543_v8  ;;  %v3218_v10 = vpop.f32.mrf.mxu3  ;;  %v3504_v58 = vld [vmem:[#allocation2 + $0x2a8] sm:$0xff] }
 0x2f5   : > { %v3268_v50 = vadd.f32 %v3267_v44, %v3218_v10  ;;  %v10123_v44 = vld [vmem:[#allocation6 + $0x610] sm:$0xff]  ;;  %v2860_v10 = vpack.c.bf16 %v11550_v60, %v11536_v42 }
 0x2f6   : > { %v11673_v6 = vadd.f32 %v2715_v13, %v11409_v31  ;;  %4101 = vmatpush.bf16.msra.mxu0 %v10123_v44  ;;  %v3514_v44 = vld [vmem:[#allocation2 + $0x2f8] sm:$0xff] }
 0x2f7   : > { %v3270_v14 = vpop.f32.mrf.mxu0  ;;  %v11683_v32 = vadd.f32 %v3316_v5, %v3268_v50  ;;  %v3499_v5 = vld [vmem:[#allocation2 + $0x280] sm:$0xff] }
 0x2f8   : > { %v3559_v50 = vpack.c.bf16 %v3504_v58, %v3499_v5  ;;  %v13254_v5 = vld [vmem:[#allocation29_spill] sm:$0xff] }
 0x2f9   : > { %v3319_v8 = vpop.f32.mrf.mxu1  ;;  %3416 = vmatmul.bf16.gmra.mxu3 %v2855_v23 }
 0x2fa   : > { %3923 = vmatmul.bf16.gmra.mxu0 %v11679_v54 }
 0x2fb   : > { %v2716_v40 = vpop.f32.mrf.mxu2 }
 0x2fc   : > { %v2717_v31 = vadd.f32 %v2716_v40, %v11554_v9  ;;  %3972 = vmatmul.bf16.gmra.mxu1 %v11679_v54  ;;  %v3221_v18 = vpop.f32.mrf.mxu3 }
 0x2fd   : > { %v3271_v34 = vadd.f32 %v3270_v14, %v3221_v18  ;;  %v11700_v14 = vld [vmem:[#allocation2 + $0x2c0] sm:$0xff]  ;;  %v10114_v18 = vld [vmem:[#allocation6 + $0x5c8] sm:$0xff] }
 0x2fe   : > { %v11690_v29 = vadd.f32 %v2717_v31, %v11417_v2  ;;  %v2864_v42 = vpack.c.bf16 %v11702_v20, %v11700_v14  ;;  %4053 = vmatpush.bf16.msra.mxu3 %v10114_v18  ;;  %v13257_v18 = vld [vmem:[#allocation30_spill] sm:$0xff] }
 0x2ff   : > { %v3272_v55 = vpop.f32.mrf.mxu0  ;;  %v11692_v30 = vadd.f32 %v3319_v8, %v3271_v34 }
 0x300   : > { %3372 = vmatmul.bf16.gmra.mxu2 %v2859_v62 }
 0x301   : > { %v3321_v21 = vpop.f32.mrf.mxu1 }
 0x303   : > { %v2719_v12 = vpop.f32.mrf.mxu2 }
 0x304   : > { %v2720_v9 = vadd.f32 %v2719_v12, %v11559_v47  ;;  %v3223_v1 = vpop.f32.mrf.mxu3  ;;  %v3560_v47 = vpack.c.bf16 %v11561_v39, %v11545_v56  ;;  %v3509_v12 = vld [vmem:[#allocation2 + $0x2d0] sm:$0xff] }
 0x305   : > { %v3273_v2 = vadd.f32 %v3272_v55, %v3223_v1  ;;  %v13255_v1 = vld [vmem:[#allocation35_spill] sm:$0xff] }
 0x306   : > { %v11696_v13 = vadd.f32 %v2720_v9, %v11430_v59  ;;  %v10106_v59 = vld [vmem:[#allocation6 + $0x588] sm:$0xff] }
 0x307   : > { %v3275_v23 = vpop.f32.mrf.mxu0  ;;  %v11704_v8 = vadd.f32 %v3321_v21, %v3273_v2  ;;  %4004 = vmatpush.bf16.msra.mxu2 %v10106_v59  ;;  %v2865_v2 = vpack.c.bf16 %v11569_v57, %v13255_v1 }
 0x309   : > { %v3324_v40 = vpop.f32.mrf.mxu1  ;;  %3421 = vmatmul.bf16.gmra.mxu3 %v2860_v10  ;;  %v3564_v10 = vpack.c.bf16 %v3514_v44, %v3509_v12 }
 0x30a   : > { %3928 = vmatmul.bf16.gmra.mxu0 %v3559_v50 }
 0x30b   : > { %v2721_v26 = vpop.f32.mrf.mxu2 }
 0x30c   : > { %v2722_v31 = vadd.f32 %v2721_v26, %v11573_v15  ;;  %3977 = vmatmul.bf16.gmra.mxu1 %v3560_v47  ;;  %v3226_v60 = vpop.f32.mrf.mxu3  ;;  %v10122_v15 = vld [vmem:[#allocation6 + $0x608] sm:$0xff]  ;;  %v11728_v47 = vld [vmem:[#allocation2 + $0x338] sm:$0xff] }
 0x30d   : > { %v3276_v52 = vadd.f32 %v3275_v23, %v3226_v60  ;;  %4102 = vmatpush.bf16.msra.mxu0 %v10122_v15  ;;  %v11726_v23 = vld [vmem:[#allocation2 + $0x310] sm:$0xff] }
 0x30e   : > { %v11712_v62 = vadd.f32 %v2722_v31, %v11438_v46  ;;  %v10105_v31 = vld [vmem:[#allocation6 + $0x580] sm:$0xff]  ;;  %v2869_v60 = vpack.c.bf16 %v11728_v47, %v11726_v23 }
 0x30f   : > { %v3277_v56 = vpop.f32.mrf.mxu0  ;;  %v11714_v39 = vadd.f32 %v3324_v40, %v3276_v52  ;;  %v13256_v40 = vld [vmem:[#allocation36_spill] sm:$0xff]  ;;  %4005 = vmatpush.bf16.msra.mxu2 %v10105_v31 }
 0x310   : > { %3377 = vmatmul.bf16.gmra.mxu2 %v2864_v42 }
 0x311   : > { %v11716_v34 = vpop.f32.mrf.mxu1 }
 0x313   : > { %v2724_v55 = vpop.f32.mrf.mxu2 }
 0x314   : > { %v2725_v21 = vadd.f32 %v2724_v55, %v11577_v61  ;;  %v3228_v9 = vpop.f32.mrf.mxu3  ;;  %v3565_v61 = vpack.c.bf16 %v11579_v16, %v13256_v40 }
 0x315   : > { %v11722_v58 = vadd.f32 %v3277_v56, %v3228_v9  ;;  %v10113_v56 = vld [vmem:[#allocation6 + $0x5c0] sm:$0xff] }
 0x316   : > { %v11720_v46 = vadd.f32 %v2725_v21, %v13254_v5  ;;  %4054 = vmatpush.bf16.msra.mxu3 %v10113_v56  ;;  %v3519_v9 = vld [vmem:[#allocation2 + $0x320] sm:$0xff]  ;;  %v3524_v5 = vld [vmem:[#allocation2 + $0x348] sm:$0xff] }
 0x317   : > { %v3280_v50 = vpop.f32.mrf.mxu0  ;;  %v3569_v31 = vpack.c.bf16 %v3524_v5, %v3519_v9 }
 0x319   : > { %v3329_v26 = vpop.f32.mrf.mxu1  ;;  %3426 = vmatmul.bf16.gmra.mxu3 %v2865_v2  ;;  %v13258_v2 = vld [vmem:[#allocation31_spill] sm:$0xff] }
 0x31a   : > { %3933 = vmatmul.bf16.gmra.mxu0 %v3564_v10 }
 0x31b   : > { %v2726_v59 = vpop.f32.mrf.mxu2 }
 0x31c   : > { %v2727_v42 = vadd.f32 %v2726_v59, %v11590_v53  ;;  %3982 = vmatmul.bf16.gmra.mxu1 %v3565_v61  ;;  %v3231_v57 = vpop.f32.mrf.mxu3  ;;  %v10121_v53 = vld [vmem:[#allocation6 + $0x600] sm:$0xff]  ;;  %v3525_v59 = vld [vmem:[#allocation2 + $0x350] sm:$0xff] }
 0x31d   : > { %v3281_v55 = vadd.f32 %v3280_v50, %v3231_v57  ;;  %4103 = vmatpush.bf16.msra.mxu0 %v10121_v53  ;;  %v13259_v50 = vld [vmem:[#allocation37_spill] sm:$0xff] }
 0x31e   : > { %v11736_v52 = vadd.f32 %v2727_v42, %v13257_v18  ;;  %v2870_v61 = vpack.c.bf16 %v11585_v45, %v13259_v50 }
 0x31f   : > { %v3282_v16 = vpop.f32.mrf.mxu0  ;;  %v11738_v15 = vadd.f32 %v3329_v26, %v3281_v55  ;;  %v3520_v26 = vld [vmem:[#allocation2 + $0x328] sm:$0xff] }
 0x320   : > { %3382 = vmatmul.bf16.gmra.mxu2 %v2869_v60  ;;  %v11750_v60 = vld [vmem:[#allocation2 + $0x360] sm:$0xff]  ;;  %v3570_v57 = vpack.c.bf16 %v3525_v59, %v3520_v26  ;;  %v13262_v59 = vld [vmem:[#allocation38_spill] sm:$0xff] }
 0x321   : > { %v11740_v21 = vpop.f32.mrf.mxu1  ;;  %v2874_v55 = vpack.c.bf16 %v11530_v27, %v11750_v60 }
 0x323   : > { %v2729_v12 = vpop.f32.mrf.mxu2 }
 0x324   : > { %v2730_v44 = vadd.f32 %v2729_v12, %v11594_v38  ;;  %v3233_v1 = vpop.f32.mrf.mxu3  ;;  %v13260_v12 = vld [vmem:[#allocation32_spill] sm:$0xff] }
 0x325   : > { %v11746_v40 = vadd.f32 %v3282_v16, %v3233_v1 }
 0x326   : > { %v11744_v10 = vadd.f32 %v2730_v44, %v13258_v2 }
 0x327   : > { %v3285_v42 = vpop.f32.mrf.mxu0 }
 0x329   : > { %3431 = vmatmul.bf16.gmra.mxu3 %v2870_v61  ;;  %v3334_v18 = vpop.f32.mrf.mxu1 }
 0x32a   : > { %3938 = vmatmul.bf16.gmra.mxu0 %v3569_v31  ;;  %v2875_v31 = vpack.c.bf16 %v11530_v27, %v13262_v59  ;;  %v3468_v59 = vld [vmem:[#allocation2 + $0xe8] sm:$0xff] }
 0x32b   : > { %v2731_v38 = vpop.f32.mrf.mxu2 }
 0x32c   : > { %v2732_v56 = vadd.f32 %v2731_v38, %v11604_v17  ;;  %3987 = vmatmul.bf16.gmra.mxu1 %v3570_v57  ;;  %v3236_v16 = vpop.f32.mrf.mxu3  ;;  %v13261_v17 = vld [vmem:[#allocation33_spill] sm:$0xff]  ;;  %v3466_v38 = vld [vmem:[#allocation2 + $0xd8] sm:$0xff] }
 0x32d   : > { %v3286_v53 = vadd.f32 %v3285_v42, %v3236_v16  ;;  %v3461_v42 = vld [vmem:[#allocation2 + $0xb0] sm:$0xff]  ;;  %v13263_v16 = vld [vmem:[#allocation34_spill] sm:$0xff] }
 0x32e   : > { %v11756_v45 = vadd.f32 %v2732_v56, %v13260_v12  ;;  %v3541_v56 = vpack.c.bf16 %v3466_v38, %v3461_v42  ;;  %v3542_v42 = vpack.c.bf16 %v11615_v33, %v11600_v41 }
 0x32f   : > { %v3287_v44 = vpop.f32.mrf.mxu0  ;;  %v11758_v9 = vadd.f32 %v3334_v18, %v3286_v53 }
 0x330   : > { %3387 = vmatmul.bf16.gmra.mxu2 %v2874_v55 }
 0x331   : > { %v11761_v2 = vpop.f32.mrf.mxu1 }
 0x333   : > { %v2734_v5 = vpop.f32.mrf.mxu2 }
 0x334   : > { %v2735_v1 = vadd.f32 %v2734_v5, %v11607_v4  ;;  %v3238_v50 = vpop.f32.mrf.mxu3 }
 0x335   : > { %v11766_v26 = vadd.f32 %v3287_v44, %v3238_v50 }
 0x336   : > { %v11764_v61 = vadd.f32 %v2735_v1, %v13261_v17  ;;  %v3463_v17 = vld [vmem:[#allocation2 + $0xc0] sm:$0xff] }
 0x337   : > { %v3290_v57 = vpop.f32.mrf.mxu0  ;;  %v3543_v38 = vpack.c.bf16 %v3468_v59, %v3463_v17  ;;  %v3473_v17 = vld [vmem:[#allocation2 + $0x110] sm:$0xff]  ;;  %v3478_v59 = vld [vmem:[#allocation2 + $0x138] sm:$0xff] }
 0x339   : > { %3436 = vmatmul.bf16.gmra.mxu3 %v2875_v31  ;;  %v3339_v44 = vpop.f32.mrf.mxu1 }
 0x33a   : > { %3943 = vmatmul.bf16.gmra.mxu0 %v11679_v54 }
 0x33b   : > { %v2736_v18 = vpop.f32.mrf.mxu2 }
 0x33c   : > { %v2737_v4 = vadd.f32 %v2736_v18, %v11621_v36  ;;  %3992 = vmatmul.bf16.gmra.mxu1 %v11679_v54  ;;  %v3241_v55 = vpop.f32.mrf.mxu3 }
 0x33d   : > { %v3291_v53 = vadd.f32 %v3290_v57, %v3241_v55  ;;  %v3471_v57 = vld [vmem:[#allocation2 + $0x100] sm:$0xff] }
 0x33e   : > { %v11774_v12 = vadd.f32 %v2737_v4, %v13263_v16  ;;  %v3476_v4 = vld [vmem:[#allocation2 + $0x128] sm:$0xff] }
 0x33f   : > { %v3292_v27 = vpop.f32.mrf.mxu0  ;;  %v11776_v5 = vadd.f32 %v3339_v44, %v3291_v53  ;;  %v3546_v16 = vpack.c.bf16 %v3476_v4, %v3471_v57  ;;  %v3481_v57 = vld [vmem:[#allocation2 + $0x150] sm:$0xff]  ;;  %v3486_v4 = vld [vmem:[#allocation2 + $0x178] sm:$0xff] }
 0x340   : > { %4006 = vmatmul.bf16.vlgmr.msra.gmra.mxu2 %v3541_v56 }
 0x343   : > { %v3353_v1 = vpop.f32.mrf.mxu2 }
 0x344   : > { %v3354_v50 = vadd.f32 %v3353_v1, %v11629_v3  ;;  %v3243_v31 = vpop.f32.mrf.mxu3  ;;  %v10176_v1 = vld [vmem:[#allocation8 + $0x178] sm:$0xff] }
 0x345   : > { %v11779_v36 = vadd.f32 %v3292_v27, %v3243_v31  ;;  %5162 = vmatpush.bf16.msra.mxu1 %v10176_v1  ;;  %v3483_v1 = vld [vmem:[#allocation2 + $0x160] sm:$0xff] }
 0x347   : > { %v11783_v18 = vpop.f32.mrf.mxu0 }
 0x349   : > { %4055 = vmatmul.bf16.vlgmr.msra.gmra.mxu3 %v3542_v42 }
 0x34a   : > { %4104 = vmatmul.bf16.vlgmr.msra.gmra.mxu0 %v3543_v38  ;;  %v3548_v38 = vpack.c.bf16 %v3478_v59, %v3473_v17  ;;  %v3488_v17 = vld [vmem:[#allocation2 + $0x188] sm:$0xff] }
 0x34b   : > { %v3355_v56 = vpop.f32.mrf.mxu2 }
 0x34c   : > { %v3356_v55 = vadd.f32 %v3355_v56, %v11641_v35  ;;  %v3402_v3 = vpop.f32.mrf.mxu3  ;;  %v3547_v35 = vpack.c.bf16 %v11637_v43, %v11617_v7 }
 0x34d   : > { %v3403_v53 = vadd.f32 %v3402_v3, %v3354_v50 }
 0x34f   : > { %v11787_v44 = vadd.f32 %v3403_v53, %v11611_v63  ;;  %v11789_v27 = vpop.f32.mrf.mxu0 }
 0x350   : > { %4011 = vmatmul.bf16.gmra.mxu2 %v3546_v16  ;;  %v3551_v16 = vpack.c.bf16 %v3486_v4, %v3481_v57 }
 0x353   : > { %v3358_v41 = vpop.f32.mrf.mxu2 }
 0x354   : > { %v3359_v33 = vadd.f32 %v3358_v41, %v11651_v37  ;;  %v3404_v31 = vpop.f32.mrf.mxu3  ;;  %v10175_v41 = vld [vmem:[#allocation8 + $0x170] sm:$0xff] }
 0x355   : > { %v3405_v42 = vadd.f32 %v3404_v31, %v3356_v55  ;;  %5163 = vmatpush.bf16.msra.mxu1 %v10175_v41 }
 0x357   : > { %v11795_v50 = vadd.f32 %v3405_v42, %v11627_v49  ;;  %v11797_v63 = vpop.f32.mrf.mxu0  ;;  %v3553_v42 = vpack.c.bf16 %v3488_v17, %v3483_v1 }
 0x359   : > { %4060 = vmatmul.bf16.gmra.mxu3 %v3547_v35 }
 0x35a   : > { %4109 = vmatmul.bf16.gmra.mxu0 %v3548_v38 }
 0x35b   : > { %v3360_v56 = vpop.f32.mrf.mxu2 }
 0x35c   : > { %v3361_v37 = vadd.f32 %v3360_v56, %v11661_v0  ;;  %v3407_v3 = vpop.f32.mrf.mxu3  ;;  %v3552_v0 = vpack.c.bf16 %v11659_v28, %v11639_v19  ;;  %v10174_v28 = vld [vmem:[#allocation8 + $0x168] sm:$0xff] }
 0x35d   : > { %v3408_v53 = vadd.f32 %v3407_v3, %v3359_v33  ;;  %5164 = vmatpush.bf16.msra.mxu1 %v10174_v28  ;;  %v3516_v28 = vld [vmem:[#allocation2 + $0x308] sm:$0xff] }
 0x35f   : > { %v11801_v55 = vadd.f32 %v3408_v53, %v11633_v24  ;;  %v11803_v7 = vpop.f32.mrf.mxu0  ;;  %v3501_v53 = vld [vmem:[#allocation2 + $0x290] sm:$0xff] }
 0x360   : > { %4016 = vmatmul.bf16.gmra.mxu2 %v3551_v16 }
 0x363   : > { %v3363_v49 = vpop.f32.mrf.mxu2 }
 0x364   : > { %v3364_v43 = vadd.f32 %v3363_v49, %v11669_v11  ;;  %v3409_v59 = vpop.f32.mrf.mxu3  ;;  %v3506_v49 = vld [vmem:[#allocation2 + $0x2b8] sm:$0xff] }
 0x365   : > { %v3410_v31 = vadd.f32 %v3409_v59, %v3361_v37  ;;  %v3561_v41 = vpack.c.bf16 %v3506_v49, %v3501_v53 }
 0x367   : > { %v11809_v33 = vadd.f32 %v3410_v31, %v11649_v25  ;;  %v11811_v24 = vpop.f32.mrf.mxu0 }
 0x369   : > { %4065 = vmatmul.bf16.gmra.mxu3 %v3552_v0  ;;  %v10173_v0 = vld [vmem:[#allocation8 + $0x160] sm:$0xff] }
 0x36a   : > { %4114 = vmatmul.bf16.gmra.mxu0 %v3553_v42  ;;  %v3503_v42 = vld [vmem:[#allocation2 + $0x2a0] sm:$0xff]  ;;  %5165 = vmatpush.bf16.msra.mxu1 %v10173_v0 }
 0x36b   : > { %v3365_v35 = vpop.f32.mrf.mxu2 }
 0x36c   : > { %v3366_v11 = vadd.f32 %v3365_v35, %v11683_v32  ;;  %v3412_v38 = vpop.f32.mrf.mxu3  ;;  %v3508_v35 = vld [vmem:[#allocation2 + $0x2c8] sm:$0xff] }
 0x36d   : > { %v3413_v57 = vadd.f32 %v3412_v38, %v3364_v43 }
 0x36f   : > { %v11816_v4 = vadd.f32 %v3413_v57, %v11655_v48  ;;  %v11818_v56 = vpop.f32.mrf.mxu0  ;;  %v3563_v57 = vpack.c.bf16 %v3508_v35, %v3503_v42 }
 0x370   : > { %4021 = vmatmul.bf16.gmra.mxu2 %v11679_v54 }
 0x373   : > { %v3368_v19 = vpop.f32.mrf.mxu2 }
 0x374   : > { %v3369_v25 = vadd.f32 %v3368_v19, %v11692_v30  ;;  %v3414_v37 = vpop.f32.mrf.mxu3 }
 0x375   : > { %v3415_v16 = vadd.f32 %v3414_v37, %v3366_v11 }
 0x377   : > { %v11822_v3 = vadd.f32 %v3415_v16, %v11667_v22  ;;  %v11824_v32 = vpop.f32.mrf.mxu0 }
 0x379   : > { %4070 = vmatmul.bf16.gmra.mxu3 %v11679_v54 }
 0x37a   : > { %4119 = vmatmul.bf16.gmra.mxu0 %v11679_v54 }
 0x37b   : > { %v3370_v48 = vpop.f32.mrf.mxu2 }
 0x37c   : > { %v3371_v43 = vadd.f32 %v3370_v48, %v11704_v8  ;;  %v3417_v30 = vpop.f32.mrf.mxu3  ;;  %v3562_v8 = vpack.c.bf16 %v11700_v14, %v11681_v51  ;;  %v3327_v51 = vadd.f32 %v11716_v34, %v11722_v58  ;;  %v3521_v34 = vld [vmem:[#allocation2 + $0x330] sm:$0xff]  ;;  %v3526_v58 = vld [vmem:[#allocation2 + $0x358] sm:$0xff] }
 0x37d   : > { %v3418_v1 = vadd.f32 %v3417_v30, %v3369_v25  ;;  %v3511_v25 = vld [vmem:[#allocation2 + $0x2e0] sm:$0xff]  ;;  %v3513_v30 = vld [vmem:[#allocation2 + $0x2f0] sm:$0xff] }
 0x37f   : > { %v11830_v17 = vadd.f32 %v3418_v1, %v11673_v6  ;;  %v11832_v22 = vpop.f32.mrf.mxu0  ;;  %v3518_v1 = vld [vmem:[#allocation2 + $0x318] sm:$0xff] }
 0x380   : > { %4026 = vmatmul.bf16.gmra.mxu2 %v3561_v41  ;;  %v10172_v41 = vld [vmem:[#allocation8 + $0x158] sm:$0xff] }
 0x381   : > { %5166 = vmatpush.bf16.msra.mxu1 %v10172_v41 }
 0x383   : > { %v3373_v59 = vpop.f32.mrf.mxu2 }
 0x384   : > { %v3374_v31 = vadd.f32 %v3373_v59, %v11714_v39  ;;  %v3419_v11 = vpop.f32.mrf.mxu3  ;;  %v3566_v39 = vpack.c.bf16 %v3516_v28, %v3511_v25 }
 0x385   : > { %v3420_v38 = vadd.f32 %v3419_v11, %v3371_v43 }
 0x387   : > { %v11838_v19 = vadd.f32 %v3420_v38, %v11690_v29  ;;  %v11840_v6 = vpop.f32.mrf.mxu0  ;;  %v11857_v38 = vpop.f32.mrf.mxu1 }
 0x389   : > { %4075 = vmatmul.bf16.gmra.mxu3 %v3562_v8 }
 0x38a   : > { %4124 = vmatmul.bf16.gmra.mxu0 %v3563_v57 }
 0x38b   : > { %v3375_v37 = vpop.f32.mrf.mxu2 }
 0x38c   : > { %v3422_v16 = vpop.f32.mrf.mxu3  ;;  %v3376_v29 = vadd.f32 %v3375_v37, %v3327_v51 }
 0x38d   : > { %v3423_v53 = vadd.f32 %v3422_v16, %v3374_v31  ;;  %v3567_v31 = vpack.c.bf16 %v11726_v23, %v11702_v20  ;;  %v3523_v16 = vld [vmem:[#allocation2 + $0x340] sm:$0xff] }
 0x38f   : > { %v11843_v49 = vadd.f32 %v3423_v53, %v11696_v13  ;;  %v11845_v48 = vpop.f32.mrf.mxu0  ;;  %v3568_v13 = vpack.c.bf16 %v3518_v1, %v3513_v30  ;;  %v3528_v53 = vld [vmem:[#allocation2 + $0x368] sm:$0xff] }
 0x390   : > { %4031 = vmatmul.bf16.gmra.mxu2 %v3566_v39  ;;  %v10171_v39 = vld [vmem:[#allocation8 + $0x150] sm:$0xff] }
 0x391   : > { %5167 = vmatpush.bf16.msra.mxu1 %v10171_v39 }
 0x393   : > { %v3378_v14 = vpop.f32.mrf.mxu2 }
 0x394   : > { %v3379_v43 = vadd.f32 %v3378_v14, %v11738_v15  ;;  %v3424_v59 = vpop.f32.mrf.mxu3  ;;  %v3571_v15 = vpack.c.bf16 %v3526_v58, %v3521_v34  ;;  %v3572_v14 = vpack.c.bf16 %v11750_v60, %v11728_v47  ;;  %v10190_v34 = vld [vmem:[#allocation8 + $0x1e8] sm:$0xff] }
 0x395   : > { %v3425_v0 = vadd.f32 %v3424_v59, %v3376_v29  ;;  %v10191_v59 = vld [vmem:[#allocation8 + $0x1f0] sm:$0xff] }
 0x397   : > { %v11853_v42 = vadd.f32 %v3425_v0, %v11712_v62  ;;  %v11855_v35 = vpop.f32.mrf.mxu0  ;;  %v3332_v62 = vadd.f32 %v11740_v21, %v11746_v40 }
 0x399   : > { %4080 = vmatmul.bf16.gmra.mxu3 %v3567_v31 }
 0x39a   : > { %4129 = vmatmul.bf16.gmra.mxu0 %v3568_v13 }
 0x39b   : > { %v3380_v11 = vpop.f32.mrf.mxu2 }
 0x39c   : > { %v3427_v8 = vpop.f32.mrf.mxu3  ;;  %v3381_v23 = vadd.f32 %v3380_v11, %v3332_v62  ;;  %v10184_v11 = vld [vmem:[#allocation8 + $0x1b8] sm:$0xff] }
 0x39d   : > { %v3428_v57 = vadd.f32 %v3427_v8, %v3379_v43  ;;  %v3573_v43 = vpack.c.bf16 %v3528_v53, %v3523_v16  ;;  %5211 = vmatpush.bf16.msrb.mxu2 %v10184_v11  ;;  %v10182_v16 = vld [vmem:[#allocation8 + $0x1a8] sm:$0xff]  ;;  %v10179_v11 = vld [vmem:[#allocation8 + $0x190] sm:$0xff] }
 0x39e   : > { %v10198_v53 = vld [vmem:[#allocation8 + $0x228] sm:$0xff] }
 0x39f   : > { %v11860_v25 = vadd.f32 %v3428_v57, %v11720_v46  ;;  %v11862_v20 = vpop.f32.mrf.mxu0  ;;  %v11869_v46 = vpop.f32.mrf.mxu1 }
 0x3a0   : > { %4036 = vmatmul.bf16.gmra.mxu2 %v3571_v15  ;;  %v10200_v15 = vld [vmem:[#allocation8 + $0x238] sm:$0xff] }
 0x3a1   : > { %5309 = vmatpush.bf16.msrb.mxu0 %v10200_v15  ;;  %v10195_v15 = vld [vmem:[#allocation8 + $0x210] sm:$0xff] }
 0x3a3   : > { %v3383_v28 = vpop.f32.mrf.mxu2 }
 0x3a4   : > { %v3384_v37 = vadd.f32 %v3383_v28, %v11758_v9  ;;  %v3429_v51 = vpop.f32.mrf.mxu3  ;;  %v10192_v9 = vld [vmem:[#allocation8 + $0x1f8] sm:$0xff] }
 0x3a5   : > { %v3430_v29 = vadd.f32 %v3429_v51, %v3381_v23  ;;  %5260 = vmatpush.bf16.msrb.mxu3 %v10192_v9  ;;  %v10199_v23 = vld [vmem:[#allocation8 + $0x230] sm:$0xff] }
 0x3a6   : > { %5310 = vmatpush.bf16.msrb.mxu0 %v10199_v23  ;;  %v10187_v51 = vld [vmem:[#allocation8 + $0x1d0] sm:$0xff] }
 0x3a7   : > { %v11872_v41 = vadd.f32 %v3430_v29, %v11736_v52  ;;  %v11874_v21 = vpop.f32.mrf.mxu0  ;;  %v3337_v52 = vadd.f32 %v11761_v2, %v11766_v26  ;;  %v11884_v0 = vpop.f32.mrf.mxu1  ;;  %v10183_v26 = vld [vmem:[#allocation8 + $0x1b0] sm:$0xff] }
 0x3a8   : > { %5212 = vmatpush.bf16.msrb.mxu2 %v10183_v26 }
 0x3a9   : > { %4085 = vmatmul.bf16.gmra.mxu3 %v3572_v14 }
 0x3aa   : > { %4134 = vmatmul.bf16.gmra.mxu0 %v3573_v43  ;;  %5261 = vmatpush.bf16.msrb.mxu3 %v10191_v59  ;;  %v3342_v43 = vadd.f32 %v11857_v38, %v11779_v36  ;;  %v3959_v36 = vadd.f32 %v11869_v46, %v11783_v18 }
 0x3ab   : > { %v3385_v40 = vpop.f32.mrf.mxu2  ;;  %5311 = vmatpush.bf16.msrb.mxu0 %v10198_v53  ;;  %v10169_v53 = vld [vmem:[#allocation8 + $0x140] sm:$0xff] }
 0x3ac   : > { %v3432_v30 = vpop.f32.mrf.mxu3  ;;  %v3386_v31 = vadd.f32 %v3385_v40, %v3337_v52  ;;  %5213 = vmatpush.bf16.msrb.mxu2 %v10182_v16  ;;  %v10181_v40 = vld [vmem:[#allocation8 + $0x1a0] sm:$0xff] }
 0x3ad   : > { %v3433_v1 = vadd.f32 %v3432_v30, %v3384_v37  ;;  %v10188_v37 = vld [vmem:[#allocation8 + $0x1d8] sm:$0xff] }
 0x3ae   : > { %5262 = vmatpush.bf16.msrb.mxu3 %v10190_v34 }
 0x3af   : > { %v11878_v47 = vadd.f32 %v3433_v1, %v11744_v10  ;;  %v11880_v60 = vpop.f32.mrf.mxu0  ;;  %v10189_v10 = vld [vmem:[#allocation8 + $0x1e0] sm:$0xff]  ;;  %v10186_v1 = vld [vmem:[#allocation8 + $0x1c8] sm:$0xff] }
 0x3b0   : > { %4041 = vmatmul.bf16.gmra.mxu2 %v11679_v54 }
 0x3b1   : > { %5214 = vmatpush.bf16.msrb.mxu2 %v10181_v40 }
 0x3b2   : > { %5263 = vmatpush.bf16.msrb.mxu3 %v10189_v10  ;;  %v10170_v10 = vld [vmem:[#allocation8 + $0x148] sm:$0xff] }
 0x3b3   : > { %v3388_v13 = vpop.f32.mrf.mxu2  ;;  %5168 = vmatpush.bf16.msra.mxu1 %v10170_v10 }
 0x3b4   : > { %v3389_v58 = vadd.f32 %v3388_v13, %v11776_v5  ;;  %v3434_v8 = vpop.f32.mrf.mxu3  ;;  %v11893_v5 = vpop.f32.mrf.mxu1 }
 0x3b5   : > { %v3435_v57 = vadd.f32 %v3434_v8, %v3386_v31  ;;  %v10180_v31 = vld [vmem:[#allocation8 + $0x198] sm:$0xff] }
 0x3b6   : > { %5264 = vmatpush.bf16.msrb.mxu3 %v10188_v37  ;;  %5215 = vmatpush.bf16.msrb.mxu2 %v10180_v31  ;;  %v10194_v37 = vld [vmem:[#allocation8 + $0x208] sm:$0xff] }
 0x3b7   : > { %v11888_v62 = vadd.f32 %v3435_v57, %v11756_v45  ;;  %v11890_v2 = vpop.f32.mrf.mxu0  ;;  %5169 = vmatpush.bf16.msra.mxu1 %v10169_v53 }
 0x3b9   : > { %4090 = vmatmul.bf16.gmra.mxu3 %v11679_v54 }
 0x3ba   : > { %4139 = vmatmul.bf16.gmra.mxu0 %v11679_v54  ;;  %v10197_v54 = vld [vmem:[#allocation8 + $0x220] sm:$0xff]  ;;  %5265 = vmatpush.bf16.msrb.mxu3 %v10187_v51 }
 0x3bb   : > { %v3390_v28 = vpop.f32.mrf.mxu2  ;;  %5312 = vmatpush.bf16.msrb.mxu0 %v10197_v54  ;;  %5216 = vmatpush.bf16.msrb.mxu2 %v10179_v11  ;;  %v11921_v51 = vld [vmem:[%s13144_s3] ss:$0 sm:$0xff] }
 0x3bc   : > { %v3437_v39 = vpop.f32.mrf.mxu3  ;;  %v3391_v9 = vadd.f32 %v3390_v28, %v3342_v43  ;;  %v11903_v59 = vpop.f32.mrf.mxu1  ;;  %v10178_v28 = vld [vmem:[#allocation8 + $0x188] sm:$0xff] }
 0x3bd   : > { %v3438_v45 = vadd.f32 %v3437_v39, %v3389_v58  ;;  %v10185_v58 = vld [vmem:[#allocation8 + $0x1c0] sm:$0xff] }
 0x3be   : > { %5266 = vmatpush.bf16.msrb.mxu3 %v10186_v1  ;;  %v11915_v39 = vld [vmem:[%s13143_s2] ss:$0 sm:$0xff] }
 0x3bf   : > { %v11897_v29 = vadd.f32 %v3438_v45, %v11764_v61  ;;  %v11899_v14 = vpop.f32.mrf.mxu0  ;;  %v10196_v61 = vld [vmem:[#allocation8 + $0x218] sm:$0xff]  ;;  %5217 = vmatpush.bf16.msrb.mxu2 %v10178_v28 }
 0x3c0   : > { %5313 = vmatpush.bf16.msrb.mxu0 %v10196_v61 }
 0x3c2   : > { %5267 = vmatpush.bf16.msrb.mxu3 %v10185_v58 }
 0x3c3   : > { %v4007_v30 = vpop.f32.mrf.mxu2 }
 0x3c4   : > { %v3439_v52 = vpop.f32.mrf.mxu3  ;;  %v4008_v8 = vadd.f32 %v4007_v30, %v3959_v36  ;;  %5314 = vmatpush.bf16.msrb.mxu0 %v10195_v15  ;;  %v3968_v18 = vpop.f32.mrf.mxu1 }
 0x3c5   : > { %v3440_v13 = vadd.f32 %v3439_v52, %v3391_v9 }
 0x3c7   : > { %v11908_v38 = vadd.f32 %v3440_v13, %v11774_v12  ;;  %v4105_v34 = vpop.f32.mrf.mxu0  ;;  %v3961_v12 = vadd.f32 %v11884_v0, %v11789_v27  ;;  %v10177_v27 = vld [vmem:[#allocation8 + $0x180] sm:$0xff] }
 0x3c8   : > { %5315 = vmatpush.bf16.msrb.mxu0 %v10194_v37  ;;  %v10193_v0 = vld [vmem:[#allocation8 + $0x200] sm:$0xff]  ;;  %5218 = vmatpush.bf16.msrb.mxu2 %v10177_v27 }
 0x3cb   : > { %v4009_v57 = vpop.f32.mrf.mxu2 }
 0x3cc   : > { %v4056_v26 = vpop.f32.mrf.mxu3  ;;  %v4010_v43 = vadd.f32 %v4009_v57, %v3961_v12  ;;  %5316 = vmatpush.bf16.msrb.mxu0 %v10193_v0  ;;  %v11927_v13 = vpop.f32.mrf.mxu1 }
 0x3cd   : > { %v4057_v23 = vadd.f32 %v4056_v26, %v4008_v8 }
 0x3cf   : > { %v4106_v46 = vadd.f32 %v4105_v34, %v4057_v23  ;;  %v4107_v16 = vpop.f32.mrf.mxu0 }
 0x3d1   : > { %v4145_v45 = vadd.f32 %v4106_v46, %v11787_v44  ;;  %v3964_v44 = vadd.f32 %v11893_v5, %v11797_v63  ;;  %v3966_v5 = vadd.f32 %v11903_v59, %v11803_v7 }
 0x3d3   : > { %v4012_v40 = vpop.f32.mrf.mxu2  ;;  %v4165_v54 = vmul.f32 %v11915_v39, %v4145_v45 }
 0x3d4   : > { %v4058_v9 = vpop.f32.mrf.mxu3  ;;  %v4013_v58 = vadd.f32 %v4012_v40, %v3964_v44  ;;  %v11935_v46 = vpop.f32.mrf.mxu1 }
 0x3d5   : > { %v4185_v30 = vadd.f32 %v11921_v51, %v4165_v54  ;;  %v4059_v1 = vadd.f32 %v4058_v9, %v4010_v43 }
 0x3d7   : > { %v4217_v52 = vmin.f32 %v4185_v30, 0.0  ;;  %v4108_v31 = vadd.f32 %v4107_v16, %v4059_v1  ;;  %v4110_v61 = vpop.f32.mrf.mxu0  ;;  %vm4201_vm0 = vcmp.gt.f32.partialorder %v4185_v30, 0.0 }
 0x3d9   : > { %v4233_v36 = vmul.f32 1.442695, %v4217_v52  ;;  %v4146_v34 = vadd.f32 %v4108_v31, %v11795_v50  ;;  %v3969_v52 = vadd.f32 %v3968_v18, %v11811_v24 }
 0x3db   : > { %v4014_v11 = vpop.f32.mrf.mxu2  ;;  %10425 = vpow2.f32 %v4233_v36  ;;  %v4166_v15 = vmul.f32 %v11915_v39, %v4146_v34 }
 0x3dc   : > { %v4061_v8 = vpop.f32.mrf.mxu3  ;;  %v4015_v53 = vadd.f32 %v4014_v11, %v3966_v5 }
 0x3dd   : > { %v4186_v57 = vadd.f32 %v11921_v51, %v4166_v15  ;;  %v4062_v10 = vadd.f32 %v4061_v8, %v4013_v58  ;;  %v11944_v8 = vpop.f32.mrf.mxu1 }
 0x3df   : > { %v4218_v26 = vmin.f32 %v4186_v57, 0.0  ;;  %v4111_v23 = vadd.f32 %v4110_v61, %v4062_v10  ;;  %v4112_v63 = vpop.f32.mrf.mxu0  ;;  %vm4202_vm1 = vcmp.gt.f32.partialorder %v4186_v57, 0.0 }
 0x3e1   : > { %v10426_v28 = vpop.eup %10425  ;;  %v4235_v37 = vmul.f32 1.442695, %v4218_v26  ;;  %v4147_v12 = vadd.f32 %v4111_v23, %v11801_v55  ;;  %v11939_v55 = vld [vmem:[#allocation2 + $0x208] sm:$0xff]  ;;  %v10208_v26 = vld [vmem:[#allocation8 + $0x278] sm:$0xff] }
 0x3e2   : > { %v9089_v16 = vadd.f32 -1.0, %v10426_v28  ;;  %5358 = vmatpush.bf16.msrb.mxu1 %v10208_v26 }
 0x3e3   : > { %v4017_v50 = vpop.f32.mrf.mxu2  ;;  %10427 = vpow2.f32 %v4235_v37  ;;  %v4167_v45 = vmul.f32 %v11915_v39, %v4147_v12 }
 0x3e4   : > { %v4281_v43 = vsel %vm4201_vm0, %v4185_v30, %v9089_v16  ;;  %v4063_v40 = vpop.f32.mrf.mxu3  ;;  %v4018_v15 = vadd.f32 %v4017_v50, %v3969_v52  ;;  %v3971_v50 = vadd.f32 %v11927_v13, %v11818_v56 }
 0x3e5   : > { %v4313_v27 = vrot.slane %v4281_v43, 6  ;;  %v4361_v0 = vrot.slane %v4281_v43, 7  ;;  %4409 = vst [vmem:[#allocation2 + $0x60] sm:$0xff] %v4281_v43  ;;  %v4425_v54 = vrot.slane %v4281_v43, 1  ;;  %v4473_v7 = vrot.slane %v4281_v43, 2 }
 0x3e6   : > { %v4187_v59 = vadd.f32 %v11921_v51, %v4167_v45  ;;  %v4064_v9 = vadd.f32 %v4063_v40, %v4015_v53  ;;  %v4803_v1 = vpack.c.bf16 %v4281_v43, %v11939_v55 }
 0x3e7   : > { %4345 = vst [vmem:[#allocation2 + $0x50] sm:$0xfc] %v4313_v27  ;;  %v4115_v44 = vpop.f32.mrf.mxu0 }
 0x3e8   : > { %4393 = vst [vmem:[#allocation2 + $0x58] sm:$0xfe] %v4361_v0  ;;  %v4219_v31 = vmin.f32 %v4187_v59, 0.0  ;;  %v4113_v30 = vadd.f32 %v4112_v63, %v4064_v9  ;;  %5268 = vmatmul.bf16.vlgmr.msrb.gmra.mxu3 %v4803_v1  ;;  %vm4203_vm2 = vcmp.gt.f32.partialorder %v4187_v59, 0.0 }
 0x3e9   : > { %v10428_v61 = vpop.eup %10427  ;;  %4457 = vst [vmem:[#allocation2 + $0x68] sm:$0x7f] %v4425_v54 }
 0x3ea   : > { %4505 = vst [vmem:[#allocation2 + $0x70] sm:$0x3f] %v4473_v7  ;;  %v9090_v34 = vadd.f32 -1.0, %v10428_v61  ;;  %v4237_v58 = vmul.f32 1.442695, %v4219_v31  ;;  %v4148_v11 = vadd.f32 %v4113_v30, %v11809_v33  ;;  %v3974_v61 = vadd.f32 %v11935_v46, %v11824_v32 }
 0x3eb   : > { %v4019_v36 = vpop.f32.mrf.mxu2 }
 0x3ec   : > { %v4282_v10 = vsel %vm4202_vm1, %v4186_v57, %v9090_v34  ;;  %10429 = vpow2.f32 %v4237_v58  ;;  %v4168_v24 = vmul.f32 %v11915_v39, %v4148_v11  ;;  %v4066_v18 = vpop.f32.mrf.mxu3  ;;  %v4020_v54 = vadd.f32 %v4019_v36, %v3971_v50  ;;  %v11960_v36 = vpop.f32.mrf.mxu1 }
 0x3ed   : > { %v4314_v23 = vrot.slane %v4282_v10, 6  ;;  %v4362_v63 = vrot.slane %v4282_v10, 7  ;;  %4410 = vst [vmem:[#allocation2 + $0x88] sm:$0xff] %v4282_v10  ;;  %v4426_v5 = vrot.slane %v4282_v10, 1  ;;  %v4474_v28 = vrot.slane %v4282_v10, 2 }
 0x3ee   : > { %v11948_v37 = vadd.f32 %v11921_v51, %v4168_v24  ;;  %v4067_v12 = vadd.f32 %v4066_v18, %v4018_v15  ;;  %v4726_v33 = vld [vmem:[#allocation2 + $0x50] sm:$0xff] }
 0x3ef   : > { %4346 = vst [vmem:[#allocation2 + $0x78] sm:$0xfc] %v4314_v23  ;;  %v4117_v57 = vpop.f32.mrf.mxu0  ;;  %v4801_v16 = vpack.c.bf16 %v4726_v33, %v11939_v55  ;;  %v4727_v53 = vld [vmem:[#allocation2 + $0x58] sm:$0xff] }
 0x3f0   : > { %4394 = vst [vmem:[#allocation2 + $0x80] sm:$0xfe] %v4362_v63  ;;  %v4220_v45 = vmin.f32 %v11948_v37, 0.0  ;;  %v4116_v43 = vadd.f32 %v4115_v44, %v4067_v12  ;;  %v4802_v40 = vpack.c.bf16 %v4727_v53, %v11939_v55  ;;  %v4729_v27 = vld [vmem:[#allocation2 + $0x68] sm:$0xff]  ;;  %vm4204_vm3 = vcmp.gt.f32.partialorder %v11948_v37, 0.0 }
 0x3f1   : > { %4458 = vst [vmem:[#allocation2 + $0x90] sm:$0x7f] %v4426_v5  ;;  %5170 = vmatmul.bf16.vlgmr.msra.gmra.mxu1 %v4801_v16  ;;  %v4804_v0 = vpack.c.bf16 %v4729_v27, %v11939_v55  ;;  %v11967_v63 = vld [vmem:[#allocation2 + $0x70] sm:$0xff] }
 0x3f2   : > { %v10430_v9 = vpop.eup %10429  ;;  %4506 = vst [vmem:[#allocation2 + $0x98] sm:$0x3f] %v4474_v28  ;;  %v4239_v56 = vmul.f32 1.442695, %v4220_v45  ;;  %v4149_v13 = vadd.f32 %v4116_v43, %v11816_v4  ;;  %5219 = vmatmul.bf16.vlgmr.msrb.gmra.mxu2 %v4802_v40  ;;  %v3976_v40 = vadd.f32 %v11944_v8, %v11832_v22 }
 0x3f3   : > { %v4022_v7 = vpop.f32.mrf.mxu2  ;;  %v9091_v1 = vadd.f32 -1.0, %v10430_v9  ;;  %5317 = vmatmul.bf16.vlgmr.msrb.gmra.mxu0 %v4804_v0 }
 0x3f4   : > { %10431 = vpow2.f32 %v4239_v56  ;;  %v4169_v44 = vmul.f32 %v11915_v39, %v4149_v13  ;;  %v4068_v52 = vpop.f32.mrf.mxu3  ;;  %v4023_v32 = vadd.f32 %v4022_v7, %v3974_v61  ;;  %v11995_v8 = vpop.f32.mrf.mxu1 }
 0x3f5   : > { %v4283_v31 = vsel %vm4203_vm2, %v4187_v59, %v9091_v1  ;;  %v4069_v30 = vadd.f32 %v4068_v52, %v4020_v54  ;;  %v11989_v54 = vld [vmem:[#allocation2 + $0x88] sm:$0xff] }
 0x3f6   : > { %v4315_v34 = vrot.slane %v4283_v31, 6  ;;  %v4363_v58 = vrot.slane %v4283_v31, 7  ;;  %4411 = vst [vmem:[#allocation2 + $0xb0] sm:$0xff] %v4283_v31  ;;  %v4427_v11 = vrot.slane %v4283_v31, 1  ;;  %v4475_v4 = vrot.slane %v4283_v31, 2  ;;  %v4731_v1 = vld [vmem:[#allocation2 + $0x78] sm:$0xff] }
 0x3f7   : > { %v11963_v15 = vadd.f32 %v11921_v51, %v4169_v44  ;;  %v4118_v24 = vadd.f32 %v4117_v57, %v4069_v30  ;;  %v4120_v18 = vpop.f32.mrf.mxu0  ;;  %v4808_v26 = vpack.c.bf16 %v4283_v31, %v4282_v10  ;;  %v10207_v57 = vld [vmem:[#allocation8 + $0x270] sm:$0xff]  ;;  %13265 = vst [vmem:[#allocation35_spill] sm:$0xff] %v11989_v54  ;;  %v4732_v31 = vld [vmem:[#allocation2 + $0x80] sm:$0xff] }
 0x3f8   : > { %4347 = vst [vmem:[#allocation2 + $0xa0] sm:$0xfc] %v4315_v34  ;;  %5359 = vmatpush.bf16.msrb.mxu1 %v10207_v57 }
 0x3f9   : > { %4395 = vst [vmem:[#allocation2 + $0xa8] sm:$0xfe] %v4363_v58  ;;  %v4221_v59 = vmin.f32 %v11963_v15, 0.0  ;;  %v4150_v23 = vadd.f32 %v4118_v24, %v11822_v3  ;;  %5273 = vmatmul.bf16.gmra.mxu3 %v4808_v26  ;;  %v11969_v5 = vld [vmem:[#allocation2 + $0x98] sm:$0xff]  ;;  %vm4205_vm4 = vcmp.gt.f32.partialorder %v11963_v15, 0.0 }
 0x3fa   : > { %v10432_v28 = vpop.eup %10431  ;;  %4459 = vst [vmem:[#allocation2 + $0xb8] sm:$0x7f] %v4427_v11  ;;  %v4734_v11 = vld [vmem:[#allocation2 + $0x90] sm:$0xff] }
 0x3fb   : > { %v4024_v46 = vpop.f32.mrf.mxu2  ;;  %4507 = vst [vmem:[#allocation2 + $0xc0] sm:$0x3f] %v4475_v4  ;;  %v9092_v10 = vadd.f32 -1.0, %v10432_v28  ;;  %v4241_v33 = vmul.f32 1.442695, %v4221_v59  ;;  %v4170_v50 = vmul.f32 %v11915_v39, %v4150_v23  ;;  %v12004_v28 = vld [vmem:[#allocation2 + $0x98] sm:$0xff] }
 0x3fc   : > { %v4071_v3 = vpop.f32.mrf.mxu3  ;;  %v4025_v24 = vadd.f32 %v4024_v46, %v3976_v40  ;;  %13267 = vst [vmem:[#allocation30_spill] sm:$0xff] %v12004_v28 }
 0x3fd   : > { %v11976_v16 = vsel %vm4204_vm3, %v11948_v37, %v9092_v10  ;;  %10433 = vpow2.f32 %v4241_v33  ;;  %v11979_v53 = vadd.f32 %v11921_v51, %v4170_v50  ;;  %v4072_v45 = vadd.f32 %v4071_v3, %v4023_v32  ;;  %v11981_v43 = vld [vmem:[#allocation2 + $0xb0] sm:$0xff] }
 0x3fe   : > { %13264 = vst [vmem:[#allocation29_spill] sm:$0xff] %v11981_v43  ;;  %v4316_v27 = vrot.slane %v11976_v16, 6  ;;  %v4364_v0 = vrot.slane %v11976_v16, 7  ;;  %v4428_v37 = vrot.slane %v11976_v16, 1  ;;  %v4476_v7 = vrot.slane %v11976_v16, 2  ;;  %v4538_v43 = vld [vmem:[#allocation2 + $0x88] sm:$0xff] }
 0x3ff   : > { %4412 = vst [vmem:[#allocation2 + $0xd8] sm:$0xff] %v11976_v16  ;;  %v4222_v9 = vmin.f32 %v11979_v53, 0.0  ;;  %v4121_v56 = vadd.f32 %v4120_v18, %v4072_v45  ;;  %v4122_v13 = vpop.f32.mrf.mxu0  ;;  %v4736_v44 = vld [vmem:[#allocation2 + $0xa0] sm:$0xff]  ;;  %v3979_v3 = vadd.f32 %v11960_v36, %v11840_v6  ;;  %vm4206_vm5 = vcmp.gt.f32.partialorder %v11979_v53, 0.0 }
 0x400   : > { %4348 = vst [vmem:[#allocation2 + $0xc8] sm:$0xfc] %v4316_v27  ;;  %v4806_v52 = vpack.c.bf16 %v4736_v44, %v4731_v1  ;;  %v11997_v30 = vld [vmem:[#allocation2 + $0xa8] sm:$0xff] }
 0x401   : > { %4396 = vst [vmem:[#allocation2 + $0xd0] sm:$0xfe] %v4364_v0  ;;  %v4243_v61 = vmul.f32 1.442695, %v4222_v9  ;;  %v4151_v34 = vadd.f32 %v4121_v56, %v11830_v17  ;;  %v4807_v58 = vpack.c.bf16 %v11997_v30, %v4732_v31  ;;  %v4739_v4 = vld [vmem:[#allocation2 + $0xb8] sm:$0xff] }
 0x402   : > { %4460 = vst [vmem:[#allocation2 + $0xe0] sm:$0x7f] %v4428_v37  ;;  %5175 = vmatmul.bf16.gmra.mxu1 %v4806_v52  ;;  %v4809_v26 = vpack.c.bf16 %v4739_v4, %v4734_v11  ;;  %v12001_v59 = vld [vmem:[#allocation2 + $0xc0] sm:$0xff]  ;;  %v12023_v36 = vld [vmem:[#allocation2 + $0xb8] sm:$0xff] }
 0x403   : > { %v4027_v18 = vpop.f32.mrf.mxu2  ;;  %13266 = vst [vmem:[#allocation36_spill] sm:$0xff] %v12001_v59  ;;  %v10434_v23 = vpop.eup %10433  ;;  %10435 = vpow2.f32 %v4243_v61  ;;  %v4171_v32 = vmul.f32 %v11915_v39, %v4151_v34  ;;  %5224 = vmatmul.bf16.gmra.mxu2 %v4807_v58 }
 0x404   : > { %4508 = vst [vmem:[#allocation2 + $0xe8] sm:$0x3f] %v4476_v7  ;;  %v9093_v17 = vadd.f32 -1.0, %v10434_v23  ;;  %5322 = vmatmul.bf16.gmra.mxu0 %v4809_v26  ;;  %v4073_v10 = vpop.f32.mrf.mxu3  ;;  %v12027_v61 = vpop.f32.mrf.mxu1  ;;  %v4028_v58 = vadd.f32 %v4027_v18, %v3979_v3 }
 0x405   : > { %v12010_v33 = vadd.f32 %v11921_v51, %v4171_v32  ;;  %v4074_v50 = vadd.f32 %v4073_v10, %v4025_v24  ;;  %13268 = vst [vmem:[#allocation31_spill] sm:$0xff] %v12023_v36  ;;  %v10206_v32 = vld [vmem:[#allocation8 + $0x268] sm:$0xff] }
 0x406   : > { %v4285_v57 = vsel %vm4205_vm4, %v11963_v15, %v9093_v17  ;;  %v12019_v15 = vld [vmem:[#allocation2 + $0xc0] sm:$0xff]  ;;  %5360 = vmatpush.bf16.msrb.mxu1 %v10206_v32 }
 0x407   : > { %v4317_v45 = vrot.slane %v4285_v57, 6  ;;  %v4365_v40 = vrot.slane %v4285_v57, 7  ;;  %4413 = vst [vmem:[#allocation2 + $0x100] sm:$0xff] %v4285_v57  ;;  %v4429_v27 = vrot.slane %v4285_v57, 1  ;;  %v4125_v0 = vpop.f32.mrf.mxu0  ;;  %v4477_v37 = vrot.slane %v4285_v57, 2 }
 0x408   : > { %v4223_v7 = vmin.f32 %v12010_v33, 0.0  ;;  %v4123_v9 = vadd.f32 %v4122_v13, %v4074_v50  ;;  %v4813_v56 = vpack.c.bf16 %v4285_v57, %v11976_v16  ;;  %v12017_v1 = vld [vmem:[#allocation2 + $0xd0] sm:$0xff]  ;;  %v12047_v57 = vld [vmem:[#allocation2 + $0xa8] sm:$0xff]  ;;  %vm4207_vm6 = vcmp.gt.f32.partialorder %v12010_v33, 0.0 }
 0x409   : > { %v10436_v44 = vpop.eup %10435  ;;  %4349 = vst [vmem:[#allocation2 + $0xf0] sm:$0xfc] %v4317_v45  ;;  %v12025_v31 = vld [vmem:[#allocation2 + $0xe0] sm:$0xff]  ;;  %v12035_v24 = vld [vmem:[#allocation2 + $0xd0] sm:$0xff] }
 0x40a   : > { %13269 = vst [vmem:[#allocation37_spill] sm:$0xff] %v12025_v31  ;;  %v9094_v13 = vadd.f32 -1.0, %v10436_v44  ;;  %v4245_v34 = vmul.f32 1.442695, %v4223_v7  ;;  %v4152_v16 = vadd.f32 %v4123_v9, %v11838_v19  ;;  %5278 = vmatmul.bf16.gmra.mxu3 %v4813_v56  ;;  %v3981_v7 = vadd.f32 %v11995_v8, %v11845_v48  ;;  %v4741_v56 = vld [vmem:[#allocation2 + $0xc8] sm:$0xff] }
 0x40b   : > { %v4029_v52 = vpop.f32.mrf.mxu2  ;;  %4397 = vst [vmem:[#allocation2 + $0xf8] sm:$0xfe] %v4365_v40  ;;  %v12030_v11 = vld [vmem:[#allocation2 + $0xe8] sm:$0xff]  ;;  %v12053_v40 = vld [vmem:[#allocation2 + $0xd8] sm:$0xff] }
 0x40c   : > { %4461 = vst [vmem:[#allocation2 + $0x108] sm:$0x7f] %v4429_v27  ;;  %v12040_v23 = vsel %vm4206_vm5, %v11979_v53, %v9094_v13  ;;  %10437 = vpow2.f32 %v4245_v34  ;;  %v4172_v19 = vmul.f32 %v11915_v39, %v4152_v16  ;;  %v4076_v18 = vpop.f32.mrf.mxu3  ;;  %v4030_v8 = vadd.f32 %v4029_v52, %v3981_v7  ;;  %v3985_v46 = vpop.f32.mrf.mxu1 }
 0x40d   : > { %13270 = vst [vmem:[#allocation32_spill] sm:$0xff] %v12035_v24  ;;  %v4318_v17 = vrot.slane %v12040_v23, 6  ;;  %v4366_v10 = vrot.slane %v12040_v23, 7  ;;  %v4430_v50 = vrot.slane %v12040_v23, 1  ;;  %v4478_v3 = vrot.slane %v12040_v23, 2 }
 0x40e   : > { %4509 = vst [vmem:[#allocation2 + $0x110] sm:$0x3f] %v4477_v37  ;;  %v12051_v53 = vadd.f32 %v11921_v51, %v4172_v19  ;;  %v4077_v45 = vadd.f32 %v4076_v18, %v4028_v58  ;;  %v12055_v27 = vld [vmem:[#allocation2 + $0x100] sm:$0xff]  ;;  %v12066_v58 = vld [vmem:[#allocation2 + $0xc8] sm:$0xff] }
 0x40f   : > { %4414 = vst [vmem:[#allocation2 + $0x128] sm:$0xff] %v12040_v23  ;;  %v4127_v9 = vpop.f32.mrf.mxu0  ;;  %v4744_v37 = vld [vmem:[#allocation2 + $0xe0] sm:$0xff] }
 0x410   : > { %13271 = vst [vmem:[#allocation33_spill] sm:$0xff] %v12047_v57  ;;  %v4224_v13 = vmin.f32 %v12051_v53, 0.0  ;;  %v4126_v34 = vadd.f32 %v4125_v0, %v4077_v45  ;;  %v12064_v16 = vld [vmem:[#allocation2 + $0xf0] sm:$0xff]  ;;  %vm4208_vm7 = vcmp.gt.f32.partialorder %v12051_v53, 0.0 }
 0x411   : > { %13272 = vst [vmem:[#allocation38_spill] sm:$0xff] %v12053_v40  ;;  %v12068_v19 = vld [vmem:[#allocation2 + $0xf0] sm:$0xff]  ;;  %v4811_v18 = vpack.c.bf16 %v12064_v16, %v4741_v56 }
 0x412   : > { %13273 = vst [vmem:[#allocation34_spill] sm:$0xff] %v12055_v27  ;;  %v12071_v48 = vld [vmem:[#allocation2 + $0xf8] sm:$0xff]  ;;  %v4247_v26 = vmul.f32 1.442695, %v4224_v13  ;;  %v4153_v0 = vadd.f32 %v4126_v34, %v11843_v49 }
 0x413   : > { %4350 = vst [vmem:[#allocation2 + $0x118] sm:$0xfc] %v4318_v17  ;;  %v4032_v32 = vpop.f32.mrf.mxu2  ;;  %v4812_v45 = vpack.c.bf16 %v12071_v48, %v12017_v1  ;;  %v4749_v44 = vld [vmem:[#allocation2 + $0x108] sm:$0xff]  ;;  %5180 = vmatmul.bf16.gmra.mxu1 %v4811_v18 }
 0x414   : > { %4398 = vst [vmem:[#allocation2 + $0x120] sm:$0xfe] %v4366_v10  ;;  %v10438_v10 = vpop.eup %10437  ;;  %v4814_v56 = vpack.c.bf16 %v4749_v44, %v4744_v37  ;;  %10439 = vpow2.f32 %v4247_v26  ;;  %v4173_v52 = vmul.f32 %v11915_v39, %v4153_v0  ;;  %v4078_v7 = vpop.f32.mrf.mxu3 }
 0x415   : > { %4462 = vst [vmem:[#allocation2 + $0x130] sm:$0x7f] %v4430_v50  ;;  %v9095_v50 = vadd.f32 -1.0, %v10438_v10  ;;  %5229 = vmatmul.bf16.gmra.mxu2 %v4812_v45  ;;  %v4079_v13 = vadd.f32 %v4078_v7, %v4030_v8  ;;  %v12083_v34 = vld [vmem:[#allocation2 + $0x110] sm:$0xff]  ;;  %v12095_v8 = vld [vmem:[#allocation2 + $0xe8] sm:$0xff] }
 0x416   : > { %4510 = vst [vmem:[#allocation2 + $0x138] sm:$0x3f] %v4478_v3  ;;  %v3984_v3 = vadd.f32 %v12027_v61, %v11855_v35  ;;  %5327 = vmatmul.bf16.gmra.mxu0 %v4814_v56  ;;  %v12088_v26 = vadd.f32 %v11921_v51, %v4173_v52  ;;  %v12111_v56 = vld [vmem:[#allocation2 + $0x108] sm:$0xff] }
 0x417   : > { %v4287_v49 = vsel %vm4207_vm6, %v12010_v33, %v9095_v50  ;;  %13274 = vst [vmem:[#allocation39_spill] sm:$0xff] %v12083_v34  ;;  %v4128_v0 = vadd.f32 %v4127_v9, %v4079_v13  ;;  %v4130_v45 = vpop.f32.mrf.mxu0 }
 0x418   : > { %v4319_v10 = vrot.slane %v4287_v49, 6  ;;  %v4367_v18 = vrot.slane %v4287_v49, 7  ;;  %4415 = vst [vmem:[#allocation2 + $0x150] sm:$0xff] %v4287_v49  ;;  %v4431_v37 = vrot.slane %v4287_v49, 1  ;;  %v4479_v44 = vrot.slane %v4287_v49, 2 }
 0x419   : > { %v4818_v35 = vpack.c.bf16 %v4287_v49, %v12040_v23  ;;  %13275 = vst [vmem:[#allocation40_spill] sm:$0xff] %v12095_v8  ;;  %v4225_v9 = vmin.f32 %v12088_v26, 0.0  ;;  %v4154_v52 = vadd.f32 %v4128_v0, %v11853_v42  ;;  %v4033_v23 = vadd.f32 %v4032_v32, %v3984_v3  ;;  %v12103_v49 = vld [vmem:[#allocation2 + $0x110] sm:$0xff]  ;;  %v10205_v0 = vld [vmem:[#allocation8 + $0x260] sm:$0xff] }
 0x41a   : > { %v12085_v22 = vld [vmem:[#allocation2 + $0x118] sm:$0xff]  ;;  %4351 = vst [vmem:[#allocation2 + $0x140] sm:$0xfc] %v4319_v10  ;;  %v10440_v10 = vpop.eup %10439  ;;  %5361 = vmatpush.bf16.msrb.mxu1 %v10205_v0  ;;  %vm4209_vm8 = vcmp.gt.f32.partialorder %v12088_v26, 0.0  ;;  %v10139_v0 = vld [vmem:[#allocation8 + $0x50] sm:$0xff] }
 0x41b   : > { %v12091_v61 = vld [vmem:[#allocation2 + $0x120] sm:$0xff]  ;;  %4399 = vst [vmem:[#allocation2 + $0x148] sm:$0xfe] %v4367_v18  ;;  %v4034_v7 = vpop.f32.mrf.mxu2  ;;  %5283 = vmatmul.bf16.gmra.mxu3 %v4818_v35  ;;  %v12113_v18 = vld [vmem:[#allocation2 + $0xf8] sm:$0xff]  ;;  %v9096_v42 = vadd.f32 -1.0, %v10440_v10  ;;  %v4174_v3 = vmul.f32 %v11915_v39, %v4154_v52  ;;  %v3986_v52 = vadd.f32 %v3985_v46, %v11862_v20  ;;  %v3988_v10 = vpop.f32.mrf.mxu1 }
 0x41c   : > { %v12107_v17 = vld [vmem:[#allocation2 + $0x130] sm:$0xff]  ;;  %4463 = vst [vmem:[#allocation2 + $0x158] sm:$0x7f] %v4431_v37  ;;  %v12115_v12 = vld [vmem:[#allocation2 + $0x120] sm:$0xff]  ;;  %v4249_v32 = vmul.f32 1.442695, %v4225_v9  ;;  %v4081_v33 = vpop.f32.mrf.mxu3 }
 0x41d   : > { %v12105_v13 = vld [vmem:[#allocation2 + $0x138] sm:$0xff]  ;;  %13276 = vst [vmem:[#allocation41_spill] sm:$0xff] %v12107_v17  ;;  %v4288_v4 = vsel %vm4208_vm7, %v12051_v53, %v9096_v42  ;;  %v12125_v50 = vadd.f32 %v11921_v51, %v4174_v3  ;;  %v4754_v17 = vld [vmem:[#allocation2 + $0x130] sm:$0xff]  ;;  %v4035_v31 = vadd.f32 %v4034_v7, %v3986_v52 }
 0x41e   : > { %13277 = vst [vmem:[#allocation42_spill] sm:$0xff] %v12111_v56  ;;  %10441 = vpow2.f32 %v4249_v32  ;;  %v4320_v6 = vrot.slane %v4288_v4, 6  ;;  %v4368_v36 = vrot.slane %v4288_v4, 7  ;;  %v4432_v37 = vrot.slane %v4288_v4, 1  ;;  %v12133_v56 = vld [vmem:[#allocation2 + $0x118] sm:$0xff] }
 0x41f   : > { %13278 = vst [vmem:[#allocation43_spill] sm:$0xff] %v12113_v18  ;;  %v12127_v9 = vld [vmem:[#allocation2 + $0x150] sm:$0xff]  ;;  %v12130_v18 = vld [vmem:[#allocation2 + $0x128] sm:$0xff]  ;;  %v4480_v35 = vrot.slane %v4288_v4, 2  ;;  %v4226_v53 = vmin.f32 %v12125_v50, 0.0  ;;  %v4132_v32 = vpop.f32.mrf.mxu0  ;;  %v12144_v20 = vld [vmem:[#allocation2 + $0x138] sm:$0xff] }
 0x420   : > { %13279 = vst [vmem:[#allocation44_spill] sm:$0xff] %v12115_v12  ;;  %vm4210_vm9 = vcmp.gt.f32.partialorder %v12125_v50, 0.0 }
 0x421   : > { %4511 = vst [vmem:[#allocation2 + $0x160] sm:$0x3f] %v4479_v44  ;;  %v4082_v44 = vadd.f32 %v4081_v33, %v4033_v23  ;;  %v4756_v3 = vld [vmem:[#allocation2 + $0x140] sm:$0xff] }
 0x422   : > { %13280 = vst [vmem:[#allocation45_spill] sm:$0xff] %v12127_v9  ;;  %v12135_v33 = vld [vmem:[#allocation2 + $0x140] sm:$0xff]  ;;  %v4816_v46 = vpack.c.bf16 %v4756_v3, %v12085_v22  ;;  %v4757_v23 = vld [vmem:[#allocation2 + $0x148] sm:$0xff] }
 0x423   : > { %4416 = vst [vmem:[#allocation2 + $0x178] sm:$0xff] %v4288_v4  ;;  %v4131_v42 = vadd.f32 %v4130_v45, %v4082_v44  ;;  %v4251_v4 = vmul.f32 1.442695, %v4226_v53  ;;  %v4817_v44 = vpack.c.bf16 %v4757_v23, %v12091_v61  ;;  %v4759_v12 = vld [vmem:[#allocation2 + $0x158] sm:$0xff]  ;;  %v4037_v57 = vpop.f32.mrf.mxu2  ;;  %v3990_v23 = vpop.f32.mrf.mxu1 }
 0x424   : > { %13281 = vst [vmem:[#allocation46_spill] sm:$0xff] %v12130_v18  ;;  %v4819_v24 = vpack.c.bf16 %v4759_v12, %v4754_v17  ;;  %v10442_v3 = vpop.eup %10441  ;;  %5185 = vmatmul.bf16.gmra.mxu1 %v4816_v46 }
 0x425   : > { %13282 = vst [vmem:[#allocation47_spill] sm:$0xff] %v12133_v56  ;;  %v4155_v45 = vadd.f32 %v4131_v42, %v11860_v25  ;;  %10443 = vpow2.f32 %v4251_v4  ;;  %v9097_v53 = vadd.f32 -1.0, %v10442_v3  ;;  %5234 = vmatmul.bf16.gmra.mxu2 %v4817_v44  ;;  %v4083_v42 = vpop.f32.mrf.mxu3 }
 0x426   : > { %13283 = vst [vmem:[#allocation48_spill] sm:$0xff] %v12135_v33  ;;  %5332 = vmatmul.bf16.gmra.mxu0 %v4819_v24  ;;  %v4084_v17 = vadd.f32 %v4083_v42, %v4035_v31 }
 0x427   : > { %4352 = vst [vmem:[#allocation2 + $0x168] sm:$0xfc] %v4320_v6  ;;  %v4289_v7 = vsel %vm4209_vm8, %v12088_v26, %v9097_v53  ;;  %v10144_v53 = vld [vmem:[#allocation8 + $0x78] sm:$0xff] }
 0x428   : > { %4400 = vst [vmem:[#allocation2 + $0x170] sm:$0xfe] %v4368_v36  ;;  %v12146_v6 = vld [vmem:[#allocation2 + $0x160] sm:$0xff]  ;;  %v4175_v36 = vmul.f32 %v11915_v39, %v4155_v45  ;;  %v4369_v52 = vrot.slane %v4289_v7, 7  ;;  %v4433_v46 = vrot.slane %v4289_v7, 1  ;;  %v4481_v4 = vrot.slane %v4289_v7, 2  ;;  %5696 = vmatpush.bf16.msra.mxu3 %v10144_v53 }
 0x429   : > { %4464 = vst [vmem:[#allocation2 + $0x180] sm:$0x7f] %v4432_v37  ;;  %v3989_v37 = vadd.f32 %v3988_v10, %v11874_v21  ;;  %v4133_v44 = vadd.f32 %v4132_v32, %v4084_v17  ;;  %v4823_v3 = vpack.c.bf16 %v4289_v7, %v11939_v55 }
 0x42a   : > { %13284 = vst [vmem:[#allocation49_spill] sm:$0xff] %v12144_v20  ;;  %v12153_v12 = vadd.f32 %v11921_v51, %v4175_v36  ;;  %v4135_v36 = vpop.f32.mrf.mxu0  ;;  %v10149_v20 = vld [vmem:[#allocation8 + $0xa0] sm:$0xff] }
 0x42b   : > { %13285 = vst [vmem:[#allocation50_spill] sm:$0xff] %v12146_v6  ;;  %v10444_v25 = vpop.eup %10443  ;;  %v4156_v26 = vadd.f32 %v4133_v44, %v11872_v41  ;;  %v4038_v21 = vadd.f32 %v4037_v57, %v3989_v37  ;;  %5288 = vmatmul.bf16.gmra.mxu3 %v4823_v3  ;;  %v4039_v10 = vpop.f32.mrf.mxu2  ;;  %v10143_v44 = vld [vmem:[#allocation8 + $0x70] sm:$0xff] }
 0x42c   : > { %4512 = vst [vmem:[#allocation2 + $0x188] sm:$0x3f] %v4480_v35  ;;  %v4321_v35 = vrot.slane %v4289_v7, 6  ;;  %v4227_v45 = vmin.f32 %v12153_v12, 0.0  ;;  %v9098_v31 = vadd.f32 -1.0, %v10444_v25  ;;  %5697 = vmatpush.bf16.msra.mxu3 %v10143_v44  ;;  %vm4211_vm10 = vcmp.gt.f32.partialorder %v12153_v12, 0.0 }
 0x42d   : > { %4417 = vst [vmem:[#allocation2 + $0x240] sm:$0xff] %v4289_v7  ;;  %v4176_v17 = vmul.f32 %v11915_v39, %v4156_v26  ;;  %v4086_v25 = vpop.f32.mrf.mxu3  ;;  %v10204_v7 = vld [vmem:[#allocation8 + $0x258] sm:$0xff] }
 0x42e   : > { %4353 = vst [vmem:[#allocation2 + $0x230] sm:$0xfc] %v4321_v35  ;;  %v4253_v24 = vmul.f32 1.442695, %v4227_v45  ;;  %v12164_v32 = vsel %vm4210_vm9, %v12125_v50, %v9098_v31  ;;  %v12171_v35 = vld [vmem:[#allocation2 + $0x148] sm:$0xff]  ;;  %5362 = vmatpush.bf16.msrb.mxu1 %v10204_v7  ;;  %v3991_v45 = vadd.f32 %v3990_v23, %v11880_v60 }
 0x42f   : > { %4401 = vst [vmem:[#allocation2 + $0x238] sm:$0xfe] %v4369_v52  ;;  %v12161_v42 = vld [vmem:[#allocation2 + $0x170] sm:$0xff]  ;;  %v4322_v41 = vrot.slane %v12164_v32, 6  ;;  %v4370_v57 = vrot.slane %v12164_v32, 7  ;;  %v4434_v37 = vrot.slane %v12164_v32, 1  ;;  %v12175_v50 = vadd.f32 %v11921_v51, %v4176_v17 }
 0x430   : > { %4465 = vst [vmem:[#allocation2 + $0x248] sm:$0x7f] %v4433_v46  ;;  %10445 = vpow2.f32 %v4253_v24  ;;  %v4482_v52 = vrot.slane %v12164_v32, 2  ;;  %v4087_v46 = vadd.f32 %v4086_v25, %v4038_v21  ;;  %v4040_v21 = vadd.f32 %v4039_v10, %v3991_v45  ;;  %v3993_v25 = vpop.f32.mrf.mxu1 }
 0x431   : > { %13286 = vst [vmem:[#allocation51_spill] sm:$0xff] %v12161_v42  ;;  %v4228_v3 = vmin.f32 %v12175_v50, 0.0  ;;  %vm4212_vm11 = vcmp.gt.f32.partialorder %v12175_v50, 0.0 }
 0x432   : > { %4513 = vst [vmem:[#allocation2 + $0x250] sm:$0x3f] %v4481_v4  ;;  %v4136_v31 = vadd.f32 %v4135_v36, %v4087_v46  ;;  %v10142_v46 = vld [vmem:[#allocation8 + $0x68] sm:$0xff] }
 0x433   : > { %4418 = vst [vmem:[#allocation2 + $0x268] sm:$0xff] %v12164_v32  ;;  %v4255_v60 = vmul.f32 1.442695, %v4228_v3  ;;  %v4042_v45 = vpop.f32.mrf.mxu2  ;;  %v10136_v3 = vld [vmem:[#allocation8 + $0x38] sm:$0xff]  ;;  %5698 = vmatpush.bf16.msra.mxu3 %v10142_v46 }
 0x434   : > { %13287 = vst [vmem:[#allocation52_spill] sm:$0xff] %v12171_v35  ;;  %v4157_v23 = vadd.f32 %v4136_v31, %v11878_v47  ;;  %v10152_v31 = vld [vmem:[#allocation8 + $0xb8] sm:$0xff]  ;;  %5647 = vmatpush.bf16.msra.mxu2 %v10136_v3  ;;  %v10133_v35 = vld [vmem:[#allocation8 + $0x20] sm:$0xff] }
 0x435   : > { %4354 = vst [vmem:[#allocation2 + $0x258] sm:$0xfc] %v4322_v41  ;;  %v12181_v24 = vld [vmem:[#allocation2 + $0x230] sm:$0xff]  ;;  %10447 = vpow2.f32 %v4255_v60  ;;  %5745 = vmatpush.bf16.msra.mxu0 %v10152_v31 }
 0x436   : > { %4402 = vst [vmem:[#allocation2 + $0x260] sm:$0xfe] %v4370_v57  ;;  %v4821_v26 = vpack.c.bf16 %v12181_v24, %v11939_v55  ;;  %v12185_v53 = vld [vmem:[#allocation2 + $0x238] sm:$0xff]  ;;  %v10446_v17 = vpop.eup %10445  ;;  %v4137_v57 = vpop.f32.mrf.mxu0  ;;  %v4177_v10 = vmul.f32 %v11915_v39, %v4157_v23 }
 0x437   : > { %4466 = vst [vmem:[#allocation2 + $0x270] sm:$0x7f] %v4434_v37  ;;  %v4822_v7 = vpack.c.bf16 %v12185_v53, %v11939_v55  ;;  %v4769_v36 = vld [vmem:[#allocation2 + $0x248] sm:$0xff]  ;;  %v9099_v41 = vadd.f32 -1.0, %v10446_v17 }
 0x438   : > { %4514 = vst [vmem:[#allocation2 + $0x278] sm:$0x3f] %v4482_v52  ;;  %5190 = vmatmul.bf16.gmra.mxu1 %v4821_v26  ;;  %v4824_v37 = vpack.c.bf16 %v4769_v36, %v11939_v55  ;;  %v4088_v52 = vpop.f32.mrf.mxu3  ;;  %v3994_v26 = vadd.f32 %v3993_v25, %v11890_v2  ;;  %v12198_v23 = vadd.f32 %v11921_v51, %v4177_v10  ;;  %v10135_v10 = vld [vmem:[#allocation8 + $0x30] sm:$0xff] }
 0x439   : > { %5239 = vmatmul.bf16.gmra.mxu2 %v4822_v7  ;;  %v4291_v47 = vsel %vm4211_vm10, %v12153_v12, %v9099_v41  ;;  %v4089_v44 = vadd.f32 %v4088_v52, %v4040_v21  ;;  %v10141_v21 = vld [vmem:[#allocation8 + $0x60] sm:$0xff] }
 0x43a   : > { %5337 = vmatmul.bf16.gmra.mxu0 %v4824_v37  ;;  %v4323_v17 = vrot.slane %v4291_v47, 6  ;;  %v4371_v55 = vrot.slane %v4291_v47, 7  ;;  %4419 = vst [vmem:[#allocation2 + $0x290] sm:$0xff] %v4291_v47  ;;  %v4435_v36 = vrot.slane %v4291_v47, 1  ;;  %v4483_v60 = vrot.slane %v4291_v47, 2  ;;  %5699 = vmatpush.bf16.msra.mxu3 %v10141_v21  ;;  %v10134_v21 = vld [vmem:[#allocation8 + $0x28] sm:$0xff] }
 0x43b   : > { %v4138_v7 = vadd.f32 %v4137_v57, %v4089_v44  ;;  %v4828_v12 = vpack.c.bf16 %v4291_v47, %v12164_v32  ;;  %v4229_v37 = vmin.f32 %v12198_v23, 0.0  ;;  %v4043_v57 = vadd.f32 %v4042_v45, %v3994_v26  ;;  %v10151_v32 = vld [vmem:[#allocation8 + $0xb0] sm:$0xff]  ;;  %v10448_v52 = vpop.eup %10447  ;;  %5648 = vmatpush.bf16.msra.mxu2 %v10135_v10  ;;  %v3995_v45 = vpop.f32.mrf.mxu1 }
 0x43c   : > { %v12195_v4 = vld [vmem:[#allocation2 + $0x258] sm:$0xff]  ;;  %4355 = vst [vmem:[#allocation2 + $0x280] sm:$0xfc] %v4323_v17  ;;  %v12209_v47 = vld [vmem:[#allocation2 + $0x250] sm:$0xff]  ;;  %v9100_v3 = vadd.f32 -1.0, %v10448_v52  ;;  %5746 = vmatpush.bf16.msra.mxu0 %v10151_v32  ;;  %v4044_v52 = vpop.f32.mrf.mxu2  ;;  %vm4213_vm12 = vcmp.gt.f32.partialorder %v12198_v23, 0.0 }
 0x43d   : > { %v12201_v41 = vld [vmem:[#allocation2 + $0x260] sm:$0xff]  ;;  %4403 = vst [vmem:[#allocation2 + $0x288] sm:$0xfe] %v4371_v55  ;;  %v4158_v46 = vadd.f32 %v4138_v7, %v11888_v62  ;;  %5293 = vmatmul.bf16.gmra.mxu3 %v4828_v12  ;;  %v4257_v31 = vmul.f32 1.442695, %v4229_v37  ;;  %v10203_v55 = vld [vmem:[#allocation8 + $0x250] sm:$0xff] }
 0x43e   : > { %4467 = vst [vmem:[#allocation2 + $0x298] sm:$0x7f] %v4435_v36  ;;  %v10140_v36 = vld [vmem:[#allocation8 + $0x58] sm:$0xff]  ;;  %v12218_v7 = vsel %vm4212_vm11, %v12175_v50, %v9100_v3  ;;  %v4140_v12 = vpop.f32.mrf.mxu0  ;;  %5363 = vmatpush.bf16.msrb.mxu1 %v10203_v55  ;;  %v10150_v37 = vld [vmem:[#allocation8 + $0xa8] sm:$0xff]  ;;  %v4774_v2 = vld [vmem:[#allocation2 + $0x270] sm:$0xff] }
 0x43f   : > { %v12211_v44 = vld [vmem:[#allocation2 + $0x278] sm:$0xff]  ;;  %4515 = vst [vmem:[#allocation2 + $0x2a0] sm:$0x3f] %v4483_v60  ;;  %v4178_v17 = vmul.f32 %v11915_v39, %v4158_v46  ;;  %10449 = vpow2.f32 %v4257_v31  ;;  %v12223_v46 = vld [vmem:[#allocation2 + $0x268] sm:$0xff]  ;;  %v4324_v10 = vrot.slane %v12218_v7, 6  ;;  %v4372_v32 = vrot.slane %v12218_v7, 7  ;;  %5700 = vmatpush.bf16.msra.mxu3 %v10140_v36  ;;  %5649 = vmatpush.bf16.msra.mxu2 %v10134_v21 }
 0x440   : > { %v4091_v26 = vpop.f32.mrf.mxu3  ;;  %13288 = vst [vmem:[#allocation53_spill] sm:$0xff] %v12223_v46  ;;  %v4436_v50 = vrot.slane %v12218_v7, 1  ;;  %v12229_v3 = vld [vmem:[#allocation2 + $0x258] sm:$0xff]  ;;  %v4484_v31 = vrot.slane %v12218_v7, 2  ;;  %5747 = vmatpush.bf16.msra.mxu0 %v10150_v37 }
 0x441   : > { %v12221_v60 = vadd.f32 %v11921_v51, %v4178_v17  ;;  %v4092_v39 = vadd.f32 %v4091_v26, %v4043_v57  ;;  %4420 = vst [vmem:[#allocation2 + $0x2b8] sm:$0xff] %v12218_v7  ;;  %v12231_v51 = vld [vmem:[#allocation2 + $0x290] sm:$0xff]  ;;  %v3996_v57 = vadd.f32 %v3995_v45, %v11899_v14  ;;  %v12251_v6 = vld [vmem:[#allocation2 + $0x278] sm:$0xff] }
 0x442   : > { %13289 = vst [vmem:[#allocation54_spill] sm:$0xff] %v12229_v3 }
 0x443   : > { %13290 = vst [vmem:[#allocation55_spill] sm:$0xff] %v12231_v51  ;;  %v4230_v17 = vmin.f32 %v12221_v60, 0.0  ;;  %v4141_v55 = vadd.f32 %v4140_v12, %v4092_v39  ;;  %v12236_v26 = vld [vmem:[#allocation2 + $0x280] sm:$0xff]  ;;  %5701 = vmatpush.bf16.msra.mxu3 %v10139_v0  ;;  %5650 = vmatpush.bf16.msra.mxu2 %v10133_v35  ;;  %vm4214_vm13 = vcmp.gt.f32.partialorder %v12221_v60, 0.0 }
 0x444   : > { %v12238_v62 = vld [vmem:[#allocation2 + $0x280] sm:$0xff]  ;;  %4356 = vst [vmem:[#allocation2 + $0x2a8] sm:$0xfc] %v4324_v10  ;;  %v4826_v36 = vpack.c.bf16 %v12236_v26, %v12195_v4  ;;  %v12242_v25 = vld [vmem:[#allocation2 + $0x288] sm:$0xff]  ;;  %v4045_v10 = vadd.f32 %v4044_v52, %v3996_v57  ;;  %5748 = vmatpush.bf16.msra.mxu0 %v10149_v20 }
 0x445   : > { %13291 = vst [vmem:[#allocation56_spill] sm:$0xff] %v12238_v62  ;;  %v4259_v12 = vmul.f32 1.442695, %v4230_v17  ;;  %v4159_v39 = vadd.f32 %v4141_v55, %v11897_v29  ;;  %v4827_v21 = vpack.c.bf16 %v12242_v25, %v12201_v41  ;;  %v4779_v37 = vld [vmem:[#allocation2 + $0x298] sm:$0xff]  ;;  %v10450_v14 = vpop.eup %10449  ;;  %v10202_v17 = vld [vmem:[#allocation8 + $0x248] sm:$0xff]  ;;  %v12406_v62 = vld [vmem:[#allocation2 + $0x50] sm:$0xff] }
 0x446   : > { %4404 = vst [vmem:[#allocation2 + $0x2b0] sm:$0xfe] %v4372_v32  ;;  %v4829_v42 = vpack.c.bf16 %v4779_v37, %v4774_v2  ;;  %v10492_v32 = vld [vmem:[%s13143_s2] ss:$0 sm:$0xff]  ;;  %v10138_v55 = vld [vmem:[#allocation8 + $0x48] sm:$0xff]  ;;  %5364 = vmatpush.bf16.msrb.mxu1 %v10202_v17  ;;  %v4142_v0 = vpop.f32.mrf.mxu0 }
 0x447   : > { %4468 = vst [vmem:[#allocation2 + $0x2c0] sm:$0x7f] %v4436_v50  ;;  %10451 = vpow2.f32 %v4259_v12  ;;  %v4179_v29 = vmul.f32 %v10492_v32, %v4159_v39  ;;  %v12256_v52 = vld [vmem:[#allocation2 + $0x2a0] sm:$0xff]  ;;  %v9101_v50 = vadd.f32 -1.0, %v10450_v14  ;;  %v10132_v12 = vld [vmem:[#allocation8 + $0x18] sm:$0xff]  ;;  %5702 = vmatpush.bf16.msra.mxu3 %v10138_v55 }
 0x448   : > { %13292 = vst [vmem:[#allocation57_spill] sm:$0xff] %v12251_v6  ;;  %5195 = vmatmul.bf16.gmra.mxu1 %v4826_v36  ;;  %v4093_v2 = vpop.f32.mrf.mxu3  ;;  %v10493_v57 = vld [vmem:[%s13144_s3] ss:$0 sm:$0xff]  ;;  %v10148_v14 = vld [vmem:[#allocation8 + $0x98] sm:$0xff]  ;;  %5651 = vmatpush.bf16.msra.mxu2 %v10132_v12  ;;  %v10131_v6 = vld [vmem:[#allocation8 + $0x10] sm:$0xff] }
 0x449   : > { %4516 = vst [vmem:[#allocation2 + $0x2c8] sm:$0x3f] %v4484_v31  ;;  %5244 = vmatmul.bf16.gmra.mxu2 %v4827_v21  ;;  %v12264_v31 = vadd.f32 %v10493_v57, %v4179_v29  ;;  %v4094_v35 = vadd.f32 %v4093_v2, %v4045_v10  ;;  %v10201_v36 = vld [vmem:[#allocation8 + $0x240] sm:$0xff]  ;;  %v4293_v39 = vsel %vm4213_vm12, %v12198_v23, %v9101_v50  ;;  %v10147_v23 = vld [vmem:[#allocation8 + $0x90] sm:$0xff] }
 0x44a   : > { %13293 = vst [vmem:[#allocation58_spill] sm:$0xff] %v12256_v52  ;;  %5342 = vmatmul.bf16.gmra.mxu0 %v4829_v42  ;;  %v4325_v20 = vrot.slane %v4293_v39, 6  ;;  %v4373_v21 = vrot.slane %v4293_v39, 7  ;;  %v4437_v37 = vrot.slane %v4293_v39, 1  ;;  %v4485_v29 = vrot.slane %v4293_v39, 2  ;;  %v10137_v55 = vld [vmem:[#allocation8 + $0x40] sm:$0xff]  ;;  %5365 = vmatpush.bf16.msrb.mxu1 %v10201_v36 }
 0x44b   : > { %4421 = vst [vmem:[#allocation2 + $0x2e0] sm:$0xff] %v4293_v39  ;;  %v12267_v45 = vld [vmem:[#allocation2 + $0x2a8] sm:$0xff]  ;;  %v4231_v42 = vmin.f32 %v12264_v31, 0.0  ;;  %v4143_v10 = vadd.f32 %v4142_v0, %v4094_v35  ;;  %v4833_v17 = vpack.c.bf16 %v4293_v39, %v12218_v7  ;;  %5749 = vmatpush.bf16.msra.mxu0 %v10148_v14  ;;  %v12273_v52 = vld [vmem:[#allocation2 + $0x2a0] sm:$0xff]  ;;  %5703 = vmatpush.bf16.msra.mxu3 %v10137_v55  ;;  %v12299_v55 = vld [vmem:[#allocation2 + $0x2b8] sm:$0xff]  ;;  %vm4215_vm14 = vcmp.gt.f32.partialorder %v12264_v31, 0.0 }
 0x44c   : > { %4357 = vst [vmem:[#allocation2 + $0x2d0] sm:$0xfc] %v4325_v20  ;;  %5652 = vmatpush.bf16.msra.mxu2 %v10131_v6  ;;  %v10130_v36 = vld [vmem:[#allocation8 + $0x8] sm:$0xff] }
 0x44d   : > { %v12271_v2 = vld [vmem:[#allocation2 + $0x2b0] sm:$0xff]  ;;  %v10452_v50 = vpop.eup %10451  ;;  %4405 = vst [vmem:[#allocation2 + $0x2d8] sm:$0xfe] %v4373_v21  ;;  %v4261_v35 = vmul.f32 1.442695, %v4231_v42  ;;  %v4160_v39 = vadd.f32 %v4143_v10, %v11908_v38  ;;  %5298 = vmatmul.bf16.gmra.mxu3 %v4833_v17  ;;  %v10146_v38 = vld [vmem:[#allocation8 + $0x88] sm:$0xff] }
 0x44e   : > { %v9102_v0 = vadd.f32 -1.0, %v10452_v50  ;;  %4469 = vst [vmem:[#allocation2 + $0x2e8] sm:$0x7f] %v4437_v37  ;;  %v12292_v10 = vld [vmem:[#allocation2 + $0x2c0] sm:$0xff]  ;;  %v12294_v17 = vld [vmem:[#allocation2 + $0x2b0] sm:$0xff]  ;;  %v12305_v50 = vld [vmem:[#allocation2 + $0x288] sm:$0xff] }
 0x44f   : > { %4517 = vst [vmem:[#allocation2 + $0x2f0] sm:$0x3f] %v4485_v29  ;;  %10453 = vpow2.f32 %v4261_v35  ;;  %v4180_v21 = vmul.f32 %v10492_v32, %v4160_v39  ;;  %5750 = vmatpush.bf16.msra.mxu0 %v10147_v23  ;;  %v12303_v23 = vld [vmem:[#allocation2 + $0x298] sm:$0xff]  ;;  %v4784_v51 = vld [vmem:[#allocation2 + $0x2c0] sm:$0xff] }
 0x450   : > { %v12280_v14 = vld [vmem:[#allocation2 + $0x2c8] sm:$0xff]  ;;  %v12286_v46 = vsel %vm4214_vm13, %v12221_v60, %v9102_v0  ;;  %13294 = vst [vmem:[#allocation59_spill] sm:$0xff] %v12292_v10  ;;  %5653 = vmatpush.bf16.msra.mxu2 %v10130_v36  ;;  %v10160_v36 = vld [vmem:[#allocation8 + $0xf8] sm:$0xff] }
 0x451   : > { %v4326_v42 = vrot.slane %v12286_v46, 6  ;;  %v4374_v37 = vrot.slane %v12286_v46, 7  ;;  %4422 = vst [vmem:[#allocation2 + $0x308] sm:$0xff] %v12286_v46  ;;  %v4438_v6 = vrot.slane %v12286_v46, 1  ;;  %v4486_v29 = vrot.slane %v12286_v46, 2  ;;  %v12328_v10 = vld [vmem:[#allocation2 + $0x2c8] sm:$0xff]  ;;  %5794 = vmatpush.bf16.msra.mxu1 %v10160_v36 }
 0x452   : > { %13295 = vst [vmem:[#allocation60_spill] sm:$0xff] %v12294_v17  ;;  %v12297_v60 = vadd.f32 %v10493_v57, %v4180_v21  ;;  %v12301_v32 = vld [vmem:[#allocation2 + $0x2e0] sm:$0xff]  ;;  %v12312_v21 = vld [vmem:[#allocation2 + $0x2a8] sm:$0xff] }
 0x453   : > { %13296 = vst [vmem:[#allocation61_spill] sm:$0xff] %v12299_v55  ;;  %v12310_v39 = vld [vmem:[#allocation2 + $0x2d0] sm:$0xff]  ;;  %5751 = vmatpush.bf16.msra.mxu0 %v10146_v38  ;;  %v10129_v57 = vld [vmem:[#allocation8] sm:$0xff] }
 0x454   : > { %13297 = vst [vmem:[#allocation62_spill] sm:$0xff] %v12301_v32  ;;  %v4232_v35 = vmin.f32 %v12297_v60, 0.0  ;;  %v4831_v20 = vpack.c.bf16 %v12310_v39, %v12267_v45  ;;  %v12320_v0 = vld [vmem:[#allocation2 + $0x2d8] sm:$0xff]  ;;  %v12322_v12 = vld [vmem:[#allocation2 + $0x2d0] sm:$0xff]  ;;  %5654 = vmatpush.bf16.msra.mxu2 %v10129_v57  ;;  %vm4216_vm15 = vcmp.gt.f32.partialorder %v12297_v60, 0.0 }
 0x455   : > { %4358 = vst [vmem:[#allocation2 + $0x2f8] sm:$0xfc] %v4326_v42  ;;  %v10454_v55 = vpop.eup %10453  ;;  %v4832_v32 = vpack.c.bf16 %v12320_v0, %v12271_v2  ;;  %v4789_v42 = vld [vmem:[#allocation2 + $0x2e8] sm:$0xff] }
 0x456   : > { %13298 = vst [vmem:[#allocation63_spill] sm:$0xff] %v12303_v23  ;;  %v4263_v38 = vmul.f32 1.442695, %v4232_v35  ;;  %v4834_v23 = vpack.c.bf16 %v4789_v42, %v4784_v51 }
 0x457   : > { %13299 = vst [vmem:[#allocation64_spill] sm:$0xff] %v12305_v50  ;;  %v12330_v50 = vld [vmem:[#allocation2 + $0x2f0] sm:$0xff] }
 0x458   : > { %4406 = vst [vmem:[#allocation2 + $0x300] sm:$0xfe] %v4374_v37  ;;  %v10145_v37 = vld [vmem:[#allocation8 + $0x80] sm:$0xff]  ;;  %5200 = vmatmul.bf16.gmra.mxu1 %v4831_v20  ;;  %10455 = vpow2.f32 %v4263_v38 }
 0x459   : > { %4470 = vst [vmem:[#allocation2 + $0x310] sm:$0x7f] %v4438_v6  ;;  %v9103_v6 = vadd.f32 -1.0, %v10454_v55  ;;  %5249 = vmatmul.bf16.gmra.mxu2 %v4832_v32  ;;  %5752 = vmatpush.bf16.msra.mxu0 %v10145_v37  ;;  %v12343_v37 = vld [vmem:[#allocation2 + $0x2f0] sm:$0xff] }
 0x45a   : > { %13300 = vst [vmem:[#allocation65_spill] sm:$0xff] %v12322_v12  ;;  %5347 = vmatmul.bf16.gmra.mxu0 %v4834_v23  ;;  %v12347_v23 = vld [vmem:[#allocation2 + $0x2e8] sm:$0xff] }
 0x45b   : > { %4518 = vst [vmem:[#allocation2 + $0x318] sm:$0x3f] %v4486_v29  ;;  %v4295_v35 = vsel %vm4215_vm14, %v12264_v31, %v9103_v6 }
 0x45c   : > { %13301 = vst [vmem:[#allocation66_spill] sm:$0xff] %v12328_v10  ;;  %v4327_v55 = vrot.slane %v4295_v35, 6  ;;  %v4375_v20 = vrot.slane %v4295_v35, 7  ;;  %v4439_v51 = vrot.slane %v4295_v35, 1  ;;  %v12336_v57 = vld [vmem:[#allocation2 + $0x2f8] sm:$0xff]  ;;  %v4487_v42 = vrot.slane %v4295_v35, 2 }
 0x45d   : > { %13302 = vst [vmem:[#allocation67_spill] sm:$0xff] %v12330_v50  ;;  %v4838_v17 = vpack.c.bf16 %v4295_v35, %v12286_v46  ;;  %v12369_v32 = vld [vmem:[#allocation2 + $0x2f8] sm:$0xff] }
 0x45e   : > { %4423 = vst [vmem:[#allocation2 + $0x330] sm:$0xff] %v4295_v35  ;;  %v12353_v35 = vld [vmem:[#allocation2 + $0x2d8] sm:$0xff] }
 0x45f   : > { %v12339_v18 = vld [vmem:[#allocation2 + $0x300] sm:$0xff]  ;;  %4359 = vst [vmem:[#allocation2 + $0x320] sm:$0xfc] %v4327_v55  ;;  %v10456_v55 = vpop.eup %10455  ;;  %5303 = vmatmul.bf16.gmra.mxu3 %v4838_v17 }
 0x460   : > { %13303 = vst [vmem:[#allocation68_spill] sm:$0xff] %v12347_v23  ;;  %v12349_v38 = vld [vmem:[#allocation2 + $0x310] sm:$0xff]  ;;  %v12355_v29 = vld [vmem:[#allocation2 + $0x300] sm:$0xff] }
 0x461   : > { %13304 = vst [vmem:[#allocation69_spill] sm:$0xff] %v12349_v38 }
 0x462   : > { %4407 = vst [vmem:[#allocation2 + $0x328] sm:$0xfe] %v4375_v20  ;;  %v12351_v6 = vld [vmem:[#allocation2 + $0x318] sm:$0xff]  ;;  %v9104_v20 = vadd.f32 -1.0, %v10456_v55 }
 0x463   : > { %13305 = vst [vmem:[#allocation70_spill] sm:$0xff] %v12353_v35  ;;  %v4794_v35 = vld [vmem:[#allocation2 + $0x310] sm:$0xff]  ;;  %v12379_v34 = vld [vmem:[#allocation2 + $0x318] sm:$0xff] }
 0x464   : > { %13306 = vst [vmem:[#allocation71_spill] sm:$0xff] %v12355_v29  ;;  %v4296_v10 = vsel %vm4216_vm15, %v12297_v60, %v9104_v20  ;;  %v10158_v20 = vld [vmem:[#allocation8 + $0xe8] sm:$0xff] }
 0x465   : > { %4471 = vst [vmem:[#allocation2 + $0x338] sm:$0x7f] %v4439_v51  ;;  %v12365_v50 = vld [vmem:[#allocation2 + $0x330] sm:$0xff]  ;;  %v4328_v9 = vrot.slane %v4296_v10, 6  ;;  %v4376_v8 = vrot.slane %v4296_v10, 7  ;;  %v4440_v36 = vrot.slane %v4296_v10, 1 }
 0x466   : > { %4519 = vst [vmem:[#allocation2 + $0x340] sm:$0x3f] %v4487_v42  ;;  %v12367_v51 = vld [vmem:[#allocation2 + $0x308] sm:$0xff]  ;;  %v4488_v17 = vrot.slane %v4296_v10, 2  ;;  %v4796_v23 = vld [vmem:[#allocation2 + $0x320] sm:$0xff] }
 0x467   : > { %13307 = vst [vmem:[#allocation72_spill] sm:$0xff] %v12365_v50  ;;  %v12371_v38 = vld [vmem:[#allocation2 + $0x320] sm:$0xff]  ;;  %v4836_v60 = vpack.c.bf16 %v4796_v23, %v12336_v57  ;;  %v10159_v23 = vld [vmem:[#allocation8 + $0xf0] sm:$0xff]  ;;  %v12385_v42 = vld [vmem:[#allocation2 + $0x208] sm:$0xff] }
 0x468   : > { %4424 = vst [vmem:[#allocation2 + $0x358] sm:$0xff] %v4296_v10  ;;  %5795 = vmatpush.bf16.msra.mxu1 %v10159_v23 }
 0x469   : > { %13308 = vst [vmem:[#allocation73_spill] sm:$0xff] %v12367_v51  ;;  %v4797_v55 = vld [vmem:[#allocation2 + $0x328] sm:$0xff]  ;;  %5205 = vmatmul.bf16.gmra.mxu1 %v4836_v60  ;;  %v12401_v51 = vld [vmem:[#allocation2 + $0x58] sm:$0xff] }
 0x46a   : > { %4360 = vst [vmem:[#allocation2 + $0x348] sm:$0xfc] %v4328_v9  ;;  %v4837_v31 = vpack.c.bf16 %v4797_v55, %v12339_v18  ;;  %v10495_v55 = vld [vmem:[#allocation2 + $0x70] sm:$0xff] }
 0x46b   : > { %4408 = vst [vmem:[#allocation2 + $0x350] sm:$0xfe] %v4376_v8  ;;  %v12389_v8 = vpack.c.bf16 %v12385_v42, %v12385_v42  ;;  %v5269_v60 = vpop.f32.mrf.mxu3 }
 0x46c   : > { %v4799_v10 = vld [vmem:[#allocation2 + $0x338] sm:$0xff]  ;;  %4472 = vst [vmem:[#allocation2 + $0x360] sm:$0x7f] %v4440_v36  ;;  %5254 = vmatmul.bf16.gmra.mxu2 %v4837_v31  ;;  %5796 = vmatpush.bf16.msra.mxu1 %v10158_v20 }
 0x46d   : > { %v4839_v29 = vpack.c.bf16 %v4799_v10, %v4794_v35  ;;  %13309 = vst [vmem:[#allocation74_spill] sm:$0xff] %v12379_v34  ;;  %v12381_v40 = vld [vmem:[#allocation2 + $0x340] sm:$0xff]  ;;  %v12391_v35 = vld [vmem:[#allocation2 + $0x328] sm:$0xff]  ;;  %v4805_v10 = vpack.c.bf16 %v10495_v55, %v12385_v42 }
 0x46e   : > { %13310 = vst [vmem:[#allocation75_spill] sm:$0xff] %v12381_v40  ;;  %v5171_v31 = vpop.f32.mrf.mxu1 }
 0x46f   : > { %4520 = vst [vmem:[#allocation2 + $0x368] sm:$0x3f] %v4488_v17  ;;  %5352 = vmatmul.bf16.gmra.mxu0 %v4839_v29  ;;  %5704 = vmatmul.bf16.vlgmr.msra.gmra.mxu3 %v12389_v8 }
 0x470   : > { %13311 = vst [vmem:[#allocation76_spill] sm:$0xff] %v12391_v35  ;;  %v5318_v29 = vpop.f32.mrf.mxu0 }
 0x472   : > { %v12393_v36 = vld [vmem:[#allocation2 + $0x350] sm:$0xff] }
 0x473   : > { %13312 = vst [vmem:[#allocation77_spill] sm:$0xff] %v12393_v36  ;;  %v5271_v9 = vpop.f32.mrf.mxu3  ;;  %v10496_v36 = vld [vmem:[#allocation2 + $0x80] sm:$0xff] }
 0x474   : > { %v4607_v50 = vpack.c.bf16 %v10496_v36, %v12401_v51 }
 0x475   : > { %v5220_v23 = vpop.f32.mrf.mxu2 }
 0x476   : > { %v5221_v34 = vadd.f32 %v5220_v23, %v5171_v31  ;;  %v5173_v40 = vpop.f32.mrf.mxu1  ;;  %v10497_v31 = vld [vmem:[#allocation2 + $0x98] sm:$0xff]  ;;  %v10498_v23 = vld [vmem:[#allocation2 + $0xc0] sm:$0xff] }
 0x477   : > { %v4810_v3 = vpack.c.bf16 %v10498_v23, %v10497_v31  ;;  %v13313_v23 = vpack.c.bf16 %v12017_v1, %v11997_v30 }
 0x478   : > { %v5270_v17 = vadd.f32 %v5269_v60, %v5221_v34  ;;  %v5320_v35 = vpop.f32.mrf.mxu0  ;;  %v10499_v34 = vld [vmem:[#allocation2 + $0x78] sm:$0xff]  ;;  %v4533_v60 = vld [vmem:[#allocation2 + $0x60] sm:$0xff] }
 0x479   : > { %5366 = vmatmul.bf16.vlgmr.msrb.gmra.mxu1 %v4805_v10  ;;  %v4606_v20 = vpack.c.bf16 %v10499_v34, %v12406_v62 }
 0x47a   : > { %v12404_v55 = vadd.f32 %v5318_v29, %v5270_v17 }
 0x47c   : > { %5655 = vmatmul.bf16.vlgmr.msra.gmra.mxu2 %v12389_v8  ;;  %v5274_v10 = vpop.f32.mrf.mxu3 }
 0x47d   : > { %v5222_v27 = vpop.f32.mrf.mxu2 }
 0x47e   : > { %v5223_v28 = vadd.f32 %v5222_v27, %v5173_v40  ;;  %v10157_v40 = vld [vmem:[#allocation8 + $0xe0] sm:$0xff] }
 0x47f   : > { %5753 = vmatmul.bf16.vlgmr.msra.gmra.mxu0 %v12389_v8  ;;  %5709 = vmatmul.bf16.gmra.mxu3 %v4607_v50  ;;  %v5176_v59 = vpop.f32.mrf.mxu1  ;;  %v4608_v50 = vpack.c.bf16 %v4538_v43, %v4533_v60 }
 0x480   : > { %v5272_v54 = vadd.f32 %v5271_v9, %v5223_v28  ;;  %5797 = vmatpush.bf16.msra.mxu1 %v10157_v40 }
 0x481   : > { %v5323_v12 = vpop.f32.mrf.mxu0 }
 0x482   : > { %v12409_v36 = vadd.f32 %v5320_v35, %v5272_v54 }
 0x484   : > { %v5276_v17 = vpop.f32.mrf.mxu3 }
 0x486   : > { %v5225_v28 = vpop.f32.mrf.mxu2 }
 0x487   : > { %v5226_v27 = vadd.f32 %v5225_v28, %v5176_v59  ;;  %v5178_v9 = vpop.f32.mrf.mxu1  ;;  %v12417_v59 = vld [vmem:[#allocation2 + $0xa0] sm:$0xff] }
 0x489   : > { %5371 = vmatmul.bf16.gmra.mxu1 %v4810_v3  ;;  %v5275_v29 = vadd.f32 %v5274_v10, %v5226_v27  ;;  %v5325_v31 = vpop.f32.mrf.mxu0  ;;  %v10501_v10 = vld [vmem:[#allocation2 + $0xc8] sm:$0xff]  ;;  %v4543_v27 = vld [vmem:[#allocation2 + $0xb0] sm:$0xff] }
 0x48a   : > { %v4611_v28 = vpack.c.bf16 %v10501_v10, %v12417_v59 }
 0x48b   : > { %v12414_v34 = vadd.f32 %v5323_v12, %v5275_v29 }
 0x48c   : > { %5660 = vmatmul.bf16.gmra.mxu2 %v4606_v20  ;;  %v4548_v20 = vld [vmem:[#allocation2 + $0xd8] sm:$0xff] }
 0x48d   : > { %v5279_v54 = vpop.f32.mrf.mxu3  ;;  %v4613_v30 = vpack.c.bf16 %v4548_v20, %v4543_v27  ;;  %v4760_v20 = vld [vmem:[#allocation2 + $0x160] sm:$0xff]  ;;  %v4558_v27 = vld [vmem:[#allocation2 + $0x128] sm:$0xff] }
 0x48e   : > { %v5227_v35 = vpop.f32.mrf.mxu2 }
 0x48f   : > { %5758 = vmatmul.bf16.gmra.mxu0 %v4608_v50  ;;  %5714 = vmatmul.bf16.gmra.mxu3 %v13313_v23  ;;  %v5228_v3 = vadd.f32 %v5227_v35, %v5178_v9  ;;  %v10500_v50 = vld [vmem:[#allocation2 + $0xe8] sm:$0xff]  ;;  %v10156_v9 = vld [vmem:[#allocation8 + $0xd8] sm:$0xff] }
 0x490   : > { %v5181_v43 = vpop.f32.mrf.mxu1  ;;  %v4815_v56 = vpack.c.bf16 %v12103_v49, %v10500_v50  ;;  %5798 = vmatpush.bf16.msra.mxu1 %v10156_v9  ;;  %v13314_v50 = vpack.c.bf16 %v12091_v61, %v12071_v48 }
 0x491   : > { %v5277_v60 = vadd.f32 %v5276_v17, %v5228_v3 }
 0x493   : > { %v5328_v40 = vpop.f32.mrf.mxu0  ;;  %v12420_v1 = vadd.f32 %v5325_v31, %v5277_v60 }
 0x495   : > { %v5281_v12 = vpop.f32.mrf.mxu3 }
 0x498   : > { %v5230_v29 = vpop.f32.mrf.mxu2  ;;  %v5183_v23 = vpop.f32.mrf.mxu1 }
 0x499   : > { %5376 = vmatmul.bf16.gmra.mxu1 %v4815_v56  ;;  %v5231_v17 = vadd.f32 %v5230_v29, %v5181_v43  ;;  %v4553_v43 = vld [vmem:[#allocation2 + $0x100] sm:$0xff]  ;;  %v13315_v29 = vpack.c.bf16 %v12085_v22, %v12064_v16  ;;  %v10215_v16 = vld [vmem:[#allocation8 + $0x2b0] sm:$0xff] }
 0x49b   : > { %v5280_v35 = vadd.f32 %v5279_v54, %v5231_v17  ;;  %v5330_v3 = vpop.f32.mrf.mxu0  ;;  %v4618_v54 = vpack.c.bf16 %v4558_v27, %v4553_v43  ;;  %v4825_v27 = vpack.c.bf16 %v12209_v47, %v12385_v42  ;;  %v10213_v42 = vld [vmem:[#allocation8 + $0x2a0] sm:$0xff] }
 0x49c   : > { %5665 = vmatmul.bf16.gmra.mxu2 %v4611_v28 }
 0x49d   : > { %v12425_v10 = vadd.f32 %v5328_v40, %v5280_v35  ;;  %v10155_v40 = vld [vmem:[#allocation8 + $0xd0] sm:$0xff] }
 0x49e   : > { %v5284_v56 = vpop.f32.mrf.mxu3  ;;  %5799 = vmatpush.bf16.msra.mxu1 %v10155_v40  ;;  %v10224_v40 = vld [vmem:[#allocation8 + $0x2f8] sm:$0xff] }
 0x49f   : > { %5763 = vmatmul.bf16.gmra.mxu0 %v4613_v30  ;;  %5719 = vmatmul.bf16.gmra.mxu3 %v13314_v50  ;;  %v4820_v30 = vpack.c.bf16 %v4760_v20, %v12105_v13 }
 0x4a0   : > { %v5232_v31 = vpop.f32.mrf.mxu2  ;;  %6382 = vmatpush.bf16.msrb.mxu0 %v10224_v40 }
 0x4a1   : > { %v5233_v60 = vadd.f32 %v5232_v31, %v5183_v23  ;;  %v5186_v28 = vpop.f32.mrf.mxu1 }
 0x4a3   : > { %v5282_v33 = vadd.f32 %v5281_v12, %v5233_v60  ;;  %v5333_v9 = vpop.f32.mrf.mxu0  ;;  %v10216_v12 = vld [vmem:[#allocation8 + $0x2b8] sm:$0xff] }
 0x4a4   : > { %6333 = vmatpush.bf16.msrb.mxu3 %v10216_v12 }
 0x4a5   : > { %v12431_v48 = vadd.f32 %v5330_v3, %v5282_v33 }
 0x4a6   : > { %v5286_v61 = vpop.f32.mrf.mxu3 }
 0x4a8   : > { %v5235_v17 = vpop.f32.mrf.mxu2  ;;  %6334 = vmatpush.bf16.msrb.mxu3 %v10215_v16  ;;  %v10166_v16 = vld [vmem:[#allocation8 + $0x128] sm:$0xff] }
 0x4a9   : > { %5381 = vmatmul.bf16.gmra.mxu1 %v4820_v30  ;;  %v5236_v23 = vadd.f32 %v5235_v17, %v5186_v28  ;;  %v5188_v35 = vpop.f32.mrf.mxu1 }
 0x4ab   : > { %v5285_v50 = vadd.f32 %v5284_v56, %v5236_v23  ;;  %v5335_v20 = vpop.f32.mrf.mxu0  ;;  %v10214_v56 = vld [vmem:[#allocation8 + $0x2a8] sm:$0xff] }
 0x4ac   : > { %5670 = vmatmul.bf16.gmra.mxu2 %v13315_v29  ;;  %v10168_v29 = vld [vmem:[#allocation8 + $0x138] sm:$0xff]  ;;  %6335 = vmatpush.bf16.msrb.mxu3 %v10214_v56 }
 0x4ad   : > { %v12434_v31 = vadd.f32 %v5333_v9, %v5285_v50  ;;  %5843 = vmatpush.bf16.msrb.mxu2 %v10168_v29  ;;  %v10223_v50 = vld [vmem:[#allocation8 + $0x2f0] sm:$0xff] }
 0x4ae   : > { %v5289_v60 = vpop.f32.mrf.mxu3  ;;  %6383 = vmatpush.bf16.msrb.mxu0 %v10223_v50  ;;  %v10210_v50 = vld [vmem:[#allocation8 + $0x288] sm:$0xff] }
 0x4af   : > { %5768 = vmatmul.bf16.gmra.mxu0 %v4618_v54  ;;  %5724 = vmatmul.bf16.gmra.mxu3 %v12389_v8  ;;  %v10154_v54 = vld [vmem:[#allocation8 + $0xc8] sm:$0xff] }
 0x4b0   : > { %v5237_v22 = vpop.f32.mrf.mxu2  ;;  %5800 = vmatpush.bf16.msra.mxu1 %v10154_v54  ;;  %6336 = vmatpush.bf16.msrb.mxu3 %v10213_v42  ;;  %v10211_v54 = vld [vmem:[#allocation8 + $0x290] sm:$0xff] }
 0x4b1   : > { %v5238_v33 = vadd.f32 %v5237_v22, %v5188_v35  ;;  %v10167_v35 = vld [vmem:[#allocation8 + $0x130] sm:$0xff]  ;;  %v13316_v22 = vpack.c.bf16 %v12201_v41, %v12185_v53  ;;  %v4830_v53 = vpack.c.bf16 %v12273_v52, %v12211_v44  ;;  %v10165_v41 = vld [vmem:[#allocation8 + $0x120] sm:$0xff] }
 0x4b2   : > { %5844 = vmatpush.bf16.msrb.mxu2 %v10167_v35  ;;  %v4573_v35 = vld [vmem:[#allocation2 + $0x240] sm:$0xff] }
 0x4b3   : > { %v5287_v30 = vadd.f32 %v5286_v61, %v5238_v33  ;;  %v10212_v33 = vld [vmem:[#allocation8 + $0x298] sm:$0xff] }
 0x4b4   : > { %6337 = vmatpush.bf16.msrb.mxu3 %v10212_v33  ;;  %v10164_v33 = vld [vmem:[#allocation8 + $0x118] sm:$0xff] }
 0x4b5   : > { %v5191_v3 = vpop.f32.mrf.mxu1  ;;  %v12439_v43 = vadd.f32 %v5335_v20, %v5287_v30 }
 0x4b6   : > { %v5291_v9 = vpop.f32.mrf.mxu3  ;;  %5845 = vmatpush.bf16.msrb.mxu2 %v10166_v16  ;;  %v10153_v16 = vld [vmem:[#allocation8 + $0xc0] sm:$0xff] }
 0x4b7   : > { %v5338_v28 = vpop.f32.mrf.mxu0  ;;  %5801 = vmatpush.bf16.msra.mxu1 %v10153_v16  ;;  %v10161_v16 = vld [vmem:[#allocation8 + $0x100] sm:$0xff] }
 0x4b8   : > { %6338 = vmatpush.bf16.msrb.mxu3 %v10211_v54 }
 0x4b9   : > { %5386 = vmatmul.bf16.gmra.mxu1 %v4825_v27  ;;  %v10222_v27 = vld [vmem:[#allocation8 + $0x2e8] sm:$0xff] }
 0x4ba   : > { %6384 = vmatpush.bf16.msrb.mxu0 %v10222_v27  ;;  %5846 = vmatpush.bf16.msrb.mxu2 %v10165_v41  ;;  %v10220_v27 = vld [vmem:[#allocation8 + $0x2d8] sm:$0xff]  ;;  %v10162_v41 = vld [vmem:[#allocation8 + $0x108] sm:$0xff] }
 0x4bc   : > { %5675 = vmatmul.bf16.gmra.mxu2 %v12389_v8  ;;  %v5240_v17 = vpop.f32.mrf.mxu2  ;;  %6339 = vmatpush.bf16.msrb.mxu3 %v10210_v50 }
 0x4bd   : > { %v5241_v23 = vadd.f32 %v5240_v17, %v5191_v3  ;;  %v5193_v61 = vpop.f32.mrf.mxu1  ;;  %v10221_v17 = vld [vmem:[#allocation8 + $0x2e0] sm:$0xff] }
 0x4be   : > { %6385 = vmatpush.bf16.msrb.mxu0 %v10221_v17  ;;  %5847 = vmatpush.bf16.msrb.mxu2 %v10164_v33  ;;  %v10218_v17 = vld [vmem:[#allocation8 + $0x2c8] sm:$0xff]  ;;  %v10217_v33 = vld [vmem:[#allocation8 + $0x2c0] sm:$0xff] }
 0x4bf   : > { %5773 = vmatmul.bf16.gmra.mxu0 %v12389_v8  ;;  %v5290_v12 = vadd.f32 %v5289_v60, %v5241_v23  ;;  %v5340_v20 = vpop.f32.mrf.mxu0  ;;  %5729 = vmatmul.bf16.gmra.mxu3 %v13316_v22  ;;  %v4578_v60 = vld [vmem:[#allocation2 + $0x268] sm:$0xff] }
 0x4c0   : > { %v5294_v56 = vpop.f32.mrf.mxu3 }
 0x4c1   : > { %v12445_v30 = vadd.f32 %v5338_v28, %v5290_v12  ;;  %v4628_v28 = vpack.c.bf16 %v4578_v60, %v4573_v35  ;;  %v13317_v12 = vpack.c.bf16 %v12195_v4, %v12181_v24  ;;  %v10163_v60 = vld [vmem:[#allocation8 + $0x110] sm:$0xff] }
 0x4c2   : > { %6386 = vmatpush.bf16.msrb.mxu0 %v10220_v27  ;;  %5848 = vmatpush.bf16.msrb.mxu2 %v10163_v60 }
 0x4c4   : > { %v5242_v3 = vpop.f32.mrf.mxu2 }
 0x4c5   : > { %v5243_v29 = vadd.f32 %v5242_v3, %v5193_v61  ;;  %v5196_v40 = vpop.f32.mrf.mxu1  ;;  %v10209_v3 = vld [vmem:[#allocation8 + $0x280] sm:$0xff] }
 0x4c6   : > { %6340 = vmatpush.bf16.msrb.mxu3 %v10209_v3  ;;  %5849 = vmatpush.bf16.msrb.mxu2 %v10162_v41 }
 0x4c7   : > { %v5292_v42 = vadd.f32 %v5291_v9, %v5243_v29  ;;  %v5343_v23 = vpop.f32.mrf.mxu0 }
 0x4c8   : > { %v5296_v22 = vpop.f32.mrf.mxu3 }
 0x4c9   : > { %5391 = vmatmul.bf16.gmra.mxu1 %v4830_v53  ;;  %v12452_v61 = vadd.f32 %v5340_v20, %v5292_v42  ;;  %v10219_v53 = vld [vmem:[#allocation8 + $0x2d0] sm:$0xff]  ;;  %v13318_v20 = vpack.c.bf16 %v12271_v2, %v12242_v25 }
 0x4ca   : > { %6387 = vmatpush.bf16.msrb.mxu0 %v10219_v53  ;;  %5850 = vmatpush.bf16.msrb.mxu2 %v10161_v16  ;;  %v12479_v16 = vld [vmem:[#allocation2 + $0x78] sm:$0xff] }
 0x4cc   : > { %5680 = vmatmul.bf16.gmra.mxu2 %v13317_v12  ;;  %v5245_v9 = vpop.f32.mrf.mxu2  ;;  %v4583_v12 = vld [vmem:[#allocation2 + $0x290] sm:$0xff] }
 0x4cd   : > { %v5246_v54 = vadd.f32 %v5245_v9, %v5196_v40  ;;  %v5198_v29 = vpop.f32.mrf.mxu1  ;;  %v4633_v27 = vpack.c.bf16 %v12218_v7, %v4583_v12  ;;  %v13320_v7 = vpack.c.bf16 %v12339_v18, %v12320_v0 }
 0x4ce   : > { %6388 = vmatpush.bf16.msrb.mxu0 %v10218_v17 }
 0x4cf   : > { %5778 = vmatmul.bf16.gmra.mxu0 %v4628_v28  ;;  %v5295_v4 = vadd.f32 %v5294_v56, %v5246_v54  ;;  %v5345_v24 = vpop.f32.mrf.mxu0  ;;  %5734 = vmatmul.bf16.gmra.mxu3 %v13318_v20  ;;  %v4835_v56 = vpack.c.bf16 %v12343_v37, %v12280_v14  ;;  %v10232_v54 = vld [vmem:[#allocation8 + $0x338] sm:$0xff] }
 0x4d0   : > { %v5299_v35 = vpop.f32.mrf.mxu3  ;;  %6431 = vmatpush.bf16.msrb.mxu1 %v10232_v54 }
 0x4d1   : > { %v12457_v42 = vadd.f32 %v5343_v23, %v5295_v4  ;;  %v13319_v23 = vpack.c.bf16 %v12267_v45, %v12236_v26  ;;  %v4800_v45 = vld [vmem:[#allocation2 + $0x340] sm:$0xff] }
 0x4d2   : > { %6389 = vmatpush.bf16.msrb.mxu0 %v10217_v33  ;;  %v10231_v33 = vld [vmem:[#allocation8 + $0x330] sm:$0xff] }
 0x4d4   : > { %v5247_v28 = vpop.f32.mrf.mxu2  ;;  %6432 = vmatpush.bf16.msrb.mxu1 %v10231_v33 }
 0x4d5   : > { %v5248_v40 = vadd.f32 %v5247_v28, %v5198_v29  ;;  %v5201_v50 = vpop.f32.mrf.mxu1  ;;  %v4593_v28 = vld [vmem:[#allocation2 + $0x2e0] sm:$0xff] }
 0x4d7   : > { %v5297_v25 = vadd.f32 %v5296_v22, %v5248_v40  ;;  %v5348_v2 = vpop.f32.mrf.mxu0  ;;  %v4840_v40 = vpack.c.bf16 %v4800_v45, %v12351_v6 }
 0x4d8   : > { %v5301_v3 = vpop.f32.mrf.mxu3 }
 0x4d9   : > { %5396 = vmatmul.bf16.gmra.mxu1 %v4835_v56  ;;  %v12465_v9 = vadd.f32 %v5345_v24, %v5297_v25 }
 0x4dc   : > { %5685 = vmatmul.bf16.gmra.mxu2 %v13319_v23  ;;  %v5250_v29 = vpop.f32.mrf.mxu2  ;;  %v5972_v23 = vpack.c.bf16 %v12479_v16, %v12406_v62 }
 0x4dd   : > { %v5251_v60 = vadd.f32 %v5250_v29, %v5201_v50  ;;  %v5203_v53 = vpop.f32.mrf.mxu1  ;;  %v13321_v50 = vpack.c.bf16 %v12336_v57, %v12310_v39 }
 0x4df   : > { %5783 = vmatmul.bf16.gmra.mxu0 %v4633_v27  ;;  %v5300_v22 = vadd.f32 %v5299_v35, %v5251_v60  ;;  %v5350_v4 = vpop.f32.mrf.mxu0  ;;  %5739 = vmatmul.bf16.gmra.mxu3 %v13320_v7  ;;  %v4638_v35 = vpack.c.bf16 %v12286_v46, %v4593_v28 }
 0x4e1   : > { %v12470_v20 = vadd.f32 %v5348_v2, %v5300_v22 }
 0x4e2   : > { %v5304_v26 = vpop.f32.mrf.mxu3 }
 0x4e4   : > { %v5252_v41 = vpop.f32.mrf.mxu2 }
 0x4e5   : > { %v5253_v24 = vadd.f32 %v5252_v41, %v5203_v53  ;;  %v5898_v53 = vld [vmem:[#allocation2 + $0x80] sm:$0xff]  ;;  %v10230_v41 = vld [vmem:[#allocation8 + $0x328] sm:$0xff] }
 0x4e6   : > { %v5206_v17 = vpop.f32.mrf.mxu1  ;;  %v5973_v45 = vpack.c.bf16 %v5898_v53, %v12401_v51  ;;  %6433 = vmatpush.bf16.msrb.mxu1 %v10230_v41 }
 0x4e7   : > { %v5302_v12 = vadd.f32 %v5301_v3, %v5253_v24 }
 0x4e9   : > { %5401 = vmatmul.bf16.gmra.mxu1 %v4840_v40  ;;  %v12477_v18 = vadd.f32 %v5350_v4, %v5302_v12  ;;  %v10502_v40 = vld [vmem:[#allocation2 + $0xc8] sm:$0xff] }
 0x4ea   : > { %v5306_v0 = vpop.f32.mrf.mxu3 }
 0x4ec   : > { %v5353_v56 = vpop.f32.mrf.mxu0  ;;  %5690 = vmatmul.bf16.gmra.mxu2 %v13321_v50 }
 0x4ee   : > { %v5208_v27 = vpop.f32.mrf.mxu1 }
 0x4ef   : > { %5788 = vmatmul.bf16.gmra.mxu0 %v4638_v35  ;;  %v5255_v25 = vpop.f32.mrf.mxu2  ;;  %6341 = vmatmul.bf16.vlgmr.msrb.gmra.mxu3 %v5972_v23  ;;  %v5908_v23 = vld [vmem:[#allocation2 + $0xd0] sm:$0xff] }
 0x4f0   : > { %v5256_v2 = vadd.f32 %v5255_v25, %v5206_v17 }
 0x4f2   : > { %v5305_v3 = vadd.f32 %v5304_v26, %v5256_v2  ;;  %v5705_v39 = vpop.f32.mrf.mxu3 }
 0x4f4   : > { %v5355_v46 = vpop.f32.mrf.mxu0  ;;  %v12483_v54 = vadd.f32 %v5353_v56, %v5305_v3 }
 0x4f6   : > { %v5367_v60 = vpop.f32.mrf.mxu1 }
 0x4f7   : > { %v5257_v57 = vpop.f32.mrf.mxu2  ;;  %v5368_v22 = vadd.f32 %v5367_v60, %v12404_v55  ;;  %v5977_v55 = vpack.c.bf16 %v10502_v40, %v12417_v59 }
 0x4f8   : > { %v5258_v29 = vadd.f32 %v5257_v57, %v5208_v27  ;;  %v4534_v27 = vld [vmem:[#allocation2 + $0x68] sm:$0xff] }
 0x4f9   : > { %5802 = vmatmul.bf16.vlgmr.msra.gmra.mxu1 %v12389_v8 }
 0x4fa   : > { %v5307_v4 = vadd.f32 %v5306_v0, %v5258_v29  ;;  %v5707_v26 = vpop.f32.mrf.mxu3  ;;  %v4539_v0 = vld [vmem:[#allocation2 + $0x90] sm:$0xff]  ;;  %v5903_v29 = vld [vmem:[#allocation2 + $0xa8] sm:$0xff] }
 0x4fc   : > { %v5754_v7 = vpop.f32.mrf.mxu0  ;;  %5851 = vmatmul.bf16.vlgmr.msrb.gmra.mxu2 %v12389_v8  ;;  %v12489_v62 = vadd.f32 %v5355_v46, %v5307_v4  ;;  %v12496_v46 = vpack.c.bf16 %v4539_v0, %v4534_v27  ;;  %v5918_v0 = vld [vmem:[#allocation2 + $0x120] sm:$0xff] }
 0x4fe   : > { %v5369_v28 = vpop.f32.mrf.mxu1 }
 0x4ff   : > { %6390 = vmatmul.bf16.vlgmr.msrb.gmra.mxu0 %v5973_v45  ;;  %v5656_v24 = vpop.f32.mrf.mxu2  ;;  %v5370_v12 = vadd.f32 %v5369_v28, %v12409_v36  ;;  %6346 = vmatmul.bf16.gmra.mxu3 %v5977_v55  ;;  %v5978_v36 = vpack.c.bf16 %v5908_v23, %v5903_v29  ;;  %v10503_v45 = vld [vmem:[#allocation2 + $0xf0] sm:$0xff]  ;;  %v5913_v23 = vld [vmem:[#allocation2 + $0xf8] sm:$0xff] }
 0x500   : > { %v5657_v17 = vadd.f32 %v5656_v24, %v5368_v22  ;;  %v10229_v22 = vld [vmem:[#allocation8 + $0x320] sm:$0xff]  ;;  %v10228_v29 = vld [vmem:[#allocation8 + $0x318] sm:$0xff] }
 0x501   : > { %6434 = vmatpush.bf16.msrb.mxu1 %v10229_v22 }
 0x502   : > { %v5706_v56 = vadd.f32 %v5705_v39, %v5657_v17  ;;  %v5710_v50 = vpop.f32.mrf.mxu3  ;;  %v13322_v39 = vpack.c.bf16 %v11969_v5, %v11967_v63  ;;  %v4549_v5 = vld [vmem:[#allocation2 + $0xe0] sm:$0xff] }
 0x504   : > { %v5756_v35 = vpop.f32.mrf.mxu0  ;;  %v12493_v51 = vadd.f32 %v5754_v7, %v5706_v56 }
 0x505   : > { %6435 = vmatpush.bf16.msrb.mxu1 %v10228_v29 }
 0x506   : > { %v5372_v2 = vpop.f32.mrf.mxu1 }
 0x507   : > { %v5658_v33 = vpop.f32.mrf.mxu2  ;;  %v5373_v3 = vadd.f32 %v5372_v2, %v12414_v34 }
 0x508   : > { %v5659_v25 = vadd.f32 %v5658_v33, %v5370_v12 }
 0x509   : > { %5807 = vmatmul.bf16.gmra.mxu1 %v12496_v46 }
 0x50a   : > { %v5708_v57 = vadd.f32 %v5707_v26, %v5659_v25  ;;  %v5712_v53 = vpop.f32.mrf.mxu3  ;;  %v10504_v26 = vld [vmem:[#allocation2 + $0x118] sm:$0xff] }
 0x50b   : > { %v5982_v41 = vpack.c.bf16 %v10504_v26, %v10503_v45  ;;  %v4559_v45 = vld [vmem:[#allocation2 + $0x130] sm:$0xff] }
 0x50c   : > { %v5759_v59 = vpop.f32.mrf.mxu0  ;;  %5856 = vmatmul.bf16.gmra.mxu2 %v13322_v39  ;;  %v12502_v60 = vadd.f32 %v5756_v35, %v5708_v57  ;;  %v4544_v35 = vld [vmem:[#allocation2 + $0xb8] sm:$0xff] }
 0x50d   : > { %v12508_v25 = vpack.c.bf16 %v4549_v5, %v4544_v35  ;;  %v5923_v35 = vld [vmem:[#allocation2 + $0x148] sm:$0xff] }
 0x50e   : > { %v5374_v7 = vpop.f32.mrf.mxu1 }
 0x50f   : > { %6395 = vmatmul.bf16.gmra.mxu0 %v5978_v36  ;;  %v5661_v4 = vpop.f32.mrf.mxu2  ;;  %v5375_v24 = vadd.f32 %v5374_v7, %v12420_v1  ;;  %6351 = vmatmul.bf16.gmra.mxu3 %v5982_v41  ;;  %v5983_v1 = vpack.c.bf16 %v5918_v0, %v5913_v23  ;;  %v5932_v23 = vld [vmem:[#allocation2 + $0x230] sm:$0xff] }
 0x510   : > { %v5662_v34 = vadd.f32 %v5661_v4, %v5373_v3 }
 0x512   : > { %v5711_v17 = vadd.f32 %v5710_v50, %v5662_v34  ;;  %v5715_v63 = vpop.f32.mrf.mxu3  ;;  %v13323_v50 = vpack.c.bf16 %v12030_v11, %v12019_v15 }
 0x514   : > { %v5761_v28 = vpop.f32.mrf.mxu0  ;;  %v12505_v40 = vadd.f32 %v5759_v59, %v5711_v17  ;;  %v12516_v59 = vld [vmem:[#allocation2 + $0x168] sm:$0xff] }
 0x515   : > { %v4554_v17 = vld [vmem:[#allocation2 + $0x108] sm:$0xff] }
 0x516   : > { %v5377_v56 = vpop.f32.mrf.mxu1 }
 0x517   : > { %v5663_v55 = vpop.f32.mrf.mxu2  ;;  %v5378_v33 = vadd.f32 %v5377_v56, %v12425_v10 }
 0x518   : > { %v5664_v12 = vadd.f32 %v5663_v55, %v5375_v24  ;;  %v12523_v55 = vpack.c.bf16 %v4559_v45, %v4554_v17 }
 0x519   : > { %5812 = vmatmul.bf16.gmra.mxu1 %v12508_v25 }
 0x51a   : > { %v5713_v2 = vadd.f32 %v5712_v53, %v5664_v12  ;;  %v5717_v57 = vpop.f32.mrf.mxu3  ;;  %v10505_v53 = vld [vmem:[#allocation2 + $0x140] sm:$0xff] }
 0x51b   : > { %v5987_v22 = vpack.c.bf16 %v12516_v59, %v10505_v53 }
 0x51c   : > { %v5764_v27 = vpop.f32.mrf.mxu0  ;;  %5861 = vmatmul.bf16.gmra.mxu2 %v13323_v50  ;;  %v12514_v3 = vadd.f32 %v5761_v28, %v5713_v2  ;;  %v5928_v28 = vld [vmem:[#allocation2 + $0x170] sm:$0xff]  ;;  %v10506_v50 = vld [vmem:[#allocation2 + $0x258] sm:$0xff] }
 0x51d   : > { %v10227_v2 = vld [vmem:[#allocation8 + $0x310] sm:$0xff] }
 0x51e   : > { %v5379_v39 = vpop.f32.mrf.mxu1  ;;  %6436 = vmatpush.bf16.msrb.mxu1 %v10227_v2 }
 0x51f   : > { %6400 = vmatmul.bf16.gmra.mxu0 %v5983_v1  ;;  %v5666_v10 = vpop.f32.mrf.mxu2  ;;  %v5380_v4 = vadd.f32 %v5379_v39, %v12431_v48  ;;  %6356 = vmatmul.bf16.gmra.mxu3 %v5987_v22  ;;  %v5988_v48 = vpack.c.bf16 %v5928_v28, %v5923_v35  ;;  %v10248_v39 = vld [vmem:[#allocation8 + $0x3b8] sm:$0xff]  ;;  %v10247_v22 = vld [vmem:[#allocation8 + $0x3b0] sm:$0xff] }
 0x520   : > { %v5667_v36 = vadd.f32 %v5666_v10, %v5378_v33  ;;  %6529 = vmatpush.bf16.msra.mxu3 %v10248_v39  ;;  %v4579_v39 = vld [vmem:[#allocation2 + $0x270] sm:$0xff] }
 0x522   : > { %v5716_v34 = vadd.f32 %v5715_v63, %v5667_v36  ;;  %v5720_v11 = vpop.f32.mrf.mxu3  ;;  %v13324_v63 = vpack.c.bf16 %v12105_v13, %v12103_v49 }
 0x524   : > { %v5766_v7 = vpop.f32.mrf.mxu0  ;;  %v12520_v15 = vadd.f32 %v5764_v27, %v5716_v34  ;;  %6530 = vmatpush.bf16.msra.mxu3 %v10247_v22  ;;  %v10243_v22 = vld [vmem:[#allocation8 + $0x390] sm:$0xff] }
 0x526   : > { %v5382_v24 = vpop.f32.mrf.mxu1 }
 0x527   : > { %v5668_v26 = vpop.f32.mrf.mxu2  ;;  %v5383_v5 = vadd.f32 %v5382_v24, %v12434_v31  ;;  %v5933_v24 = vld [vmem:[#allocation2 + $0x238] sm:$0xff] }
 0x528   : > { %v5669_v41 = vadd.f32 %v5668_v26, %v5380_v4 }
 0x529   : > { %5817 = vmatmul.bf16.gmra.mxu1 %v12523_v55 }
 0x52a   : > { %v5718_v12 = vadd.f32 %v5717_v57, %v5669_v41  ;;  %v5722_v33 = vpop.f32.mrf.mxu3  ;;  %v5992_v57 = vpack.c.bf16 %v10506_v50, %v5932_v23  ;;  %v10255_v23 = vld [vmem:[#allocation8 + $0x3f0] sm:$0xff]  ;;  %v10238_v50 = vld [vmem:[#allocation8 + $0x368] sm:$0xff] }
 0x52c   : > { %v5769_v56 = vpop.f32.mrf.mxu0  ;;  %5866 = vmatmul.bf16.gmra.mxu2 %v13324_v63  ;;  %v12529_v0 = vadd.f32 %v5766_v7, %v5718_v12  ;;  %v5938_v7 = vld [vmem:[#allocation2 + $0x260] sm:$0xff]  ;;  %v10240_v12 = vld [vmem:[#allocation8 + $0x378] sm:$0xff] }
 0x52d   : > { %6480 = vmatpush.bf16.msra.mxu2 %v10240_v12  ;;  %v10242_v12 = vld [vmem:[#allocation8 + $0x388] sm:$0xff] }
 0x52e   : > { %v5384_v1 = vpop.f32.mrf.mxu1 }
 0x52f   : > { %6405 = vmatmul.bf16.gmra.mxu0 %v5988_v48  ;;  %v5671_v27 = vpop.f32.mrf.mxu2  ;;  %v5385_v29 = vadd.f32 %v5384_v1, %v12439_v43  ;;  %6361 = vmatmul.bf16.gmra.mxu3 %v5992_v57  ;;  %v5993_v43 = vpack.c.bf16 %v5938_v7, %v5933_v24  ;;  %v10244_v57 = vld [vmem:[#allocation8 + $0x398] sm:$0xff]  ;;  %v5948_v7 = vld [vmem:[#allocation2 + $0x2b0] sm:$0xff]  ;;  %v10253_v24 = vld [vmem:[#allocation8 + $0x3e0] sm:$0xff] }
 0x530   : > { %v5672_v31 = vadd.f32 %v5671_v27, %v5383_v5  ;;  %v10226_v5 = vld [vmem:[#allocation8 + $0x308] sm:$0xff]  ;;  %v10239_v27 = vld [vmem:[#allocation8 + $0x370] sm:$0xff] }
 0x531   : > { %6437 = vmatpush.bf16.msrb.mxu1 %v10226_v5  ;;  %6481 = vmatpush.bf16.msra.mxu2 %v10239_v27  ;;  %v10508_v27 = vld [vmem:[#allocation2 + $0x2d0] sm:$0xff] }
 0x532   : > { %v5721_v10 = vadd.f32 %v5720_v11, %v5672_v31  ;;  %v5725_v13 = vpop.f32.mrf.mxu3  ;;  %v10246_v11 = vld [vmem:[#allocation8 + $0x3a8] sm:$0xff] }
 0x533   : > { %6531 = vmatpush.bf16.msra.mxu3 %v10246_v11  ;;  %v5943_v11 = vld [vmem:[#allocation2 + $0x288] sm:$0xff] }
 0x534   : > { %v5771_v36 = vpop.f32.mrf.mxu0  ;;  %v12532_v49 = vadd.f32 %v5769_v56, %v5721_v10  ;;  %v10256_v56 = vld [vmem:[#allocation8 + $0x3f8] sm:$0xff]  ;;  %v5998_v5 = vpack.c.bf16 %v5948_v7, %v5943_v11 }
 0x535   : > { %7035 = vmatpush.bf16.msra.mxu0 %v10256_v56  ;;  %6482 = vmatpush.bf16.msra.mxu2 %v10238_v50  ;;  %v13325_v56 = vpack.c.bf16 %v12211_v44, %v12209_v47  ;;  %v10235_v44 = vld [vmem:[#allocation8 + $0x350] sm:$0xff]  ;;  %v4584_v7 = vld [vmem:[#allocation2 + $0x298] sm:$0xff] }
 0x536   : > { %v5387_v34 = vpop.f32.mrf.mxu1 }
 0x537   : > { %v5673_v53 = vpop.f32.mrf.mxu2  ;;  %v5388_v45 = vadd.f32 %v5387_v34, %v12445_v30  ;;  %v10245_v30 = vld [vmem:[#allocation8 + $0x3a0] sm:$0xff]  ;;  %v4574_v34 = vld [vmem:[#allocation2 + $0x248] sm:$0xff] }
 0x538   : > { %v5674_v4 = vadd.f32 %v5673_v53, %v5385_v29  ;;  %6532 = vmatpush.bf16.msra.mxu3 %v10245_v30  ;;  %v10254_v29 = vld [vmem:[#allocation8 + $0x3e8] sm:$0xff]  ;;  %v10225_v30 = vld [vmem:[#allocation8 + $0x300] sm:$0xff] }
 0x539   : > { %5822 = vmatmul.bf16.gmra.mxu1 %v12389_v8  ;;  %7036 = vmatpush.bf16.msra.mxu0 %v10255_v23  ;;  %v6002_v23 = vpack.c.bf16 %v12369_v32, %v10508_v27 }
 0x53a   : > { %v5723_v26 = vadd.f32 %v5722_v33, %v5674_v4  ;;  %v5727_v28 = vpop.f32.mrf.mxu3  ;;  %v10507_v33 = vld [vmem:[#allocation2 + $0x280] sm:$0xff]  ;;  %6438 = vmatpush.bf16.msrb.mxu1 %v10225_v30  ;;  %v12565_v30 = vld [vmem:[#allocation2 + $0x348] sm:$0xff] }
 0x53b   : > { %v5997_v2 = vpack.c.bf16 %v12312_v21, %v10507_v33  ;;  %v10241_v33 = vld [vmem:[#allocation8 + $0x380] sm:$0xff] }
 0x53c   : > { %v5774_v41 = vpop.f32.mrf.mxu0  ;;  %5871 = vmatmul.bf16.gmra.mxu2 %v12389_v8  ;;  %v12537_v17 = vadd.f32 %v5771_v36, %v5723_v26  ;;  %6533 = vmatpush.bf16.msra.mxu3 %v10244_v57  ;;  %v10237_v26 = vld [vmem:[#allocation8 + $0x360] sm:$0xff]  ;;  %v10234_v57 = vld [vmem:[#allocation8 + $0x348] sm:$0xff] }
 0x53d   : > { %7037 = vmatpush.bf16.msra.mxu0 %v10254_v29  ;;  %6483 = vmatpush.bf16.msra.mxu2 %v10237_v26  ;;  %v10250_v29 = vld [vmem:[#allocation8 + $0x3c8] sm:$0xff]  ;;  %v10233_v26 = vld [vmem:[#allocation8 + $0x340] sm:$0xff] }
 0x53e   : > { %v5389_v63 = vpop.f32.mrf.mxu1 }
 0x53f   : > { %6410 = vmatmul.bf16.gmra.mxu0 %v5993_v43  ;;  %v5676_v35 = vpop.f32.mrf.mxu2  ;;  %v5390_v8 = vadd.f32 %v5389_v63, %v12452_v61  ;;  %6366 = vmatmul.bf16.gmra.mxu3 %v5997_v2  ;;  %v10252_v63 = vld [vmem:[#allocation8 + $0x3d8] sm:$0xff] }
 0x540   : > { %v5677_v48 = vadd.f32 %v5676_v35, %v5388_v45  ;;  %v12544_v45 = vpack.c.bf16 %v4579_v39, %v4574_v34  ;;  %6534 = vmatpush.bf16.msra.mxu3 %v10243_v22  ;;  %v4589_v22 = vld [vmem:[#allocation2 + $0x2c0] sm:$0xff] }
 0x541   : > { %7038 = vmatpush.bf16.msra.mxu0 %v10253_v24  ;;  %v10249_v24 = vld [vmem:[#allocation8 + $0x3c0] sm:$0xff] }
 0x542   : > { %v5726_v31 = vadd.f32 %v5725_v13, %v5677_v48  ;;  %v5730_v36 = vpop.f32.mrf.mxu3  ;;  %v10236_v48 = vld [vmem:[#allocation8 + $0x358] sm:$0xff] }
 0x543   : > { %6484 = vmatpush.bf16.msra.mxu2 %v10236_v48  ;;  %v10264_v48 = vld [vmem:[#allocation8 + $0x438] sm:$0xff] }
 0x544   : > { %v5776_v1 = vpop.f32.mrf.mxu0  ;;  %v12541_v10 = vadd.f32 %v5774_v41, %v5726_v31  ;;  %6535 = vmatpush.bf16.msra.mxu3 %v10242_v12  ;;  %v10251_v31 = vld [vmem:[#allocation8 + $0x3d0] sm:$0xff]  ;;  %v13326_v12 = vpack.c.bf16 %v12280_v14, %v12273_v52  ;;  %7084 = vmatpush.bf16.msra.mxu1 %v10264_v48 }
 0x545   : > { %7039 = vmatpush.bf16.msra.mxu0 %v10252_v63 }
 0x546   : > { %v5392_v4 = vpop.f32.mrf.mxu1 }
 0x547   : > { %v5678_v53 = vpop.f32.mrf.mxu2  ;;  %v5393_v13 = vadd.f32 %v5392_v4, %v12457_v42  ;;  %6485 = vmatpush.bf16.msra.mxu2 %v10235_v44 }
 0x548   : > { %v5679_v61 = vadd.f32 %v5678_v53, %v5390_v8  ;;  %6536 = vmatpush.bf16.msra.mxu3 %v10241_v33  ;;  %v6007_v33 = vpack.c.bf16 %v12565_v30, %v12371_v38 }
 0x549   : > { %5827 = vmatmul.bf16.gmra.mxu1 %v12544_v45  ;;  %7040 = vmatpush.bf16.msra.mxu0 %v10251_v31 }
 0x54a   : > { %v5728_v41 = vadd.f32 %v5727_v28, %v5679_v61  ;;  %v5732_v42 = vpop.f32.mrf.mxu3 }
 0x54b   : > { %6486 = vmatpush.bf16.msra.mxu2 %v10234_v57 }
 0x54c   : > { %v5779_v43 = vpop.f32.mrf.mxu0  ;;  %5876 = vmatmul.bf16.gmra.mxu2 %v13325_v56  ;;  %v12550_v35 = vadd.f32 %v5776_v1, %v5728_v41 }
 0x54d   : > { %7041 = vmatpush.bf16.msra.mxu0 %v10250_v29 }
 0x54e   : > { %v5394_v8 = vpop.f32.mrf.mxu1 }
 0x54f   : > { %6415 = vmatmul.bf16.gmra.mxu0 %v5998_v5  ;;  %v5681_v28 = vpop.f32.mrf.mxu2  ;;  %v5395_v47 = vadd.f32 %v5394_v8, %v12465_v9  ;;  %6371 = vmatmul.bf16.gmra.mxu3 %v6002_v23  ;;  %v5958_v9 = vld [vmem:[#allocation2 + $0x300] sm:$0xff]  ;;  %v5953_v5 = vld [vmem:[#allocation2 + $0x2d8] sm:$0xff]  ;;  %v4599_v23 = vld [vmem:[#allocation2 + $0x310] sm:$0xff] }
 0x550   : > { %v5682_v2 = vadd.f32 %v5681_v28, %v5393_v13  ;;  %6487 = vmatpush.bf16.msra.mxu2 %v10233_v26  ;;  %v5896_v26 = vld [vmem:[#allocation2 + $0x70] sm:$0xff] }
 0x551   : > { %7042 = vmatpush.bf16.msra.mxu0 %v10249_v24 }
 0x552   : > { %v5731_v1 = vadd.f32 %v5730_v36, %v5682_v2  ;;  %v5735_v53 = vpop.f32.mrf.mxu3  ;;  %v12557_v36 = vpack.c.bf16 %v4589_v22, %v4584_v7 }
 0x554   : > { %v5781_v50 = vpop.f32.mrf.mxu0  ;;  %v12554_v39 = vadd.f32 %v5779_v43, %v5731_v1  ;;  %v6003_v43 = vpack.c.bf16 %v5958_v9, %v5953_v5  ;;  %v4594_v1 = vld [vmem:[#allocation2 + $0x2e8] sm:$0xff]  ;;  %v10263_v9 = vld [vmem:[#allocation8 + $0x430] sm:$0xff] }
 0x555   : > { %v12573_v29 = vpack.c.bf16 %v4599_v23, %v4594_v1  ;;  %7085 = vmatpush.bf16.msra.mxu1 %v10263_v9 }
 0x556   : > { %v5397_v34 = vpop.f32.mrf.mxu1 }
 0x557   : > { %v5683_v61 = vpop.f32.mrf.mxu2  ;;  %v5398_v13 = vadd.f32 %v5397_v34, %v12470_v20 }
 0x558   : > { %v5684_v4 = vadd.f32 %v5683_v61, %v5395_v47 }
 0x559   : > { %5832 = vmatmul.bf16.gmra.mxu1 %v12557_v36 }
 0x55a   : > { %v5733_v41 = vadd.f32 %v5732_v42, %v5684_v4  ;;  %v5737_v20 = vpop.f32.mrf.mxu3  ;;  %v5963_v4 = vld [vmem:[#allocation2 + $0x328] sm:$0xff] }
 0x55c   : > { %v5784_v11 = vpop.f32.mrf.mxu0  ;;  %5881 = vmatmul.bf16.gmra.mxu2 %v13326_v12  ;;  %v12563_v56 = vadd.f32 %v5781_v50, %v5733_v41  ;;  %v5968_v50 = vld [vmem:[#allocation2 + $0x350] sm:$0xff]  ;;  %v10509_v41 = vld [vmem:[#allocation2 + $0x98] sm:$0xff] }
 0x55e   : > { %v5399_v28 = vpop.f32.mrf.mxu1 }
 0x55f   : > { %6420 = vmatmul.bf16.gmra.mxu0 %v6003_v43  ;;  %v5686_v63 = vpop.f32.mrf.mxu2  ;;  %v5400_v2 = vadd.f32 %v5399_v28, %v12477_v18  ;;  %6376 = vmatmul.bf16.gmra.mxu3 %v6007_v33  ;;  %v6008_v18 = vpack.c.bf16 %v5968_v50, %v5963_v4  ;;  %v6599_v28 = vld [vmem:[#allocation2 + $0xa0] sm:$0xff] }
 0x560   : > { %v5687_v42 = vadd.f32 %v5686_v63, %v5398_v13 }
 0x562   : > { %v5736_v8 = vadd.f32 %v5735_v53, %v5687_v42  ;;  %v5740_v27 = vpop.f32.mrf.mxu3  ;;  %v13327_v53 = vpack.c.bf16 %v12351_v6, %v12343_v37  ;;  %v5894_v42 = vld [vmem:[#allocation2 + $0x60] sm:$0xff] }
 0x564   : > { %v5786_v52 = vpop.f32.mrf.mxu0  ;;  %v12570_v14 = vadd.f32 %v5784_v11, %v5736_v8  ;;  %v5976_v11 = vpack.c.bf16 %v10509_v41, %v5896_v26  ;;  %v10513_v26 = vld [vmem:[#allocation2 + $0xb0] sm:$0xff] }
 0x566   : > { %v5402_v31 = vpop.f32.mrf.mxu1 }
 0x567   : > { %v5688_v47 = vpop.f32.mrf.mxu2  ;;  %v5403_v57 = vadd.f32 %v5402_v31, %v12483_v54  ;;  %v10262_v31 = vld [vmem:[#allocation8 + $0x428] sm:$0xff] }
 0x568   : > { %v5689_v44 = vadd.f32 %v5688_v47, %v5400_v2  ;;  %v10510_v2 = vld [vmem:[#allocation2 + $0x88] sm:$0xff]  ;;  %7086 = vmatpush.bf16.msra.mxu1 %v10262_v31 }
 0x569   : > { %5837 = vmatmul.bf16.gmra.mxu1 %v12573_v29  ;;  %v5974_v8 = vpack.c.bf16 %v10510_v2, %v5894_v42 }
 0x56a   : > { %v5738_v22 = vadd.f32 %v5737_v20, %v5689_v44  ;;  %v5742_v7 = vpop.f32.mrf.mxu3 }
 0x56c   : > { %v5789_v61 = vpop.f32.mrf.mxu0  ;;  %5886 = vmatmul.bf16.gmra.mxu2 %v13327_v53  ;;  %v12579_v34 = vadd.f32 %v5786_v52, %v5738_v22  ;;  %v10512_v22 = vld [vmem:[#allocation2 + $0xe8] sm:$0xff] }
 0x56e   : > { %v5404_v24 = vpop.f32.mrf.mxu1 }
 0x56f   : > { %6425 = vmatmul.bf16.gmra.mxu0 %v6008_v18  ;;  %v5691_v13 = vpop.f32.mrf.mxu2  ;;  %v5405_v5 = vadd.f32 %v5404_v24, %v12489_v62  ;;  %6537 = vmatmul.bf16.vlgmr.msra.gmra.mxu3 %v5976_v11  ;;  %v6674_v62 = vpack.c.bf16 %v6599_v28, %v12479_v16 }
 0x570   : > { %v5692_v54 = vadd.f32 %v5691_v13, %v5403_v57  ;;  %v10511_v57 = vld [vmem:[#allocation2 + $0xc0] sm:$0xff] }
 0x572   : > { %v5741_v43 = vadd.f32 %v5740_v27, %v5692_v54  ;;  %v6342_v37 = vpop.f32.mrf.mxu3  ;;  %v10514_v54 = vld [vmem:[#allocation2 + $0xd8] sm:$0xff] }
 0x573   : > { %v5979_v24 = vpack.c.bf16 %v10514_v54, %v10513_v26  ;;  %v12627_v54 = vld [vmem:[#allocation2 + $0x178] sm:$0xff] }
 0x574   : > { %v5791_v12 = vpop.f32.mrf.mxu0  ;;  %v12582_v20 = vadd.f32 %v5789_v61, %v5741_v43  ;;  %v5981_v61 = vpack.c.bf16 %v10512_v22, %v10511_v57  ;;  %v10261_v43 = vld [vmem:[#allocation8 + $0x420] sm:$0xff]  ;;  %v12619_v22 = vld [vmem:[#allocation2 + $0x188] sm:$0xff] }
 0x575   : > { %7087 = vmatpush.bf16.msra.mxu1 %v10261_v43 }
 0x576   : > { %v5803_v63 = vpop.f32.mrf.mxu1 }
 0x577   : > { %v5693_v6 = vpop.f32.mrf.mxu2  ;;  %v5804_v33 = vadd.f32 %v5803_v63, %v12493_v51 }
 0x578   : > { %v5694_v48 = vadd.f32 %v5693_v6, %v5405_v5  ;;  %v10515_v6 = vld [vmem:[#allocation2 + $0x110] sm:$0xff] }
 0x579   : > { %6439 = vmatmul.bf16.vlgmr.msrb.gmra.mxu1 %v5974_v8 }
 0x57a   : > { %v5743_v52 = vadd.f32 %v5742_v7, %v5694_v48  ;;  %v6344_v44 = vpop.f32.mrf.mxu3  ;;  %v10516_v48 = vld [vmem:[#allocation2 + $0x138] sm:$0xff] }
 0x57b   : > { %v5986_v63 = vpack.c.bf16 %v10516_v48, %v10515_v6  ;;  %v12635_v6 = vld [vmem:[#allocation2 + $0x158] sm:$0xff] }
 0x57c   : > { %v6391_v23 = vpop.f32.mrf.mxu0  ;;  %6488 = vmatmul.bf16.vlgmr.msra.gmra.mxu2 %v12496_v46  ;;  %v12589_v47 = vadd.f32 %v5791_v12, %v5743_v52  ;;  %v10517_v52 = vld [vmem:[#allocation2 + $0x100] sm:$0xff] }
 0x57d   : > { %v12586_v27 = vadd.f32 %v6391_v23, %v6342_v37  ;;  %v10518_v23 = vld [vmem:[#allocation2 + $0x128] sm:$0xff] }
 0x57e   : > { %v5805_v51 = vpop.f32.mrf.mxu1 }
 0x57f   : > { %7043 = vmatmul.bf16.vlgmr.msra.gmra.mxu0 %v6674_v62  ;;  %v5852_v1 = vpop.f32.mrf.mxu2  ;;  %v5806_v4 = vadd.f32 %v5805_v51, %v12502_v60  ;;  %6542 = vmatmul.bf16.gmra.mxu3 %v5981_v61  ;;  %v13328_v60 = vpack.c.bf16 %v12068_v19, %v12066_v58  ;;  %v5984_v62 = vpack.c.bf16 %v10518_v23, %v10517_v52  ;;  %v10260_v61 = vld [vmem:[#allocation8 + $0x418] sm:$0xff] }
 0x580   : > { %v12591_v50 = vadd.f32 %v5852_v1, %v5804_v33  ;;  %v13330_v1 = vld [vmem:[#allocation47_spill] sm:$0xff]  ;;  %7088 = vmatpush.bf16.msra.mxu1 %v10260_v61  ;;  %v10522_v23 = vld [vmem:[#allocation2 + $0x278] sm:$0xff] }
 0x582   : > { %v6347_v46 = vpop.f32.mrf.mxu3 }
 0x584   : > { %v6393_v16 = vpop.f32.mrf.mxu0 }
 0x585   : > { %v12594_v18 = vadd.f32 %v6393_v16, %v6344_v44 }
 0x586   : > { %v5808_v9 = vpop.f32.mrf.mxu1 }
 0x587   : > { %v5854_v53 = vpop.f32.mrf.mxu2  ;;  %v5809_v13 = vadd.f32 %v5808_v9, %v12505_v40 }
 0x588   : > { %v12596_v7 = vadd.f32 %v5854_v53, %v5806_v4 }
 0x589   : > { %6444 = vmatmul.bf16.gmra.mxu1 %v5979_v24 }
 0x58a   : > { %v6349_v5 = vpop.f32.mrf.mxu3 }
 0x58c   : > { %v6396_v41 = vpop.f32.mrf.mxu0  ;;  %6493 = vmatmul.bf16.gmra.mxu2 %v12508_v25 }
 0x58d   : > { %v12599_v11 = vadd.f32 %v6396_v41, %v6347_v46  ;;  %v10519_v46 = vld [vmem:[#allocation2 + $0x160] sm:$0xff] }
 0x58e   : > { %v5810_v40 = vpop.f32.mrf.mxu1  ;;  %v5991_v53 = vpack.c.bf16 %v12619_v22, %v10519_v46  ;;  %v12629_v41 = vld [vmem:[#allocation2 + $0x180] sm:$0xff] }
 0x58f   : > { %7048 = vmatmul.bf16.gmra.mxu0 %v13328_v60  ;;  %v5857_v12 = vpop.f32.mrf.mxu2  ;;  %v5811_v42 = vadd.f32 %v5810_v40, %v12514_v3  ;;  %6547 = vmatmul.bf16.gmra.mxu3 %v5986_v63  ;;  %v13329_v3 = vld [vmem:[#allocation48_spill] sm:$0xff]  ;;  %v5990_v48 = vpack.c.bf16 %v12629_v41, %v12635_v6  ;;  %v12639_v63 = vld [vmem:[#allocation2 + $0x208] sm:$0xff] }
 0x590   : > { %v12605_v37 = vadd.f32 %v5857_v12, %v5809_v13  ;;  %v13331_v51 = vpack.c.bf16 %v13329_v3, %v13330_v1  ;;  %v10520_v12 = vld [vmem:[#allocation2 + $0x150] sm:$0xff] }
 0x591   : > { %v5989_v40 = vpack.c.bf16 %v12627_v54, %v10520_v12 }
 0x592   : > { %v6352_v25 = vpop.f32.mrf.mxu3 }
 0x594   : > { %v6398_v28 = vpop.f32.mrf.mxu0 }
 0x595   : > { %v12608_v33 = vadd.f32 %v6398_v28, %v6349_v5 }
 0x596   : > { %v5813_v19 = vpop.f32.mrf.mxu1 }
 0x597   : > { %v5859_v2 = vpop.f32.mrf.mxu2  ;;  %v5814_v8 = vadd.f32 %v5813_v19, %v12520_v15  ;;  %v5936_v19 = vld [vmem:[#allocation2 + $0x250] sm:$0xff] }
 0x598   : > { %v12610_v58 = vadd.f32 %v5859_v2, %v5811_v42  ;;  %v6689_v42 = vpack.c.bf16 %v12639_v63, %v12516_v59 }
 0x599   : > { %6449 = vmatmul.bf16.gmra.mxu1 %v5984_v62  ;;  %v5996_v62 = vpack.c.bf16 %v10522_v23, %v5936_v19  ;;  %v10525_v19 = vld [vmem:[#allocation2 + $0x2c8] sm:$0xff] }
 0x59a   : > { %v6354_v57 = vpop.f32.mrf.mxu3 }
 0x59c   : > { %v6401_v44 = vpop.f32.mrf.mxu0  ;;  %6498 = vmatmul.bf16.gmra.mxu2 %v12523_v55 }
 0x59d   : > { %v12613_v31 = vadd.f32 %v6401_v44, %v6352_v25  ;;  %v10259_v25 = vld [vmem:[#allocation8 + $0x410] sm:$0xff] }
 0x59e   : > { %v5815_v16 = vpop.f32.mrf.mxu1  ;;  %7089 = vmatpush.bf16.msra.mxu1 %v10259_v25 }
 0x59f   : > { %7053 = vmatmul.bf16.gmra.mxu0 %v13331_v51  ;;  %v5862_v4 = vpop.f32.mrf.mxu2  ;;  %v5816_v9 = vadd.f32 %v5815_v16, %v12529_v0  ;;  %6552 = vmatmul.bf16.gmra.mxu3 %v5991_v53  ;;  %v5934_v16 = vld [vmem:[#allocation2 + $0x240] sm:$0xff]  ;;  %v10523_v53 = vld [vmem:[#allocation2 + $0x268] sm:$0xff] }
 0x5a0   : > { %v12621_v15 = vadd.f32 %v5862_v4, %v5814_v8 }
 0x5a2   : > { %v6357_v26 = vpop.f32.mrf.mxu3 }
 0x5a4   : > { %v6403_v13 = vpop.f32.mrf.mxu0 }
 0x5a5   : > { %v12625_v55 = vadd.f32 %v6403_v13, %v6354_v57  ;;  %v10280_v57 = vld [vmem:[#allocation8 + $0x4b8] sm:$0xff] }
 0x5a6   : > { %v5818_v5 = vpop.f32.mrf.mxu1  ;;  %7182 = vmatpush.bf16.msrb.mxu3 %v10280_v57  ;;  %v10286_v57 = vld [vmem:[#allocation8 + $0x4e8] sm:$0xff] }
 0x5a7   : > { %v5864_v24 = vpop.f32.mrf.mxu2  ;;  %v5819_v43 = vadd.f32 %v5818_v5, %v12532_v49  ;;  %v13333_v5 = vld [vmem:[#allocation54_spill] sm:$0xff] }
 0x5a8   : > { %v12631_v60 = vadd.f32 %v5864_v24, %v5816_v9  ;;  %v5994_v9 = vpack.c.bf16 %v10523_v53, %v5934_v16  ;;  %v13332_v24 = vld [vmem:[#allocation56_spill] sm:$0xff] }
 0x5a9   : > { %6454 = vmatmul.bf16.gmra.mxu1 %v5989_v40  ;;  %v10258_v40 = vld [vmem:[#allocation8 + $0x408] sm:$0xff] }
 0x5aa   : > { %v6359_v49 = vpop.f32.mrf.mxu3  ;;  %7090 = vmatpush.bf16.msra.mxu1 %v10258_v40 }
 0x5ac   : > { %v6406_v0 = vpop.f32.mrf.mxu0  ;;  %6503 = vmatmul.bf16.gmra.mxu2 %v5990_v48  ;;  %v10288_v48 = vld [vmem:[#allocation8 + $0x4f8] sm:$0xff] }
 0x5ad   : > { %v12643_v28 = vadd.f32 %v6406_v0, %v6357_v26  ;;  %v10272_v0 = vld [vmem:[#allocation8 + $0x478] sm:$0xff]  ;;  %7231 = vmatpush.bf16.msrb.mxu0 %v10288_v48  ;;  %v13335_v48 = vld [vmem:[#allocation65_spill] sm:$0xff] }
 0x5ae   : > { %v5820_v52 = vpop.f32.mrf.mxu1  ;;  %7133 = vmatpush.bf16.msrb.mxu2 %v10272_v0  ;;  %v10275_v0 = vld [vmem:[#allocation8 + $0x490] sm:$0xff] }
 0x5af   : > { %7058 = vmatmul.bf16.gmra.mxu0 %v6689_v42  ;;  %v5867_v2 = vpop.f32.mrf.mxu2  ;;  %v5821_v44 = vadd.f32 %v5820_v52, %v12537_v17  ;;  %6557 = vmatmul.bf16.gmra.mxu3 %v5996_v62  ;;  %v10279_v17 = vld [vmem:[#allocation8 + $0x4b0] sm:$0xff]  ;;  %v10278_v42 = vld [vmem:[#allocation8 + $0x4a8] sm:$0xff] }
 0x5b0   : > { %v12645_v8 = vadd.f32 %v5867_v2, %v5819_v43  ;;  %v13334_v43 = vpack.c.bf16 %v13332_v24, %v13333_v5  ;;  %7183 = vmatpush.bf16.msrb.mxu3 %v10279_v17  ;;  %v10524_v2 = vld [vmem:[#allocation2 + $0x2a0] sm:$0xff]  ;;  %v10271_v62 = vld [vmem:[#allocation8 + $0x470] sm:$0xff]  ;;  %v10527_v17 = vld [vmem:[#allocation2 + $0x2b8] sm:$0xff] }
 0x5b1   : > { %v6001_v52 = vpack.c.bf16 %v10525_v19, %v10524_v2  ;;  %v10284_v2 = vld [vmem:[#allocation8 + $0x4d8] sm:$0xff] }
 0x5b2   : > { %v6362_v59 = vpop.f32.mrf.mxu3  ;;  %7134 = vmatpush.bf16.msrb.mxu2 %v10271_v62  ;;  %v10528_v62 = vld [vmem:[#allocation2 + $0x2f0] sm:$0xff] }
 0x5b4   : > { %v6408_v3 = vpop.f32.mrf.mxu0  ;;  %7184 = vmatpush.bf16.msrb.mxu3 %v10278_v42 }
 0x5b5   : > { %v12648_v1 = vadd.f32 %v6408_v3, %v6359_v49 }
 0x5b6   : > { %v5823_v4 = vpop.f32.mrf.mxu1 }
 0x5b7   : > { %v5869_v51 = vpop.f32.mrf.mxu2  ;;  %v5824_v46 = vadd.f32 %v5823_v4, %v12541_v10 }
 0x5b8   : > { %v12650_v61 = vadd.f32 %v5869_v51, %v5821_v44  ;;  %v10287_v44 = vld [vmem:[#allocation8 + $0x4f0] sm:$0xff]  ;;  %v10270_v51 = vld [vmem:[#allocation8 + $0x468] sm:$0xff] }
 0x5b9   : > { %6459 = vmatmul.bf16.gmra.mxu1 %v5994_v9  ;;  %7232 = vmatpush.bf16.msrb.mxu0 %v10287_v44  ;;  %v10529_v44 = vld [vmem:[#allocation2 + $0x318] sm:$0xff] }
 0x5ba   : > { %v6364_v12 = vpop.f32.mrf.mxu3  ;;  %7135 = vmatpush.bf16.msrb.mxu2 %v10270_v51  ;;  %v10267_v51 = vld [vmem:[#allocation8 + $0x450] sm:$0xff] }
 0x5bc   : > { %v6411_v13 = vpop.f32.mrf.mxu0  ;;  %6508 = vmatmul.bf16.gmra.mxu2 %v12544_v45 }
 0x5bd   : > { %v12653_v26 = vadd.f32 %v6411_v13, %v6362_v59  ;;  %v10277_v59 = vld [vmem:[#allocation8 + $0x4a0] sm:$0xff]  ;;  %7233 = vmatpush.bf16.msrb.mxu0 %v10286_v57  ;;  %v10526_v13 = vld [vmem:[#allocation2 + $0x290] sm:$0xff] }
 0x5be   : > { %v5825_v25 = vpop.f32.mrf.mxu1  ;;  %7185 = vmatpush.bf16.msrb.mxu3 %v10277_v59  ;;  %v5999_v24 = vpack.c.bf16 %v10527_v17, %v10526_v13  ;;  %v10283_v57 = vld [vmem:[#allocation8 + $0x4d0] sm:$0xff] }
 0x5bf   : > { %7063 = vmatmul.bf16.gmra.mxu0 %v13334_v43  ;;  %v5872_v10 = vpop.f32.mrf.mxu2  ;;  %v5826_v45 = vadd.f32 %v5825_v25, %v12550_v35  ;;  %6562 = vmatmul.bf16.gmra.mxu3 %v6001_v52  ;;  %v10269_v43 = vld [vmem:[#allocation8 + $0x460] sm:$0xff]  ;;  %v10268_v25 = vld [vmem:[#allocation8 + $0x458] sm:$0xff]  ;;  %v10274_v52 = vld [vmem:[#allocation8 + $0x488] sm:$0xff] }
 0x5c0   : > { %v12659_v49 = vadd.f32 %v5872_v10, %v5824_v46  ;;  %v10276_v46 = vld [vmem:[#allocation8 + $0x498] sm:$0xff]  ;;  %v13336_v10 = vpack.c.bf16 %v13335_v48, %v12312_v21  ;;  %7136 = vmatpush.bf16.msrb.mxu2 %v10269_v43  ;;  %v10531_v43 = vld [vmem:[#allocation2 + $0x308] sm:$0xff]  ;;  %v10265_v48 = vld [vmem:[#allocation8 + $0x440] sm:$0xff] }
 0x5c2   : > { %v6367_v4 = vpop.f32.mrf.mxu3  ;;  %7186 = vmatpush.bf16.msrb.mxu3 %v10276_v46  ;;  %v10282_v46 = vld [vmem:[#allocation8 + $0x4c8] sm:$0xff] }
 0x5c4   : > { %v6413_v23 = vpop.f32.mrf.mxu0  ;;  %7137 = vmatpush.bf16.msrb.mxu2 %v10268_v25 }
 0x5c5   : > { %v12662_v3 = vadd.f32 %v6413_v23, %v6364_v12  ;;  %v10285_v12 = vld [vmem:[#allocation8 + $0x4e0] sm:$0xff] }
 0x5c6   : > { %v5828_v9 = vpop.f32.mrf.mxu1  ;;  %7234 = vmatpush.bf16.msrb.mxu0 %v10285_v12  ;;  %7187 = vmatpush.bf16.msrb.mxu3 %v10275_v0 }
 0x5c7   : > { %v5874_v16 = vpop.f32.mrf.mxu2  ;;  %v5829_v35 = vadd.f32 %v5828_v9, %v12554_v39  ;;  %v10257_v39 = vld [vmem:[#allocation8 + $0x400] sm:$0xff] }
 0x5c8   : > { %v12664_v53 = vadd.f32 %v5874_v16, %v5826_v45  ;;  %7091 = vmatpush.bf16.msra.mxu1 %v10257_v39  ;;  %v10273_v16 = vld [vmem:[#allocation8 + $0x480] sm:$0xff]  ;;  %7138 = vmatpush.bf16.msrb.mxu2 %v10267_v51  ;;  %v13337_v39 = vpack.c.bf16 %v12371_v38, %v12369_v32  ;;  %v12695_v38 = vld [vmem:[#allocation2 + $0x358] sm:$0xff] }
 0x5c9   : > { %6464 = vmatmul.bf16.gmra.mxu1 %v5999_v24  ;;  %v12697_v51 = vld [vmem:[#allocation2 + $0x360] sm:$0xff] }
 0x5ca   : > { %v6369_v42 = vpop.f32.mrf.mxu3  ;;  %7235 = vmatpush.bf16.msrb.mxu0 %v10284_v2  ;;  %7188 = vmatpush.bf16.msrb.mxu3 %v10274_v52  ;;  %v12687_v2 = vld [vmem:[#allocation2 + $0x368] sm:$0xff] }
 0x5cc   : > { %v6416_v5 = vpop.f32.mrf.mxu0  ;;  %6513 = vmatmul.bf16.gmra.mxu2 %v12557_v36  ;;  %v6006_v36 = vpack.c.bf16 %v10529_v44, %v10528_v62  ;;  %v10532_v62 = vld [vmem:[#allocation2 + $0x340] sm:$0xff] }
 0x5cd   : > { %v12667_v40 = vadd.f32 %v6416_v5, %v6367_v4  ;;  %v10530_v5 = vld [vmem:[#allocation2 + $0x2e0] sm:$0xff]  ;;  %v6011_v44 = vpack.c.bf16 %v12687_v2, %v10532_v62 }
 0x5ce   : > { %v5830_v23 = vpop.f32.mrf.mxu1  ;;  %7236 = vmatpush.bf16.msrb.mxu0 %v10283_v57  ;;  %7189 = vmatpush.bf16.msrb.mxu3 %v10273_v16  ;;  %v6004_v12 = vpack.c.bf16 %v10531_v43, %v10530_v5 }
 0x5cf   : > { %7068 = vmatmul.bf16.gmra.mxu0 %v13336_v10  ;;  %v5877_v19 = vpop.f32.mrf.mxu2  ;;  %v5831_v59 = vadd.f32 %v5830_v23, %v12563_v56  ;;  %6567 = vmatmul.bf16.gmra.mxu3 %v6006_v36  ;;  %v10281_v10 = vld [vmem:[#allocation8 + $0x4c0] sm:$0xff] }
 0x5d0   : > { %v12673_v45 = vadd.f32 %v5877_v19, %v5829_v35  ;;  %v10266_v35 = vld [vmem:[#allocation8 + $0x448] sm:$0xff] }
 0x5d1   : > { %7139 = vmatpush.bf16.msrb.mxu2 %v10266_v35 }
 0x5d2   : > { %v6372_v9 = vpop.f32.mrf.mxu3  ;;  %7237 = vmatpush.bf16.msrb.mxu0 %v10282_v46 }
 0x5d4   : > { %v6418_v21 = vpop.f32.mrf.mxu0 }
 0x5d5   : > { %v12676_v4 = vadd.f32 %v6418_v21, %v6369_v42  ;;  %7140 = vmatpush.bf16.msrb.mxu2 %v10265_v48 }
 0x5d6   : > { %v5833_v24 = vpop.f32.mrf.mxu1  ;;  %7238 = vmatpush.bf16.msrb.mxu0 %v10281_v10 }
 0x5d7   : > { %v5879_v13 = vpop.f32.mrf.mxu2  ;;  %v5834_v56 = vadd.f32 %v5833_v24, %v12570_v14  ;;  %v10296_v14 = vld [vmem:[#allocation8 + $0x538] sm:$0xff] }
 0x5d8   : > { %v12678_v17 = vadd.f32 %v5879_v13, %v5831_v59  ;;  %7737 = vmatpush.bf16.msrb.mxu1 %v10296_v14  ;;  %v12703_v13 = vld [vmem:[#allocation2 + $0x338] sm:$0xff] }
 0x5d9   : > { %6469 = vmatmul.bf16.gmra.mxu1 %v6004_v12  ;;  %v6010_v24 = vpack.c.bf16 %v12697_v51, %v12703_v13  ;;  %v10295_v12 = vld [vmem:[#allocation8 + $0x530] sm:$0xff] }
 0x5da   : > { %v6374_v25 = vpop.f32.mrf.mxu3 }
 0x5dc   : > { %v6421_v0 = vpop.f32.mrf.mxu0  ;;  %6518 = vmatmul.bf16.gmra.mxu2 %v12573_v29  ;;  %7738 = vmatpush.bf16.msrb.mxu1 %v10295_v12  ;;  %v10294_v12 = vld [vmem:[#allocation8 + $0x528] sm:$0xff] }
 0x5dd   : > { %v12681_v42 = vadd.f32 %v6421_v0, %v6372_v9  ;;  %v10533_v9 = vld [vmem:[#allocation2 + $0x330] sm:$0xff] }
 0x5de   : > { %v5835_v23 = vpop.f32.mrf.mxu1  ;;  %v6009_v35 = vpack.c.bf16 %v12695_v38, %v10533_v9  ;;  %v6597_v0 = vld [vmem:[#allocation2 + $0x90] sm:$0xff]  ;;  %v13338_v9 = vld [vmem:[#allocation29_spill] sm:$0xff] }
 0x5df   : > { %7073 = vmatmul.bf16.gmra.mxu0 %v13337_v39  ;;  %v5882_v19 = vpop.f32.mrf.mxu2  ;;  %v5836_v29 = vadd.f32 %v5835_v23, %v12579_v34  ;;  %6572 = vmatmul.bf16.gmra.mxu3 %v6011_v44  ;;  %v10534_v39 = vld [vmem:[#allocation2 + $0xb8] sm:$0xff] }
 0x5e0   : > { %v12689_v52 = vadd.f32 %v5882_v19, %v5834_v56  ;;  %v6709_v56 = vpack.c.bf16 %v12639_v63, %v12565_v30  ;;  %7739 = vmatpush.bf16.msrb.mxu1 %v10294_v12  ;;  %v13345_v12 = vld [vmem:[#allocation38_spill] sm:$0xff] }
 0x5e2   : > { %v6377_v32 = vpop.f32.mrf.mxu3 }
 0x5e4   : > { %v6423_v36 = vpop.f32.mrf.mxu0 }
 0x5e5   : > { %v12693_v59 = vadd.f32 %v6423_v36, %v6374_v25  ;;  %v6677_v25 = vpack.c.bf16 %v10534_v39, %v6597_v0  ;;  %v6595_v36 = vld [vmem:[#allocation2 + $0x80] sm:$0xff]  ;;  %v10537_v39 = vld [vmem:[#allocation2 + $0x108] sm:$0xff] }
 0x5e6   : > { %v5838_v16 = vpop.f32.mrf.mxu1 }
 0x5e7   : > { %v5884_v21 = vpop.f32.mrf.mxu2  ;;  %v5839_v46 = vadd.f32 %v5838_v16, %v12582_v20 }
 0x5e8   : > { %v12699_v57 = vadd.f32 %v5884_v21, %v5836_v29  ;;  %v10535_v21 = vld [vmem:[#allocation2 + $0xa8] sm:$0xff] }
 0x5e9   : > { %6474 = vmatmul.bf16.gmra.mxu1 %v6009_v35  ;;  %v6675_v16 = vpack.c.bf16 %v10535_v21, %v6595_v36  ;;  %v13339_v35 = vld [vmem:[#allocation35_spill] sm:$0xff] }
 0x5ea   : > { %v6379_v43 = vpop.f32.mrf.mxu3 }
 0x5ec   : > { %v6426_v34 = vpop.f32.mrf.mxu0  ;;  %6523 = vmatmul.bf16.gmra.mxu2 %v6010_v24  ;;  %v13342_v24 = vld [vmem:[#allocation30_spill] sm:$0xff] }
 0x5ed   : > { %v12709_v5 = vadd.f32 %v6426_v34, %v6377_v32  ;;  %v13341_v34 = vld [vmem:[#allocation36_spill] sm:$0xff] }
 0x5ee   : > { %v5840_v10 = vpop.f32.mrf.mxu1 }
 0x5ef   : > { %7078 = vmatmul.bf16.gmra.mxu0 %v6709_v56  ;;  %v5887_v20 = vpop.f32.mrf.mxu2  ;;  %v5841_v14 = vadd.f32 %v5840_v10, %v12589_v47  ;;  %7190 = vmatmul.bf16.vlgmr.msrb.gmra.mxu3 %v6677_v25  ;;  %v13340_v47 = vpack.c.bf16 %v13338_v9, %v13339_v35  ;;  %v13343_v56 = vpack.c.bf16 %v13341_v34, %v13342_v24 }
 0x5f0   : > { %v12711_v48 = vadd.f32 %v5887_v20, %v5839_v46 }
 0x5f2   : > { %v6538_v30 = vpop.f32.mrf.mxu3 }
 0x5f4   : > { %v6428_v19 = vpop.f32.mrf.mxu0 }
 0x5f5   : > { %v12714_v23 = vadd.f32 %v6428_v19, %v6379_v43 }
 0x5f6   : > { %v6440_v29 = vpop.f32.mrf.mxu1 }
 0x5f7   : > { %v5889_v62 = vpop.f32.mrf.mxu2  ;;  %v6441_v32 = vadd.f32 %v6440_v29, %v12586_v27  ;;  %v10536_v27 = vld [vmem:[#allocation2 + $0xe0] sm:$0xff] }
 0x5f8   : > { %v12716_v44 = vadd.f32 %v5889_v62, %v5841_v14  ;;  %v6682_v25 = vpack.c.bf16 %v10537_v39, %v10536_v27 }
 0x5f9   : > { %7092 = vmatmul.bf16.vlgmr.msra.gmra.mxu1 %v6675_v16 }
 0x5fa   : > { %v6540_v43 = vpop.f32.mrf.mxu3 }
 0x5fc   : > { %v12719_v46 = vpop.f32.mrf.mxu0  ;;  %7141 = vmatmul.bf16.vlgmr.msrb.gmra.mxu2 %v13340_v47  ;;  %v10539_v47 = vld [vmem:[#allocation2 + $0xf8] sm:$0xff] }
 0x5fe   : > { %v6442_v10 = vpop.f32.mrf.mxu1 }
 0x5ff   : > { %7239 = vmatmul.bf16.vlgmr.msrb.gmra.mxu0 %v13343_v56  ;;  %v6489_v20 = vpop.f32.mrf.mxu2  ;;  %v6443_v14 = vadd.f32 %v6442_v10, %v12594_v18  ;;  %7195 = vmatmul.bf16.gmra.mxu3 %v6682_v25 }
 0x600   : > { %v6490_v0 = vadd.f32 %v6489_v20, %v6441_v32  ;;  %v10538_v32 = vld [vmem:[#allocation2 + $0xd0] sm:$0xff] }
 0x601   : > { %v6680_v34 = vpack.c.bf16 %v10539_v47, %v10538_v32  ;;  %v13347_v20 = vld [vmem:[#allocation39_spill] sm:$0xff] }
 0x602   : > { %v6539_v19 = vadd.f32 %v6538_v30, %v6490_v0  ;;  %v6543_v36 = vpop.f32.mrf.mxu3  ;;  %v13344_v30 = vld [vmem:[#allocation34_spill] sm:$0xff]  ;;  %v13348_v0 = vld [vmem:[#allocation40_spill] sm:$0xff] }
 0x603   : > { %v13349_v10 = vpack.c.bf16 %v13347_v20, %v13348_v0  ;;  %v13351_v0 = vld [vmem:[#allocation46_spill] sm:$0xff] }
 0x604   : > { %v12728_v62 = vpop.f32.mrf.mxu0  ;;  %v12731_v29 = vadd.f32 %v6539_v19, %v12591_v50  ;;  %v13346_v50 = vpack.c.bf16 %v13344_v30, %v13345_v12  ;;  %v10542_v12 = vld [vmem:[#allocation2 + $0x148] sm:$0xff] }
 0x606   : > { %v6445_v9 = vpop.f32.mrf.mxu1 }
 0x607   : > { %v6491_v21 = vpop.f32.mrf.mxu2  ;;  %v6446_v35 = vadd.f32 %v6445_v9, %v12599_v11  ;;  %v10293_v11 = vld [vmem:[#allocation8 + $0x520] sm:$0xff] }
 0x608   : > { %v6492_v16 = vadd.f32 %v6491_v21, %v6443_v14  ;;  %7740 = vmatpush.bf16.msrb.mxu1 %v10293_v11  ;;  %v10540_v14 = vld [vmem:[#allocation2 + $0x130] sm:$0xff]  ;;  %v13354_v11 = vld [vmem:[#allocation49_spill] sm:$0xff] }
 0x609   : > { %7097 = vmatmul.bf16.gmra.mxu1 %v6680_v34  ;;  %v6687_v19 = vpack.c.bf16 %v12635_v6, %v10540_v14 }
 0x60a   : > { %v6541_v24 = vadd.f32 %v6540_v43, %v6492_v16  ;;  %v6545_v27 = vpop.f32.mrf.mxu3 }
 0x60c   : > { %v12734_v56 = vpop.f32.mrf.mxu0  ;;  %v12737_v18 = vadd.f32 %v6541_v24, %v12596_v7  ;;  %7146 = vmatmul.bf16.gmra.mxu2 %v13346_v50 }
 0x60e   : > { %v6447_v43 = vpop.f32.mrf.mxu1 }
 0x60f   : > { %7244 = vmatmul.bf16.gmra.mxu0 %v13349_v10  ;;  %v6494_v39 = vpop.f32.mrf.mxu2  ;;  %v6448_v7 = vadd.f32 %v6447_v43, %v12608_v33  ;;  %7200 = vmatmul.bf16.gmra.mxu3 %v6687_v19  ;;  %v13353_v10 = vld [vmem:[#allocation50_spill] sm:$0xff]  ;;  %v6692_v19 = vpack.c.bf16 %v12639_v63, %v12629_v41 }
 0x610   : > { %v6495_v25 = vadd.f32 %v6494_v39, %v6446_v35  ;;  %v10541_v35 = vld [vmem:[#allocation2 + $0x120] sm:$0xff]  ;;  %v13355_v39 = vpack.c.bf16 %v13353_v10, %v13354_v11  ;;  %v6637_v10 = vld [vmem:[#allocation2 + $0x270] sm:$0xff] }
 0x611   : > { %v6685_v50 = vpack.c.bf16 %v10542_v12, %v10541_v35 }
 0x612   : > { %v6544_v21 = vadd.f32 %v6543_v36, %v6495_v25  ;;  %v6548_v32 = vpop.f32.mrf.mxu3  ;;  %v13350_v36 = vld [vmem:[#allocation45_spill] sm:$0xff] }
 0x614   : > { %v12747_v16 = vpop.f32.mrf.mxu0  ;;  %v12750_v9 = vadd.f32 %v6544_v21, %v12605_v37  ;;  %v13352_v37 = vpack.c.bf16 %v13350_v36, %v13351_v0 }
 0x616   : > { %v6450_v24 = vpop.f32.mrf.mxu1 }
 0x617   : > { %v6496_v47 = vpop.f32.mrf.mxu2  ;;  %v6451_v30 = vadd.f32 %v6450_v24, %v12613_v31  ;;  %v10292_v31 = vld [vmem:[#allocation8 + $0x518] sm:$0xff] }
 0x618   : > { %v6497_v34 = vadd.f32 %v6496_v47, %v6448_v7  ;;  %7741 = vmatpush.bf16.msrb.mxu1 %v10292_v31 }
 0x619   : > { %7102 = vmatmul.bf16.gmra.mxu1 %v6685_v50 }
 0x61a   : > { %v6546_v20 = vadd.f32 %v6545_v27, %v6497_v34  ;;  %v6550_v25 = vpop.f32.mrf.mxu3 }
 0x61c   : > { %v12753_v6 = vpop.f32.mrf.mxu0  ;;  %v12756_v33 = vadd.f32 %v6546_v20, %v12610_v58  ;;  %7151 = vmatmul.bf16.gmra.mxu2 %v13352_v37 }
 0x61e   : > { %v6452_v27 = vpop.f32.mrf.mxu1 }
 0x61f   : > { %7249 = vmatmul.bf16.gmra.mxu0 %v13355_v39  ;;  %v6499_v43 = vpop.f32.mrf.mxu2  ;;  %v6453_v58 = vadd.f32 %v6452_v27, %v12625_v55  ;;  %7205 = vmatmul.bf16.gmra.mxu3 %v6692_v19  ;;  %v6691_v55 = vpack.c.bf16 %v12639_v63, %v12627_v54  ;;  %v10312_v19 = vld [vmem:[#allocation8 + $0x5b8] sm:$0xff] }
 0x620   : > { %v6500_v14 = vadd.f32 %v6499_v43, %v6451_v30  ;;  %v10543_v30 = vld [vmem:[#allocation2 + $0x170] sm:$0xff]  ;;  %7835 = vmatpush.bf16.msra.mxu3 %v10312_v19 }
 0x621   : > { %v6690_v20 = vpack.c.bf16 %v12639_v63, %v10543_v30 }
 0x622   : > { %v6549_v7 = vadd.f32 %v6548_v32, %v6500_v14  ;;  %v6553_v34 = vpop.f32.mrf.mxu3 }
 0x624   : > { %v12767_v21 = vpop.f32.mrf.mxu0  ;;  %v12770_v47 = vadd.f32 %v6549_v7, %v12621_v15  ;;  %v6693_v15 = vpack.c.bf16 %v12639_v63, %v12619_v22 }
 0x626   : > { %v6455_v12 = vpop.f32.mrf.mxu1 }
 0x627   : > { %v6501_v24 = vpop.f32.mrf.mxu2  ;;  %v6456_v50 = vadd.f32 %v6455_v12, %v12643_v28  ;;  %v10291_v28 = vld [vmem:[#allocation8 + $0x510] sm:$0xff]  ;;  %v10545_v12 = vld [vmem:[#allocation2 + $0x288] sm:$0xff] }
 0x628   : > { %v6502_v35 = vadd.f32 %v6501_v24, %v6453_v58  ;;  %7742 = vmatpush.bf16.msrb.mxu1 %v10291_v28  ;;  %v6635_v24 = vld [vmem:[#allocation2 + $0x260] sm:$0xff] }
 0x629   : > { %7107 = vmatmul.bf16.gmra.mxu1 %v6690_v20  ;;  %v13360_v28 = vld [vmem:[#allocation57_spill] sm:$0xff] }
 0x62a   : > { %v6551_v36 = vadd.f32 %v6550_v25, %v6502_v35  ;;  %v6555_v0 = vpop.f32.mrf.mxu3  ;;  %v10544_v25 = vld [vmem:[#allocation2 + $0x298] sm:$0xff] }
 0x62b   : > { %v6697_v31 = vpack.c.bf16 %v10544_v25, %v6637_v10  ;;  %v10290_v10 = vld [vmem:[#allocation8 + $0x508] sm:$0xff] }
 0x62c   : > { %v12774_v41 = vpop.f32.mrf.mxu0  ;;  %v12781_v32 = vadd.f32 %v6551_v36, %v12631_v60  ;;  %7156 = vmatmul.bf16.gmra.mxu2 %v6691_v55  ;;  %v13357_v36 = vld [vmem:[#allocation53_spill] sm:$0xff]  ;;  %7743 = vmatpush.bf16.msrb.mxu1 %v10290_v10  ;;  %v10310_v25 = vld [vmem:[#allocation8 + $0x5a8] sm:$0xff] }
 0x62e   : > { %v6457_v39 = vpop.f32.mrf.mxu1 }
 0x62f   : > { %7254 = vmatmul.bf16.gmra.mxu0 %v6693_v15  ;;  %v6504_v37 = vpop.f32.mrf.mxu2  ;;  %v6458_v54 = vadd.f32 %v6457_v39, %v12648_v1  ;;  %7210 = vmatmul.bf16.gmra.mxu3 %v6697_v31  ;;  %v13359_v15 = vld [vmem:[#allocation58_spill] sm:$0xff]  ;;  %v10320_v39 = vld [vmem:[#allocation8 + $0x5f8] sm:$0xff] }
 0x630   : > { %v6505_v11 = vadd.f32 %v6504_v37, %v6456_v50  ;;  %v6695_v50 = vpack.c.bf16 %v10545_v12, %v6635_v24  ;;  %v13361_v37 = vpack.c.bf16 %v13359_v15, %v13360_v28  ;;  %7884 = vmatpush.bf16.msra.mxu0 %v10320_v39  ;;  %v10309_v24 = vld [vmem:[#allocation8 + $0x5a0] sm:$0xff]  ;;  %v10548_v28 = vld [vmem:[#allocation2 + $0x2b0] sm:$0xff] }
 0x631   : > { %v10307_v39 = vld [vmem:[#allocation8 + $0x590] sm:$0xff] }
 0x632   : > { %v6554_v43 = vadd.f32 %v6553_v34, %v6505_v11  ;;  %v6558_v60 = vpop.f32.mrf.mxu3  ;;  %v10311_v34 = vld [vmem:[#allocation8 + $0x5b0] sm:$0xff]  ;;  %v10304_v11 = vld [vmem:[#allocation8 + $0x578] sm:$0xff] }
 0x633   : > { %7836 = vmatpush.bf16.msra.mxu3 %v10311_v34  ;;  %7786 = vmatpush.bf16.msra.mxu2 %v10304_v11 }
 0x634   : > { %v12784_v14 = vpop.f32.mrf.mxu0  ;;  %v12787_v22 = vadd.f32 %v6554_v43, %v12645_v8  ;;  %v13356_v8 = vld [vmem:[#allocation55_spill] sm:$0xff]  ;;  %v10547_v43 = vld [vmem:[#allocation2 + $0x2e8] sm:$0xff] }
 0x635   : > { %v13358_v55 = vpack.c.bf16 %v13356_v8, %v13357_v36  ;;  %v10318_v8 = vld [vmem:[#allocation8 + $0x5e8] sm:$0xff] }
 0x636   : > { %v6460_v7 = vpop.f32.mrf.mxu1 }
 0x637   : > { %v6506_v27 = vpop.f32.mrf.mxu2  ;;  %v6461_v35 = vadd.f32 %v6460_v7, %v12653_v26  ;;  %7837 = vmatpush.bf16.msra.mxu3 %v10310_v25  ;;  %v13362_v25 = vld [vmem:[#allocation62_spill] sm:$0xff] }
 0x638   : > { %v6507_v58 = vadd.f32 %v6506_v27, %v6458_v54  ;;  %v10546_v54 = vld [vmem:[#allocation2 + $0x2c0] sm:$0xff] }
 0x639   : > { %7112 = vmatmul.bf16.gmra.mxu1 %v6695_v50  ;;  %v6702_v27 = vpack.c.bf16 %v10547_v43, %v10546_v54  ;;  %v10303_v50 = vld [vmem:[#allocation8 + $0x570] sm:$0xff]  ;;  %v10301_v54 = vld [vmem:[#allocation8 + $0x560] sm:$0xff] }
 0x63a   : > { %v6556_v30 = vadd.f32 %v6555_v0, %v6507_v58  ;;  %v6560_v26 = vpop.f32.mrf.mxu3  ;;  %7787 = vmatpush.bf16.msra.mxu2 %v10303_v50  ;;  %v13365_v43 = vld [vmem:[#allocation67_spill] sm:$0xff] }
 0x63b   : > { %7838 = vmatpush.bf16.msra.mxu3 %v10309_v24  ;;  %v10300_v24 = vld [vmem:[#allocation8 + $0x558] sm:$0xff] }
 0x63c   : > { %v12790_v1 = vpop.f32.mrf.mxu0  ;;  %v12793_v20 = vadd.f32 %v6556_v30, %v12650_v61  ;;  %7161 = vmatmul.bf16.gmra.mxu2 %v13358_v55  ;;  %v10319_v30 = vld [vmem:[#allocation8 + $0x5f0] sm:$0xff]  ;;  %v10308_v55 = vld [vmem:[#allocation8 + $0x598] sm:$0xff] }
 0x63d   : > { %7885 = vmatpush.bf16.msra.mxu0 %v10319_v30  ;;  %v10306_v30 = vld [vmem:[#allocation8 + $0x588] sm:$0xff] }
 0x63e   : > { %v6462_v61 = vpop.f32.mrf.mxu1 }
 0x63f   : > { %7259 = vmatmul.bf16.gmra.mxu0 %v13361_v37  ;;  %v6509_v0 = vpop.f32.mrf.mxu2  ;;  %v6463_v19 = vadd.f32 %v6462_v61, %v12662_v3  ;;  %7215 = vmatmul.bf16.gmra.mxu3 %v6702_v27  ;;  %v10549_v37 = vld [vmem:[#allocation2 + $0x2d8] sm:$0xff]  ;;  %v13366_v27 = vld [vmem:[#allocation66_spill] sm:$0xff] }
 0x640   : > { %v6510_v31 = vadd.f32 %v6509_v0, %v6461_v35  ;;  %v10302_v35 = vld [vmem:[#allocation8 + $0x568] sm:$0xff]  ;;  %v6700_v10 = vpack.c.bf16 %v10549_v37, %v10548_v28  ;;  %7839 = vmatpush.bf16.msra.mxu3 %v10308_v55  ;;  %v10305_v37 = vld [vmem:[#allocation8 + $0x580] sm:$0xff] }
 0x641   : > { %7788 = vmatpush.bf16.msra.mxu2 %v10302_v35  ;;  %7886 = vmatpush.bf16.msra.mxu0 %v10318_v8 }
 0x642   : > { %v6559_v58 = vadd.f32 %v6558_v60, %v6510_v31  ;;  %v6563_v34 = vpop.f32.mrf.mxu3  ;;  %v13363_v31 = vld [vmem:[#allocation61_spill] sm:$0xff] }
 0x643   : > { %v13364_v61 = vpack.c.bf16 %v13362_v25, %v13363_v31  ;;  %v10298_v25 = vld [vmem:[#allocation8 + $0x548] sm:$0xff] }
 0x644   : > { %v12802_v7 = vpop.f32.mrf.mxu0  ;;  %v12805_v12 = vadd.f32 %v6559_v58, %v12659_v49  ;;  %v10289_v58 = vld [vmem:[#allocation8 + $0x500] sm:$0xff]  ;;  %7840 = vmatpush.bf16.msra.mxu3 %v10307_v39  ;;  %v10315_v39 = vld [vmem:[#allocation8 + $0x5d0] sm:$0xff] }
 0x645   : > { %7789 = vmatpush.bf16.msra.mxu2 %v10301_v54  ;;  %7744 = vmatpush.bf16.msrb.mxu1 %v10289_v58  ;;  %v10551_v54 = vld [vmem:[#allocation2 + $0x300] sm:$0xff]  ;;  %v13368_v58 = vld [vmem:[#allocation72_spill] sm:$0xff] }
 0x646   : > { %v6465_v15 = vpop.f32.mrf.mxu1 }
 0x647   : > { %v6511_v36 = vpop.f32.mrf.mxu2  ;;  %v6466_v60 = vadd.f32 %v6465_v15, %v12667_v40  ;;  %v10317_v40 = vld [vmem:[#allocation8 + $0x5e0] sm:$0xff] }
 0x648   : > { %v6512_v3 = vadd.f32 %v6511_v36, %v6463_v19  ;;  %v13367_v19 = vpack.c.bf16 %v13365_v43, %v13366_v27  ;;  %7887 = vmatpush.bf16.msra.mxu0 %v10317_v40  ;;  %v10550_v36 = vld [vmem:[#allocation2 + $0x310] sm:$0xff]  ;;  %7841 = vmatpush.bf16.msra.mxu3 %v10306_v30  ;;  %v10552_v40 = vld [vmem:[#allocation2 + $0x328] sm:$0xff]  ;;  %v10313_v30 = vld [vmem:[#allocation8 + $0x5c0] sm:$0xff] }
 0x649   : > { %7117 = vmatmul.bf16.gmra.mxu1 %v6700_v10  ;;  %v6707_v55 = vpack.c.bf16 %v12703_v13, %v10550_v36  ;;  %7790 = vmatpush.bf16.msra.mxu2 %v10300_v24  ;;  %v6705_v43 = vpack.c.bf16 %v10552_v40, %v10551_v54  ;;  %v13369_v24 = vld [vmem:[#allocation73_spill] sm:$0xff] }
 0x64a   : > { %v6561_v49 = vadd.f32 %v6560_v26, %v6512_v3  ;;  %v6565_v26 = vpop.f32.mrf.mxu3 }
 0x64c   : > { %v12808_v11 = vpop.f32.mrf.mxu0  ;;  %v12811_v0 = vadd.f32 %v6561_v49, %v12664_v53  ;;  %7166 = vmatmul.bf16.gmra.mxu2 %v13364_v61  ;;  %v10316_v53 = vld [vmem:[#allocation8 + $0x5d8] sm:$0xff]  ;;  %v10299_v49 = vld [vmem:[#allocation8 + $0x550] sm:$0xff]  ;;  %7842 = vmatpush.bf16.msra.mxu3 %v10305_v37 }
 0x64d   : > { %7888 = vmatpush.bf16.msra.mxu0 %v10316_v53  ;;  %7791 = vmatpush.bf16.msra.mxu2 %v10299_v49  ;;  %v10297_v53 = vld [vmem:[#allocation8 + $0x540] sm:$0xff] }
 0x64e   : > { %v6467_v8 = vpop.f32.mrf.mxu1 }
 0x64f   : > { %7264 = vmatmul.bf16.gmra.mxu0 %v13367_v19  ;;  %v6514_v50 = vpop.f32.mrf.mxu2  ;;  %v6468_v3 = vadd.f32 %v6467_v8, %v12676_v4  ;;  %7220 = vmatmul.bf16.gmra.mxu3 %v6707_v55  ;;  %v10314_v4 = vld [vmem:[#allocation8 + $0x5c8] sm:$0xff] }
 0x650   : > { %v6515_v35 = vadd.f32 %v6514_v50, %v6466_v60  ;;  %v13370_v50 = vpack.c.bf16 %v13368_v58, %v13369_v24  ;;  %v10327_v58 = vld [vmem:[#allocation8 + $0x630] sm:$0xff] }
 0x651   : > { %7889 = vmatpush.bf16.msra.mxu0 %v10315_v39  ;;  %7792 = vmatpush.bf16.msra.mxu2 %v10298_v25 }
 0x652   : > { %v6564_v15 = vadd.f32 %v6563_v34, %v6515_v35  ;;  %v6568_v60 = vpop.f32.mrf.mxu3  ;;  %v13371_v35 = vld [vmem:[#allocation75_spill] sm:$0xff] }
 0x654   : > { %v12821_v28 = vpop.f32.mrf.mxu0  ;;  %v12824_v10 = vadd.f32 %v6564_v15, %v12673_v45 }
 0x655   : > { %7890 = vmatpush.bf16.msra.mxu0 %v10314_v4  ;;  %7793 = vmatpush.bf16.msra.mxu2 %v10297_v53 }
 0x656   : > { %v6470_v34 = vpop.f32.mrf.mxu1 }
 0x657   : > { %v6516_v13 = vpop.f32.mrf.mxu2  ;;  %v6471_v61 = vadd.f32 %v6470_v34, %v12681_v42  ;;  %v13372_v42 = vld [vmem:[#allocation74_spill] sm:$0xff] }
 0x658   : > { %v6517_v31 = vadd.f32 %v6516_v13, %v6468_v3  ;;  %v13373_v8 = vpack.c.bf16 %v13371_v35, %v13372_v42 }
 0x659   : > { %7122 = vmatmul.bf16.gmra.mxu1 %v6705_v43  ;;  %7891 = vmatpush.bf16.msra.mxu0 %v10313_v30 }
 0x65a   : > { %v6566_v27 = vadd.f32 %v6565_v26, %v6517_v31  ;;  %v6570_v36 = vpop.f32.mrf.mxu3  ;;  %v10328_v26 = vld [vmem:[#allocation8 + $0x638] sm:$0xff] }
 0x65b   : > { %7933 = vmatpush.bf16.msra.mxu1 %v10328_v26 }
 0x65c   : > { %v12827_v19 = vpop.f32.mrf.mxu0  ;;  %v12830_v45 = vadd.f32 %v6566_v27, %v12678_v17  ;;  %7171 = vmatmul.bf16.gmra.mxu2 %v13370_v50  ;;  %v6712_v17 = vpack.c.bf16 %v12639_v63, %v12697_v51  ;;  %v7298_v50 = vld [vmem:[#allocation2 + $0xb0] sm:$0xff] }
 0x65e   : > { %v6472_v15 = vpop.f32.mrf.mxu1 }
 0x65f   : > { %7269 = vmatmul.bf16.gmra.mxu0 %v13373_v8  ;;  %v6519_v55 = vpop.f32.mrf.mxu2  ;;  %v6473_v37 = vadd.f32 %v6472_v15, %v12693_v59  ;;  %7225 = vmatmul.bf16.gmra.mxu3 %v6712_v17  ;;  %v6711_v59 = vpack.c.bf16 %v12639_v63, %v12695_v38  ;;  %v7296_v15 = vld [vmem:[#allocation2 + $0xa0] sm:$0xff] }
 0x660   : > { %v6520_v3 = vadd.f32 %v6519_v55, %v6471_v61  ;;  %v10553_v61 = vld [vmem:[#allocation2 + $0x350] sm:$0xff]  ;;  %7934 = vmatpush.bf16.msra.mxu1 %v10327_v58 }
 0x661   : > { %v6710_v40 = vpack.c.bf16 %v12639_v63, %v10553_v61 }
 0x662   : > { %v6569_v49 = vadd.f32 %v6568_v60, %v6520_v3  ;;  %v6573_v13 = vpop.f32.mrf.mxu3 }
 0x664   : > { %v12841_v39 = vpop.f32.mrf.mxu0  ;;  %v12844_v25 = vadd.f32 %v6569_v49, %v12689_v52  ;;  %v6713_v52 = vpack.c.bf16 %v12639_v63, %v12687_v2 }
 0x666   : > { %v6475_v34 = vpop.f32.mrf.mxu1 }
 0x667   : > { %v6521_v4 = vpop.f32.mrf.mxu2  ;;  %v6476_v54 = vadd.f32 %v6475_v34, %v12709_v5  ;;  %v7303_v5 = vld [vmem:[#allocation2 + $0xd8] sm:$0xff]  ;;  %v13377_v34 = vld [vmem:[#allocation37_spill] sm:$0xff] }
 0x668   : > { %v6522_v31 = vadd.f32 %v6521_v4, %v6473_v37  ;;  %v7378_v35 = vpack.c.bf16 %v7303_v5, %v7298_v50 }
 0x669   : > { %7127 = vmatmul.bf16.gmra.mxu1 %v6710_v40  ;;  %v7313_v40 = vld [vmem:[#allocation2 + $0x128] sm:$0xff] }
 0x66a   : > { %v6571_v43 = vadd.f32 %v6570_v36, %v6522_v31  ;;  %v6575_v27 = vpop.f32.mrf.mxu3  ;;  %v7301_v36 = vld [vmem:[#allocation2 + $0xc8] sm:$0xff] }
 0x66b   : > { %v7376_v17 = vpack.c.bf16 %v7301_v36, %v7296_v15 }
 0x66c   : > { %v12848_v51 = vpop.f32.mrf.mxu0  ;;  %v12855_v60 = vadd.f32 %v6571_v43, %v12699_v57  ;;  %7176 = vmatmul.bf16.gmra.mxu2 %v6711_v59  ;;  %v10326_v43 = vld [vmem:[#allocation8 + $0x628] sm:$0xff] }
 0x66d   : > { %7935 = vmatpush.bf16.msra.mxu1 %v10326_v43  ;;  %v7318_v43 = vld [vmem:[#allocation2 + $0x150] sm:$0xff] }
 0x66e   : > { %v6477_v30 = vpop.f32.mrf.mxu1 }
 0x66f   : > { %7274 = vmatmul.bf16.gmra.mxu0 %v6713_v52  ;;  %v6524_v24 = vpop.f32.mrf.mxu2  ;;  %v6478_v38 = vadd.f32 %v6477_v30, %v12714_v23  ;;  %7843 = vmatmul.bf16.vlgmr.msra.gmra.mxu3 %v7378_v35  ;;  %v13374_v23 = vld [vmem:[#allocation32_spill] sm:$0xff] }
 0x670   : > { %v6525_v53 = vadd.f32 %v6524_v24, %v6476_v54 }
 0x672   : > { %v6574_v42 = vadd.f32 %v6573_v13, %v6525_v53  ;;  %v7191_v57 = vpop.f32.mrf.mxu3  ;;  %v13375_v13 = vld [vmem:[#allocation33_spill] sm:$0xff] }
 0x673   : > { %v13376_v31 = vpack.c.bf16 %v13374_v23, %v13375_v13  ;;  %v13381_v23 = vld [vmem:[#allocation43_spill] sm:$0xff] }
 0x674   : > { %v12858_v8 = vpop.f32.mrf.mxu0  ;;  %v12861_v2 = vadd.f32 %v6574_v42, %v12711_v48  ;;  %v13378_v48 = vld [vmem:[#allocation31_spill] sm:$0xff] }
 0x675   : > { %v13379_v54 = vpack.c.bf16 %v13377_v34, %v13378_v48  ;;  %v10325_v48 = vld [vmem:[#allocation8 + $0x620] sm:$0xff] }
 0x676   : > { %v7093_v3 = vpop.f32.mrf.mxu1  ;;  %7936 = vmatpush.bf16.msra.mxu1 %v10325_v48 }
 0x677   : > { %v6526_v26 = vpop.f32.mrf.mxu2  ;;  %v7094_v59 = vadd.f32 %v7093_v3, %v12719_v46 }
 0x678   : > { %v6527_v55 = vadd.f32 %v6526_v26, %v6478_v38  ;;  %v7311_v38 = vld [vmem:[#allocation2 + $0x118] sm:$0xff] }
 0x679   : > { %7745 = vmatmul.bf16.vlgmr.msrb.gmra.mxu1 %v7376_v17 }
 0x67a   : > { %v6576_v37 = vadd.f32 %v6575_v27, %v6527_v55  ;;  %v7193_v61 = vpop.f32.mrf.mxu3  ;;  %v7308_v27 = vld [vmem:[#allocation2 + $0x100] sm:$0xff]  ;;  %v7306_v55 = vld [vmem:[#allocation2 + $0xf0] sm:$0xff] }
 0x67b   : > { %v7381_v3 = vpack.c.bf16 %v7311_v38, %v7306_v55 }
 0x67c   : > { %v7240_v49 = vpop.f32.mrf.mxu0  ;;  %v12864_v4 = vadd.f32 %v6576_v37, %v12716_v44  ;;  %7794 = vmatmul.bf16.vlgmr.msra.gmra.mxu2 %v13376_v31  ;;  %v7383_v44 = vpack.c.bf16 %v7313_v40, %v7308_v27  ;;  %v13384_v31 = vld [vmem:[#allocation42_spill] sm:$0xff] }
 0x67e   : > { %v7095_v58 = vpop.f32.mrf.mxu1 }
 0x67f   : > { %7892 = vmatmul.bf16.vlgmr.msra.gmra.mxu0 %v13379_v54  ;;  %v7142_v52 = vpop.f32.mrf.mxu2  ;;  %7848 = vmatmul.bf16.gmra.mxu3 %v7383_v44  ;;  %v7096_v35 = vadd.f32 %v7095_v58, %v12728_v62 }
 0x680   : > { %v7143_v5 = vadd.f32 %v7142_v52, %v7094_v59 }
 0x682   : > { %v7192_v24 = vadd.f32 %v7191_v57, %v7143_v5  ;;  %v7196_v30 = vpop.f32.mrf.mxu3  ;;  %v13380_v57 = vld [vmem:[#allocation44_spill] sm:$0xff] }
 0x683   : > { %v13382_v13 = vpack.c.bf16 %v13380_v57, %v13381_v23  ;;  %v13387_v57 = vld [vmem:[#allocation52_spill] sm:$0xff] }
 0x684   : > { %v7242_v50 = vpop.f32.mrf.mxu0  ;;  %v7241_v53 = vadd.f32 %v7240_v49, %v7192_v24  ;;  %v13383_v49 = vld [vmem:[#allocation41_spill] sm:$0xff] }
 0x685   : > { %v13385_v62 = vpack.c.bf16 %v13383_v49, %v13384_v31  ;;  %v12897_v49 = vpack.c.bf16 %v12639_v63, %v12639_v63 }
 0x686   : > { %v12875_v42 = vadd.f32 %v7241_v53, %v12731_v29  ;;  %v7098_v46 = vpop.f32.mrf.mxu1  ;;  %v7323_v29 = vld [vmem:[#allocation2 + $0x178] sm:$0xff]  ;;  %v7321_v53 = vld [vmem:[#allocation2 + $0x168] sm:$0xff] }
 0x687   : > { %v7144_v36 = vpop.f32.mrf.mxu2  ;;  %v7099_v54 = vadd.f32 %v7098_v46, %v12734_v56  ;;  %v7388_v27 = vpack.c.bf16 %v7323_v29, %v7318_v43 }
 0x688   : > { %v7145_v26 = vadd.f32 %v7144_v36, %v7096_v35  ;;  %v7316_v36 = vld [vmem:[#allocation2 + $0x140] sm:$0xff] }
 0x689   : > { %7750 = vmatmul.bf16.gmra.mxu1 %v7381_v3  ;;  %v7386_v46 = vpack.c.bf16 %v7321_v53, %v7316_v36 }
 0x68a   : > { %v7194_v15 = vadd.f32 %v7193_v61, %v7145_v26  ;;  %v7198_v34 = vpop.f32.mrf.mxu3  ;;  %v7324_v26 = vld [vmem:[#allocation2 + $0x180] sm:$0xff] }
 0x68c   : > { %v7245_v17 = vpop.f32.mrf.mxu0  ;;  %v7243_v37 = vadd.f32 %v7242_v50, %v7194_v15  ;;  %7799 = vmatmul.bf16.gmra.mxu2 %v13382_v13  ;;  %v7319_v15 = vld [vmem:[#allocation2 + $0x158] sm:$0xff] }
 0x68e   : > { %v12885_v40 = vadd.f32 %v7243_v37, %v12737_v18  ;;  %v7100_v52 = vpop.f32.mrf.mxu1 }
 0x68f   : > { %7897 = vmatmul.bf16.gmra.mxu0 %v13385_v62  ;;  %v7147_v61 = vpop.f32.mrf.mxu2  ;;  %7853 = vmatmul.bf16.gmra.mxu3 %v7388_v27  ;;  %v7101_v50 = vadd.f32 %v7100_v52, %v12747_v16 }
 0x690   : > { %v7148_v59 = vadd.f32 %v7147_v61, %v7099_v54 }
 0x692   : > { %v7197_v5 = vadd.f32 %v7196_v30, %v7148_v59  ;;  %v7201_v24 = vpop.f32.mrf.mxu3  ;;  %v7389_v30 = vpack.c.bf16 %v7324_v26, %v7319_v15 }
 0x694   : > { %v7247_v58 = vpop.f32.mrf.mxu0  ;;  %v7246_v44 = vadd.f32 %v7245_v17, %v7197_v5  ;;  %v13386_v17 = vld [vmem:[#allocation51_spill] sm:$0xff] }
 0x695   : > { %v13388_v23 = vpack.c.bf16 %v13386_v17, %v13387_v57  ;;  %v7336_v57 = vld [vmem:[#allocation2 + $0x280] sm:$0xff] }
 0x696   : > { %v12889_v35 = vadd.f32 %v7246_v44, %v12750_v9  ;;  %v7103_v38 = vpop.f32.mrf.mxu1  ;;  %v10324_v9 = vld [vmem:[#allocation8 + $0x618] sm:$0xff] }
 0x697   : > { %v7149_v56 = vpop.f32.mrf.mxu2  ;;  %v7104_v13 = vadd.f32 %v7103_v38, %v12753_v6  ;;  %7937 = vmatpush.bf16.msra.mxu1 %v10324_v9 }
 0x698   : > { %v7150_v18 = vadd.f32 %v7149_v56, %v7101_v50  ;;  %v10323_v50 = vld [vmem:[#allocation8 + $0x610] sm:$0xff] }
 0x699   : > { %7755 = vmatmul.bf16.gmra.mxu1 %v7386_v46  ;;  %v7338_v56 = vld [vmem:[#allocation2 + $0x290] sm:$0xff] }
 0x69a   : > { %v7199_v55 = vadd.f32 %v7198_v34, %v7150_v18  ;;  %v7203_v16 = vpop.f32.mrf.mxu3 }
 0x69b   : > { %7938 = vmatpush.bf16.msra.mxu1 %v10323_v50 }
 0x69c   : > { %v7250_v3 = vpop.f32.mrf.mxu0  ;;  %v7248_v37 = vadd.f32 %v7247_v58, %v7199_v55  ;;  %7804 = vmatmul.bf16.gmra.mxu2 %v13388_v23 }
 0x69e   : > { %v12900_v31 = vadd.f32 %v7248_v37, %v12756_v33  ;;  %v7105_v29 = vpop.f32.mrf.mxu1 }
 0x69f   : > { %7902 = vmatmul.bf16.gmra.mxu0 %v7389_v30  ;;  %v7152_v62 = vpop.f32.mrf.mxu2  ;;  %7858 = vmatmul.bf16.gmra.mxu3 %v12897_v49  ;;  %v7106_v59 = vadd.f32 %v7105_v29, %v12767_v21  ;;  %v7341_v30 = vld [vmem:[#allocation2 + $0x2a8] sm:$0xff] }
 0x6a0   : > { %v7153_v34 = vadd.f32 %v7152_v62, %v7104_v13  ;;  %v7396_v23 = vpack.c.bf16 %v7341_v30, %v7336_v57  ;;  %v13389_v62 = vld [vmem:[#allocation60_spill] sm:$0xff]  ;;  %v13396_v30 = vld [vmem:[#allocation70_spill] sm:$0xff] }
 0x6a2   : > { %v7202_v48 = vadd.f32 %v7201_v24, %v7153_v34  ;;  %v7206_v43 = vpop.f32.mrf.mxu3  ;;  %v7343_v24 = vld [vmem:[#allocation2 + $0x2b8] sm:$0xff] }
 0x6a3   : > { %v7398_v36 = vpack.c.bf16 %v7343_v24, %v7338_v56  ;;  %v13390_v34 = vld [vmem:[#allocation64_spill] sm:$0xff] }
 0x6a4   : > { %v7252_v54 = vpop.f32.mrf.mxu0  ;;  %v7251_v61 = vadd.f32 %v7250_v3, %v7202_v48  ;;  %v13391_v29 = vpack.c.bf16 %v13389_v62, %v13390_v34  ;;  %v13392_v48 = vld [vmem:[#allocation59_spill] sm:$0xff] }
 0x6a6   : > { %v12905_v6 = vadd.f32 %v7251_v61, %v12770_v47  ;;  %v7108_v27 = vpop.f32.mrf.mxu1 }
 0x6a7   : > { %v7154_v63 = vpop.f32.mrf.mxu2  ;;  %v7109_v21 = vadd.f32 %v7108_v27, %v12774_v41  ;;  %v7348_v27 = vld [vmem:[#allocation2 + $0x2e0] sm:$0xff] }
 0x6a8   : > { %v7155_v52 = vadd.f32 %v7154_v63, %v7106_v59 }
 0x6a9   : > { %7760 = vmatmul.bf16.gmra.mxu1 %v12897_v49 }
 0x6aa   : > { %v7204_v33 = vadd.f32 %v7203_v16, %v7155_v52  ;;  %v7208_v44 = vpop.f32.mrf.mxu3 }
 0x6ac   : > { %v7255_v5 = vpop.f32.mrf.mxu0  ;;  %v7253_v58 = vadd.f32 %v7252_v54, %v7204_v33  ;;  %7809 = vmatmul.bf16.gmra.mxu2 %v12897_v49  ;;  %v13393_v54 = vld [vmem:[#allocation63_spill] sm:$0xff] }
 0x6ae   : > { %v12912_v47 = vadd.f32 %v7253_v58, %v12781_v32  ;;  %v7110_v38 = vpop.f32.mrf.mxu1 }
 0x6af   : > { %7907 = vmatmul.bf16.gmra.mxu0 %v12897_v49  ;;  %v7157_v53 = vpop.f32.mrf.mxu2  ;;  %7863 = vmatmul.bf16.gmra.mxu3 %v7398_v36  ;;  %v7111_v15 = vadd.f32 %v7110_v38, %v12784_v14  ;;  %v13394_v14 = vpack.c.bf16 %v13392_v48, %v13393_v54  ;;  %v7346_v36 = vld [vmem:[#allocation2 + $0x2d0] sm:$0xff] }
 0x6b0   : > { %v7158_v18 = vadd.f32 %v7157_v53, %v7109_v21  ;;  %v7351_v53 = vld [vmem:[#allocation2 + $0x2f8] sm:$0xff] }
 0x6b2   : > { %v7207_v26 = vadd.f32 %v7206_v43, %v7158_v18  ;;  %v7211_v3 = vpop.f32.mrf.mxu3  ;;  %v10322_v43 = vld [vmem:[#allocation8 + $0x608] sm:$0xff] }
 0x6b3   : > { %7939 = vmatpush.bf16.msra.mxu1 %v10322_v43  ;;  %v7361_v43 = vld [vmem:[#allocation2 + $0x348] sm:$0xff] }
 0x6b4   : > { %v7257_v46 = vpop.f32.mrf.mxu0  ;;  %v7256_v55 = vadd.f32 %v7255_v5, %v7207_v26  ;;  %v7401_v26 = vpack.c.bf16 %v7351_v53, %v7346_v36  ;;  %v13401_v53 = vld [vmem:[#allocation77_spill] sm:$0xff] }
 0x6b6   : > { %v12916_v37 = vadd.f32 %v7256_v55, %v12787_v22  ;;  %v7113_v17 = vpop.f32.mrf.mxu1  ;;  %v7353_v22 = vld [vmem:[#allocation2 + $0x308] sm:$0xff] }
 0x6b7   : > { %v7159_v41 = vpop.f32.mrf.mxu2  ;;  %v7114_v59 = vadd.f32 %v7113_v17, %v12790_v1  ;;  %v7403_v58 = vpack.c.bf16 %v7353_v22, %v7348_v27  ;;  %v13399_v17 = vld [vmem:[#allocation68_spill] sm:$0xff]  ;;  %v7356_v27 = vld [vmem:[#allocation2 + $0x320] sm:$0xff] }
 0x6b8   : > { %v7160_v32 = vadd.f32 %v7159_v41, %v7111_v15 }
 0x6b9   : > { %7765 = vmatmul.bf16.gmra.mxu1 %v7396_v23 }
 0x6ba   : > { %v7209_v16 = vadd.f32 %v7208_v44, %v7160_v32  ;;  %v7213_v61 = vpop.f32.mrf.mxu3  ;;  %v10321_v32 = vld [vmem:[#allocation8 + $0x600] sm:$0xff] }
 0x6bb   : > { %7940 = vmatpush.bf16.msra.mxu1 %v10321_v32 }
 0x6bc   : > { %v7260_v9 = vpop.f32.mrf.mxu0  ;;  %v7258_v13 = vadd.f32 %v7257_v46, %v7209_v16  ;;  %7814 = vmatmul.bf16.gmra.mxu2 %v13391_v29 }
 0x6be   : > { %v12926_v63 = vadd.f32 %v7258_v13, %v12793_v20  ;;  %v7115_v5 = vpop.f32.mrf.mxu1  ;;  %v7358_v13 = vld [vmem:[#allocation2 + $0x330] sm:$0xff] }
 0x6bf   : > { %7912 = vmatmul.bf16.gmra.mxu0 %v13394_v14  ;;  %v7162_v52 = vpop.f32.mrf.mxu2  ;;  %7868 = vmatmul.bf16.gmra.mxu3 %v7403_v58  ;;  %v7116_v21 = vadd.f32 %v7115_v5, %v12802_v7  ;;  %v13398_v7 = vld [vmem:[#allocation69_spill] sm:$0xff]  ;;  %v7406_v5 = vpack.c.bf16 %v7361_v43, %v7356_v27 }
 0x6c0   : > { %v7163_v33 = vadd.f32 %v7162_v52, %v7114_v59  ;;  %v13400_v57 = vpack.c.bf16 %v13398_v7, %v13399_v17 }
 0x6c2   : > { %v7212_v44 = vadd.f32 %v7211_v3, %v7163_v33  ;;  %v7216_v18 = vpop.f32.mrf.mxu3  ;;  %v13395_v3 = vld [vmem:[#allocation71_spill] sm:$0xff]  ;;  %v7364_v33 = vld [vmem:[#allocation2 + $0x360] sm:$0xff] }
 0x6c3   : > { %v13397_v41 = vpack.c.bf16 %v13395_v3, %v13396_v30 }
 0x6c4   : > { %v7262_v24 = vpop.f32.mrf.mxu0  ;;  %v7261_v50 = vadd.f32 %v7260_v9, %v7212_v44  ;;  %v7359_v44 = vld [vmem:[#allocation2 + $0x338] sm:$0xff] }
 0x6c6   : > { %v12930_v56 = vadd.f32 %v7261_v50, %v12805_v12  ;;  %v7118_v38 = vpop.f32.mrf.mxu1  ;;  %v7363_v12 = vld [vmem:[#allocation2 + $0x358] sm:$0xff] }
 0x6c7   : > { %v7164_v1 = vpop.f32.mrf.mxu2  ;;  %v7119_v23 = vadd.f32 %v7118_v38, %v12808_v11  ;;  %v7408_v29 = vpack.c.bf16 %v7363_v12, %v7358_v13 }
 0x6c8   : > { %v7165_v20 = vadd.f32 %v7164_v1, %v7116_v21  ;;  %v13402_v1 = vld [vmem:[#allocation76_spill] sm:$0xff] }
 0x6c9   : > { %7770 = vmatmul.bf16.gmra.mxu1 %v7401_v26 }
 0x6ca   : > { %v7214_v46 = vadd.f32 %v7213_v61, %v7165_v20  ;;  %v7218_v48 = vpop.f32.mrf.mxu3 }
 0x6cc   : > { %v7265_v55 = vpop.f32.mrf.mxu0  ;;  %v7263_v15 = vadd.f32 %v7262_v24, %v7214_v46  ;;  %7819 = vmatmul.bf16.gmra.mxu2 %v13397_v41  ;;  %v7409_v24 = vpack.c.bf16 %v7364_v33, %v7359_v44 }
 0x6ce   : > { %v12940_v16 = vadd.f32 %v7263_v15, %v12811_v0  ;;  %v7120_v34 = vpop.f32.mrf.mxu1 }
 0x6cf   : > { %7917 = vmatmul.bf16.gmra.mxu0 %v13400_v57  ;;  %v7167_v9 = vpop.f32.mrf.mxu2  ;;  %7873 = vmatmul.bf16.gmra.mxu3 %v7408_v29  ;;  %v7121_v22 = vadd.f32 %v7120_v34, %v12821_v28 }
 0x6d0   : > { %v7168_v62 = vadd.f32 %v7167_v9, %v7119_v23 }
 0x6d2   : > { %v7217_v54 = vadd.f32 %v7216_v18, %v7168_v62  ;;  %v7221_v50 = vpop.f32.mrf.mxu3  ;;  %v13403_v18 = vpack.c.bf16 %v13401_v53, %v13402_v1 }
 0x6d4   : > { %v7267_v14 = vpop.f32.mrf.mxu0  ;;  %v7266_v61 = vadd.f32 %v7265_v55, %v7217_v54 }
 0x6d6   : > { %v12944_v59 = vadd.f32 %v7266_v61, %v12824_v10  ;;  %v7123_v0 = vpop.f32.mrf.mxu1 }
 0x6d7   : > { %v7169_v11 = vpop.f32.mrf.mxu2  ;;  %v7124_v10 = vadd.f32 %v7123_v0, %v12827_v19 }
 0x6d8   : > { %v7170_v52 = vadd.f32 %v7169_v11, %v7121_v22 }
 0x6d9   : > { %7775 = vmatmul.bf16.gmra.mxu1 %v7406_v5  ;;  %v7315_v5 = vld [vmem:[#allocation2 + $0x138] sm:$0xff] }
 0x6da   : > { %v7219_v58 = vadd.f32 %v7218_v48, %v7170_v52  ;;  %v7223_v15 = vpop.f32.mrf.mxu3  ;;  %v7305_v48 = vld [vmem:[#allocation2 + $0xe8] sm:$0xff] }
 0x6dc   : > { %v7268_v21 = vadd.f32 %v7267_v14, %v7219_v58  ;;  %7824 = vmatmul.bf16.gmra.mxu2 %v13403_v18  ;;  %v7270_v28 = vpop.f32.mrf.mxu0  ;;  %v7310_v58 = vld [vmem:[#allocation2 + $0x110] sm:$0xff] }
 0x6dd   : > { %v7385_v44 = vpack.c.bf16 %v7315_v5, %v7310_v58 }
 0x6de   : > { %v12951_v20 = vadd.f32 %v7268_v21, %v12830_v45  ;;  %v7125_v26 = vpop.f32.mrf.mxu1  ;;  %v7320_v21 = vld [vmem:[#allocation2 + $0x160] sm:$0xff] }
 0x6df   : > { %7922 = vmatmul.bf16.gmra.mxu0 %v7409_v24  ;;  %v7172_v38 = vpop.f32.mrf.mxu2  ;;  %7878 = vmatmul.bf16.gmra.mxu3 %v12897_v49  ;;  %v7126_v3 = vadd.f32 %v7125_v26, %v12841_v39  ;;  %v7325_v24 = vld [vmem:[#allocation2 + $0x188] sm:$0xff] }
 0x6e0   : > { %v7173_v36 = vadd.f32 %v7172_v38, %v7124_v10  ;;  %v7390_v53 = vpack.c.bf16 %v7325_v24, %v7320_v21  ;;  %v7340_v38 = vld [vmem:[#allocation2 + $0x2a0] sm:$0xff] }
 0x6e1   : > { %v13003_v24 = vld [vmem:[%s13146_s5] ss:$0 sm:$0xff] }
 0x6e2   : > { %v7222_v46 = vadd.f32 %v7221_v50, %v7173_v36  ;;  %v7226_v39 = vpop.f32.mrf.mxu3 }
 0x6e4   : > { %v7271_v55 = vadd.f32 %v7270_v28, %v7222_v46  ;;  %v7272_v41 = vpop.f32.mrf.mxu0  ;;  %v7345_v28 = vld [vmem:[#allocation2 + $0x2c8] sm:$0xff]  ;;  %v7355_v46 = vld [vmem:[#allocation2 + $0x318] sm:$0xff] }
 0x6e5   : > { %v7400_v36 = vpack.c.bf16 %v7345_v28, %v7340_v38 }
 0x6e6   : > { %v12956_v30 = vadd.f32 %v7271_v55, %v12844_v25  ;;  %v7128_v19 = vpop.f32.mrf.mxu1 }
 0x6e7   : > { %v7174_v32 = vpop.f32.mrf.mxu2  ;;  %v7129_v57 = vadd.f32 %v7128_v19, %v12848_v51  ;;  %v7300_v51 = vld [vmem:[#allocation2 + $0xc0] sm:$0xff]  ;;  %v7365_v19 = vld [vmem:[#allocation2 + $0x368] sm:$0xff] }
 0x6e8   : > { %v7175_v7 = vadd.f32 %v7174_v32, %v7126_v3 }
 0x6e9   : > { %7780 = vmatmul.bf16.gmra.mxu1 %v12897_v49 }
 0x6ea   : > { %v7224_v17 = vadd.f32 %v7223_v15, %v7175_v7  ;;  %v7228_v43 = vpop.f32.mrf.mxu3  ;;  %v7350_v15 = vld [vmem:[#allocation2 + $0x2f0] sm:$0xff] }
 0x6eb   : > { %v7405_v3 = vpack.c.bf16 %v7355_v46, %v7350_v15 }
 0x6ec   : > { %v7273_v45 = vadd.f32 %v7272_v41, %v7224_v17  ;;  %7829 = vmatmul.bf16.gmra.mxu2 %v12897_v49  ;;  %v7275_v13 = vpop.f32.mrf.mxu0 }
 0x6ee   : > { %v12963_v12 = vadd.f32 %v7273_v45, %v12855_v60  ;;  %v7130_v9 = vpop.f32.mrf.mxu1  ;;  %v7380_v60 = vpack.c.bf16 %v7305_v48, %v7300_v51 }
 0x6ef   : > { %7927 = vmatmul.bf16.gmra.mxu0 %v12897_v49  ;;  %v7177_v25 = vpop.f32.mrf.mxu2  ;;  %v7131_v29 = vadd.f32 %v7130_v9, %v12858_v8 }
 0x6f0   : > { %v7178_v23 = vadd.f32 %v7177_v25, %v7129_v57 }
 0x6f2   : > { %v7227_v62 = vadd.f32 %v7226_v39, %v7178_v23  ;;  %v7844_v7 = vpop.f32.mrf.mxu3  ;;  %v7360_v39 = vld [vmem:[#allocation2 + $0x340] sm:$0xff] }
 0x6f3   : > { %v7410_v25 = vpack.c.bf16 %v7365_v19, %v7360_v39 }
 0x6f4   : > { %v7276_v34 = vadd.f32 %v7275_v13, %v7227_v62  ;;  %v7277_v52 = vpop.f32.mrf.mxu0 }
 0x6f6   : > { %v12967_v54 = vadd.f32 %v7276_v34, %v12861_v2  ;;  %v7746_v22 = vpop.f32.mrf.mxu1 }
 0x6f7   : > { %v7179_v14 = vpop.f32.mrf.mxu2 }
 0x6f8   : > { %v7180_v61 = vadd.f32 %v7179_v14, %v7131_v29 }
 0x6f9   : > { %7941 = vmatmul.bf16.vlgmr.msra.gmra.mxu1 %v7380_v60 }
 0x6fa   : > { %v7229_v11 = vadd.f32 %v7228_v43, %v7180_v61  ;;  %v7846_v23 = vpop.f32.mrf.mxu3 }
 0x6fc   : > { %v7278_v0 = vadd.f32 %v7277_v52, %v7229_v11  ;;  %v7893_v17 = vpop.f32.mrf.mxu0 }
 0x6fe   : > { %v12970_v27 = vadd.f32 %v7278_v0, %v12864_v4  ;;  %v7748_v33 = vpop.f32.mrf.mxu1 }
 0x6ff   : > { %v7795_v41 = vpop.f32.mrf.mxu2 }
 0x700   : > { %v7796_v61 = vadd.f32 %v7795_v41, %v7746_v22  ;;  %v13009_v22 = vld [vmem:[%s13147_s6] ss:$0 sm:$0xff]  ;;  %v13404_v41 = vld [vmem:[#allocation14_spill] sm:$0xff] }
 0x702   : > { %v7849_v34 = vpop.f32.mrf.mxu3  ;;  %v7845_v60 = vadd.f32 %v7844_v7, %v7796_v61 }
 0x704   : > { %v7895_v13 = vpop.f32.mrf.mxu0  ;;  %v7894_v5 = vadd.f32 %v7893_v17, %v7845_v60 }
 0x706   : > { %v7751_v8 = vpop.f32.mrf.mxu1 }
 0x707   : > { %v7797_v45 = vpop.f32.mrf.mxu2 }
 0x708   : > { %v7798_v0 = vadd.f32 %v7797_v45, %v7748_v33 }
 0x709   : > { %7946 = vmatmul.bf16.gmra.mxu1 %v7385_v44 }
 0x70a   : > { %v7851_v43 = vpop.f32.mrf.mxu3  ;;  %v7847_v21 = vadd.f32 %v7846_v23, %v7798_v0  ;;  %v13405_v0 = vld [vmem:[#allocation17_spill] sm:$0xff] }
 0x70c   : > { %v7898_v48 = vpop.f32.mrf.mxu0  ;;  %v7896_v46 = vadd.f32 %v7895_v13, %v7847_v21 }
 0x70e   : > { %v12972_v2 = vpop.f32.mrf.mxu1 }
 0x70f   : > { %v7800_v62 = vpop.f32.mrf.mxu2 }
 0x710   : > { %v7801_v33 = vadd.f32 %v7800_v62, %v7751_v8 }
 0x712   : > { %v7850_v17 = vadd.f32 %v7849_v34, %v7801_v33 }
 0x714   : > { %v7900_v11 = vpop.f32.mrf.mxu0  ;;  %v7899_v62 = vadd.f32 %v7898_v48, %v7850_v17 }
 0x716   : > { %v12974_v50 = vpop.f32.mrf.mxu1 }
 0x717   : > { %v7802_v14 = vpop.f32.mrf.mxu2 }
 0x718   : > { %v7803_v61 = vadd.f32 %v7802_v14, %v12972_v2 }
 0x719   : > { %7951 = vmatmul.bf16.gmra.mxu1 %v7390_v53  ;;  %v7854_v53 = vpop.f32.mrf.mxu3 }
 0x71a   : > { %v7852_v34 = vadd.f32 %v7851_v43, %v7803_v61 }
 0x71c   : > { %v7903_v38 = vpop.f32.mrf.mxu0 }
 0x71e   : > { %v12976_v1 = vpop.f32.mrf.mxu1 }
 0x71f   : > { %v7805_v52 = vpop.f32.mrf.mxu2 }
 0x720   : > { %v7806_v2 = vadd.f32 %v7805_v52, %v12974_v50 }
 0x721   : > { %v7856_v23 = vpop.f32.mrf.mxu3 }
 0x722   : > { %v7855_v17 = vadd.f32 %v7854_v53, %v7806_v2 }
 0x724   : > { %v7905_v60 = vpop.f32.mrf.mxu0  ;;  %v7904_v61 = vadd.f32 %v7903_v38, %v7855_v17 }
 0x726   : > { %v12978_v18 = vpop.f32.mrf.mxu1 }
 0x727   : > { %v7807_v15 = vpop.f32.mrf.mxu2 }
 0x729   : > { %7956 = vmatmul.bf16.gmra.mxu1 %v12897_v49 }
 0x72c   : > { %v7908_v50 = vpop.f32.mrf.mxu0 }
 0x72e   : > { %v12981_v4 = vpop.f32.mrf.mxu1 }
 0x734   : > { %v7910_v38 = vpop.f32.mrf.mxu0 }
 0x736   : > { %v12983_v10 = vpop.f32.mrf.mxu1 }
 0x739   : > { %7961 = vmatmul.bf16.gmra.mxu1 %v7400_v36 }
 0x73e   : > { %v12985_v26 = vpop.f32.mrf.mxu1 }
 0x746   : > { %v12987_v55 = vpop.f32.mrf.mxu1 }
 0x749   : > { %7966 = vmatmul.bf16.gmra.mxu1 %v7405_v3 }
 0x74e   : > { %v12989_v32 = vpop.f32.mrf.mxu1 }
 0x756   : > { %v12991_v57 = vpop.f32.mrf.mxu1 }
 0x759   : > { %7971 = vmatmul.bf16.gmra.mxu1 %v7410_v25 }
 0x75e   : > { %v12993_v9 = vpop.f32.mrf.mxu1 }
 0x766   : > { %v12995_v29 = vpop.f32.mrf.mxu1 }
 0x769   : > { %7976 = vmatmul.bf16.gmra.mxu1 %v12897_v49 }
 0x76e   : > { %v12998_v51 = vpop.f32.mrf.mxu1 }
 0x776   : > { %v7942_v58 = vpop.f32.mrf.mxu1 }
 0x777   : > { %v7943_v44 = vadd.f32 %v7942_v58, %v7894_v5 }
 0x779   : > { %v7982_v49 = vadd.f32 %v7943_v44, %v12875_v42  ;;  %v7810_v44 = vpop.f32.mrf.mxu2 }
 0x77b   : > { %v8002_v28 = vmul.f32 %v13003_v24, %v7982_v49 }
 0x77d   : > { %v8022_v36 = vadd.f32 %v13009_v22, %v8002_v28 }
 0x77e   : > { %v7944_v3 = vpop.f32.mrf.mxu1 }
 0x77f   : > { %v8038_v7 = vadd.f32 %v8022_v36, %v13404_v41  ;;  %v7945_v19 = vadd.f32 %v7944_v3, %v7896_v46  ;;  %v7901_v36 = vadd.f32 %v7900_v11, %v7852_v34  ;;  %v7859_v46 = vpop.f32.mrf.mxu3 }
 0x781   : > { %v8070_v42 = vmin.f32 %v8038_v7, 0.0  ;;  %v7983_v45 = vadd.f32 %v7945_v19, %v12885_v40  ;;  %vm8054_vm0 = vcmp.gt.f32.partialorder %v8038_v7, 0.0 }
 0x783   : > { %v8086_v39 = vmul.f32 1.442695, %v8070_v42  ;;  %v8003_v25 = vmul.f32 %v13003_v24, %v7983_v45  ;;  %v7812_v45 = vpop.f32.mrf.mxu2 }
 0x785   : > { %10457 = vpow2.f32 %v8086_v39  ;;  %v8023_v8 = vadd.f32 %v13009_v22, %v8003_v25 }
 0x786   : > { %v7947_v13 = vpop.f32.mrf.mxu1 }
 0x787   : > { %v8039_v5 = vadd.f32 %v8023_v8, %v13405_v0  ;;  %v7948_v58 = vadd.f32 %v7947_v13, %v7899_v62  ;;  %v7808_v8 = vadd.f32 %v7807_v15, %v12976_v1  ;;  %v13407_v0 = vld [vmem:[#allocation21_spill] sm:$0xff]  ;;  %v7811_v15 = vadd.f32 %v7810_v44, %v12978_v18 }
 0x789   : > { %v8071_v21 = vmin.f32 %v8039_v5, 0.0  ;;  %v7984_v40 = vadd.f32 %v7948_v58, %v12889_v35  ;;  %v13406_v35 = vld [vmem:[#allocation18_spill] sm:$0xff]  ;;  %vm8055_vm1 = vcmp.gt.f32.partialorder %v8039_v5, 0.0 }
 0x78b   : > { %v10458_v49 = vpop.eup %10457  ;;  %v8088_v28 = vmul.f32 1.442695, %v8071_v21  ;;  %v8004_v33 = vmul.f32 %v13003_v24, %v7984_v40  ;;  %v7857_v21 = vadd.f32 %v7856_v23, %v7808_v8  ;;  %v7815_v2 = vpop.f32.mrf.mxu2  ;;  %v13409_v8 = vld [vmem:[#allocation25_spill] sm:$0xff] }
 0x78c   : > { %v9905_v14 = vadd.f32 -1.0, %v10458_v49 }
 0x78d   : > { %10459 = vpow2.f32 %v8088_v28  ;;  %v8024_v48 = vadd.f32 %v13009_v22, %v8004_v33 }
 0x78e   : > { %v8134_v3 = vsel %vm8054_vm0, %v8038_v7, %v9905_v14  ;;  %v7949_v41 = vpop.f32.mrf.mxu1 }
 0x78f   : > { %8150 = vst [vmem:[%s13025_s13] sm:$0xff] %v8134_v3  ;;  %v8040_v43 = vadd.f32 %v8024_v48, %v13406_v35  ;;  %v7950_v19 = vadd.f32 %v7949_v41, %v7901_v36  ;;  %v7906_v48 = vadd.f32 %v7905_v60, %v7857_v21  ;;  %v13408_v3 = vld [vmem:[#allocation22_spill] sm:$0xff]  ;;  %v7860_v35 = vadd.f32 %v7859_v46, %v7811_v15 }
 0x790   : > { %v7813_v60 = vadd.f32 %v7812_v45, %v12981_v4  ;;  %v7816_v45 = vadd.f32 %v7815_v2, %v12983_v10 }
 0x791   : > { %v8072_v52 = vmin.f32 %v8040_v43, 0.0  ;;  %v7985_v42 = vadd.f32 %v7950_v19, %v12900_v31  ;;  %v7861_v31 = vpop.f32.mrf.mxu3  ;;  %vm8056_vm2 = vcmp.gt.f32.partialorder %v8040_v43, 0.0 }
 0x793   : > { %v10460_v39 = vpop.eup %10459  ;;  %v8090_v11 = vmul.f32 1.442695, %v8072_v52  ;;  %v8005_v7 = vmul.f32 %v13003_v24, %v7985_v42 }
 0x794   : > { %v9906_v25 = vadd.f32 -1.0, %v10460_v39 }
 0x795   : > { %10461 = vpow2.f32 %v8090_v11  ;;  %v8025_v62 = vadd.f32 %v13009_v22, %v8005_v7  ;;  %v7909_v11 = vadd.f32 %v7908_v50, %v7860_v35 }
 0x796   : > { %v8135_v13 = vsel %vm8055_vm1, %v8039_v5, %v9906_v25  ;;  %v7952_v53 = vpop.f32.mrf.mxu1  ;;  %v7817_v25 = vpop.f32.mrf.mxu2 }
 0x797   : > { %8151 = vst [vmem:[%s13025_s13 + $0x8] sm:$0xff] %v8135_v13  ;;  %v8041_v58 = vadd.f32 %v8025_v62, %v13407_v0  ;;  %v7953_v34 = vadd.f32 %v7952_v53, %v7904_v61  ;;  %v7862_v13 = vadd.f32 %v7861_v31, %v7813_v60 }
 0x799   : > { %v8073_v40 = vmin.f32 %v8041_v58, 0.0  ;;  %v7986_v49 = vadd.f32 %v7953_v34, %v12905_v6  ;;  %v7864_v52 = vpop.f32.mrf.mxu3  ;;  %vm8057_vm3 = vcmp.gt.f32.partialorder %v8041_v58, 0.0 }
 0x79b   : > { %v10462_v28 = vpop.eup %10461  ;;  %v8092_v33 = vmul.f32 1.442695, %v8073_v40  ;;  %v8006_v1 = vmul.f32 %v13003_v24, %v7986_v49  ;;  %v7911_v49 = vadd.f32 %v7910_v38, %v7862_v13  ;;  %v7818_v38 = vadd.f32 %v7817_v25, %v12985_v26  ;;  %v13412_v13 = vld [vmem:[#allocation13_spill] sm:$0xff] }
 0x79c   : > { %v9907_v5 = vadd.f32 -1.0, %v10462_v28 }
 0x79d   : > { %10463 = vpow2.f32 %v8092_v33  ;;  %v8026_v14 = vadd.f32 %v13009_v22, %v8006_v1  ;;  %v13410_v1 = vld [vmem:[#allocation26_spill] sm:$0xff] }
 0x79e   : > { %v8136_v36 = vsel %vm8056_vm2, %v8040_v43, %v9907_v5  ;;  %v7954_v23 = vpop.f32.mrf.mxu1  ;;  %v7913_v43 = vpop.f32.mrf.mxu0  ;;  %v7865_v5 = vadd.f32 %v7864_v52, %v7816_v45  ;;  %v13411_v52 = vld [vmem:[#allocation27_spill] sm:$0xff] }
 0x79f   : > { %8152 = vst [vmem:[%s13025_s13 + $0x10] sm:$0xff] %v8136_v36  ;;  %v8042_v41 = vadd.f32 %v8026_v14, %v13408_v3  ;;  %v7955_v6 = vadd.f32 %v7954_v23, %v7906_v48  ;;  %v7820_v14 = vpop.f32.mrf.mxu2 }
 0x7a0   : > { %v7821_v25 = vadd.f32 %v7820_v14, %v12987_v55 }
 0x7a1   : > { %v8074_v19 = vmin.f32 %v8042_v41, 0.0  ;;  %v7987_v17 = vadd.f32 %v7955_v6, %v12912_v47  ;;  %v7866_v21 = vpop.f32.mrf.mxu3  ;;  %vm8058_vm4 = vcmp.gt.f32.partialorder %v8042_v41, 0.0  ;;  %v7914_v6 = vadd.f32 %v7913_v43, %v7865_v5 }
 0x7a3   : > { %v10464_v18 = vpop.eup %10463  ;;  %v8094_v44 = vmul.f32 1.442695, %v8074_v19  ;;  %v8007_v42 = vmul.f32 %v13003_v24, %v7987_v17 }
 0x7a4   : > { %v9908_v39 = vadd.f32 -1.0, %v10464_v18 }
 0x7a5   : > { %10465 = vpow2.f32 %v8094_v44  ;;  %v8027_v7 = vadd.f32 %v13009_v22, %v8007_v42 }
 0x7a6   : > { %v8137_v46 = vsel %vm8057_vm3, %v8041_v58, %v9908_v39  ;;  %v7957_v61 = vpop.f32.mrf.mxu1  ;;  %v7915_v31 = vpop.f32.mrf.mxu0 }
 0x7a7   : > { %8153 = vst [vmem:[%s13025_s13 + $0x18] sm:$0xff] %v8137_v46  ;;  %v8043_v47 = vadd.f32 %v8027_v7, %v13409_v8  ;;  %v7958_v62 = vadd.f32 %v7957_v61, %v7909_v11  ;;  %v7822_v60 = vpop.f32.mrf.mxu2 }
 0x7a9   : > { %v8075_v53 = vmin.f32 %v8043_v47, 0.0  ;;  %v7988_v0 = vadd.f32 %v7958_v62, %v12916_v37  ;;  %vm8059_vm5 = vcmp.gt.f32.partialorder %v8043_v47, 0.0  ;;  %v7869_v35 = vpop.f32.mrf.mxu3 }
 0x7ab   : > { %v10466_v50 = vpop.eup %10465  ;;  %v8096_v34 = vmul.f32 1.442695, %v8075_v53  ;;  %v8008_v4 = vmul.f32 %v13003_v24, %v7988_v0 }
 0x7ac   : > { %v9909_v40 = vadd.f32 -1.0, %v10466_v50 }
 0x7ad   : > { %10467 = vpow2.f32 %v8096_v34  ;;  %v8028_v58 = vadd.f32 %v13009_v22, %v8008_v4 }
 0x7ae   : > { %v8138_v28 = vsel %vm8058_vm4, %v8042_v41, %v9909_v40  ;;  %v7959_v33 = vpop.f32.mrf.mxu1  ;;  %v7918_v42 = vpop.f32.mrf.mxu0 }
 0x7af   : > { %8154 = vst [vmem:[%s13025_s13 + $0x20] sm:$0xff] %v8138_v28  ;;  %v8044_v15 = vadd.f32 %v8028_v58, %v13410_v1  ;;  %v7960_v37 = vadd.f32 %v7959_v33, %v7911_v49  ;;  %v7825_v58 = vpop.f32.mrf.mxu2  ;;  %v7823_v33 = vadd.f32 %v7822_v60, %v12989_v32 }
 0x7b1   : > { %v8076_v48 = vmin.f32 %v8044_v15, 0.0  ;;  %v7989_v10 = vadd.f32 %v7960_v37, %v12926_v63  ;;  %v7867_v63 = vadd.f32 %v7866_v21, %v7818_v38  ;;  %vm8060_vm6 = vcmp.gt.f32.partialorder %v8044_v15, 0.0  ;;  %v7871_v50 = vpop.f32.mrf.mxu3  ;;  %v13413_v37 = vld [vmem:[#allocation15_spill] sm:$0xff] }
 0x7b2   : > { %v7872_v14 = vadd.f32 %v7871_v50, %v7823_v33  ;;  %v13416_v33 = vld [vmem:[#allocation20_spill] sm:$0xff] }
 0x7b3   : > { %v10468_v2 = vpop.eup %10467  ;;  %v8098_v36 = vmul.f32 1.442695, %v8076_v48  ;;  %v8009_v23 = vmul.f32 %v13003_v24, %v7989_v10  ;;  %v7916_v8 = vadd.f32 %v7915_v31, %v7867_v63 }
 0x7b4   : > { %v9910_v3 = vadd.f32 -1.0, %v10468_v2 }
 0x7b5   : > { %10469 = vpow2.f32 %v8098_v36  ;;  %v8029_v41 = vadd.f32 %v13009_v22, %v8009_v23 }
 0x7b6   : > { %v8139_v19 = vsel %vm8059_vm5, %v8043_v47, %v9910_v3  ;;  %v7962_v17 = vpop.f32.mrf.mxu1  ;;  %v7920_v55 = vpop.f32.mrf.mxu0  ;;  %v7826_v3 = vadd.f32 %v7825_v58, %v12991_v57 }
 0x7b7   : > { %8155 = vst [vmem:[%s13025_s13 + $0x28] sm:$0xff] %v8139_v19  ;;  %v8045_v18 = vadd.f32 %v8029_v41, %v13411_v52  ;;  %v7963_v44 = vadd.f32 %v7962_v17, %v7914_v6  ;;  %v7827_v19 = vpop.f32.mrf.mxu2 }
 0x7b9   : > { %v8077_v39 = vmin.f32 %v8045_v18, 0.0  ;;  %v7990_v11 = vadd.f32 %v7963_v44, %v12930_v56  ;;  %v7870_v56 = vadd.f32 %v7869_v35, %v7821_v25  ;;  %vm8061_vm7 = vcmp.gt.f32.partialorder %v8045_v18, 0.0  ;;  %v7874_v2 = vpop.f32.mrf.mxu3 }
 0x7ba   : > { %v7921_v35 = vadd.f32 %v7920_v55, %v7872_v14  ;;  %v7875_v63 = vadd.f32 %v7874_v2, %v7826_v3  ;;  %v7828_v25 = vadd.f32 %v7827_v19, %v12993_v9 }
 0x7bb   : > { %v10470_v43 = vpop.eup %10469  ;;  %v8100_v26 = vmul.f32 1.442695, %v8077_v39  ;;  %v8010_v7 = vmul.f32 %v13003_v24, %v7990_v11  ;;  %v7919_v28 = vadd.f32 %v7918_v42, %v7870_v56 }
 0x7bc   : > { %v9911_v46 = vadd.f32 -1.0, %v10470_v43 }
 0x7bd   : > { %10471 = vpow2.f32 %v8100_v26  ;;  %v8030_v61 = vadd.f32 %v13009_v22, %v8010_v7 }
 0x7be   : > { %v8140_v47 = vsel %vm8060_vm6, %v8044_v15, %v9911_v46  ;;  %v7964_v62 = vpop.f32.mrf.mxu1  ;;  %v7923_v38 = vpop.f32.mrf.mxu0 }
 0x7bf   : > { %8156 = vst [vmem:[%s13025_s13 + $0x30] sm:$0xff] %v8140_v47  ;;  %v8046_v53 = vadd.f32 %v8030_v61, %v13412_v13  ;;  %v7965_v0 = vadd.f32 %v7964_v62, %v7916_v8  ;;  %v7924_v7 = vadd.f32 %v7923_v38, %v7875_v63  ;;  %v13415_v47 = vld [vmem:[#allocation19_spill] sm:$0xff] }
 0x7c0   : > { %v13417_v38 = vld [vmem:[#allocation23_spill] sm:$0xff] }
 0x7c1   : > { %v8078_v34 = vmin.f32 %v8046_v53, 0.0  ;;  %v7991_v4 = vadd.f32 %v7965_v0, %v12940_v16  ;;  %vm8062_vm8 = vcmp.gt.f32.partialorder %v8046_v53, 0.0  ;;  %v7876_v43 = vpop.f32.mrf.mxu3 }
 0x7c2   : > { %v7877_v0 = vadd.f32 %v7876_v43, %v7828_v25 }
 0x7c3   : > { %v10472_v45 = vpop.eup %10471  ;;  %v8102_v21 = vmul.f32 1.442695, %v8078_v34  ;;  %v8011_v40 = vmul.f32 %v13003_v24, %v7991_v4 }
 0x7c4   : > { %v9912_v49 = vadd.f32 -1.0, %v10472_v45 }
 0x7c5   : > { %10473 = vpow2.f32 %v8102_v21  ;;  %v8031_v31 = vadd.f32 %v13009_v22, %v8011_v40 }
 0x7c6   : > { %v8141_v1 = vsel %vm8061_vm7, %v8045_v18, %v9912_v49  ;;  %v7967_v15 = vpop.f32.mrf.mxu1  ;;  %v13414_v18 = vld [vmem:[#allocation16_spill] sm:$0xff] }
 0x7c7   : > { %8157 = vst [vmem:[%s13025_s13 + $0x38] sm:$0xff] %v8141_v1  ;;  %v8047_v5 = vadd.f32 %v8031_v31, %v13413_v37  ;;  %v7968_v16 = vadd.f32 %v7967_v15, %v7919_v28 }
 0x7c9   : > { %v8079_v48 = vmin.f32 %v8047_v5, 0.0  ;;  %v7992_v10 = vadd.f32 %v7968_v16, %v12944_v59  ;;  %vm8063_vm9 = vcmp.gt.f32.partialorder %v8047_v5, 0.0  ;;  %v7879_v55 = vpop.f32.mrf.mxu3 }
 0x7cb   : > { %v10474_v36 = vpop.eup %10473  ;;  %v8104_v23 = vmul.f32 1.442695, %v8079_v48  ;;  %v8012_v32 = vmul.f32 %v13003_v24, %v7992_v10 }
 0x7cc   : > { %v9913_v6 = vadd.f32 -1.0, %v10474_v36 }
 0x7cd   : > { %10475 = vpow2.f32 %v8104_v23  ;;  %v8032_v41 = vadd.f32 %v13009_v22, %v8012_v32 }
 0x7ce   : > { %v8142_v17 = vsel %vm8062_vm8, %v8046_v53, %v9913_v6  ;;  %v7969_v52 = vpop.f32.mrf.mxu1  ;;  %v7830_v53 = vpop.f32.mrf.mxu2 }
 0x7cf   : > { %8158 = vst [vmem:[%s13025_s13 + $0x40] sm:$0xff] %v8142_v17  ;;  %v8048_v59 = vadd.f32 %v8032_v41, %v13414_v18  ;;  %v7970_v44 = vadd.f32 %v7969_v52, %v7921_v35  ;;  %v7831_v45 = vadd.f32 %v7830_v53, %v12995_v29 }
 0x7d1   : > { %v8080_v42 = vmin.f32 %v8048_v59, 0.0  ;;  %v7993_v39 = vadd.f32 %v7970_v44, %v12951_v20  ;;  %v7925_v20 = vpop.f32.mrf.mxu0  ;;  %vm8064_vm10 = vcmp.gt.f32.partialorder %v8048_v59, 0.0  ;;  %v7881_v32 = vpop.f32.mrf.mxu3 }
 0x7d2   : > { %v7926_v58 = vadd.f32 %v7925_v20, %v7877_v0 }
 0x7d3   : > { %v10476_v57 = vpop.eup %10475  ;;  %v8106_v11 = vmul.f32 1.442695, %v8080_v42  ;;  %v8013_v60 = vmul.f32 %v13003_v24, %v7993_v39 }
 0x7d4   : > { %v9914_v26 = vadd.f32 -1.0, %v10476_v57 }
 0x7d5   : > { %10477 = vpow2.f32 %v8106_v11  ;;  %v8033_v46 = vadd.f32 %v13009_v22, %v8013_v60  ;;  %v13418_v11 = vld [vmem:[#allocation24_spill] sm:$0xff] }
 0x7d6   : > { %v8143_v61 = vsel %vm8063_vm9, %v8047_v5, %v9914_v26  ;;  %v7972_v8 = vpop.f32.mrf.mxu1  ;;  %v7832_v29 = vpop.f32.mrf.mxu2 }
 0x7d7   : > { %8159 = vst [vmem:[%s13025_s13 + $0x48] sm:$0xff] %v8143_v61  ;;  %v8049_v62 = vadd.f32 %v8033_v46, %v13415_v47  ;;  %v7973_v13 = vadd.f32 %v7972_v8, %v7924_v7  ;;  %v7833_v36 = vadd.f32 %v7832_v29, %v12998_v51 }
 0x7d9   : > { %v8081_v56 = vmin.f32 %v8049_v62, 0.0  ;;  %v7994_v50 = vadd.f32 %v7973_v13, %v12956_v30  ;;  %v7880_v30 = vadd.f32 %v7879_v55, %v7831_v45  ;;  %v7928_v15 = vpop.f32.mrf.mxu0  ;;  %vm8065_vm11 = vcmp.gt.f32.partialorder %v8049_v62, 0.0 }
 0x7da   : > { %v7882_v35 = vadd.f32 %v7881_v32, %v7833_v36 }
 0x7db   : > { %v10478_v34 = vpop.eup %10477  ;;  %v8108_v4 = vmul.f32 1.442695, %v8081_v56  ;;  %v8014_v9 = vmul.f32 %v13003_v24, %v7994_v50  ;;  %v7929_v10 = vadd.f32 %v7928_v15, %v7880_v30 }
 0x7dc   : > { %v9915_v21 = vadd.f32 -1.0, %v10478_v34 }
 0x7dd   : > { %10479 = vpow2.f32 %v8108_v4  ;;  %v8034_v40 = vadd.f32 %v13009_v22, %v8014_v9 }
 0x7de   : > { %v8144_v49 = vsel %vm8064_vm10, %v8048_v59, %v9915_v21  ;;  %v7974_v28 = vpop.f32.mrf.mxu1 }
 0x7df   : > { %8160 = vst [vmem:[%s13025_s13 + $0x50] sm:$0xff] %v8144_v49  ;;  %v8050_v31 = vadd.f32 %v8034_v40, %v13416_v33  ;;  %v7975_v1 = vadd.f32 %v7974_v28, %v7926_v58 }
 0x7e1   : > { %v8082_v37 = vmin.f32 %v8050_v31, 0.0  ;;  %v7995_v5 = vadd.f32 %v7975_v1, %v12963_v12  ;;  %v7930_v52 = vpop.f32.mrf.mxu0  ;;  %vm8066_vm12 = vcmp.gt.f32.partialorder %v8050_v31, 0.0 }
 0x7e2   : > { %v7931_v63 = vadd.f32 %v7930_v52, %v7882_v35 }
 0x7e3   : > { %v10480_v16 = vpop.eup %10479  ;;  %v8110_v14 = vmul.f32 1.442695, %v8082_v37  ;;  %v8015_v48 = vmul.f32 %v13003_v24, %v7995_v5 }
 0x7e4   : > { %v9916_v2 = vadd.f32 -1.0, %v10480_v16 }
 0x7e5   : > { %10481 = vpow2.f32 %v8110_v14  ;;  %v8035_v23 = vadd.f32 %v13009_v22, %v8015_v48 }
 0x7e6   : > { %v8145_v3 = vsel %vm8065_vm11, %v8049_v62, %v9916_v2  ;;  %v7977_v6 = vpop.f32.mrf.mxu1  ;;  %v13419_v62 = vld [vmem:[#allocation28_spill] sm:$0xff] }
 0x7e7   : > { %8161 = vst [vmem:[%s13025_s13 + $0x58] sm:$0xff] %v8145_v3  ;;  %v8051_v41 = vadd.f32 %v8035_v23, %v13417_v38  ;;  %v7978_v12 = vadd.f32 %v7977_v6, %v7929_v10 }
 0x7e9   : > { %v8083_v19 = vmin.f32 %v8051_v41, 0.0  ;;  %v7996_v17 = vadd.f32 %v7978_v12, %v12967_v54  ;;  %vm8067_vm13 = vcmp.gt.f32.partialorder %v8051_v41, 0.0 }
 0x7eb   : > { %v10482_v18 = vpop.eup %10481  ;;  %v8112_v59 = vmul.f32 1.442695, %v8083_v19  ;;  %v8016_v51 = vmul.f32 %v13003_v24, %v7996_v17 }
 0x7ec   : > { %v9917_v44 = vadd.f32 -1.0, %v10482_v18 }
 0x7ed   : > { %10483 = vpow2.f32 %v8112_v59  ;;  %v8036_v42 = vadd.f32 %v13009_v22, %v8016_v51 }
 0x7ee   : > { %v8146_v39 = vsel %vm8066_vm12, %v8050_v31, %v9917_v44  ;;  %v7979_v57 = vpop.f32.mrf.mxu1 }
 0x7ef   : > { %8162 = vst [vmem:[%s13025_s13 + $0x60] sm:$0xff] %v8146_v39  ;;  %v8052_v60 = vadd.f32 %v8036_v42, %v13418_v11  ;;  %v7980_v43 = vadd.f32 %v7979_v57, %v7931_v63 }
 0x7f1   : > { %v8084_v54 = vmin.f32 %v8052_v60, 0.0  ;;  %v7997_v26 = vadd.f32 %v7980_v43, %v12970_v27  ;;  %vm8068_vm14 = vcmp.gt.f32.partialorder %v8052_v60, 0.0 }
 0x7f3   : > { %v10484_v7 = vpop.eup %10483  ;;  %v8114_v25 = vmul.f32 1.442695, %v8084_v54  ;;  %v8017_v46 = vmul.f32 %v13003_v24, %v7997_v26 }
 0x7f4   : > { %v9918_v61 = vadd.f32 -1.0, %v10484_v7 }
 0x7f5   : > { %10485 = vpow2.f32 %v8114_v25  ;;  %v8037_v8 = vadd.f32 %v13009_v22, %v8017_v46 }
 0x7f6   : > { %v8147_v47 = vsel %vm8067_vm13, %v8051_v41, %v9918_v61 }
 0x7f7   : > { %8163 = vst [vmem:[%s13025_s13 + $0x68] sm:$0xff] %v8147_v47  ;;  %v8053_v13 = vadd.f32 %v8037_v8, %v13419_v62 }
 0x7f9   : > { %v8085_v20 = vmin.f32 %v8053_v13, 0.0  ;;  %vm8069_vm15 = vcmp.gt.f32.partialorder %v8053_v13, 0.0 }
 0x7fb   : > { %v10486_v53 = vpop.eup %10485  ;;  %v8116_v0 = vmul.f32 1.442695, %v8085_v20 }
 0x7fc   : > { %v9919_v27 = vadd.f32 -1.0, %v10486_v53 }
 0x7fd   : > { %10487 = vpow2.f32 %v8116_v0 }
 0x7fe   : > { %v8148_v24 = vsel %vm8068_vm14, %v8052_v60, %v9919_v27 }
 0x7ff   : > { %8164 = vst [vmem:[%s13025_s13 + $0x70] sm:$0xff] %v8148_v24 }
 0x803   : > { %v10488_v22 = vpop.eup %10487 }
 0x804   : > { %v9920_v56 = vadd.f32 -1.0, %v10488_v22 }
 0x806   : > { %v8149_v50 = vsel %vm8069_vm15, %v8053_v13, %v9920_v56 }
 0x807   : > { %8165 = vst [vmem:[%s13025_s13 + $0x78] sm:$0xff] %v8149_v50 }
 0x808   : > { %10671 = shalt.err (!%p10668_p10)
}
 0x809   : > { %s10724_s14 = smov 128   ;;  %s10725_s13 = smov 8  }
 0x80a   : > { %10357 = dma.vmem_to_hbm [thread:$0]  (%p10832_p3), %s8181_s20, 2048, %s8183_s21, %s8167_s28, %s10724_s14, %s10724_s14, %s10725_s13  }
 0x80b PF: > { %s8197_s29 = sand.u32 1, %s10702_s24   ;;  %p13420_p12 = scmp.ge.s32.totalorder %s10714_s27, 2 }
 0x80c   : > { %s8198_s30 = scalar_lea.sflag [#allocation5], %s8197_s29 }
 0x80d   : > { %p10371_p13 = pnand %p13420_p12, %p10801_p6 }
 0x80f   : > { %p10372_p0 = pneg %p10371_p13 }
 0x811   : > { %10697 = dma.done.wait (%p10372_p0), %s8198_s30, 2048  }
 0x812   : > { %10699 = vsyncadd (%p10372_p0), %s8198_s30, 4294965248  ;;  %p21_p5 = scmp.ge.s32.totalorder %s10822_s22, 4   ;;  %s13421_s24 = smov %s10706_s25 }
 0x813   : > { %s13422_s25 = smov %s10710_s26  ;;  %s13423_s26 = smov %s10838_s10 }
 0x814   : > { %s13424_s27 = smov %s10822_s22  ;;  %23 = sbr.rel (!%p21_p5) target bundleno = 8 (0x8), region = 114 }
 0x819   :  { %8204 = vsyncpa [#allocation4], 1 }
 0x81a   :  { %8206 = vsyncpa [#allocation4 + $0x1], 1 }
 0x81b   :  { %8207 = vsyncpa [#allocation7], 1 }
 0x81c   :  { %8208 = vsyncpa [#allocation5], 1 }
 0x81d   :  { %8210 = vsyncpa [#allocation5 + $0x1], 1 }

</bundles_post_ra>
